<compile_context>
chip_gen: v7x
topology: tpu7x:2x2x1
jax: 0.10.0
libtpu: 0.0.40
codegen_flags: <defaults>
</compile_context>

<pallas_src>
import math

import jax
import jax.numpy as jnp
from jax.experimental import pallas as pl
from jax.experimental.pallas import tpu as pltpu


# ----------------------------- Pallas kernel -------------------------------


def _leaky_relu(h):
    # nn.LeakyReLU(0.2), computed in f32.
    return jnp.where(h >= 0, h, 0.2 * h)


def style_mlp_kernel(
    lat_ref,                      # [B, S, L]   f32  (fully resident, untransposed)
    emo_ref,                      # [B, 2]      f32
    ew1_ref, eb1_ref,             # [2, 32], [1, 32]                 f32
    ew2_ref, eb2_ref,             # [32, E], [1, E]                  f32
    w1_ref, b1_ref,               # [1, L+E, 2048] bf16, [1, 1, 2048] f32
    w2_ref, s2_ref, b2_ref,       # [1, 2048, 1024] int8, [1, 1, 1024] f32 x2
    w3_ref, s3_ref, b3_ref,       # [1, 1024, 512]  int8, [1, 1, 512]  f32 x2
    w4_ref, b4_ref,               # [1, 512, L]     bf16, [1, 1, L]    f32
    o_ref,                        # [1, B, L]   f32  (style-major output)
):
    L = lat_ref.shape[-1]
    bf16 = jnp.bfloat16

    # --- tiny emotion encoder, recomputed per style (free vs the weight DMA) ---
    e = emo_ref[...]                                                      # [B, 2]
    h = jnp.dot(e, ew1_ref[...], preferred_element_type=jnp.float32) + eb1_ref[...]
    emb = (
        jnp.dot(_leaky_relu(h), ew2_ref[...], preferred_element_type=jnp.float32)
        + eb2_ref[...]
    )                                                                     # [B, E] f32

    # Per-style latent row: dynamic sublane slice of the resident latents block
    # (removes the wrapper-side transpose / extra XLA dispatch).
    s_idx = pl.program_id(0)
    lat = lat_ref[:, pl.ds(s_idx, 1), :][:, 0, :]                         # [B, L] f32

    w1 = w1_ref[0]                                                        # [L+E, H1] bf16

    # --- layer 1: split-K form of concat([lat, emb], -1) @ w1 ---
    # L=32, E=16 so both w1 row-slices are bf16-tile aligned (multiples of 16).
    h = (
        jnp.dot(lat.astype(bf16), w1[:L, :], preferred_element_type=jnp.float32)
        + jnp.dot(emb.astype(bf16), w1[L:, :], preferred_element_type=jnp.float32)
        + b1_ref[0]
    )
    h = _leaky_relu(h)

    # --- layer 2: int8 weights, per-column scale (HBM bytes halved vs bf16) ---
    w2 = w2_ref[0].astype(bf16)                                           # int8 -> bf16 (exact)
    h = jnp.dot(h.astype(bf16), w2, preferred_element_type=jnp.float32)
    h = _leaky_relu(h * s2_ref[0] + b2_ref[0])

    # --- layer 3: int8 weights, per-column scale ---
    w3 = w3_ref[0].astype(bf16)
    h = jnp.dot(h.astype(bf16), w3, preferred_element_type=jnp.float32)
    h = _leaky_relu(h * s3_ref[0] + b3_ref[0])

    # --- layer 4: small bf16 projection back to latent_dim ---
    h = jnp.dot(h.astype(bf16), w4_ref[0], preferred_element_type=jnp.float32) + b4_ref[0]
    o_ref[0] = h.astype(o_ref.dtype)


# ------------------------------- Wrapper ------------------------------------


def _run_pallas(latents, emotions, params, *, deep_w2_buffering):
    B, S, L = latents.shape
    E = params["e_w2"].shape[1]
    D_in, H1 = params["w1"].shape[1], params["w1"].shape[2]
    H2, H3 = params["w2"].shape[2], params["w3"].shape[2]

    if deep_w2_buffering:
        # 3-deep buffering on the dominant stream hides the per-step pipeline
        # bubble on v7x (per-step DMA ~1 us there).
        w2_spec = pl.BlockSpec((1, H1, H2), lambda s: (s, 0, 0),
                               pipeline_mode=pl.Buffered(3))
    else:
        w2_spec = pl.BlockSpec((1, H1, H2), lambda s: (s, 0, 0))

    return pl.pallas_call(
        style_mlp_kernel,
        out_shape=jax.ShapeDtypeStruct((S, B, L), jnp.float32),
        grid_spec=pltpu.PrefetchScalarGridSpec(
            num_scalar_prefetch=0,
            grid=(S,),
            in_specs=[
                pl.BlockSpec((B, S, L), lambda s: (0, 0, 0)),       # latents (resident)
                pl.BlockSpec((B, 2), lambda s: (0, 0)),             # emotions (resident)
                pl.BlockSpec((2, 32), lambda s: (0, 0)),            # e_w1
                pl.BlockSpec((1, 32), lambda s: (0, 0)),            # e_b1
                pl.BlockSpec((32, E), lambda s: (0, 0)),            # e_w2
                pl.BlockSpec((1, E), lambda s: (0, 0)),             # e_b2
                pl.BlockSpec((1, D_in, H1), lambda s: (s, 0, 0)),   # w1 (bf16)
                pl.BlockSpec((1, 1, H1), lambda s: (s, 0, 0)),      # b1
                w2_spec,                                            # w2 (int8)
                pl.BlockSpec((1, 1, H2), lambda s: (s, 0, 0)),      # s2 (scale)
                pl.BlockSpec((1, 1, H2), lambda s: (s, 0, 0)),      # b2
                pl.BlockSpec((1, H2, H3), lambda s: (s, 0, 0)),     # w3 (int8)
                pl.BlockSpec((1, 1, H3), lambda s: (s, 0, 0)),      # s3 (scale)
                pl.BlockSpec((1, 1, H3), lambda s: (s, 0, 0)),      # b3
                pl.BlockSpec((1, H3, L), lambda s: (s, 0, 0)),      # w4 (bf16)
                pl.BlockSpec((1, 1, L), lambda s: (s, 0, 0)),       # b4
            ],
            out_specs=pl.BlockSpec((1, B, L), lambda s: (s, 0, 0)),
        ),
        compiler_params=pltpu.CompilerParams(
            # Styles are independent -> v7x shards the grid across its 2 TCs (3/3).
            dimension_semantics=("parallel",),
            # ~14.5 MiB peak (6 MiB w2 x3 bufs + ~3.5 MiB other streams x2 +
            # ~5 MiB dequant intermediates); keep <= 48 MiB for v7x headroom.
            vmem_limit_bytes=40 * 1024 * 1024,
        ),
    )(
        latents, emotions,
        params["e_w1"], params["e_b1"], params["e_w2"], params["e_b2"],
        params["w1"], params["b1"],
        params["w2"], params["s2"], params["b2"],
        params["w3"], params["s3"], params["b3"],
        params["w4"], params["b4"],
    )


def emo_mapping_wplus_forward(latents, emotions, params, style_major_output=False):
    """latents: [B, num_styles, latent_dim], emotions: [B, 2].

    Returns [B, num_styles, latent_dim] (matches torch.stack(dim=1)); pass
    style_major_output=True to get the kernel-native [num_styles, B, latent_dim]
    and skip the (tiny) final transpose.
    """
    try:
        out_sb = _run_pallas(latents, emotions, params, deep_w2_buffering=True)
    except Exception:
        # Fallback for Pallas versions without BlockSpec pipeline_mode support.
        out_sb = _run_pallas(latents, emotions, params, deep_w2_buffering=False)
    if style_major_output:
        return out_sb
    return jnp.transpose(out_sb, (1, 0, 2))


# ------------------------- deterministic params -----------------------------


def _quantize_per_out_channel(w):
    """Symmetric int8 quantization with a per-output-column f32 scale."""
    amax = jnp.max(jnp.abs(w), axis=-2, keepdims=True)          # [S, 1, N]
    scale = jnp.maximum(amax, 1e-8) * (1.0 / 127.0)
    q = jnp.clip(jnp.round(w / scale), -127.0, 127.0).astype(jnp.int8)
    return q, scale.astype(jnp.float32)


def init_params(key, num_styles, emotion_dim, latent_dim):
    H1, H2, H3 = 2048, 1024, 512
    D_in = latent_dim + emotion_dim
    ks = jax.random.split(key, 6)

    def lin_w(k, fan_in, fan_out, lead=()):
        scale = 1.0 / jnp.sqrt(jnp.float32(fan_in))
        return jax.random.normal(k, lead + (fan_in, fan_out), jnp.float32) * scale

    bf = jnp.bfloat16
    p = {}
    # emotion_enc: Linear(2, 32) -> LeakyReLU(0.2) -> Linear(32, emotion_dim)  (f32, tiny)
    p["e_w1"] = lin_w(ks[0], 2, 32)
    p["e_b1"] = jnp.full((1, 32), 0.01, jnp.float32)
    p["e_w2"] = lin_w(ks[1], 32, emotion_dim)
    p["e_b2"] = jnp.full((1, emotion_dim), 0.01, jnp.float32)
    # per-style MLPs (D_in -> 2048 -> 1024 -> 512 -> latent_dim).
    # w1/w4 small -> bf16; w2/w3 dominate HBM traffic -> int8 + per-column scales.
    p["w1"] = lin_w(ks[2], D_in, H1, (num_styles,)).astype(bf)
    p["b1"] = jnp.full((num_styles, 1, H1), 0.01, jnp.float32)
    p["w2"], p["s2"] = _quantize_per_out_channel(lin_w(ks[3], H1, H2, (num_styles,)))
    p["b2"] = jnp.full((num_styles, 1, H2), 0.01, jnp.float32)
    p["w3"], p["s3"] = _quantize_per_out_channel(lin_w(ks[4], H2, H3, (num_styles,)))
    p["b3"] = jnp.full((num_styles, 1, H3), 0.01, jnp.float32)
    p["w4"] = lin_w(ks[5], H3, latent_dim, (num_styles,)).astype(bf)
    p["b4"] = jnp.full((num_styles, 1, latent_dim), 0.01, jnp.float32)
    return p


# ---------------------------- plain-JAX reference ----------------------------


def reference_forward(latents, emotions, params):
    """Same module semantics with matching bf16/int8-dequant numerics."""
    def leaky(h):
        return jnp.where(h >= 0, h, 0.2 * h)

    bf = jnp.bfloat16
    emb = (
        leaky(emotions @ params["e_w1"] + params["e_b1"]) @ params["e_w2"]
        + params["e_b2"]
    )
    outs = []
    for i in range(latents.shape[1]):
        x = jnp.concatenate([latents[:, i, :], emb], axis=1).astype(bf)
        h = leaky(
            jnp.dot(x, params["w1"][i], preferred_element_type=jnp.float32)
            + params["b1"][i]
        )
        h = jnp.dot(h.astype(bf), params["w2"][i].astype(bf),
                    preferred_element_type=jnp.float32)
        h = leaky(h * params["s2"][i] + params["b2"][i])
        h = jnp.dot(h.astype(bf), params["w3"][i].astype(bf),
                    preferred_element_type=jnp.float32)
        h = leaky(h * params["s3"][i] + params["b3"][i])
        outs.append(
            jnp.dot(h.astype(bf), params["w4"][i], preferred_element_type=jnp.float32)
            + params["b4"][i]
        )
    return jnp.stack(outs, axis=1)


# --------------------------------- main --------------------------------------


if __name__ == "__main__":
    size = 16                                   # -> num_styles = log2(16)*2 - 2 = 6
    emotion_dim = 16
    latent_dim = 32
    batch = 2
    num_styles = int(math.log(size, 2)) * 2 - 2

    key = jax.random.PRNGKey(0)
    k_lat, k_emo, k_par = jax.random.split(key, 3)
    latents = jax.random.normal(k_lat, (batch, num_styles, latent_dim), jnp.float32)
    emotions = jax.random.normal(k_emo, (batch, 2), jnp.float32)
    params = init_params(k_par, num_styles, emotion_dim, latent_dim)

    out = jax.block_until_ready(emo_mapping_wplus_forward(latents, emotions, params))
    ref = jax.block_until_ready(reference_forward(latents, emotions, params))

    assert out.shape == (batch, num_styles, latent_dim), out.shape
    max_err = float(jnp.max(jnp.abs(out - ref)))
    # bf16 activations + int8 weights on both sides -> matched-numerics comparison.
    # (Accuracy vs the full-f32 model is a deliberate quantization trade-off per review.)
    assert max_err < 2e-2, max_err
    print("KERNEL_OK")
</pallas_src>

<mosaic_0001>
module attributes {stable_mosaic.version = 11 : i64} {
  func.func @style_mlp_kernel(%arg0: i32, %arg1: memref<2x6x32xf32, #tpu.memory_space<vmem>>, %arg2: memref<2x2xf32, #tpu.memory_space<vmem>>, %arg3: memref<2x32xf32, #tpu.memory_space<vmem>>, %arg4: memref<1x32xf32, #tpu.memory_space<vmem>>, %arg5: memref<32x16xf32, #tpu.memory_space<vmem>>, %arg6: memref<1x16xf32, #tpu.memory_space<vmem>>, %arg7: memref<1x48x2048xbf16, #tpu.memory_space<vmem>>, %arg8: memref<1x1x2048xf32, #tpu.memory_space<vmem>>, %arg9: memref<1x2048x1024xi8, #tpu.memory_space<vmem>>, %arg10: memref<1x1x1024xf32, #tpu.memory_space<vmem>>, %arg11: memref<1x1x1024xf32, #tpu.memory_space<vmem>>, %arg12: memref<1x1024x512xi8, #tpu.memory_space<vmem>>, %arg13: memref<1x1x512xf32, #tpu.memory_space<vmem>>, %arg14: memref<1x1x512xf32, #tpu.memory_space<vmem>>, %arg15: memref<1x512x32xbf16, #tpu.memory_space<vmem>>, %arg16: memref<1x1x32xf32, #tpu.memory_space<vmem>>, %arg17: memref<1x2x32xf32, #tpu.memory_space<vmem>>) attributes {dimension_semantics = [#tpu.dimension_semantics<parallel>], iteration_bounds = array<i64: 6>, scalar_prefetch = 0 : i64, scratch_operands = 0 : i64, tpu.core_type = #tpu.core_type<tc>, window_params = [{pipeline_mode = #tpu.pipeline_mode<synchronous>, transform_indices = @transform_0, window_bounds = array<i64: 2, 6, 32>}, {pipeline_mode = #tpu.pipeline_mode<synchronous>, transform_indices = @transform_1, window_bounds = array<i64: 2, 2>}, {pipeline_mode = #tpu.pipeline_mode<synchronous>, transform_indices = @transform_2, window_bounds = array<i64: 2, 32>}, {pipeline_mode = #tpu.pipeline_mode<synchronous>, transform_indices = @transform_3, window_bounds = array<i64: 1, 32>}, {pipeline_mode = #tpu.pipeline_mode<synchronous>, transform_indices = @transform_4, window_bounds = array<i64: 32, 16>}, {pipeline_mode = #tpu.pipeline_mode<synchronous>, transform_indices = @transform_5, window_bounds = array<i64: 1, 16>}, {transform_indices = @transform_6, window_bounds = array<i64: 1, 48, 2048>}, {transform_indices = @transform_7, window_bounds = array<i64: 1, 1, 2048>}, {transform_indices = @transform_8, window_bounds = array<i64: 1, 2048, 1024>}, {transform_indices = @transform_9, window_bounds = array<i64: 1, 1, 1024>}, {transform_indices = @transform_10, window_bounds = array<i64: 1, 1, 1024>}, {transform_indices = @transform_11, window_bounds = array<i64: 1, 1024, 512>}, {transform_indices = @transform_12, window_bounds = array<i64: 1, 1, 512>}, {transform_indices = @transform_13, window_bounds = array<i64: 1, 1, 512>}, {transform_indices = @transform_14, window_bounds = array<i64: 1, 512, 32>}, {transform_indices = @transform_15, window_bounds = array<i64: 1, 1, 32>}, {transform_indices = @transform_16, window_bounds = array<i64: 1, 2, 32>}]} {
    %c0 = arith.constant 0 : index
    %c0_0 = arith.constant 0 : index
    %0 = vector.load %arg2[%c0, %c0_0] : memref<2x2xf32, #tpu.memory_space<vmem>>, vector<2x2xf32>
    %c0_1 = arith.constant 0 : index
    %c0_2 = arith.constant 0 : index
    %1 = vector.load %arg3[%c0_1, %c0_2] : memref<2x32xf32, #tpu.memory_space<vmem>>, vector<2x32xf32>
    %cst = arith.constant dense<0.000000e+00> : vector<2x32xf32>
    %2 = tpu.matmul %0, %1, %cst {dimension_numbers = #tpu.dot_dimension_numbers<[1], [0], [0], [1], [0, 0, 1, 1], [], []>} : vector<2x2xf32>, vector<2x32xf32>, vector<2x32xf32> -> vector<2x32xf32>
    %c0_3 = arith.constant 0 : index
    %c0_4 = arith.constant 0 : index
    %3 = vector.load %arg4[%c0_3, %c0_4] : memref<1x32xf32, #tpu.memory_space<vmem>>, vector<1x32xf32>
    %4 = vector.broadcast %3 : vector<1x32xf32> to vector<2x32xf32>
    %5 = arith.addf %2, %4 : vector<2x32xf32>
    %cst_5 = arith.constant 0.000000e+00 : f32
    %6 = vector.broadcast %cst_5 : f32 to vector<2x32xf32>
    %7 = arith.cmpf oge, %5, %6 : vector<2x32xf32>
    %cst_6 = arith.constant 2.000000e-01 : f32
    %8 = vector.broadcast %cst_6 : f32 to vector<2x32xf32>
    %9 = arith.mulf %8, %5 : vector<2x32xf32>
    %10 = arith.select %7, %5, %9 : vector<2x32xi1>, vector<2x32xf32>
    %c0_7 = arith.constant 0 : index
    %c0_8 = arith.constant 0 : index
    %11 = vector.load %arg5[%c0_7, %c0_8] : memref<32x16xf32, #tpu.memory_space<vmem>>, vector<32x16xf32>
    %cst_9 = arith.constant dense<0.000000e+00> : vector<2x16xf32>
    %12 = tpu.matmul %10, %11, %cst_9 {dimension_numbers = #tpu.dot_dimension_numbers<[1], [0], [0], [1], [0, 0, 1, 1], [], []>} : vector<2x32xf32>, vector<32x16xf32>, vector<2x16xf32> -> vector<2x16xf32>
    %c0_10 = arith.constant 0 : index
    %c0_11 = arith.constant 0 : index
    %13 = vector.load %arg6[%c0_10, %c0_11] : memref<1x16xf32, #tpu.memory_space<vmem>>, vector<1x16xf32>
    %14 = vector.broadcast %13 : vector<1x16xf32> to vector<2x16xf32>
    %15 = arith.addf %12, %14 : vector<2x16xf32>
    %c0_12 = arith.constant 0 : index
    %16 = arith.index_cast %arg0 : i32 to index
    %c0_13 = arith.constant 0 : index
    %17 = vector.load %arg1[%c0_12, %16, %c0_13] : memref<2x6x32xf32, #tpu.memory_space<vmem>>, vector<2x1x32xf32>
    %18 = vector.shape_cast %17 : vector<2x1x32xf32> to vector<2x32xf32>
    %c0_14 = arith.constant 0 : index
    %c0_15 = arith.constant 0 : index
    %c0_16 = arith.constant 0 : index
    %19 = vector.load %arg7[%c0_14, %c0_15, %c0_16] : memref<1x48x2048xbf16, #tpu.memory_space<vmem>>, vector<1x48x2048xbf16>
    %20 = vector.shape_cast %19 : vector<1x48x2048xbf16> to vector<48x2048xbf16>
    %21 = arith.truncf %18 : vector<2x32xf32> to vector<2x32xbf16>
    %22 = vector.extract_strided_slice %20 {offsets = [0, 0], sizes = [32, 2048], strides = [1, 1]} : vector<48x2048xbf16> to vector<32x2048xbf16>
    %cst_17 = arith.constant dense<0.000000e+00> : vector<2x2048xf32>
    %23 = tpu.matmul %21, %22, %cst_17 {dimension_numbers = #tpu.dot_dimension_numbers<[1], [0], [0], [1], [0, 0, 1, 1], [], []>} : vector<2x32xbf16>, vector<32x2048xbf16>, vector<2x2048xf32> -> vector<2x2048xf32>
    %24 = arith.truncf %15 : vector<2x16xf32> to vector<2x16xbf16>
    %25 = vector.extract_strided_slice %20 {offsets = [32, 0], sizes = [16, 2048], strides = [1, 1]} : vector<48x2048xbf16> to vector<16x2048xbf16>
    %cst_18 = arith.constant dense<0.000000e+00> : vector<2x2048xf32>
    %26 = tpu.matmul %24, %25, %cst_18 {dimension_numbers = #tpu.dot_dimension_numbers<[1], [0], [0], [1], [0, 0, 1, 1], [], []>} : vector<2x16xbf16>, vector<16x2048xbf16>, vector<2x2048xf32> -> vector<2x2048xf32>
    %27 = arith.addf %23, %26 : vector<2x2048xf32>
    %c0_19 = arith.constant 0 : index
    %c0_20 = arith.constant 0 : index
    %c0_21 = arith.constant 0 : index
    %28 = vector.load %arg8[%c0_19, %c0_20, %c0_21] : memref<1x1x2048xf32, #tpu.memory_space<vmem>>, vector<1x1x2048xf32>
    %29 = vector.shape_cast %28 : vector<1x1x2048xf32> to vector<1x2048xf32>
    %30 = vector.broadcast %29 : vector<1x2048xf32> to vector<2x2048xf32>
    %31 = arith.addf %27, %30 : vector<2x2048xf32>
    %cst_22 = arith.constant 0.000000e+00 : f32
    %32 = vector.broadcast %cst_22 : f32 to vector<2x2048xf32>
    %33 = arith.cmpf oge, %31, %32 : vector<2x2048xf32>
    %cst_23 = arith.constant 2.000000e-01 : f32
    %34 = vector.broadcast %cst_23 : f32 to vector<2x2048xf32>
    %35 = arith.mulf %34, %31 : vector<2x2048xf32>
    %36 = arith.select %33, %31, %35 : vector<2x2048xi1>, vector<2x2048xf32>
    %c0_24 = arith.constant 0 : index
    %c0_25 = arith.constant 0 : index
    %c0_26 = arith.constant 0 : index
    %37 = vector.load %arg9[%c0_24, %c0_25, %c0_26] : memref<1x2048x1024xi8, #tpu.memory_space<vmem>>, vector<1x2048x1024xi8>
    %38 = vector.shape_cast %37 : vector<1x2048x1024xi8> to vector<2048x1024xi8>
    %39 = arith.sitofp %38 : vector<2048x1024xi8> to vector<2048x1024xbf16>
    %40 = arith.truncf %36 : vector<2x2048xf32> to vector<2x2048xbf16>
    %cst_27 = arith.constant dense<0.000000e+00> : vector<2x1024xf32>
    %41 = tpu.matmul %40, %39, %cst_27 {dimension_numbers = #tpu.dot_dimension_numbers<[1], [0], [0], [1], [0, 0, 1, 1], [], []>} : vector<2x2048xbf16>, vector<2048x1024xbf16>, vector<2x1024xf32> -> vector<2x1024xf32>
    %c0_28 = arith.constant 0 : index
    %c0_29 = arith.constant 0 : index
    %c0_30 = arith.constant 0 : index
    %42 = vector.load %arg10[%c0_28, %c0_29, %c0_30] : memref<1x1x1024xf32, #tpu.memory_space<vmem>>, vector<1x1x1024xf32>
    %43 = vector.shape_cast %42 : vector<1x1x1024xf32> to vector<1x1024xf32>
    %44 = vector.broadcast %43 : vector<1x1024xf32> to vector<2x1024xf32>
    %45 = arith.mulf %41, %44 : vector<2x1024xf32>
    %c0_31 = arith.constant 0 : index
    %c0_32 = arith.constant 0 : index
    %c0_33 = arith.constant 0 : index
    %46 = vector.load %arg11[%c0_31, %c0_32, %c0_33] : memref<1x1x1024xf32, #tpu.memory_space<vmem>>, vector<1x1x1024xf32>
    %47 = vector.shape_cast %46 : vector<1x1x1024xf32> to vector<1x1024xf32>
    %48 = vector.broadcast %47 : vector<1x1024xf32> to vector<2x1024xf32>
    %49 = arith.addf %45, %48 : vector<2x1024xf32>
    %cst_34 = arith.constant 0.000000e+00 : f32
    %50 = vector.broadcast %cst_34 : f32 to vector<2x1024xf32>
    %51 = arith.cmpf oge, %49, %50 : vector<2x1024xf32>
    %cst_35 = arith.constant 2.000000e-01 : f32
    %52 = vector.broadcast %cst_35 : f32 to vector<2x1024xf32>
    %53 = arith.mulf %52, %49 : vector<2x1024xf32>
    %54 = arith.select %51, %49, %53 : vector<2x1024xi1>, vector<2x1024xf32>
    %c0_36 = arith.constant 0 : index
    %c0_37 = arith.constant 0 : index
    %c0_38 = arith.constant 0 : index
    %55 = vector.load %arg12[%c0_36, %c0_37, %c0_38] : memref<1x1024x512xi8, #tpu.memory_space<vmem>>, vector<1x1024x512xi8>
    %56 = vector.shape_cast %55 : vector<1x1024x512xi8> to vector<1024x512xi8>
    %57 = arith.sitofp %56 : vector<1024x512xi8> to vector<1024x512xbf16>
    %58 = arith.truncf %54 : vector<2x1024xf32> to vector<2x1024xbf16>
    %cst_39 = arith.constant dense<0.000000e+00> : vector<2x512xf32>
    %59 = tpu.matmul %58, %57, %cst_39 {dimension_numbers = #tpu.dot_dimension_numbers<[1], [0], [0], [1], [0, 0, 1, 1], [], []>} : vector<2x1024xbf16>, vector<1024x512xbf16>, vector<2x512xf32> -> vector<2x512xf32>
    %c0_40 = arith.constant 0 : index
    %c0_41 = arith.constant 0 : index
    %c0_42 = arith.constant 0 : index
    %60 = vector.load %arg13[%c0_40, %c0_41, %c0_42] : memref<1x1x512xf32, #tpu.memory_space<vmem>>, vector<1x1x512xf32>
    %61 = vector.shape_cast %60 : vector<1x1x512xf32> to vector<1x512xf32>
    %62 = vector.broadcast %61 : vector<1x512xf32> to vector<2x512xf32>
    %63 = arith.mulf %59, %62 : vector<2x512xf32>
    %c0_43 = arith.constant 0 : index
    %c0_44 = arith.constant 0 : index
    %c0_45 = arith.constant 0 : index
    %64 = vector.load %arg14[%c0_43, %c0_44, %c0_45] : memref<1x1x512xf32, #tpu.memory_space<vmem>>, vector<1x1x512xf32>
    %65 = vector.shape_cast %64 : vector<1x1x512xf32> to vector<1x512xf32>
    %66 = vector.broadcast %65 : vector<1x512xf32> to vector<2x512xf32>
    %67 = arith.addf %63, %66 : vector<2x512xf32>
    %cst_46 = arith.constant 0.000000e+00 : f32
    %68 = vector.broadcast %cst_46 : f32 to vector<2x512xf32>
    %69 = arith.cmpf oge, %67, %68 : vector<2x512xf32>
    %cst_47 = arith.constant 2.000000e-01 : f32
    %70 = vector.broadcast %cst_47 : f32 to vector<2x512xf32>
    %71 = arith.mulf %70, %67 : vector<2x512xf32>
    %72 = arith.select %69, %67, %71 : vector<2x512xi1>, vector<2x512xf32>
    %73 = arith.truncf %72 : vector<2x512xf32> to vector<2x512xbf16>
    %c0_48 = arith.constant 0 : index
    %c0_49 = arith.constant 0 : index
    %c0_50 = arith.constant 0 : index
    %74 = vector.load %arg15[%c0_48, %c0_49, %c0_50] : memref<1x512x32xbf16, #tpu.memory_space<vmem>>, vector<1x512x32xbf16>
    %75 = vector.shape_cast %74 : vector<1x512x32xbf16> to vector<512x32xbf16>
    %cst_51 = arith.constant dense<0.000000e+00> : vector<2x32xf32>
    %76 = tpu.matmul %73, %75, %cst_51 {dimension_numbers = #tpu.dot_dimension_numbers<[1], [0], [0], [1], [0, 0, 1, 1], [], []>} : vector<2x512xbf16>, vector<512x32xbf16>, vector<2x32xf32> -> vector<2x32xf32>
    %c0_52 = arith.constant 0 : index
    %c0_53 = arith.constant 0 : index
    %c0_54 = arith.constant 0 : index
    %77 = vector.load %arg16[%c0_52, %c0_53, %c0_54] : memref<1x1x32xf32, #tpu.memory_space<vmem>>, vector<1x1x32xf32>
    %78 = vector.shape_cast %77 : vector<1x1x32xf32> to vector<1x32xf32>
    %79 = vector.broadcast %78 : vector<1x32xf32> to vector<2x32xf32>
    %80 = arith.addf %76, %79 : vector<2x32xf32>
    %c0_55 = arith.constant 0 : index
    %c0_56 = arith.constant 0 : index
    %c0_57 = arith.constant 0 : index
    %81 = vector.load %arg17[%c0_55, %c0_56, %c0_57] : memref<1x2x32xf32, #tpu.memory_space<vmem>>, vector<1x2x32xf32>
    %82 = vector.shape_cast %81 : vector<1x2x32xf32> to vector<2x32xf32>
    %83 = vector.shape_cast %80 : vector<2x32xf32> to vector<1x2x32xf32>
    tpu.vector_store %arg17[%c0_55, %c0_56, %c0_57], %83 {strides = array<i32>} : memref<1x2x32xf32, #tpu.memory_space<vmem>>, vector<1x2x32xf32>,
    return
  }
  func.func @transform_0(%arg0: i32) -> (i32, i32, i32) {
    %c0_i32 = arith.constant 0 : i32
    %c0_i32_0 = arith.constant 0 : i32
    %c0_i32_1 = arith.constant 0 : i32
    %c0_i32_2 = arith.constant 0 : i32
    return %c0_i32, %c0_i32_0, %c0_i32_1 : i32, i32, i32
  }
  func.func @transform_1(%arg0: i32) -> (i32, i32) {
    %c0_i32 = arith.constant 0 : i32
    %c0_i32_0 = arith.constant 0 : i32
    %c0_i32_1 = arith.constant 0 : i32
    return %c0_i32, %c0_i32_0 : i32, i32
  }
  func.func @transform_2(%arg0: i32) -> (i32, i32) {
    %c0_i32 = arith.constant 0 : i32
    %c0_i32_0 = arith.constant 0 : i32
    %c0_i32_1 = arith.constant 0 : i32
    return %c0_i32, %c0_i32_0 : i32, i32
  }
  func.func @transform_3(%arg0: i32) -> (i32, i32) {
    %c0_i32 = arith.constant 0 : i32
    %c0_i32_0 = arith.constant 0 : i32
    %c0_i32_1 = arith.constant 0 : i32
    return %c0_i32, %c0_i32_0 : i32, i32
  }
  func.func @transform_4(%arg0: i32) -> (i32, i32) {
    %c0_i32 = arith.constant 0 : i32
    %c0_i32_0 = arith.constant 0 : i32
    %c0_i32_1 = arith.constant 0 : i32
    return %c0_i32, %c0_i32_0 : i32, i32
  }
  func.func @transform_5(%arg0: i32) -> (i32, i32) {
    %c0_i32 = arith.constant 0 : i32
    %c0_i32_0 = arith.constant 0 : i32
    %c0_i32_1 = arith.constant 0 : i32
    return %c0_i32, %c0_i32_0 : i32, i32
  }
  func.func @transform_6(%arg0: i32) -> (i32, i32, i32) {
    %c0_i32 = arith.constant 0 : i32
    %c0_i32_0 = arith.constant 0 : i32
    %c0_i32_1 = arith.constant 0 : i32
    return %arg0, %c0_i32, %c0_i32_0 : i32, i32, i32
  }
  func.func @transform_7(%arg0: i32) -> (i32, i32, i32) {
    %c0_i32 = arith.constant 0 : i32
    %c0_i32_0 = arith.constant 0 : i32
    %c0_i32_1 = arith.constant 0 : i32
    return %arg0, %c0_i32, %c0_i32_0 : i32, i32, i32
  }
  func.func @transform_8(%arg0: i32) -> (i32, i32, i32) {
    %c0_i32 = arith.constant 0 : i32
    %c0_i32_0 = arith.constant 0 : i32
    %c0_i32_1 = arith.constant 0 : i32
    return %arg0, %c0_i32, %c0_i32_0 : i32, i32, i32
  }
  func.func @transform_9(%arg0: i32) -> (i32, i32, i32) {
    %c0_i32 = arith.constant 0 : i32
    %c0_i32_0 = arith.constant 0 : i32
    %c0_i32_1 = arith.constant 0 : i32
    return %arg0, %c0_i32, %c0_i32_0 : i32, i32, i32
  }
  func.func @transform_10(%arg0: i32) -> (i32, i32, i32) {
    %c0_i32 = arith.constant 0 : i32
    %c0_i32_0 = arith.constant 0 : i32
    %c0_i32_1 = arith.constant 0 : i32
    return %arg0, %c0_i32, %c0_i32_0 : i32, i32, i32
  }
  func.func @transform_11(%arg0: i32) -> (i32, i32, i32) {
    %c0_i32 = arith.constant 0 : i32
    %c0_i32_0 = arith.constant 0 : i32
    %c0_i32_1 = arith.constant 0 : i32
    return %arg0, %c0_i32, %c0_i32_0 : i32, i32, i32
  }
  func.func @transform_12(%arg0: i32) -> (i32, i32, i32) {
    %c0_i32 = arith.constant 0 : i32
    %c0_i32_0 = arith.constant 0 : i32
    %c0_i32_1 = arith.constant 0 : i32
    return %arg0, %c0_i32, %c0_i32_0 : i32, i32, i32
  }
  func.func @transform_13(%arg0: i32) -> (i32, i32, i32) {
    %c0_i32 = arith.constant 0 : i32
    %c0_i32_0 = arith.constant 0 : i32
    %c0_i32_1 = arith.constant 0 : i32
    return %arg0, %c0_i32, %c0_i32_0 : i32, i32, i32
  }
  func.func @transform_14(%arg0: i32) -> (i32, i32, i32) {
    %c0_i32 = arith.constant 0 : i32
    %c0_i32_0 = arith.constant 0 : i32
    %c0_i32_1 = arith.constant 0 : i32
    return %arg0, %c0_i32, %c0_i32_0 : i32, i32, i32
  }
  func.func @transform_15(%arg0: i32) -> (i32, i32, i32) {
    %c0_i32 = arith.constant 0 : i32
    %c0_i32_0 = arith.constant 0 : i32
    %c0_i32_1 = arith.constant 0 : i32
    return %arg0, %c0_i32, %c0_i32_0 : i32, i32, i32
  }
  func.func @transform_16(%arg0: i32) -> (i32, i32, i32) {
    %c0_i32 = arith.constant 0 : i32
    %c0_i32_0 = arith.constant 0 : i32
    %c0_i32_1 = arith.constant 0 : i32
    return %arg0, %c0_i32, %c0_i32_0 : i32, i32, i32
  }
}

</mosaic_0001>

<bundles_post_ra>
// kernel: tpu_custom_call.1
= control target key start
LH: loop header
LB: loop body
LE: loop exit
PB: predicated region body
PF: predicated region fallthrough
CT: control target
= control target key end

     0   :  { %s9368_s0 = inlined_call_operand.vmem [shape: f32[2,6,32], index: 0, kind: input, shape index: {}]   ;;  %s9369_s1 = inlined_call_operand.hbm [shape: f32[2,2], index: 1, kind: input, shape index: {}]   ;;  %s9370_s2 = inlined_call_operand.hbm [shape: f32[2,32], index: 2, kind: input, shape index: {}]   ;;  %s9371_s3 = inlined_call_operand.hbm [shape: f32[1,32], index: 3, kind: input, shape index: {}]   ;;  %s9372_s4 = inlined_call_operand.vmem [shape: f32[32,16], index: 4, kind: input, shape index: {}]   ;;  %s9373_s5 = inlined_call_operand.hbm [shape: f32[1,16], index: 5, kind: input, shape index: {}]   ;;  %s9374_s6 = inlined_call_operand.hbm [shape: bf16[6,48,2048], index: 6, kind: input, shape index: {}]   ;;  %s9375_s7 = inlined_call_operand.hbm [shape: f32[6,1,2048], index: 7, kind: input, shape index: {}]   ;;  %s9376_s8 = inlined_call_operand.hbm [shape: s8[6,2048,1024], index: 8, kind: input, shape index: {}]   ;;  %s9377_s9 = inlined_call_operand.hbm [shape: f32[6,1,1024], index: 9, kind: input, shape index: {}]   ;;  %s9378_s10 = inlined_call_operand.hbm [shape: f32[6,1,1024], index: 10, kind: input, shape index: {}]   ;;  %s9379_s11 = inlined_call_operand.hbm [shape: s8[6,1024,512], index: 11, kind: input, shape index: {}]   ;;  %s9380_s12 = inlined_call_operand.hbm [shape: f32[6,1,512], index: 12, kind: input, shape index: {}]   ;;  %s9381_s13 = inlined_call_operand.hbm [shape: f32[6,1,512], index: 13, kind: input, shape index: {}]   ;;  %s9382_s14 = inlined_call_operand.vmem [shape: bf16[6,512,32], index: 14, kind: input, shape index: {}]   ;;  %s9383_s15 = inlined_call_operand.hbm [shape: f32[6,1,32], index: 15, kind: input, shape index: {}]   ;;  %s9384_s16 = inlined_call_operand.hbm [shape: f32[6,2,32], index: 16, kind: output, shape index: {}]  }
   0x1   :  { %9416 = sst [smem:[#allocation35_spill]] %s9368_s0 }
   0x2   :  { %9417 = sst [smem:[#allocation36_spill]] %s9369_s1 }
   0x3   :  { %9418 = sst [smem:[#allocation37_spill]] %s9372_s4 }
   0x4   :  { %9419 = sst [smem:[#allocation38_spill]] %s9374_s6 }
   0x5   :  { %9420 = sst [smem:[#allocation39_spill]] %s9382_s14 }
   0x6   :  { %9421 = sst [smem:[#allocation40_spill]] %s9384_s16 }
   0x7   :  { %21 = vsyncpa [#allocation3], 0 }
   0x8   :  { %22 = vsyncpa [#allocation6], 0 }
   0x9   :  { %23 = vsyncpa [#allocation9], 0 }
   0xa   :  { %24 = vsyncpa [#allocation4], 0 }
   0xb   :  { %26 = vsyncpa [#allocation4 + $0x1], 0  ;;  %s7699_s21 = smov 0   ;;  %s7701_s22 = smov 0  }
   0xc   :  { %s7703_s23 = smov 0   ;;  %s7705_s24 = smov 0  }
   0xd LB: > { %9422 = sst [smem:[#allocation25_spill]] %s7578_s21  ;;  %s7720_s25 = sadd.s32 4294967295, %s7590_s24   ;;  %s7590_s24 = sphi %s7705_s24, %s9477_s24   ;;  %s7586_s23 = sphi %s7703_s23, %s9480_s23   ;;  %s7582_s22 = sphi %s7701_s22, %s9479_s22   ;;  %s7578_s21 = sphi %s7699_s21, %s9478_s21  }
   0xe   : > { %9423 = sst [smem:[#allocation26_spill]] %s7582_s22  ;;  %s6590_s26 = sadd.s32 4294967294, %s7590_s24  }
   0xf   : > { %9424 = sst [smem:[#allocation27_spill]] %s7586_s23  ;;  %s7724_s27 = sadd.s32 1, %s7590_s24  }
  0x10   : > { %9425 = sst [smem:[#allocation28_spill]] %s7720_s25  ;;  %s165_s28 = sadd.s32 1, %s7586_s23 }
  0x11   : > { %9426 = sst [smem:[#allocation29_spill]] %s7724_s27  ;;  %s162_s29 = ssub.s32 %s7590_s24, %s7724_s27 }
  0x12   : > { %p172_p0 = scmp.ne.s32.totalorder %s7586_s23, %s7582_s22  ;;  %p163_p1 = scmp.eq.s32.totalorder %s162_s29, 0 }
  0x13   : > { %p173_p2 = scmp.eq.s32.totalorder %s7590_s24, 0  ;;  %p178_p3 = scmp.ne.s32.totalorder %s7582_s22, %s7578_s21 }
  0x14   : > { %p9394_p4 = scmp.eq.s32.totalorder %s7720_s25, 0  ;;  %p436_p7 = scmp.eq.s32.totalorder %s7720_s25, 5 }
  0x15   : > { %s7736_s30 = scalar_select %p163_p1, %s7586_s23, %s165_s28  }
  0x16   : > { %p7738_p5 = por %p173_p2, %p172_p0  ;;  %p7744_p6 = por %p9394_p4, %p178_p3 }
  0x17   : > { %9427 = sst [smem:[#allocation30_spill]] %s7736_s30  ;;  %p442_p8 = scmp.eq.s32.totalorder %s6590_s26, 5 }
  0x18   : > { %s9429_s17 = scalar_select %p7744_p6, 1, 0 }
  0x19   : > { %p6591_p9 = scmp.ge.s32.totalorder %s7590_s24, 1  ;;  %p449_p10 = scmp.lt.s32.totalorder %s7590_s24, 7 }
  0x1a   : > { %9430 = sst [smem:[#allocation31_spill]] %s9429_s17  ;;  %p7751_p11 = por %p436_p7, %p172_p0 }
  0x1b   : > { %p7755_p12 = por %p442_p8, %p178_p3  ;;  %p7759_p13 = pnand %p6591_p9, %p449_p10 }
  0x1c   : > { %s9431_s18 = scalar_select %p7751_p11, 1, 0 }
  0x1d   : > { %s9433_s19 = scalar_select %p7755_p12, 1, 0 }
  0x1e   : > { %9432 = sst [smem:[#allocation32_spill]] %s9431_s18  ;;  %p6997_p1 = pneg %p7759_p13 }
  0x1f   : > { %9434 = sst [smem:[#allocation33_spill]] %s9433_s19  ;;  %s7592_s28 = smov [#allocation2]  }
  0x20   : > { %s9435_s20 = scalar_select %p7759_p13, 1, 0 }
  0x21   : > { %s465_s29 = sshll.u32 %s7592_s28, 4  ;;  %p7046_p2 = scmp.lt.s32.totalorder %s7590_s24, 6  ;;  %s466_s29 = int_to_ptr.vmem [resolvable:$true] %s465_s29 }
  0x22   : > { %9436 = sst [smem:[#allocation34_spill]] %s9435_s20  ;;  %p7768_p0 = pnand %p6997_p1, %p9394_p4 }
  0x23   : > { %s512_s30 = sand.u32 1, %s7590_s24   ;;  %p7775_p3 = pnand %p7046_p2, %p7738_p5 }
  0x24   : > { %s9437_s26 = scalar_select %p7768_p0, 1, 0 }
  0x25   : > { %s9438_s27 = scalar_select %p7775_p3, 1, 0 }
  0x26   : > { %s7780_s19 = sand.u32 1, %s7586_s23   ;;  %s9439_s1 = sld [smem:[#allocation36_spill]] }
  0x27   : > { %p7790_p8 = pneg %p7768_p0 }
  0x29   : > { %s9440_s4 = scalar_select %p7790_p8, 1, 0 }
  0x2c   : > { %s7130_s28 = scalar_lea.hbm %s9439_s1, 32 }
  0x2d   : > { %p7131_p7 = scmp.ne.s32.totalorder %s9439_s1, %s7130_s28  ;;  %p7137_p10 = scmp.lt.u32.totalorder %s7130_s28, %s9439_s1 }
  0x2f   : > { %p7133_p5 = pnand %p7790_p8, %p7131_p7 }
  0x31   : > { %p7134_p9 = pneg %p7133_p5 }
  0x33   : > { %p7139_p1 = pnand %p7137_p10, %p7134_p9 }
  0x35   : > { %7142 = shalt.err (!%p7139_p1)
}
  0x36   : > { %s7143_s16 = scalar_lea.vmem %s466_s29, 32  ;;  %p7151_p11 = scmp.lt.s32.totalorder %s466_s29, %s466_s29 }
  0x37   : > { %p7144_p2 = scmp.ne.s32.totalorder %s466_s29, %s7143_s16  ;;  %p7152_p6 = scmp.lt.s32.totalorder %s7143_s16, %s7143_s16 }
  0x39   : > { %p7146_p4 = pnand %p7144_p2, %p7790_p8  ;;  %p7153_p13 = por %p7152_p6, %p7151_p11 }
  0x3b   : > { %p7147_p12 = pneg %p7146_p4 }
  0x3d   : > { %p7154_p3 = pnand %p7153_p13, %p7147_p12 }
  0x3f   : > { %7157 = shalt.err (!%p7154_p3)
}
  0x40   : > { %7000 = dma.hbm_to_vmem [thread:$0]  (!%p7768_p0), %s9439_s1, 32, %s466_s29, [#allocation3]  }
  0x41   : > { %s6958_s23 = smul.u32 384, %s7780_s19  ;;  %s9441_s6 = sld [smem:[#allocation38_spill]] }
  0x42   : > { %s6959_s18 = smul.u32 6144, %s7590_s24  ;;  %s6598_s14 = sshll.u32 %s7780_s19, 4 }
  0x43   : > { %s516_s16 = scalar_lea.vmem [#allocation10], %s6958_s23  ;;  %s7816_s21 = scalar_lea.sflag [#allocation3], %s512_s30 }
  0x44   : > { %s523_s22 = sshll.u32 %s516_s16, 4  ;;  %p9442_p6 = scmp.ne.s32.totalorder %s9438_s27, 0  ;;  %s7813_s22 = int_to_ptr.vmem [resolvable:$true] %s523_s22 }
  0x46   : > { %p7822_p11 = pneg %p9442_p6 }
  0x47   : > { %s7811_s17 = scalar_lea.hbm %s9441_s6, %s6959_s18  ;;  %s7163_s23 = scalar_lea.hbm %s9441_s6, 36864 }
  0x48   : > { %s7158_s25 = scalar_lea.hbm %s7811_s17, 6144  ;;  %p7164_p3 = scmp.lt.u32.totalorder %s7811_s17, %s9441_s6 }
  0x49   : > { %p7159_p4 = scmp.ne.s32.totalorder %s7811_s17, %s7158_s25  ;;  %p7165_p7 = scmp.lt.u32.totalorder %s7163_s23, %s7158_s25 }
  0x4a   : > { %s9443_s29 = scalar_select %p7822_p11, 1, 0 }
  0x4b   : > { %p7161_p12 = pnand %p7822_p11, %p7159_p4  ;;  %p7166_p5 = por %p7165_p7, %p7164_p3 }
  0x4c   : > { %p7167_p9 = scmp.lt.u32.totalorder %s7158_s25, %s7811_s17 }
  0x4d   : > { %p7162_p13 = pneg %p7161_p12 }
  0x4e   : > { %p7168_p10 = por %p7167_p9, %p7166_p5 }
  0x50   : > { %p7169_p1 = pnand %p7168_p10, %p7162_p13 }
  0x52   : > { %7172 = shalt.err (!%p7169_p1)
}
  0x53   : > { %s7173_s30 = scalar_lea.vmem %s7813_s22, 6144  ;;  %s7593_s18 = smov [#allocation10]  }
  0x54   : > { %p7174_p2 = scmp.ne.s32.totalorder %s7813_s22, %s7173_s30  ;;  %s7178_s28 = sshll.u32 %s7593_s18, 4  ;;  %s7179_s28 = int_to_ptr.vmem [resolvable:$false] %s7178_s28 }
  0x55   : > { %s7180_s0 = scalar_lea.vmem %s7179_s28, 12288  ;;  %p7181_p0 = scmp.lt.s32.totalorder %s7813_s22, %s7179_s28 }
  0x56   : > { %p7176_p4 = pnand %p7174_p2, %p7822_p11  ;;  %p7182_p8 = scmp.lt.s32.totalorder %s7180_s0, %s7173_s30 }
  0x58   : > { %p7177_p12 = pneg %p7176_p4  ;;  %p7183_p3 = por %p7182_p8, %p7181_p0 }
  0x5a   : > { %p7184_p7 = pnand %p7183_p3, %p7177_p12 }
  0x5c   : > { %7187 = shalt.err (!%p7184_p7)
}
  0x5d   : > { %s9409_s25 = smov 1024   ;;  %s7595_s23 = smov 64  }
  0x5e   : > { %7013 = dma.hbm_to_vmem [thread:$0]  (!%p9442_p6), %s7811_s17, 6144, %s7813_s22, %s7816_s21, %s9409_s25, %s9409_s25, %s7595_s23  }
  0x5f   : > { %s6741_s16 = sshll.u32 %s7590_s24, 8  ;;  %s537_s0 = scalar_lea.vmem [#allocation11], %s6598_s14 }
  0x60   : > { %s7853_s28 = scalar_lea.hbm %s9375_s7, %s6741_s16  ;;  %s545_s1 = sshll.u32 %s537_s0, 4  ;;  %s546_s1 = int_to_ptr.vmem [resolvable:$true] %s545_s1 }
  0x61   : > { %s6601_s6 = sshll.u32 %s7780_s19, 12  ;;  %s7188_s20 = scalar_lea.hbm %s7853_s28, 256 }
  0x62   : > { %p7189_p0 = scmp.ne.s32.totalorder %s7853_s28, %s7188_s20  ;;  %s7193_s30 = scalar_lea.hbm %s9375_s7, 1536 }
  0x63   : > { %p7194_p5 = scmp.lt.u32.totalorder %s7853_s28, %s9375_s7  ;;  %p7195_p9 = scmp.lt.u32.totalorder %s7193_s30, %s7188_s20 }
  0x64   : > { %p7191_p8 = pnand %p7189_p0, %p7822_p11  ;;  %p7197_p1 = scmp.lt.u32.totalorder %s7188_s20, %s7853_s28 }
  0x65   : > { %p7196_p10 = por %p7195_p9, %p7194_p5 }
  0x66   : > { %p7192_p13 = pneg %p7191_p8 }
  0x67   : > { %p7198_p2 = por %p7197_p1, %p7196_p10 }
  0x69   : > { %p7199_p4 = pnand %p7198_p2, %p7192_p13 }
  0x6b   : > { %7202 = shalt.err (!%p7199_p4)
}
  0x6c   : > { %s7203_s14 = scalar_lea.vmem %s546_s1, 256  ;;  %s7596_s0 = smov [#allocation11]  }
  0x6d   : > { %p7204_p12 = scmp.ne.s32.totalorder %s546_s1, %s7203_s14  ;;  %s7208_s25 = sshll.u32 %s7596_s0, 4  ;;  %s7209_s25 = int_to_ptr.vmem [resolvable:$false] %s7208_s25 }
  0x6e   : > { %s7210_s22 = scalar_lea.vmem %s7209_s25, 512  ;;  %p7211_p0 = scmp.lt.s32.totalorder %s546_s1, %s7209_s25 }
  0x6f   : > { %p7206_p3 = pnand %p7204_p12, %p7822_p11  ;;  %p7212_p8 = scmp.lt.s32.totalorder %s7210_s22, %s7203_s14 }
  0x71   : > { %p7207_p7 = pneg %p7206_p3  ;;  %p7213_p6 = por %p7212_p8, %p7211_p0 }
  0x73   : > { %p7214_p5 = pnand %p7213_p6, %p7207_p7 }
  0x75   : > { %7217 = shalt.err (!%p7214_p5)
}
  0x76   : > { %p9444_p9 = scmp.ne.s32.totalorder %s9438_s27, 0  ;;  %s6742_s20 = sshll.u32 %s7590_s24, 16 }
  0x77   : > { %s7880_s16 = scalar_lea.hbm %s9376_s8, %s6742_s20  ;;  %s556_s25 = scalar_lea.vmem [#allocation12], %s6601_s6 }
  0x78   : > { %7016 = dma.hbm_to_vmem [thread:$0]  (!%p9444_p9), %s7853_s28, 256, %s546_s1, %s7816_s21  }
  0x79   : > { %s563_s18 = sshll.u32 %s556_s25, 4  ;;  %s6604_s14 = sshll.u32 %s7780_s19, 3  ;;  %s7884_s18 = int_to_ptr.vmem [resolvable:$true] %s563_s18 }
  0x7a   : > { %s7218_s0 = scalar_lea.hbm %s7880_s16, 65536  ;;  %s7223_s22 = scalar_lea.hbm %s9376_s8, 393216 }
  0x7b   : > { %p7219_p6 = scmp.ne.s32.totalorder %s7880_s16, %s7218_s0  ;;  %p7224_p1 = scmp.lt.u32.totalorder %s7880_s16, %s9376_s8 }
  0x7c   : > { %p7225_p2 = scmp.lt.u32.totalorder %s7223_s22, %s7218_s0  ;;  %p7227_p12 = scmp.lt.u32.totalorder %s7218_s0, %s7880_s16 }
  0x7d   : > { %p7221_p13 = pnand %p7219_p6, %p7822_p11 }
  0x7e   : > { %p7226_p4 = por %p7225_p2, %p7224_p1 }
  0x7f   : > { %p7222_p10 = pneg %p7221_p13 }
  0x80   : > { %p7228_p3 = por %p7227_p12, %p7226_p4 }
  0x82   : > { %p7229_p7 = pnand %p7228_p3, %p7222_p10 }
  0x84   : > { %7232 = shalt.err (!%p7229_p7)
}
  0x85   : > { %s7233_s6 = scalar_lea.vmem %s7884_s18, 65536  ;;  %s7597_s30 = smov [#allocation12]  }
  0x86   : > { %p7234_p0 = scmp.ne.s32.totalorder %s7884_s18, %s7233_s6  ;;  %s7238_s25 = sshll.u32 %s7597_s30, 4  ;;  %s7239_s25 = int_to_ptr.vmem [resolvable:$false] %s7238_s25 }
  0x87   : > { %s7240_s1 = scalar_lea.vmem %s7239_s25, 131072  ;;  %p7241_p6 = scmp.lt.s32.totalorder %s7884_s18, %s7239_s25 }
  0x88   : > { %p7236_p8 = pnand %p7234_p0, %p7822_p11  ;;  %p7242_p13 = scmp.lt.s32.totalorder %s7240_s1, %s7233_s6 }
  0x8a   : > { %p7237_p5 = pneg %p7236_p8  ;;  %p7243_p1 = por %p7242_p13, %p7241_p6 }
  0x8c   : > { %p7244_p2 = pnand %p7243_p1, %p7237_p5 }
  0x8e   : > { %7247 = shalt.err (!%p7244_p2)
}
  0x8f   : > { %s9445_s0 = smov 1024   ;;  %s6743_s28 = sshll.u32 %s7590_s24, 7 }
  0x90   : > { %7019 = dma.hbm_to_vmem [thread:$0]  (!%p9444_p9), %s7880_s16, 65536, %s7884_s18, %s7816_s21, %s9445_s0, %s9445_s0, %s7595_s23  }
  0x91   : > { %s7918_s17 = scalar_lea.hbm %s9377_s9, %s6743_s28  ;;  %s577_s6 = scalar_lea.vmem [#allocation13], %s6604_s14 }
  0x92   : > { %s585_s30 = sshll.u32 %s577_s6, 4  ;;  %s7248_s25 = scalar_lea.hbm %s7918_s17, 128  ;;  %s586_s30 = int_to_ptr.vmem [resolvable:$true] %s585_s30 }
  0x93   : > { %p7249_p10 = scmp.ne.s32.totalorder %s7918_s17, %s7248_s25  ;;  %s7253_s18 = scalar_lea.hbm %s9377_s9, 768 }
  0x94   : > { %p7254_p3 = scmp.lt.u32.totalorder %s7918_s17, %s9377_s9  ;;  %p7255_p7 = scmp.lt.u32.totalorder %s7253_s18, %s7248_s25 }
  0x95   : > { %p7251_p4 = pnand %p7249_p10, %p7822_p11  ;;  %p7257_p8 = scmp.lt.u32.totalorder %s7248_s25, %s7918_s17 }
  0x96   : > { %p7256_p0 = por %p7255_p7, %p7254_p3 }
  0x97   : > { %p7252_p12 = pneg %p7251_p4 }
  0x98   : > { %p7258_p5 = por %p7257_p8, %p7256_p0 }
  0x9a   : > { %p7259_p6 = pnand %p7258_p5, %p7252_p12 }
  0x9c   : > { %7262 = shalt.err (!%p7259_p6)
}
  0x9d   : > { %s7263_s22 = scalar_lea.vmem %s586_s30, 128  ;;  %s7598_s20 = smov [#allocation13]  }
  0x9e   : > { %p7264_p13 = scmp.ne.s32.totalorder %s586_s30, %s7263_s22  ;;  %s7268_s6 = sshll.u32 %s7598_s20, 4  ;;  %s7269_s6 = int_to_ptr.vmem [resolvable:$false] %s7268_s6 }
  0x9f   : > { %s7270_s23 = scalar_lea.vmem %s7269_s6, 256  ;;  %p7271_p10 = scmp.lt.s32.totalorder %s586_s30, %s7269_s6 }
  0xa0   : > { %p7266_p1 = pnand %p7264_p13, %p7822_p11  ;;  %p7272_p4 = scmp.lt.s32.totalorder %s7270_s23, %s7263_s22 }
  0xa2   : > { %p7267_p2 = pneg %p7266_p1  ;;  %p7273_p9 = por %p7272_p4, %p7271_p10 }
  0xa4   : > { %p7274_p3 = pnand %p7273_p9, %p7267_p2 }
  0xa6   : > { %7277 = shalt.err (!%p7274_p3)
}
  0xa7   : > { %p9446_p7 = scmp.ne.s32.totalorder %s9438_s27, 0  ;;  %s7945_s18 = scalar_lea.hbm %s9378_s10, %s6743_s28 }
  0xa8   : > { %s596_s1 = scalar_lea.vmem [#allocation14], %s6604_s14  ;;  %s6610_s22 = sshll.u32 %s7780_s19, 10 }
  0xa9   : > { %7022 = dma.hbm_to_vmem [thread:$0]  (!%p9446_p7), %s7918_s17, 128, %s586_s30, %s7816_s21  }
  0xaa   : > { %s604_s0 = sshll.u32 %s596_s1, 4  ;;  %s7278_s20 = scalar_lea.hbm %s7945_s18, 128  ;;  %s605_s0 = int_to_ptr.vmem [resolvable:$true] %s604_s0 }
  0xab   : > { %p7279_p9 = scmp.ne.s32.totalorder %s7945_s18, %s7278_s20  ;;  %s7283_s6 = scalar_lea.hbm %s9378_s10, 768 }
  0xac   : > { %p7284_p8 = scmp.lt.u32.totalorder %s7945_s18, %s9378_s10  ;;  %p7285_p5 = scmp.lt.u32.totalorder %s7283_s6, %s7278_s20 }
  0xad   : > { %p7281_p12 = pnand %p7279_p9, %p7822_p11  ;;  %p7287_p13 = scmp.lt.u32.totalorder %s7278_s20, %s7945_s18 }
  0xae   : > { %p7286_p6 = por %p7285_p5, %p7284_p8 }
  0xaf   : > { %p7282_p0 = pneg %p7281_p12 }
  0xb0   : > { %p7288_p1 = por %p7287_p13, %p7286_p6 }
  0xb2   : > { %p7289_p2 = pnand %p7288_p1, %p7282_p0 }
  0xb4   : > { %7292 = shalt.err (!%p7289_p2)
}
  0xb5   : > { %s7293_s14 = scalar_lea.vmem %s605_s0, 128  ;;  %s7599_s25 = smov [#allocation14]  }
  0xb6   : > { %p7294_p10 = scmp.ne.s32.totalorder %s605_s0, %s7293_s14  ;;  %s7298_s16 = sshll.u32 %s7599_s25, 4  ;;  %s7299_s16 = int_to_ptr.vmem [resolvable:$false] %s7298_s16 }
  0xb7   : > { %s7300_s1 = scalar_lea.vmem %s7299_s16, 256  ;;  %p7301_p9 = scmp.lt.s32.totalorder %s605_s0, %s7299_s16 }
  0xb8   : > { %p7296_p4 = pnand %p7294_p10, %p7822_p11  ;;  %p7302_p12 = scmp.lt.s32.totalorder %s7300_s1, %s7293_s14 }
  0xba   : > { %p7297_p3 = pneg %p7296_p4  ;;  %p7303_p7 = por %p7302_p12, %p7301_p9 }
  0xbc   : > { %p7304_p5 = pnand %p7303_p7, %p7297_p3 }
  0xbe   : > { %7307 = shalt.err (!%p7304_p5)
}
  0xbf   : > { %p9447_p8 = scmp.ne.s32.totalorder %s9438_s27, 0  ;;  %s6745_s20 = sshll.u32 %s7590_s24, 14 }
  0xc0   : > { %s7972_s6 = scalar_lea.hbm %s9379_s11, %s6745_s20  ;;  %s615_s28 = scalar_lea.vmem [#allocation15], %s6610_s22 }
  0xc1   : > { %7025 = dma.hbm_to_vmem [thread:$0]  (!%p9447_p8), %s7945_s18, 128, %s605_s0, %s7816_s21  }
  0xc2   : > { %s622_s23 = sshll.u32 %s615_s28, 4  ;;  %s9413_s14 = sshll.u32 %s7780_s19, 2  ;;  %s7976_s23 = int_to_ptr.vmem [resolvable:$true] %s622_s23 }
  0xc3   : > { %s7308_s25 = scalar_lea.hbm %s7972_s6, 16384  ;;  %s7313_s16 = scalar_lea.hbm %s9379_s11, 98304 }
  0xc4   : > { %p7309_p7 = scmp.ne.s32.totalorder %s7972_s6, %s7308_s25  ;;  %p7314_p13 = scmp.lt.u32.totalorder %s7972_s6, %s9379_s11 }
  0xc5   : > { %p7315_p1 = scmp.lt.u32.totalorder %s7313_s16, %s7308_s25  ;;  %p7317_p10 = scmp.lt.u32.totalorder %s7308_s25, %s7972_s6 }
  0xc6   : > { %p7311_p0 = pnand %p7309_p7, %p7822_p11 }
  0xc7   : > { %p7316_p2 = por %p7315_p1, %p7314_p13 }
  0xc8   : > { %p7312_p6 = pneg %p7311_p0 }
  0xc9   : > { %p7318_p4 = por %p7317_p10, %p7316_p2 }
  0xcb   : > { %p7319_p3 = pnand %p7318_p4, %p7312_p6 }
  0xcd   : > { %7322 = shalt.err (!%p7319_p3)
}
  0xce   : > { %s7323_s22 = scalar_lea.vmem %s7976_s23, 16384  ;;  %s7600_s17 = smov [#allocation15]  }
  0xcf   : > { %p7324_p9 = scmp.ne.s32.totalorder %s7976_s23, %s7323_s22  ;;  %s7328_s30 = sshll.u32 %s7600_s17, 4  ;;  %s7329_s30 = int_to_ptr.vmem [resolvable:$false] %s7328_s30 }
  0xd0   : > { %s7330_s28 = scalar_lea.vmem %s7329_s30, 32768  ;;  %p7331_p7 = scmp.lt.s32.totalorder %s7976_s23, %s7329_s30 }
  0xd1   : > { %p7326_p12 = pnand %p7324_p9, %p7822_p11  ;;  %p7332_p0 = scmp.lt.s32.totalorder %s7330_s28, %s7323_s22 }
  0xd3   : > { %p7327_p5 = pneg %p7326_p12  ;;  %p7333_p13 = por %p7332_p0, %p7331_p7 }
  0xd5   : > { %p7334_p1 = pnand %p7333_p13, %p7327_p5 }
  0xd7   : > { %7337 = shalt.err (!%p7334_p1)
}
  0xd8   : > { %s7601_s25 = smov 512   ;;  %s7602_s18 = smov 32  }
  0xd9   : > { %7028 = dma.hbm_to_vmem [thread:$0]  (!%p9447_p8), %s7972_s6, 16384, %s7976_s23, %s7816_s21, %s7601_s25, %s7601_s25, %s7602_s18  }
  0xda   : > { %s6746_s0 = sshll.u32 %s7590_s24, 6  ;;  %s636_s22 = scalar_lea.vmem [#allocation16], %s9413_s14 }
  0xdb   : > { %s8007_s20 = scalar_lea.hbm %s9380_s12, %s6746_s0  ;;  %s644_s17 = sshll.u32 %s636_s22, 4  ;;  %s645_s17 = int_to_ptr.vmem [resolvable:$true] %s644_s17 }
  0xdc   : > { %s7338_s30 = scalar_lea.hbm %s8007_s20, 64  ;;  %s7343_s28 = scalar_lea.hbm %s9380_s12, 384 }
  0xdd   : > { %p7339_p6 = scmp.ne.s32.totalorder %s8007_s20, %s7338_s30  ;;  %p7344_p4 = scmp.lt.u32.totalorder %s8007_s20, %s9380_s12 }
  0xde   : > { %p7345_p3 = scmp.lt.u32.totalorder %s7343_s28, %s7338_s30  ;;  %p7347_p12 = scmp.lt.u32.totalorder %s7338_s30, %s8007_s20 }
  0xdf   : > { %p7341_p2 = pnand %p7339_p6, %p7822_p11 }
  0xe0   : > { %p7346_p9 = por %p7345_p3, %p7344_p4 }
  0xe1   : > { %p7342_p10 = pneg %p7341_p2 }
  0xe2   : > { %p7348_p5 = por %p7347_p12, %p7346_p9 }
  0xe4   : > { %p7349_p7 = pnand %p7348_p5, %p7342_p10 }
  0xe6   : > { %7352 = shalt.err (!%p7349_p7)
}
  0xe7   : > { %s7353_s16 = scalar_lea.vmem %s645_s17, 64  ;;  %s7603_s1 = smov [#allocation16]  }
  0xe8   : > { %p7354_p0 = scmp.ne.s32.totalorder %s645_s17, %s7353_s16  ;;  %s7358_s22 = sshll.u32 %s7603_s1, 4  ;;  %s7359_s22 = int_to_ptr.vmem [resolvable:$false] %s7358_s22 }
  0xe9   : > { %s7360_s6 = scalar_lea.vmem %s7359_s22, 128  ;;  %p7361_p6 = scmp.lt.s32.totalorder %s645_s17, %s7359_s22 }
  0xea   : > { %p7356_p13 = pnand %p7354_p0, %p7822_p11  ;;  %p7362_p2 = scmp.lt.s32.totalorder %s7360_s6, %s7353_s16 }
  0xec   : > { %p7357_p1 = pneg %p7356_p13  ;;  %p7363_p8 = por %p7362_p2, %p7361_p6 }
  0xee   : > { %p7364_p3 = pnand %p7363_p8, %p7357_p1 }
  0xf0   : > { %7367 = shalt.err (!%p7364_p3)
}
  0xf1   : > { %p9448_p4 = scmp.ne.s32.totalorder %s9438_s27, 0  ;;  %s7604_s30 = smov [#allocation5]  }
  0xf2   : > { %s476_s23 = sshll.u32 %s7604_s30, 4  ;;  %s8034_s18 = scalar_lea.hbm %s9381_s13, %s6746_s0  ;;  %s477_s23 = int_to_ptr.vmem [resolvable:$true] %s476_s23 }
  0xf3   : > { %7031 = dma.hbm_to_vmem [thread:$0]  (!%p9448_p4), %s8007_s20, 64, %s645_s17, %s7816_s21  }
  0xf4   : > { %s7368_s22 = scalar_lea.hbm %s9370_s2, 32  ;;  %p9449_p10 = scmp.ne.s32.totalorder %s9440_s4, 0 }
  0xf5   : > { %p7369_p8 = scmp.ne.s32.totalorder %s9370_s2, %s7368_s22  ;;  %p7375_p5 = scmp.lt.u32.totalorder %s7368_s22, %s9370_s2 }
  0xf7   : > { %p7371_p9 = pnand %p7369_p8, %p9449_p10 }
  0xf9   : > { %p7372_p12 = pneg %p7371_p9 }
  0xfb   : > { %p7377_p7 = pnand %p7375_p5, %p7372_p12 }
  0xfd   : > { %7380 = shalt.err (!%p7377_p7)
}
  0xfe   : > { %s7381_s30 = scalar_lea.vmem %s477_s23, 32  ;;  %p7389_p6 = scmp.lt.s32.totalorder %s477_s23, %s477_s23 }
  0xff   : > { %p7382_p0 = scmp.ne.s32.totalorder %s477_s23, %s7381_s30  ;;  %p7390_p2 = scmp.lt.s32.totalorder %s7381_s30, %s7381_s30 }
 0x101   : > { %p7384_p13 = pnand %p7382_p0, %p9449_p10  ;;  %p7391_p3 = por %p7390_p2, %p7389_p6 }
 0x103   : > { %p7385_p1 = pneg %p7384_p13 }
 0x105   : > { %p7392_p4 = pnand %p7391_p3, %p7385_p1 }
 0x107   : > { %7395 = shalt.err (!%p7392_p4)
}
 0x108   : > { %p9450_p8 = scmp.ne.s32.totalorder %s9437_s26, 0  ;;  %s9451_s28 = sshll.u32 %s7780_s19, 2 }
 0x109   : > { %s655_s25 = scalar_lea.vmem [#allocation17], %s9451_s28  ;;  %s7605_s1 = smov [#allocation7]  }
 0x10a   : > { %7003 = dma.hbm_to_vmem [thread:$0]  (!%p9450_p8), %s9370_s2, 32, %s477_s23, [#allocation6]  }
 0x10b   : > { %s663_s16 = sshll.u32 %s655_s25, 4  ;;  %s487_s22 = sshll.u32 %s7605_s1, 4  ;;  %s8056_s16 = int_to_ptr.vmem [resolvable:$true] %s663_s16  ;;  %s488_s22 = int_to_ptr.vmem [resolvable:$true] %s487_s22 }
 0x10c   : > { %s7396_s6 = scalar_lea.hbm %s8034_s18, 64  ;;  %s7401_s30 = scalar_lea.hbm %s9381_s13, 384 }
 0x10d   : > { %p7397_p4 = scmp.ne.s32.totalorder %s8034_s18, %s7396_s6  ;;  %p7402_p5 = scmp.lt.u32.totalorder %s8034_s18, %s9381_s13 }
 0x10e   : > { %p7403_p7 = scmp.lt.u32.totalorder %s7401_s30, %s7396_s6  ;;  %p7405_p13 = scmp.lt.u32.totalorder %s7396_s6, %s8034_s18 }
 0x10f   : > { %p7399_p9 = pnand %p7397_p4, %p7822_p11 }
 0x110   : > { %p7404_p0 = por %p7403_p7, %p7402_p5 }
 0x111   : > { %p7400_p12 = pneg %p7399_p9 }
 0x112   : > { %p7406_p1 = por %p7405_p13, %p7404_p0 }
 0x114   : > { %p7407_p6 = pnand %p7406_p1, %p7400_p12 }
 0x116   : > { %7410 = shalt.err (!%p7407_p6)
}
 0x117   : > { %s7411_s23 = scalar_lea.vmem %s8056_s16, 64  ;;  %s7606_s28 = smov [#allocation17]  }
 0x118   : > { %p7412_p2 = scmp.ne.s32.totalorder %s8056_s16, %s7411_s23  ;;  %s7416_s25 = sshll.u32 %s7606_s28, 4  ;;  %s7417_s25 = int_to_ptr.vmem [resolvable:$false] %s7416_s25 }
 0x119   : > { %s7418_s1 = scalar_lea.vmem %s7417_s25, 128  ;;  %p7419_p9 = scmp.lt.s32.totalorder %s8056_s16, %s7417_s25 }
 0x11a   : > { %p7414_p3 = pnand %p7412_p2, %p7822_p11  ;;  %p7420_p8 = scmp.lt.s32.totalorder %s7418_s1, %s7411_s23 }
 0x11c   : > { %p7415_p4 = pneg %p7414_p3  ;;  %p7421_p5 = por %p7420_p8, %p7419_p9 }
 0x11e   : > { %p7422_p7 = pnand %p7421_p5, %p7415_p4 }
 0x120   : > { %7425 = shalt.err (!%p7422_p7)
}
 0x121   : > { %p9452_p12 = scmp.ne.s32.totalorder %s9438_s27, 0  ;;  %s7426_s17 = scalar_lea.hbm %s9371_s3, 16 }
 0x122   : > { %p7427_p0 = scmp.ne.s32.totalorder %s9371_s3, %s7426_s17  ;;  %p7433_p1 = scmp.lt.u32.totalorder %s7426_s17, %s9371_s3 }
 0x123   : > { %7034 = dma.hbm_to_vmem [thread:$0]  (!%p9452_p12), %s8034_s18, 64, %s8056_s16, %s7816_s21  }
 0x124   : > { %p7429_p8 = pnand %p7427_p0, %p9449_p10 }
 0x126   : > { %p7430_p13 = pneg %p7429_p8 }
 0x128   : > { %p7435_p6 = pnand %p7433_p1, %p7430_p13 }
 0x12a   : > { %7438 = shalt.err (!%p7435_p6)
}
 0x12b   : > { %s7439_s28 = scalar_lea.vmem %s488_s22, 16  ;;  %s7446_s18 = scalar_lea.vmem %s488_s22, 32 }
 0x12c   : > { %p7440_p2 = scmp.ne.s32.totalorder %s488_s22, %s7439_s28  ;;  %p7447_p9 = scmp.lt.s32.totalorder %s488_s22, %s488_s22 }
 0x12d   : > { %p7448_p5 = scmp.lt.s32.totalorder %s7446_s18, %s7439_s28 }
 0x12e   : > { %p7442_p3 = pnand %p7440_p2, %p9449_p10 }
 0x12f   : > { %p7449_p7 = por %p7448_p5, %p7447_p9 }
 0x130   : > { %p7443_p4 = pneg %p7442_p3 }
 0x132   : > { %p7450_p12 = pnand %p7449_p7, %p7443_p4 }
 0x134   : > { %7453 = shalt.err (!%p7450_p12)
}
 0x135   : > { %p9453_p0 = scmp.ne.s32.totalorder %s9437_s26, 0  ;;  %s7607_s1 = smov [#allocation8]  }
 0x136   : > { %s501_s6 = sshll.u32 %s7607_s1, 4  ;;  %s6619_s20 = sshll.u32 %s7590_s24, 4  ;;  %s502_s6 = int_to_ptr.vmem [resolvable:$true] %s501_s6 }
 0x137   : > { %7006 = dma.hbm_to_vmem [thread:$0]  (!%p9453_p0), %s9371_s3, 16, %s488_s22, [#allocation6]  }
 0x138   : > { %s7454_s14 = scalar_lea.hbm %s9373_s5, 16 }
 0x139   : > { %p7455_p12 = scmp.ne.s32.totalorder %s9373_s5, %s7454_s14  ;;  %p7461_p1 = scmp.lt.u32.totalorder %s7454_s14, %s9373_s5 }
 0x13b   : > { %p7457_p8 = pnand %p7455_p12, %p9449_p10 }
 0x13d   : > { %p7458_p13 = pneg %p7457_p8 }
 0x13f   : > { %p7463_p6 = pnand %p7461_p1, %p7458_p13 }
 0x141   : > { %7466 = shalt.err (!%p7463_p6)
}
 0x142   : > { %s7467_s22 = scalar_lea.vmem %s502_s6, 16  ;;  %s7474_s16 = scalar_lea.vmem %s502_s6, 32 }
 0x143   : > { %p7468_p2 = scmp.ne.s32.totalorder %s502_s6, %s7467_s22  ;;  %p7475_p9 = scmp.lt.s32.totalorder %s502_s6, %s502_s6 }
 0x144   : > { %p7476_p5 = scmp.lt.s32.totalorder %s7474_s16, %s7467_s22 }
 0x145   : > { %p7470_p3 = pnand %p7468_p2, %p9449_p10 }
 0x146   : > { %p7477_p7 = por %p7476_p5, %p7475_p9 }
 0x147   : > { %p7471_p4 = pneg %p7470_p3 }
 0x149   : > { %p7478_p11 = pnand %p7477_p7, %p7471_p4 }
 0x14b   : > { %7481 = shalt.err (!%p7478_p11)
}
 0x14c   : > { %7009 = dma.hbm_to_vmem [thread:$0]  (!%p9453_p0), %s9373_s5, 16, %s502_s6, [#allocation9]  }
 0x14d   : > { %s8120_s4 = scalar_lea.hbm %s9383_s15, %s6619_s20  ;;  %s681_s14 = scalar_lea.vmem [#allocation18], %s7780_s19 }
 0x14e   : > { %s688_s0 = sshll.u32 %s681_s14, 4  ;;  %s7482_s23 = scalar_lea.hbm %s8120_s4, 16  ;;  %s689_s0 = int_to_ptr.vmem [resolvable:$true] %s688_s0 }
 0x14f   : > { %p7483_p11 = scmp.ne.s32.totalorder %s8120_s4, %s7482_s23  ;;  %p9454_p10 = scmp.ne.s32.totalorder %s9443_s29, 0 }
 0x150   : > { %s7487_s6 = scalar_lea.hbm %s9383_s15, 96  ;;  %p7488_p0 = scmp.lt.u32.totalorder %s8120_s4, %s9383_s15 }
 0x151   : > { %p7485_p12 = pnand %p7483_p11, %p9454_p10  ;;  %p7489_p13 = scmp.lt.u32.totalorder %s7487_s6, %s7482_s23 }
 0x152   : > { %p7491_p6 = scmp.lt.u32.totalorder %s7482_s23, %s8120_s4 }
 0x153   : > { %p7486_p8 = pneg %p7485_p12  ;;  %p7490_p1 = por %p7489_p13, %p7488_p0 }
 0x155   : > { %p7492_p2 = por %p7491_p6, %p7490_p1 }
 0x157   : > { %p7493_p3 = pnand %p7492_p2, %p7486_p8 }
 0x159   : > { %7496 = shalt.err (!%p7493_p3)
}
 0x15a   : > { %s7497_s19 = scalar_lea.vmem %s689_s0, 16  ;;  %s7608_s20 = smov [#allocation18]  }
 0x15b   : > { %p7498_p4 = scmp.ne.s32.totalorder %s689_s0, %s7497_s19  ;;  %s7502_s16 = sshll.u32 %s7608_s20, 4  ;;  %s7503_s16 = int_to_ptr.vmem [resolvable:$false] %s7502_s16 }
 0x15c   : > { %s7504_s25 = scalar_lea.vmem %s7503_s16, 32  ;;  %p7505_p7 = scmp.lt.s32.totalorder %s689_s0, %s7503_s16 }
 0x15d   : > { %p7500_p9 = pnand %p7498_p4, %p9454_p10  ;;  %p7506_p11 = scmp.lt.s32.totalorder %s7504_s25, %s7497_s19 }
 0x15f   : > { %p7501_p5 = pneg %p7500_p9  ;;  %p7507_p12 = por %p7506_p11, %p7505_p7 }
 0x161   : > { %p7508_p0 = pnand %p7507_p12, %p7501_p5 }
 0x163   : > { %7511 = shalt.err (!%p7508_p0)
}
 0x164   : > { %p9455_p13 = scmp.ne.s32.totalorder %s9438_s27, 0  ;;  %s9456_s1 = sld [smem:[#allocation34_spill]] }
 0x166   : > { %7037 = dma.hbm_to_vmem [thread:$0]  (!%p9455_p13), %s8120_s4, 16, %s689_s0, %s7816_s21  }
 0x16a   : > { %p9457_p8 = scmp.ne.s32.totalorder %s9456_s1, 0 }
 0x16b   : > { %s9458_s29 = sld [smem:[#allocation28_spill]] (!%p9457_p8) }
 0x16c   : > { %697 = sbr.rel (%p9457_p8) target bundleno = 2785 (0xae1), region = 84 }
 0x171   : > { %p9459_p10 = scmp.eq.s32.totalorder (!%p9457_p8), %s9458_s29, 0 }
 0x173   : > { %7557 = dma.done.wait (%p9459_p10), [#allocation3], 32   ;;  %p9460_p1 = pmov %p9459_p10 }
 0x175   : > { %7559 = vsyncadd (%p9460_p1), [#allocation3], 4294967264  ;;  %p9461_p6 = pmov %p9460_p1 }
 0x176   : > { %p9462_p2 = pmov %p9460_p1 }
 0x177   : > { %7561 = dma.done.wait (%p9461_p6), [#allocation6], 48  }
 0x178   : > { %7563 = vsyncadd (%p9462_p2), [#allocation6], 4294967248  ;;  %p9463_p3 = pmov %p9460_p1 }
 0x179   : > { %p9464_p4 = pmov %p9460_p1 }
 0x17a   : > { %7565 = dma.done.wait (%p9463_p3), [#allocation9], 16  }
 0x17b   : > { %7567 = vsyncadd (%p9464_p4), [#allocation9], 4294967280  ;;  %s9465_s27 = sld [smem:[#allocation26_spill]]  ;;  %s9466_s21 = sld [smem:[#allocation31_spill]] }
 0x17c   : > { %s715_s17 = sand.u32 1, %s9458_s29  }
 0x17d   : > { %s716_s14 = scalar_lea.sflag [#allocation3], %s715_s17 }
 0x181   : > { %s8157_s30 = sand.u32 1, %s9465_s27   ;;  %p9467_p9 = scmp.ne.s32.totalorder %s9466_s21, 0 }
 0x182   : > { %s6960_s4 = smul.u32 384, %s8157_s30 }
 0x184   : > { %s8160_s0 = scalar_lea.vmem [#allocation10], %s6960_s4 }
 0x185   : > { %7569 = dma.done.wait (%p9467_p9), %s716_s14, 88720  }
 0x186   : > { %7571 = vsyncadd (%p9467_p9), %s716_s14, 4294878576  ;;  %v7609_v0 = vmov 0.0   ;;  %vm7610_vm0 = vmmov 0   ;;  %v7611_v1 = vmov 0.0|0.0   ;;  %vm902_vm1 = vcmask 1041408   ;;  %s9468_s28 = sld [smem:[#allocation37_spill]] }
 0x187   : > { %6800 = vmatprep.subr.mxu0 %v7609_v0  ;;  %6802 = vmatprep.mubr.msk.f32.mxu0 %vm7610_vm0, %v7609_v0  ;;  %vm898_vm2 = vcmask 15360   ;;  %v890_v2 = vld [vmem:[#allocation5] sm:$0x3]  ;;  %v889_v3 = vld [vmem:[#allocation2] sm:$0x3]  ;;  %vm990_vm4 = vcmask 261120  }
 0x188   : > { %6816 = vmatprep.subr.bf16.mxu1 %v7611_v1  ;;  %6813 = vmatprep.mubr.msk.f32.mxu1 %vm7610_vm0, %v7609_v0  ;;  %v6635_v10 = vld [vmem:[#allocation7] ss:$0 sm:$0xff]  ;;  %v1099_v16 = vld [vmem:[%s8160_s0 + $0x100] sm:$0xff]  ;;  %v1100_v18 = vld [vmem:[%s8160_s0 + $0x108] sm:$0xff]  ;;  %v7612_v26 = vmov 0   ;;  %vm1198_vm5 = vcmask 130048  }
 0x189   : > { %6801 = vmatpush3.msk.msra.mxu0 %vm902_vm1, %v890_v2  ;;  %v1107_v17 = vld [vmem:[%s8160_s0 + $0x140] sm:$0xff]  ;;  %v1108_v20 = vld [vmem:[%s8160_s0 + $0x148] sm:$0xff]  ;;  %v1101_v24 = vld [vmem:[%s8160_s0 + $0x110] sm:$0xff]  ;;  %s9469_s27 = sld [smem:[#allocation35_spill]]  ;;  %vm1535_vm6 = vcmask 1041409   ;;  %s6626_s17 = sshll.u32 %s8157_s30, 12 }
 0x18a   : > { %6803 = vmatmul.mubr.msk.f32.vlgmr.msra.gmra.mrb[0].mxu0 %vm898_vm2, %v889_v3  ;;  %v6641_v19 = vcombine.high %v1099_v16, %v1107_v17  ;;  %v6640_v21 = vcombine.low %v1099_v16, %v1107_v17  ;;  %v6642_v22 = vcombine.low %v1100_v18, %v1108_v20  ;;  %v6643_v23 = vcombine.high %v1100_v18, %v1108_v20  ;;  %v1109_v25 = vld [vmem:[%s8160_s0 + $0x150] sm:$0xff]  ;;  %v1102_v29 = vld [vmem:[%s8160_s0 + $0x118] sm:$0xff]  ;;  %v1103_v35 = vld [vmem:[%s8160_s0 + $0x120] sm:$0xff]  ;;  %s8274_s4 = scalar_lea.vmem [#allocation12], %s6626_s17  ;;  %s6625_s14 = sshll.u32 %s8157_s30, 4 }
 0x18b   : > { %1234 = vmatprep.mubr.bf16.mxu0 %v7612_v26  ;;  %v6644_v27 = vcombine.low %v1101_v24, %v1109_v25  ;;  %v6645_v28 = vcombine.high %v1101_v24, %v1109_v25  ;;  %v1110_v30 = vld [vmem:[%s8160_s0 + $0x158] sm:$0xff]  ;;  %v1111_v38 = vld [vmem:[%s8160_s0 + $0x160] sm:$0xff]  ;;  %v1104_v39 = vld [vmem:[%s8160_s0 + $0x128] sm:$0xff]  ;;  %s6627_s23 = sshll.u32 %s8157_s30, 3  ;;  %s6629_s18 = sshll.u32 %s8157_s30, 10 }
 0x18c   : > { %v979_v4 = vld [vmem:[%s9468_s28] sm:$0xff]  ;;  %v980_v5 = vld [vmem:[%s9468_s28 + $0x8] sm:$0xff]  ;;  %v981_v7 = vld [vmem:[%s9468_s28 + $0x10] sm:$0xff]  ;;  %1202 = vmatprep.subr.bf16.mxu0 %v6641_v19  ;;  %v6646_v31 = vcombine.low %v1102_v29, %v1110_v30  ;;  %v6647_v32 = vcombine.high %v1102_v29, %v1110_v30  ;;  %v6649_v42 = vcombine.high %v1103_v35, %v1111_v38  ;;  %v6648_v48 = vcombine.low %v1103_v35, %v1111_v38  ;;  %s9069_s26 = scalar_lea.vmem [#allocation13], %s6627_s23  ;;  %s9078_s6 = scalar_lea.vmem [#allocation14], %s6627_s23 }
 0x18d   : > { %v6817_v6 = vpack.c.bf16 %v980_v5, %v979_v4  ;;  %v982_v8 = vld [vmem:[%s9468_s28 + $0x18] sm:$0xff]  ;;  %1203 = vmatpush1.bf16.msra.mxu0 %v6640_v21  ;;  %v6638_v33 = vld [vmem:[#allocation8] ss:$0 sm:$0xff]  ;;  %v1112_v40 = vld [vmem:[%s8160_s0 + $0x168] sm:$0xff]  ;;  %s9091_s22 = scalar_lea.vmem [#allocation15], %s6629_s18  ;;  %p883_p5 = scmp.lt.s32.totalorder %s9458_s29, 5 }
 0x18e   : > { %v6820_v9 = vpack.c.bf16 %v982_v8, %v981_v7  ;;  %1284 = vmatprep.subr.bf16.mxu0 %v6645_v28  ;;  %v6651_v43 = vcombine.high %v1104_v39, %v1112_v40  ;;  %v1105_v44 = vld [vmem:[%s8160_s0 + $0x130] sm:$0xff]  ;;  %v1106_v46 = vld [vmem:[%s8160_s0 + $0x138] sm:$0xff]  ;;  %v6650_v49 = vcombine.low %v1104_v39, %v1112_v40  ;;  %v1067_v53 = vld [vmem:[%s8160_s0] sm:$0xff]  ;;  %s9470_s1 = sld [smem:[#allocation39_spill]]  ;;  %s9471_s23 = sld [smem:[#allocation32_spill]] }
 0x18f   : > { %6818 = vmatpush3.bf16.msra.mxu1 %v6817_v6  ;;  %v1113_v45 = vld [vmem:[%s8160_s0 + $0x170] sm:$0xff]  ;;  %v1114_v47 = vld [vmem:[%s8160_s0 + $0x178] sm:$0xff]  ;;  %s1064_s21 = scalar_lea.vmem %s9469_s27, %s9458_s29  ;;  %v1075_v54 = vld [vmem:[%s8160_s0 + $0x40] sm:$0xff]  ;;  %s6299_s25 = scalar_lea.sflag [#allocation4], %s8157_s30 }
 0x190   : > { %6819 = vmatprep.subr.bf16.mxu1 %v7611_v1  ;;  %v6653_v50 = vcombine.high %v1105_v44, %v1113_v45  ;;  %v6655_v51 = vcombine.high %v1106_v46, %v1114_v47  ;;  %v1066_v52 = vld [vmem:[%s1064_s21 + $0x8] sm:$0x1]  ;;  %v1068_v55 = vld [vmem:[%s8160_s0 + $0x8] sm:$0xff]  ;;  %v6652_v57 = vcombine.low %v1105_v44, %v1113_v45  ;;  %v6654_v58 = vcombine.low %v1106_v46, %v1114_v47  ;;  %v1083_v1 = vld [vmem:[%s8160_s0 + $0x80] sm:$0xff]  ;;  %s884_s19 = scalar_select %p883_p5, %s9458_s29, 5 }
 0x191   : > { %v1076_v56 = vld [vmem:[%s8160_s0 + $0x48] sm:$0xff]  ;;  %v1116_v59 = vpack.c.bf16 %v1066_v52, %v1066_v52  ;;  %v6665_v61 = vcombine.high %v1067_v53, %v1075_v54  ;;  %v1091_v2 = vld [vmem:[%s8160_s0 + $0xc0] sm:$0xff]  ;;  %v6664_v5 = vcombine.low %v1067_v53, %v1075_v54  ;;  %v1085_v20 = vld [vmem:[%s8160_s0 + $0x90] sm:$0xff] }
 0x192   : > { %v1065_v60 = vld [vmem:[%s1064_s21] sm:$0x1]  ;;  %v6667_v62 = vcombine.high %v1068_v55, %v1076_v56  ;;  %v6666_v6 = vcombine.low %v1068_v55, %v1076_v56  ;;  %v1093_v21 = vld [vmem:[%s8160_s0 + $0xd0] sm:$0xff]  ;;  %v1071_v30 = vld [vmem:[%s8160_s0 + $0x20] sm:$0xff]  ;;  %s6748_s20 = sshll.u32 %s884_s19, 8  ;;  %s6630_s21 = sshll.u32 %s8157_s30, 2 }
 0x193   : > { %6821 = vmatpush3.bf16.msra.mxu1 %v6820_v9  ;;  %v1115_v63 = vpack.c.bf16 %v1065_v60, %v1065_v60  ;;  %v1533_v0 = vunpack.c.l.b16 %v1116_v59  ;;  %v1084_v3 = vld [vmem:[%s8160_s0 + $0x88] sm:$0xff]  ;;  %v6681_v9 = vcombine.high %v1083_v1, %v1091_v2  ;;  %v6685_v28 = vcombine.high %v1085_v20, %v1093_v21  ;;  %v1087_v38 = vld [vmem:[%s8160_s0 + $0xa0] sm:$0xff]  ;;  %v1073_v46 = vld [vmem:[%s8160_s0 + $0x30] sm:$0xff]  ;;  %s773_s17 = scalar_lea.vmem [#allocation16], %s6630_s21 }
 0x194   : > { %1243 = vmatprep.subr.bf16.mxu1 %v6643_v23  ;;  %v1092_v4 = vld [vmem:[%s8160_s0 + $0xc8] sm:$0xff]  ;;  %v1094_v23 = vld [vmem:[%s8160_s0 + $0xd8] sm:$0xff]  ;;  %v1095_v39 = vld [vmem:[%s8160_s0 + $0xe0] sm:$0xff]  ;;  %s9203_s27 = scalar_lea.vmem %s9470_s1, %s6748_s20  ;;  %s9472_s20 = sld [smem:[#allocation40_spill]] }
 0x195   : > { %v1532_v7 = vunpack.c.l.b16 %v1115_v63  ;;  %v1534_v8 = vrot.slane %v1533_v0, 7  ;;  %v6682_v16 = vcombine.low %v1084_v3, %v1092_v4  ;;  %v1088_v40 = vld [vmem:[%s8160_s0 + $0xa8] sm:$0xff]  ;;  %v6689_v44 = vcombine.high %v1087_v38, %v1095_v39  ;;  %v1081_v47 = vld [vmem:[%s8160_s0 + $0x70] sm:$0xff]  ;;  %v1090_v56 = vld [vmem:[%s8160_s0 + $0xb8] sm:$0xff]  ;;  %p9473_p11 = scmp.ne.s32.totalorder %s9471_s23, 0 }
 0x196   : > { %v6677_v52 = vcombine.high %v1073_v46, %v1081_v47  ;;  %v1089_v54 = vld [vmem:[%s8160_s0 + $0xb0] sm:$0xff]  ;;  %v2180_v63 = vld [vmem:[%s8274_s4 + $0x18] sm:$0xff] }
 0x197   : > { %v1536_v17 = vsel %vm1535_vm6, %v1534_v8, %v1532_v7  ;;  %v1097_v55 = vld [vmem:[%s8160_s0 + $0xf0] sm:$0xff] }
 0x198   : > { %v8243_v24 = vpack.c.b16 %v1536_v17, %v1536_v17  ;;  %v6693_v60 = vcombine.high %v1089_v54, %v1097_v55  ;;  %v6692_v0 = vcombine.low %v1089_v54, %v1097_v55 }
 0x25d   : > { %v972_v11 = vpop.f32.mrb[0].mxu0 }
 0x25e   : > { %v973_v12 = vadd.f32 %v6635_v10, %v972_v11  ;;  %v6804_v13 = vpop.f32.mrb[1].mxu0  ;;  %v6683_v10 = vcombine.high %v1084_v3, %v1092_v4  ;;  %v1069_v11 = vld [vmem:[%s8160_s0 + $0x10] sm:$0xff]  ;;  %v2692_v3 = vunpack.c.l.s8.bf16 %v2180_v63  ;;  %v2177_v4 = vld [vmem:[%s8274_s4] sm:$0xff] }
 0x25f   : > { %v1070_v13 = vld [vmem:[%s8160_s0 + $0x18] sm:$0xff] }
 0x260   : > { %vm976_vm3 = vcmp.ge.f32.partialorder %v973_v12, 0.0  ;;  %v977_v14 = vmul.f32 0.2, %v973_v12 }
 0x262   : > { %v978_v15 = vsel %vm976_vm3, %v973_v12, %v977_v14  ;;  %v1077_v12 = vld [vmem:[%s8160_s0 + $0x50] sm:$0xff]  ;;  %v1078_v14 = vld [vmem:[%s8160_s0 + $0x58] sm:$0xff] }
 0x263   : > { %6814 = vmatmul.mubr.msk.f32.vlgmr.msra.gmra.mrb[0].mxu1 %vm990_vm4, %v978_v15  ;;  %v6680_v15 = vcombine.low %v1083_v1, %v1091_v2  ;;  %v6669_v18 = vcombine.high %v1069_v11, %v1077_v12  ;;  %v6671_v19 = vcombine.high %v1070_v13, %v1078_v14  ;;  %v6668_v25 = vcombine.low %v1069_v11, %v1077_v12  ;;  %v2188_v11 = vld [vmem:[%s8274_s4 + $0x58] sm:$0xff] }
 0x264   : > { %1244 = vmatpush1.bf16.msra.mxu1 %v6642_v22  ;;  %1275 = vmatprep.mubr.bf16.mxu1 %v7612_v26  ;;  %v1086_v22 = vld [vmem:[%s8160_s0 + $0x98] sm:$0xff] }
 0x265   : > { %1325 = vmatprep.subr.bf16.mxu1 %v6647_v32  ;;  %v6687_v29 = vcombine.high %v1086_v22, %v1094_v23  ;;  %v1072_v32 = vld [vmem:[%s8160_s0 + $0x28] sm:$0xff]  ;;  %v6686_v35 = vcombine.low %v1086_v22, %v1094_v23  ;;  %v2196_v22 = vld [vmem:[%s8274_s4 + $0x98] sm:$0xff] }
 0x336   : > { %v1060_v34 = vpop.f32.mrb[0].mxu1 }
 0x337   : > { %v1061_v36 = vadd.f32 %v6638_v33, %v1060_v34  ;;  %v6815_v37 = vpop.f32.mrb[1].mxu1  ;;  %v1080_v33 = vld [vmem:[%s8160_s0 + $0x68] sm:$0xff]  ;;  %v6684_v34 = vcombine.low %v1085_v20, %v1093_v21  ;;  %v2716_v20 = vunpack.c.h.s8.bf16 %v2188_v11 }
 0x338   : > { %v6675_v37 = vcombine.high %v1072_v32, %v1080_v33  ;;  %v2194_v21 = vld [vmem:[%s8274_s4 + $0x88] sm:$0xff] }
 0x339   : > { %v8193_v41 = vpack.c.bf16 %v1061_v36, %v1061_v36 }
 0x33b   : > { %6656 = vmatmul.mubr.msk.bf16.vlgmr.msra.gmra.mrb[4].mxu0 %vm1198_vm5, %v8193_v41  ;;  %6657 = vmatmul.mubr.msk.bf16.vlgmr.msra.gmra.mrb[4].mxu1 %vm1198_vm5, %v8193_v41 }
 0x33c   : > { %1285 = vmatpush1.bf16.msra.mxu0 %v6644_v27  ;;  %1326 = vmatpush1.bf16.msra.mxu1 %v6646_v31  ;;  %v6670_v27 = vcombine.low %v1070_v13, %v1078_v14  ;;  %v1079_v31 = vld [vmem:[%s8160_s0 + $0x60] sm:$0xff]  ;;  %v2708_v14 = vunpack.c.l.s8.bf16 %v2188_v11 }
 0x33d   : > { %1316 = vmatprep.mubr.bf16.mxu0 %v7612_v26  ;;  %1357 = vmatprep.mubr.bf16.mxu1 %v7612_v26  ;;  %v6673_v36 = vcombine.high %v1071_v30, %v1079_v31 }
 0x33e   : > { %1366 = vmatprep.subr.bf16.mxu0 %v6649_v42  ;;  %1407 = vmatprep.subr.bf16.mxu1 %v6651_v43  ;;  %v6672_v42 = vcombine.low %v1071_v30, %v1079_v31  ;;  %v6674_v43 = vcombine.low %v1072_v32, %v1080_v33  ;;  %v2730_v32 = vunpack.c.h.s8.bf16 %v2194_v21  ;;  %v2732_v33 = vunpack.c.h.s8.bf16 %v2196_v22 }
 0x343   : > { %6658 = vmatmul.mubr.msk.bf16.vlgmr.msra.gmra.mrb[8].mxu0 %vm1198_vm5, %v8193_v41  ;;  %6659 = vmatmul.mubr.msk.bf16.vlgmr.msra.gmra.mrb[8].mxu1 %vm1198_vm5, %v8193_v41 }
 0x344   : > { %1367 = vmatpush1.bf16.msra.mxu0 %v6648_v48  ;;  %1408 = vmatpush1.bf16.msra.mxu1 %v6650_v49  ;;  %v1074_v48 = vld [vmem:[%s8160_s0 + $0x38] sm:$0xff] }
 0x345   : > { %1398 = vmatprep.mubr.bf16.mxu0 %v7612_v26  ;;  %1439 = vmatprep.mubr.bf16.mxu1 %v7612_v26  ;;  %v1082_v49 = vld [vmem:[%s8160_s0 + $0x78] sm:$0xff] }
 0x346   : > { %1448 = vmatprep.subr.bf16.mxu0 %v6653_v50  ;;  %1489 = vmatprep.subr.bf16.mxu1 %v6655_v51  ;;  %v6688_v50 = vcombine.low %v1087_v38, %v1095_v39  ;;  %v6679_v53 = vcombine.high %v1074_v48, %v1082_v49  ;;  %v6678_v59 = vcombine.low %v1074_v48, %v1082_v49  ;;  %v2210_v48 = vld [vmem:[%s8274_s4 + $0x108] sm:$0xff]  ;;  %v2212_v49 = vld [vmem:[%s8274_s4 + $0x118] sm:$0xff] }
 0x34b   : > { %6660 = vmatmul.mubr.msk.bf16.vlgmr.msra.gmra.mrb[12].mxu0 %vm1198_vm5, %v8193_v41  ;;  %6661 = vmatmul.mubr.msk.bf16.vlgmr.msra.gmra.mrb[12].mxu1 %vm1198_vm5, %v8193_v41 }
 0x34c   : > { %1449 = vmatpush1.bf16.msra.mxu0 %v6652_v57  ;;  %1490 = vmatpush1.bf16.msra.mxu1 %v6654_v58  ;;  %v1098_v57 = vld [vmem:[%s8160_s0 + $0xf8] sm:$0xff]  ;;  %v6676_v58 = vcombine.low %v1073_v46, %v1081_v47 }
 0x34d   : > { %1480 = vmatprep.mubr.bf16.mxu0 %v7612_v26  ;;  %1521 = vmatprep.mubr.bf16.mxu1 %v7612_v26  ;;  %v6694_v1 = vcombine.low %v1090_v56, %v1098_v57 }
 0x34e   : > { %1701 = vmatprep.subr.bf16.mxu0 %v6665_v61  ;;  %1742 = vmatprep.subr.bf16.mxu1 %v6667_v62  ;;  %v6695_v61 = vcombine.high %v1090_v56, %v1098_v57  ;;  %v2178_v62 = vld [vmem:[%s8274_s4 + $0x8] sm:$0xff]  ;;  %v2762_v56 = vunpack.c.h.s8.bf16 %v2210_v48  ;;  %v2764_v57 = vunpack.c.h.s8.bf16 %v2212_v49 }
 0x34f   : > { %v2690_v2 = vunpack.c.l.s8.bf16 %v2178_v62  ;;  %v2698_v8 = vunpack.c.h.s8.bf16 %v2178_v62 }
 0x353   : > { %6662 = vmatmul.mubr.msk.bf16.vlgmr.msra.gmra.mrb[16].mxu0 %vm1198_vm5, %v8193_v41  ;;  %6663 = vmatmul.mubr.msk.bf16.vlgmr.msra.gmra.mrb[16].mxu1 %vm1198_vm5, %v8193_v41  ;;  %v1096_v41 = vld [vmem:[%s8160_s0 + $0xe8] sm:$0xff]  ;;  %s8355_s0 = scalar_lea.vmem [#allocation11], %s6625_s14  ;;  %s6632_s14 = sshll.u32 %s8157_s30, 1 }
 0x354   : > { %1702 = vmatpush1.bf16.msra.mxu0 %v6664_v5  ;;  %1743 = vmatpush1.bf16.msra.mxu1 %v6666_v6  ;;  %v6691_v45 = vcombine.high %v1088_v40, %v1096_v41  ;;  %v6690_v51 = vcombine.low %v1088_v40, %v1096_v41  ;;  %v2179_v5 = vld [vmem:[%s8274_s4 + $0x10] sm:$0xff]  ;;  %v2689_v6 = vunpack.c.l.s8.bf16 %v2177_v4  ;;  %v2201_v40 = vld [vmem:[%s8274_s4 + $0xc0] sm:$0xff] }
 0x355   : > { %1703 = vmatprep.subr.bf16.mxu0 %v6681_v9  ;;  %1744 = vmatprep.subr.bf16.mxu1 %v6683_v10  ;;  %v2691_v7 = vunpack.c.l.s8.bf16 %v2179_v5  ;;  %v2700_v9 = vunpack.c.h.s8.bf16 %v2180_v63  ;;  %v2186_v10 = vld [vmem:[%s8274_s4 + $0x48] sm:$0xff]  ;;  %v2699_v12 = vunpack.c.h.s8.bf16 %v2179_v5  ;;  %v2203_v41 = vld [vmem:[%s8274_s4 + $0xd0] sm:$0xff]  ;;  %v2745_v46 = vunpack.c.h.s8.bf16 %v2201_v40 }
 0x356   : > { %1733 = vmatprep.mubr.bf16.mxu0 %v7612_v26  ;;  %1774 = vmatprep.mubr.bf16.mxu1 %v7612_v26  ;;  %v2706_v13 = vunpack.c.l.s8.bf16 %v2186_v10  ;;  %v2747_v47 = vunpack.c.h.s8.bf16 %v2203_v41 }
 0x358   : > { %1704 = vmatpush1.bf16.msra.mxu0 %v6680_v15  ;;  %1745 = vmatpush1.bf16.msra.mxu1 %v6682_v16  ;;  %v2185_v15 = vld [vmem:[%s8274_s4 + $0x40] sm:$0xff]  ;;  %v2187_v16 = vld [vmem:[%s8274_s4 + $0x50] sm:$0xff] }
 0x359   : > { %1783 = vmatprep.subr.bf16.mxu0 %v6669_v18  ;;  %1824 = vmatprep.subr.bf16.mxu1 %v6671_v19  ;;  %v2705_v17 = vunpack.c.l.s8.bf16 %v2185_v15  ;;  %v2707_v18 = vunpack.c.l.s8.bf16 %v2187_v16  ;;  %v2714_v19 = vunpack.c.h.s8.bf16 %v2186_v10  ;;  %v2713_v23 = vunpack.c.h.s8.bf16 %v2185_v15 }
 0x35b   : > { %6696 = vmatmul.mubr.msk.bf16.vlgmr.msra.gmra.mrb[20].mxu0 %vm990_vm4, %v8243_v24  ;;  %6697 = vmatmul.mubr.msk.bf16.vlgmr.msra.gmra.mrb[20].mxu1 %vm990_vm4, %v8243_v24 }
 0x35c   : > { %1784 = vmatpush1.bf16.msra.mxu0 %v6668_v25  ;;  %1825 = vmatpush1.bf16.msra.mxu1 %v6670_v27  ;;  %v2722_v25 = vunpack.c.l.s8.bf16 %v2194_v21  ;;  %v2724_v27 = vunpack.c.l.s8.bf16 %v2196_v22 }
 0x35d   : > { %1785 = vmatprep.subr.bf16.mxu0 %v6685_v28  ;;  %1826 = vmatprep.subr.bf16.mxu1 %v6687_v29  ;;  %v2193_v28 = vld [vmem:[%s8274_s4 + $0x80] sm:$0xff]  ;;  %v2195_v29 = vld [vmem:[%s8274_s4 + $0x90] sm:$0xff] }
 0x35e   : > { %1815 = vmatprep.mubr.bf16.mxu0 %v7612_v26  ;;  %1856 = vmatprep.mubr.bf16.mxu1 %v7612_v26  ;;  %v2721_v30 = vunpack.c.l.s8.bf16 %v2193_v28  ;;  %v2723_v31 = vunpack.c.l.s8.bf16 %v2195_v29 }
 0x360   : > { %1786 = vmatpush1.bf16.msra.mxu0 %v6684_v34  ;;  %1827 = vmatpush1.bf16.msra.mxu1 %v6686_v35  ;;  %v2729_v34 = vunpack.c.h.s8.bf16 %v2193_v28  ;;  %v2731_v35 = vunpack.c.h.s8.bf16 %v2195_v29 }
 0x361   : > { %1865 = vmatprep.subr.bf16.mxu0 %v6673_v36  ;;  %1906 = vmatprep.subr.bf16.mxu1 %v6675_v37  ;;  %v2202_v36 = vld [vmem:[%s8274_s4 + $0xc8] sm:$0xff]  ;;  %v2204_v37 = vld [vmem:[%s8274_s4 + $0xd8] sm:$0xff] }
 0x362   : > { %v2738_v38 = vunpack.c.l.s8.bf16 %v2202_v36  ;;  %v2740_v39 = vunpack.c.l.s8.bf16 %v2204_v37 }
 0x363   : > { %6698 = vmatmul.mubr.msk.bf16.vlgmr.msra.gmra.mrb[24].mxu0 %vm990_vm4, %v8243_v24  ;;  %6699 = vmatmul.mubr.msk.bf16.vlgmr.msra.gmra.mrb[24].mxu1 %vm990_vm4, %v8243_v24 }
 0x364   : > { %1866 = vmatpush1.bf16.msra.mxu0 %v6672_v42  ;;  %1907 = vmatpush1.bf16.msra.mxu1 %v6674_v43  ;;  %v2737_v42 = vunpack.c.l.s8.bf16 %v2201_v40  ;;  %v2739_v43 = vunpack.c.l.s8.bf16 %v2203_v41 }
 0x365   : > { %1867 = vmatprep.subr.bf16.mxu0 %v6689_v44  ;;  %1908 = vmatprep.subr.bf16.mxu1 %v6691_v45  ;;  %v2746_v44 = vunpack.c.h.s8.bf16 %v2202_v36  ;;  %v2748_v45 = vunpack.c.h.s8.bf16 %v2204_v37 }
 0x366   : > { %1897 = vmatprep.mubr.bf16.mxu0 %v7612_v26  ;;  %1938 = vmatprep.mubr.bf16.mxu1 %v7612_v26 }
 0x368   : > { %1868 = vmatpush1.bf16.msra.mxu0 %v6688_v50  ;;  %1909 = vmatpush1.bf16.msra.mxu1 %v6690_v51  ;;  %v2754_v50 = vunpack.c.l.s8.bf16 %v2210_v48  ;;  %v2756_v51 = vunpack.c.l.s8.bf16 %v2212_v49 }
 0x369   : > { %1947 = vmatprep.subr.bf16.mxu0 %v6677_v52  ;;  %1988 = vmatprep.subr.bf16.mxu1 %v6679_v53  ;;  %v2209_v52 = vld [vmem:[%s8274_s4 + $0x100] sm:$0xff]  ;;  %v2211_v53 = vld [vmem:[%s8274_s4 + $0x110] sm:$0xff] }
 0x36a   : > { %v2753_v54 = vunpack.c.l.s8.bf16 %v2209_v52  ;;  %v2755_v55 = vunpack.c.l.s8.bf16 %v2211_v53 }
 0x36b   : > { %6700 = vmatmul.mubr.msk.bf16.vlgmr.msra.gmra.mrb[28].mxu0 %vm990_vm4, %v8243_v24  ;;  %6701 = vmatmul.mubr.msk.bf16.vlgmr.msra.gmra.mrb[28].mxu1 %vm990_vm4, %v8243_v24 }
 0x36c   : > { %1948 = vmatpush1.bf16.msra.mxu0 %v6676_v58  ;;  %1989 = vmatpush1.bf16.msra.mxu1 %v6678_v59  ;;  %v2761_v58 = vunpack.c.h.s8.bf16 %v2209_v52  ;;  %v2763_v59 = vunpack.c.h.s8.bf16 %v2211_v53 }
 0x36d   : > { %1949 = vmatprep.subr.bf16.mxu0 %v6693_v60  ;;  %1990 = vmatprep.subr.bf16.mxu1 %v6695_v61  ;;  %v2218_v60 = vld [vmem:[%s8274_s4 + $0x148] sm:$0xff]  ;;  %v2220_v61 = vld [vmem:[%s8274_s4 + $0x158] sm:$0xff] }
 0x36e   : > { %1979 = vmatprep.mubr.bf16.mxu0 %v7612_v26  ;;  %2020 = vmatprep.mubr.bf16.mxu1 %v7612_v26  ;;  %v2697_v26 = vunpack.c.h.s8.bf16 %v2177_v4  ;;  %v2770_v62 = vunpack.c.l.s8.bf16 %v2218_v60  ;;  %v2772_v63 = vunpack.c.l.s8.bf16 %v2220_v61  ;;  %v2778_v4 = vunpack.c.h.s8.bf16 %v2218_v60 }
 0x36f   : > { %v2780_v5 = vunpack.c.h.s8.bf16 %v2220_v61  ;;  %v2033_v60 = vlaneseq }
 0x370   : > { %1950 = vmatpush1.bf16.msra.mxu0 %v6692_v0  ;;  %1991 = vmatpush1.bf16.msra.mxu1 %v6694_v1  ;;  %v2217_v0 = vld [vmem:[%s8274_s4 + $0x140] sm:$0xff]  ;;  %v2219_v1 = vld [vmem:[%s8274_s4 + $0x150] sm:$0xff] }
 0x371   : > { %3729 = vmatprep.subr.bf16.mxu0 %v2690_v2  ;;  %4057 = vmatprep.subr.bf16.mxu1 %v2692_v3  ;;  %v2769_v2 = vunpack.c.l.s8.bf16 %v2217_v0  ;;  %v2771_v3 = vunpack.c.l.s8.bf16 %v2219_v1  ;;  %v2034_v61 = vshrl.u32 %v2033_v60, 7 }
 0x373   : > { %6702 = vmatmul.mubr.msk.bf16.vlgmr.msra.gmra.mrb[32].mxu0 %vm990_vm4, %v8243_v24  ;;  %6703 = vmatmul.mubr.msk.bf16.vlgmr.msra.gmra.mrb[32].mxu1 %vm990_vm4, %v8243_v24  ;;  %v2715_v24 = vunpack.c.h.s8.bf16 %v2187_v16 }
 0x374   : > { %3730 = vmatpush1.bf16.msra.mxu0 %v2689_v6  ;;  %4058 = vmatpush1.bf16.msra.mxu1 %v2691_v7  ;;  %v2777_v6 = vunpack.c.h.s8.bf16 %v2217_v0  ;;  %v2779_v7 = vunpack.c.h.s8.bf16 %v2219_v1 }
 0x375   : > { %3731 = vmatprep.subr.bf16.mxu0 %v2698_v8  ;;  %4059 = vmatprep.subr.bf16.mxu1 %v2700_v9  ;;  %v2226_v8 = vld [vmem:[%s8274_s4 + $0x188] sm:$0xff]  ;;  %v2228_v9 = vld [vmem:[%s8274_s4 + $0x198] sm:$0xff] }
 0x376   : > { %v2786_v10 = vunpack.c.l.s8.bf16 %v2226_v8  ;;  %v2788_v11 = vunpack.c.l.s8.bf16 %v2228_v9  ;;  %v2794_v15 = vunpack.c.h.s8.bf16 %v2226_v8  ;;  %v2796_v16 = vunpack.c.h.s8.bf16 %v2228_v9  ;;  %v8358_v8 = vld [vmem:[%s8355_s0] sm:$0xff] }
 0x377   : > { %v8360_v9 = vsub.s32 1, %v2034_v61 }
 0x378   : > { %3732 = vmatpush1.bf16.msra.mxu0 %v2697_v26  ;;  %4060 = vmatpush1.bf16.msra.mxu1 %v2699_v12  ;;  %v2225_v26 = vld [vmem:[%s8274_s4 + $0x180] sm:$0xff]  ;;  %v2227_v12 = vld [vmem:[%s8274_s4 + $0x190] sm:$0xff] }
 0x379   : > { %3733 = vmatprep.subr.bf16.mxu0 %v2706_v13  ;;  %4061 = vmatprep.subr.bf16.mxu1 %v2708_v14  ;;  %v2785_v13 = vunpack.c.l.s8.bf16 %v2225_v26  ;;  %v2787_v14 = vunpack.c.l.s8.bf16 %v2227_v12 }
 0x37c   : > { %3734 = vmatpush1.bf16.msra.mxu0 %v2705_v17  ;;  %4062 = vmatpush1.bf16.msra.mxu1 %v2707_v18  ;;  %v2793_v17 = vunpack.c.h.s8.bf16 %v2225_v26  ;;  %v2795_v18 = vunpack.c.h.s8.bf16 %v2227_v12 }
 0x37d   : > { %3735 = vmatprep.subr.bf16.mxu0 %v2714_v19  ;;  %4063 = vmatprep.subr.bf16.mxu1 %v2716_v20  ;;  %v2234_v19 = vld [vmem:[%s8274_s4 + $0x1c8] sm:$0xff]  ;;  %v2236_v20 = vld [vmem:[%s8274_s4 + $0x1d8] sm:$0xff] }
 0x37e   : > { %v2802_v21 = vunpack.c.l.s8.bf16 %v2234_v19  ;;  %v2804_v22 = vunpack.c.l.s8.bf16 %v2236_v20  ;;  %v2810_v28 = vunpack.c.h.s8.bf16 %v2234_v19  ;;  %v2812_v29 = vunpack.c.h.s8.bf16 %v2236_v20 }
 0x380   : > { %3736 = vmatpush1.bf16.msra.mxu0 %v2713_v23  ;;  %4064 = vmatpush1.bf16.msra.mxu1 %v2715_v24  ;;  %v2233_v23 = vld [vmem:[%s8274_s4 + $0x1c0] sm:$0xff]  ;;  %v2235_v24 = vld [vmem:[%s8274_s4 + $0x1d0] sm:$0xff] }
 0x381   : > { %3737 = vmatprep.subr.bf16.mxu0 %v2722_v25  ;;  %4065 = vmatprep.subr.bf16.mxu1 %v2724_v27  ;;  %v2801_v25 = vunpack.c.l.s8.bf16 %v2233_v23  ;;  %v2803_v27 = vunpack.c.l.s8.bf16 %v2235_v24 }
 0x384   : > { %3738 = vmatpush1.bf16.msra.mxu0 %v2721_v30  ;;  %4066 = vmatpush1.bf16.msra.mxu1 %v2723_v31  ;;  %v2809_v30 = vunpack.c.h.s8.bf16 %v2233_v23  ;;  %v2811_v31 = vunpack.c.h.s8.bf16 %v2235_v24  ;;  %v8372_v24 = vsub.s32 4, %v2034_v61 }
 0x385   : > { %3739 = vmatprep.subr.bf16.mxu0 %v2730_v32  ;;  %4067 = vmatprep.subr.bf16.mxu1 %v2732_v33  ;;  %v8319_v32 = vld [vmem:[%s8274_s4 + $0x208] sm:$0xff]  ;;  %v8322_v33 = vld [vmem:[%s8274_s4 + $0x218] sm:$0xff] }
 0x388   : > { %3740 = vmatpush1.bf16.msra.mxu0 %v2729_v34  ;;  %4068 = vmatpush1.bf16.msra.mxu1 %v2731_v35  ;;  %v2818_v34 = vunpack.c.l.s8.bf16 %v8319_v32  ;;  %v2820_v35 = vunpack.c.l.s8.bf16 %v8322_v33 }
 0x389   : > { %3741 = vmatprep.subr.bf16.mxu0 %v2738_v38  ;;  %4069 = vmatprep.subr.bf16.mxu1 %v2740_v39 }
 0x38c   : > { %3742 = vmatpush1.bf16.msra.mxu0 %v2737_v42  ;;  %4070 = vmatpush1.bf16.msra.mxu1 %v2739_v43 }
 0x38d   : > { %3743 = vmatprep.subr.bf16.mxu0 %v2746_v44  ;;  %4071 = vmatprep.subr.bf16.mxu1 %v2748_v45 }
 0x390   : > { %3744 = vmatpush1.bf16.msra.mxu0 %v2745_v46  ;;  %4072 = vmatpush1.bf16.msra.mxu1 %v2747_v47 }
 0x391   : > { %3745 = vmatprep.subr.bf16.mxu0 %v2754_v50  ;;  %4073 = vmatprep.subr.bf16.mxu1 %v2756_v51 }
 0x394   : > { %3746 = vmatpush1.bf16.msra.mxu0 %v2753_v54  ;;  %4074 = vmatpush1.bf16.msra.mxu1 %v2755_v55 }
 0x395   : > { %3747 = vmatprep.subr.bf16.mxu0 %v2762_v56  ;;  %4075 = vmatprep.subr.bf16.mxu1 %v2764_v57 }
 0x398   : > { %3748 = vmatpush1.bf16.msra.mxu0 %v2761_v58  ;;  %4076 = vmatpush1.bf16.msra.mxu1 %v2763_v59 }
 0x399   : > { %3749 = vmatprep.subr.bf16.mxu0 %v2770_v62  ;;  %4077 = vmatprep.subr.bf16.mxu1 %v2772_v63 }
 0x39c   : > { %3750 = vmatpush1.bf16.msra.mxu0 %v2769_v2  ;;  %4078 = vmatpush1.bf16.msra.mxu1 %v2771_v3 }
 0x39d   : > { %3751 = vmatprep.subr.bf16.mxu0 %v2778_v4  ;;  %4079 = vmatprep.subr.bf16.mxu1 %v2780_v5 }
 0x3a0   : > { %3752 = vmatpush1.bf16.msra.mxu0 %v2777_v6  ;;  %4080 = vmatpush1.bf16.msra.mxu1 %v2779_v7  ;;  %v8351_v6 = vsub.s32 0, %v2034_v61  ;;  %v8353_v7 = vsub.s32 2, %v2034_v61 }
 0x3a1   : > { %3753 = vmatprep.subr.bf16.mxu0 %v2786_v10  ;;  %4081 = vmatprep.subr.bf16.mxu1 %v2788_v11  ;;  %v8362_v10 = vsub.s32 3, %v2034_v61 }
 0x3a2   : > { %v2036_v11 = vrot.slane %v8358_v8, %v8351_v6  ;;  %v2044_v26 = vrot.slane %v8358_v8, %v8353_v7 }
 0x3a4   : > { %3754 = vmatpush1.bf16.msra.mxu0 %v2785_v13  ;;  %4082 = vmatpush1.bf16.msra.mxu1 %v2787_v14  ;;  %v2040_v14 = vrot.slane %v8358_v8, %v8360_v9 }
 0x3a5   : > { %3755 = vmatprep.subr.bf16.mxu0 %v2794_v15  ;;  %4083 = vmatprep.subr.bf16.mxu1 %v2796_v16  ;;  %v2048_v15 = vrot.slane %v8358_v8, %v8362_v10 }
 0x3a8   : > { %3756 = vmatpush1.bf16.msra.mxu0 %v2793_v17  ;;  %4084 = vmatpush1.bf16.msra.mxu1 %v2795_v18 }
 0x3a9   : > { %3757 = vmatprep.subr.bf16.mxu0 %v2802_v21  ;;  %4085 = vmatprep.subr.bf16.mxu1 %v2804_v22 }
 0x3ac   : > { %3758 = vmatpush1.bf16.msra.mxu0 %v2801_v25  ;;  %4086 = vmatpush1.bf16.msra.mxu1 %v2803_v27 }
 0x3ad   : > { %3759 = vmatprep.subr.bf16.mxu0 %v2810_v28  ;;  %4087 = vmatprep.subr.bf16.mxu1 %v2812_v29 }
 0x3b0   : > { %3760 = vmatpush1.bf16.msra.mxu0 %v2809_v30  ;;  %4088 = vmatpush1.bf16.msra.mxu1 %v2811_v31  ;;  %v8376_v30 = vsub.s32 6, %v2034_v61  ;;  %v8378_v31 = vsub.s32 5, %v2034_v61 }
 0x3b1   : > { %3770 = vmatprep.subr.bf16.mxu0 %v2818_v34  ;;  %4098 = vmatprep.subr.bf16.mxu1 %v2820_v35 }
 0x40e   : > { %v1236_v36 = vpop.f32.mrb[4].mxu0  ;;  %v1277_v37 = vpop.f32.mrb[4].mxu1 }
 0x40f   : > { %v1238_v38 = vpop.f32.mrb[5].mxu0  ;;  %v1279_v39 = vpop.f32.mrb[5].mxu1 }
 0x410   : > { %v1240_v40 = vpop.f32.mrb[6].mxu0  ;;  %v1281_v41 = vpop.f32.mrb[6].mxu1 }
 0x411   : > { %v1241_v42 = vpop.f32.mrb[7].mxu0  ;;  %v1282_v43 = vpop.f32.mrb[7].mxu1 }
 0x412   : > { %v2052_v43 = vrot.slane %v8358_v8, %v8372_v24 }
 0x416   : > { %v8326_v44 = vpop.f32.mrb[8].mxu0  ;;  %v8328_v45 = vpop.f32.mrb[8].mxu1 }
 0x417   : > { %v8330_v46 = vpop.f32.mrb[9].mxu0  ;;  %v8332_v47 = vpop.f32.mrb[9].mxu1 }
 0x418   : > { %v1322_v48 = vpop.f32.mrb[10].mxu0  ;;  %v1363_v49 = vpop.f32.mrb[10].mxu1 }
 0x419   : > { %v1323_v50 = vpop.f32.mrb[11].mxu0  ;;  %v1364_v51 = vpop.f32.mrb[11].mxu1  ;;  %v2060_v48 = vrot.slane %v8358_v8, %v8376_v30  ;;  %v2056_v49 = vrot.slane %v8358_v8, %v8378_v31 }
 0x41e   : > { %v8334_v52 = vpop.f32.mrb[12].mxu0  ;;  %v8336_v53 = vpop.f32.mrb[12].mxu1 }
 0x41f   : > { %v8338_v54 = vpop.f32.mrb[13].mxu0  ;;  %v8340_v55 = vpop.f32.mrb[13].mxu1 }
 0x420   : > { %v1404_v56 = vpop.f32.mrb[14].mxu0  ;;  %v1445_v57 = vpop.f32.mrb[14].mxu1 }
 0x421   : > { %v1405_v58 = vpop.f32.mrb[15].mxu0  ;;  %v1446_v59 = vpop.f32.mrb[15].mxu1 }
 0x426   : > { %v8343_v62 = vpop.f32.mrb[16].mxu0  ;;  %v8345_v63 = vpop.f32.mrb[16].mxu1 }
 0x427   : > { %v8347_v0 = vpop.f32.mrb[17].mxu0  ;;  %v8349_v1 = vpop.f32.mrb[17].mxu1 }
 0x428   : > { %v1486_v2 = vpop.f32.mrb[18].mxu0  ;;  %v1527_v3 = vpop.f32.mrb[18].mxu1 }
 0x429   : > { %v1487_v4 = vpop.f32.mrb[19].mxu0  ;;  %v1528_v5 = vpop.f32.mrb[19].mxu1 }
 0x42e   : > { %v1735_v12 = vpop.f32.mrb[20].mxu0  ;;  %v1776_v13 = vpop.f32.mrb[20].mxu1 }
 0x42f   : > { %v1736_v16 = vadd.f32 %v1735_v12, %v1236_v36  ;;  %v1777_v17 = vadd.f32 %v1776_v13, %v1277_v37  ;;  %v1737_v18 = vpop.f32.mrb[21].mxu0  ;;  %v1778_v19 = vpop.f32.mrb[21].mxu1  ;;  %v8380_v36 = vsub.s32 7, %v2034_v61 }
 0x430   : > { %v1738_v20 = vadd.f32 %v1737_v18, %v1238_v38  ;;  %v1779_v21 = vadd.f32 %v1778_v19, %v1279_v39  ;;  %v1739_v22 = vpop.f32.mrb[22].mxu0  ;;  %v1780_v23 = vpop.f32.mrb[22].mxu1  ;;  %v8383_v38 = vld [vmem:[%s8274_s4 + $0x200] sm:$0xff]  ;;  %v8386_v39 = vld [vmem:[%s8274_s4 + $0x210] sm:$0xff] }
 0x431   : > { %v2113_v25 = vadd.f32 %v2036_v11, %v1736_v16  ;;  %v8374_v27 = vadd.f32 %v2044_v26, %v1777_v17  ;;  %v1740_v28 = vpop.f32.mrb[23].mxu0  ;;  %v1781_v29 = vpop.f32.mrb[23].mxu1  ;;  %v2064_v57 = vrot.slane %v8358_v8, %v8380_v36  ;;  %v2817_v58 = vunpack.c.l.s8.bf16 %v8383_v38  ;;  %v2249_v23 = vld [vmem:[%s8274_s4 + $0x240] sm:$0xff] }
 0x432   : > { %v2114_v34 = vadd.f32 %v2040_v14, %v1738_v20  ;;  %v2116_v35 = vadd.f32 %v2048_v15, %v1779_v21  ;;  %v2819_v59 = vunpack.c.l.s8.bf16 %v8386_v39  ;;  %v2826_v16 = vunpack.c.h.s8.bf16 %v8319_v32  ;;  %v8424_v20 = vld [vmem:[%s8355_s0 + $0x8] sm:$0xff]  ;;  %s790_s0 = scalar_lea.vmem [#allocation18], %s8157_s30 }
 0x433   : > { %vm2129_vm7 = vcmp.ge.f32.partialorder %v2113_v25, 0.0  ;;  %v2145_v37 = vmul.f32 0.2, %v2113_v25  ;;  %v2252_v21 = vld [vmem:[%s8274_s4 + $0x258] sm:$0xff]  ;;  %v2825_v32 = vunpack.c.h.s8.bf16 %v8383_v38  ;;  %v2076_v28 = vrot.slane %v8424_v20, %v8353_v7 }
 0x434   : > { %vm2130_vm8 = vcmp.ge.f32.partialorder %v2114_v34, 0.0  ;;  %v2146_v40 = vmul.f32 0.2, %v2114_v34  ;;  %vm2132_vm9 = vcmp.ge.f32.partialorder %v2116_v35, 0.0  ;;  %v2148_v41 = vmul.f32 0.2, %v2116_v35 }
 0x435   : > { %v2161_v42 = vsel %vm2129_vm7, %v2113_v25, %v2145_v37  ;;  %v2068_v25 = vrot.slane %v8424_v20, %v8351_v6  ;;  %v2836_v29 = vunpack.c.l.s8.bf16 %v2252_v21  ;;  %v2072_v38 = vrot.slane %v8424_v20, %v8360_v9 }
 0x436   : > { %v2162_v50 = vsel %vm2130_vm8, %v2114_v34, %v2146_v40  ;;  %v1817_v51 = vpop.f32.mrb[24].mxu0  ;;  %v1858_v56 = vpop.f32.mrb[24].mxu1  ;;  %v2164_v61 = vsel %vm2132_vm9, %v2116_v35, %v2148_v41  ;;  %v8402_v11 = vpack.c.bf16 %v2161_v42, %v2161_v42  ;;  %v2251_v34 = vld [vmem:[%s8274_s4 + $0x250] sm:$0xff]  ;;  %vm2131_vm10 = vcmp.ge.f32.partialorder %v8374_v27, 0.0 }
 0x437   : > { %v8398_v60 = vpack.c.bf16 %v2162_v50, %v2162_v50  ;;  %v1818_v2 = vadd.f32 %v1817_v51, %v8326_v44  ;;  %v1859_v3 = vadd.f32 %v1858_v56, %v8328_v45  ;;  %v1819_v4 = vpop.f32.mrb[25].mxu0  ;;  %v1860_v5 = vpop.f32.mrb[25].mxu1  ;;  %v8415_v17 = vpack.c.bf16 %v2164_v61, %v2164_v61 }
 0x438   : > { %v1820_v26 = vadd.f32 %v1819_v4, %v8330_v46  ;;  %v1861_v8 = vadd.f32 %v1860_v5, %v8332_v47  ;;  %v1821_v12 = vpop.f32.mrb[26].mxu0  ;;  %v1862_v13 = vpop.f32.mrb[26].mxu1  ;;  %v2828_v46 = vunpack.c.h.s8.bf16 %v8322_v33  ;;  %v2250_v47 = vld [vmem:[%s8274_s4 + $0x248] sm:$0xff]  ;;  %v2827_v33 = vunpack.c.h.s8.bf16 %v8386_v39 }
 0x439   : > { %v8406_v14 = vadd.f32 %v2052_v43, %v1818_v2  ;;  %v8408_v15 = vadd.f32 %v2060_v48, %v1859_v3  ;;  %3761 = vmatprep.mubr.bf16.mxu0 %v8398_v60  ;;  %4089 = vmatprep.mubr.bf16.mxu1 %v8398_v60  ;;  %v1822_v44 = vpop.f32.mrb[27].mxu0  ;;  %v1863_v45 = vpop.f32.mrb[27].mxu1  ;;  %v2834_v22 = vunpack.c.l.s8.bf16 %v2250_v47  ;;  %v2080_v39 = vrot.slane %v8424_v20, %v8362_v10  ;;  %v2258_v3 = vld [vmem:[%s8274_s4 + $0x288] sm:$0xff]  ;;  %v2257_v12 = vld [vmem:[%s8274_s4 + $0x280] sm:$0xff] }
 0x43a   : > { %v8417_v18 = vadd.f32 %v2056_v49, %v1820_v26  ;;  %v8419_v19 = vadd.f32 %v2064_v57, %v1861_v8  ;;  %3762 = vmatmul.mubr.bf16.vlgmr.msra.gmra.mrb[36].mxu0 %v8402_v11  ;;  %4090 = vmatmul.mubr.bf16.vlgmr.msra.gmra.mrb[36].mxu1 %v8402_v11  ;;  %v2833_v48 = vunpack.c.l.s8.bf16 %v2249_v23  ;;  %v2835_v51 = vunpack.c.l.s8.bf16 %v2251_v34 }
 0x43b   : > { %3771 = vmatpush1.bf16.msra.mxu0 %v2817_v58  ;;  %4099 = vmatpush1.bf16.msra.mxu1 %v2819_v59  ;;  %v2842_v58 = vunpack.c.h.s8.bf16 %v2250_v47  ;;  %v2844_v2 = vunpack.c.h.s8.bf16 %v2252_v21  ;;  %v2841_v5 = vunpack.c.h.s8.bf16 %v2249_v23  ;;  %v2843_v26 = vunpack.c.h.s8.bf16 %v2251_v34 }
 0x43c   : > { %3802 = vmatprep.mubr.bf16.mxu0 %v8415_v17  ;;  %4130 = vmatprep.mubr.bf16.mxu1 %v8415_v17  ;;  %v2850_v8 = vunpack.c.l.s8.bf16 %v2258_v3  ;;  %v2084_v13 = vrot.slane %v8424_v20, %v8372_v24  ;;  %v2092_v44 = vrot.slane %v8424_v20, %v8376_v30  ;;  %v2088_v21 = vrot.slane %v8424_v20, %v8378_v31 }
 0x43d   : > { %3772 = vmatprep.subr.bf16.mxu0 %v2826_v16  ;;  %4100 = vmatprep.subr.bf16.mxu1 %v2828_v46  ;;  %v2259_v16 = vld [vmem:[%s8274_s4 + $0x290] sm:$0xff]  ;;  %vm2134_vm11 = vcmp.ge.f32.partialorder %v8417_v18, 0.0  ;;  %vm2133_vm12 = vcmp.ge.f32.partialorder %v8406_v14, 0.0  ;;  %vm2136_vm13 = vcmp.ge.f32.partialorder %v8419_v19, 0.0  ;;  %vm2135_vm14 = vcmp.ge.f32.partialorder %v8408_v15, 0.0 }
 0x43e   : > { %v1899_v35 = vpop.f32.mrb[28].mxu0  ;;  %v1940_v37 = vpop.f32.mrb[28].mxu1 }
 0x43f   : > { %v1900_v40 = vadd.f32 %v1899_v35, %v8334_v52  ;;  %v1941_v41 = vadd.f32 %v1940_v37, %v8336_v53  ;;  %3773 = vmatpush1.bf16.msra.mxu0 %v2825_v32  ;;  %v1901_v42 = vpop.f32.mrb[29].mxu0  ;;  %v1942_v43 = vpop.f32.mrb[29].mxu1  ;;  %4101 = vmatpush1.bf16.msra.mxu1 %v2827_v33  ;;  %v2096_v32 = vrot.slane %v8424_v20, %v8380_v36  ;;  %v2851_v35 = vunpack.c.l.s8.bf16 %v2259_v16 }
 0x440   : > { %v1902_v49 = vadd.f32 %v1901_v42, %v8338_v54  ;;  %v1943_v50 = vadd.f32 %v1942_v43, %v8340_v55  ;;  %3774 = vmatprep.subr.bf16.mxu0 %v2834_v22  ;;  %v1903_v56 = vpop.f32.mrb[30].mxu0  ;;  %v1944_v57 = vpop.f32.mrb[30].mxu1  ;;  %4102 = vmatprep.subr.bf16.mxu1 %v2836_v29  ;;  %v2260_v55 = vld [vmem:[%s8274_s4 + $0x298] sm:$0xff]  ;;  %v2858_v37 = vunpack.c.h.s8.bf16 %v2258_v3  ;;  %v2274_v3 = vld [vmem:[%s8274_s4 + $0x308] sm:$0xff] }
 0x441   : > { %v8445_v59 = vadd.f32 %v2068_v25, %v1900_v40  ;;  %v8447_v52 = vadd.f32 %v2076_v28, %v1941_v41  ;;  %v1904_v53 = vpop.f32.mrb[31].mxu0  ;;  %v1945_v61 = vpop.f32.mrb[31].mxu1  ;;  %v2852_v45 = vunpack.c.l.s8.bf16 %v2260_v55  ;;  %v2849_v28 = vunpack.c.l.s8.bf16 %v2257_v12  ;;  %v2266_v40 = vld [vmem:[%s8274_s4 + $0x2c8] sm:$0xff]  ;;  %v2267_v57 = vld [vmem:[%s8274_s4 + $0x2d0] sm:$0xff] }
 0x442   : > { %v8450_v54 = vadd.f32 %v2072_v38, %v1902_v49  ;;  %v8452_v4 = vadd.f32 %v2080_v39, %v1943_v50  ;;  %v2859_v49 = vunpack.c.h.s8.bf16 %v2259_v16  ;;  %v2866_v50 = vunpack.c.l.s8.bf16 %v2266_v40 }
 0x443   : > { %3775 = vmatpush1.bf16.msra.mxu0 %v2833_v48  ;;  %4103 = vmatpush1.bf16.msra.mxu1 %v2835_v51  ;;  %v2857_v48 = vunpack.c.h.s8.bf16 %v2257_v12  ;;  %v2265_v51 = vld [vmem:[%s8274_s4 + $0x2c0] sm:$0xff]  ;;  %v2867_v53 = vunpack.c.l.s8.bf16 %v2267_v57  ;;  %v2874_v61 = vunpack.c.h.s8.bf16 %v2266_v40  ;;  %vm2137_vm0 = vcmp.ge.f32.partialorder %v8445_v59, 0.0 }
 0x444   : > { %3776 = vmatprep.subr.bf16.mxu0 %v2842_v58  ;;  %4104 = vmatprep.subr.bf16.mxu1 %v2844_v2  ;;  %v2865_v58 = vunpack.c.l.s8.bf16 %v2265_v51  ;;  %v2273_v12 = vld [vmem:[%s8274_s4 + $0x300] sm:$0xff]  ;;  %vm2138_vm15 = vcmp.ge.f32.partialorder %v8450_v54, 0.0  ;;  %vm2140_vm1 = vcmp.ge.f32.partialorder %v8452_v4, 0.0  ;;  %vm2139_vm2 = vcmp.ge.f32.partialorder %v8447_v52, 0.0 }
 0x446   : > { %v1981_v46 = vpop.f32.mrb[32].mxu0  ;;  %v2022_v47 = vpop.f32.mrb[32].mxu1 }
 0x447   : > { %v1982_v33 = vadd.f32 %v1981_v46, %v8343_v62  ;;  %v2023_v22 = vadd.f32 %v2022_v47, %v8345_v63  ;;  %3777 = vmatpush1.bf16.msra.mxu0 %v2841_v5  ;;  %v1983_v23 = vpop.f32.mrb[33].mxu0  ;;  %v2024_v25 = vpop.f32.mrb[33].mxu1  ;;  %4105 = vmatpush1.bf16.msra.mxu1 %v2843_v26  ;;  %v2860_v63 = vunpack.c.h.s8.bf16 %v2260_v55  ;;  %v2276_v55 = vld [vmem:[%s8274_s4 + $0x318] sm:$0xff]  ;;  %v2873_v5 = vunpack.c.h.s8.bf16 %v2265_v51 }
 0x448   : > { %v1984_v29 = vadd.f32 %v1983_v23, %v8347_v0  ;;  %v2025_v34 = vadd.f32 %v2024_v25, %v8349_v1  ;;  %3778 = vmatprep.subr.bf16.mxu0 %v2850_v8  ;;  %v1985_v38 = vpop.f32.mrb[34].mxu0  ;;  %v2026_v20 = vpop.f32.mrb[34].mxu1  ;;  %4106 = vmatprep.subr.bf16.mxu1 %v2852_v45  ;;  %v2268_v1 = vld [vmem:[%s8274_s4 + $0x2d8] sm:$0xff]  ;;  %v2875_v26 = vunpack.c.h.s8.bf16 %v2267_v57  ;;  %v2882_v8 = vunpack.c.l.s8.bf16 %v2274_v3  ;;  %v2281_v25 = vld [vmem:[%s8274_s4 + $0x340] sm:$0xff] }
 0x449   : > { %v8469_v39 = vadd.f32 %v2084_v13, %v1982_v33  ;;  %v8471_v62 = vadd.f32 %v2092_v44, %v2023_v22  ;;  %v1986_v41 = vpop.f32.mrb[35].mxu0  ;;  %v2027_v42 = vpop.f32.mrb[35].mxu1  ;;  %v2868_v56 = vunpack.c.l.s8.bf16 %v2268_v1  ;;  %v2876_v2 = vunpack.c.h.s8.bf16 %v2268_v1  ;;  %v2275_v44 = vld [vmem:[%s8274_s4 + $0x310] sm:$0xff]  ;;  %v2290_v20 = vld [vmem:[%s8274_s4 + $0x388] sm:$0xff]  ;;  %v2289_v1 = vld [vmem:[%s8274_s4 + $0x380] sm:$0xff] }
 0x44a   : > { %v8474_v0 = vadd.f32 %v2088_v21, %v1984_v29  ;;  %v8476_v43 = vadd.f32 %v2096_v32, %v2025_v34  ;;  %v2884_v13 = vunpack.c.l.s8.bf16 %v2276_v55  ;;  %v2881_v45 = vunpack.c.l.s8.bf16 %v2273_v12  ;;  %v2282_v21 = vld [vmem:[%s8274_s4 + $0x348] sm:$0xff]  ;;  %v2284_v32 = vld [vmem:[%s8274_s4 + $0x358] sm:$0xff]  ;;  %v2283_v29 = vld [vmem:[%s8274_s4 + $0x350] sm:$0xff] }
 0x44b   : > { %3779 = vmatpush1.bf16.msra.mxu0 %v2849_v28  ;;  %4107 = vmatpush1.bf16.msra.mxu1 %v2851_v35  ;;  %v2883_v16 = vunpack.c.l.s8.bf16 %v2275_v44  ;;  %v2890_v46 = vunpack.c.h.s8.bf16 %v2274_v3  ;;  %v2892_v47 = vunpack.c.h.s8.bf16 %v2276_v55  ;;  %v2889_v33 = vunpack.c.h.s8.bf16 %v2273_v12  ;;  %v2297_v55 = vld [vmem:[%s8274_s4 + $0x3c0] sm:$0xff] }
 0x44c   : > { %3780 = vmatprep.subr.bf16.mxu0 %v2858_v37  ;;  %4108 = vmatprep.subr.bf16.mxu1 %v2860_v63  ;;  %v2891_v22 = vunpack.c.h.s8.bf16 %v2275_v44  ;;  %v2898_v23 = vunpack.c.l.s8.bf16 %v2282_v21  ;;  %v2900_v28 = vunpack.c.l.s8.bf16 %v2284_v32  ;;  %v2897_v34 = vunpack.c.l.s8.bf16 %v2281_v25  ;;  %v2292_v63 = vld [vmem:[%s8274_s4 + $0x398] sm:$0xff] }
 0x44d   : > { %v2899_v35 = vunpack.c.l.s8.bf16 %v2283_v29  ;;  %v2906_v37 = vunpack.c.h.s8.bf16 %v2282_v21  ;;  %v2908_v38 = vunpack.c.h.s8.bf16 %v2284_v32  ;;  %v2905_v40 = vunpack.c.h.s8.bf16 %v2281_v25 }
 0x44e   : > { %v2907_v41 = vunpack.c.h.s8.bf16 %v2283_v29  ;;  %v2914_v42 = vunpack.c.l.s8.bf16 %v2290_v20  ;;  %v2924_v57 = vunpack.c.h.s8.bf16 %v2292_v63  ;;  %v2147_v44 = vmul.f32 0.2, %v8374_v27 }
 0x44f   : > { %3781 = vmatpush1.bf16.msra.mxu0 %v2857_v48  ;;  %4109 = vmatpush1.bf16.msra.mxu1 %v2859_v49  ;;  %v2916_v48 = vunpack.c.l.s8.bf16 %v2292_v63  ;;  %v2291_v49 = vld [vmem:[%s8274_s4 + $0x390] sm:$0xff]  ;;  %v2937_v21 = vunpack.c.h.s8.bf16 %v2297_v55  ;;  %vm2142_vm3 = vcmp.ge.f32.partialorder %v8474_v0, 0.0  ;;  %vm2141_vm4 = vcmp.ge.f32.partialorder %v8469_v39, 0.0 }
 0x450   : > { %3782 = vmatprep.subr.bf16.mxu0 %v2866_v50  ;;  %4110 = vmatprep.subr.bf16.mxu1 %v2868_v56  ;;  %v2913_v50 = vunpack.c.l.s8.bf16 %v2289_v1  ;;  %v2915_v51 = vunpack.c.l.s8.bf16 %v2291_v49  ;;  %v2922_v56 = vunpack.c.h.s8.bf16 %v2290_v20  ;;  %v2314_v20 = vld [vmem:[%s8274_s4 + $0x448] sm:$0xff]  ;;  %vm2144_vm5 = vcmp.ge.f32.partialorder %v8476_v43, 0.0 }
 0x451   : > { %vm2143_vm6 = vcmp.ge.f32.partialorder %v8471_v62, 0.0 }
 0x453   : > { %3783 = vmatpush1.bf16.msra.mxu0 %v2865_v58  ;;  %4111 = vmatpush1.bf16.msra.mxu1 %v2867_v53  ;;  %v2298_v58 = vld [vmem:[%s8274_s4 + $0x3c8] sm:$0xff]  ;;  %v2300_v53 = vld [vmem:[%s8274_s4 + $0x3d8] sm:$0xff] }
 0x454   : > { %3784 = vmatprep.subr.bf16.mxu0 %v2874_v61  ;;  %4112 = vmatprep.subr.bf16.mxu1 %v2876_v2  ;;  %v2921_v61 = vunpack.c.h.s8.bf16 %v2289_v1  ;;  %v2923_v2 = vunpack.c.h.s8.bf16 %v2291_v49  ;;  %v2930_v3 = vunpack.c.l.s8.bf16 %v2298_v58  ;;  %v2313_v1 = vld [vmem:[%s8274_s4 + $0x440] sm:$0xff]  ;;  %v2315_v49 = vld [vmem:[%s8274_s4 + $0x450] sm:$0xff] }
 0x457   : > { %3785 = vmatpush1.bf16.msra.mxu0 %v2873_v5  ;;  %4113 = vmatpush1.bf16.msra.mxu1 %v2875_v26  ;;  %v2932_v5 = vunpack.c.l.s8.bf16 %v2300_v53  ;;  %v2299_v26 = vld [vmem:[%s8274_s4 + $0x3d0] sm:$0xff] }
 0x458   : > { %3786 = vmatprep.subr.bf16.mxu0 %v2882_v8  ;;  %4114 = vmatprep.subr.bf16.mxu1 %v2884_v13  ;;  %v2929_v8 = vunpack.c.l.s8.bf16 %v2297_v55  ;;  %v2931_v12 = vunpack.c.l.s8.bf16 %v2299_v26  ;;  %v2938_v13 = vunpack.c.h.s8.bf16 %v2298_v58  ;;  %v2939_v32 = vunpack.c.h.s8.bf16 %v2299_v26  ;;  %v2322_v58 = vld [vmem:[%s8274_s4 + $0x488] sm:$0xff]  ;;  %v2321_v55 = vld [vmem:[%s8274_s4 + $0x480] sm:$0xff]  ;;  %v2323_v26 = vld [vmem:[%s8274_s4 + $0x490] sm:$0xff] }
 0x45b   : > { %3787 = vmatpush1.bf16.msra.mxu0 %v2881_v45  ;;  %4115 = vmatpush1.bf16.msra.mxu1 %v2883_v16  ;;  %v2940_v45 = vunpack.c.h.s8.bf16 %v2300_v53  ;;  %v2306_v16 = vld [vmem:[%s8274_s4 + $0x408] sm:$0xff]  ;;  %v2324_v53 = vld [vmem:[%s8274_s4 + $0x498] sm:$0xff] }
 0x45c   : > { %3788 = vmatprep.subr.bf16.mxu0 %v2890_v46  ;;  %4116 = vmatprep.subr.bf16.mxu1 %v2892_v47  ;;  %v2308_v46 = vld [vmem:[%s8274_s4 + $0x418] sm:$0xff]  ;;  %v2150_v47 = vmul.f32 0.2, %v8417_v18 }
 0x45d   : > { %v2948_v25 = vunpack.c.l.s8.bf16 %v2308_v46 }
 0x45e   : > { %v2166_v29 = vsel %vm2134_vm11, %v8417_v18, %v2150_v47  ;;  %v2987_v47 = vunpack.c.h.s8.bf16 %v2323_v26 }
 0x45f   : > { %3789 = vmatpush1.bf16.msra.mxu0 %v2889_v33  ;;  %4117 = vmatpush1.bf16.msra.mxu1 %v2891_v22  ;;  %v2946_v33 = vunpack.c.l.s8.bf16 %v2306_v16  ;;  %v2305_v22 = vld [vmem:[%s8274_s4 + $0x400] sm:$0xff]  ;;  %v8510_v63 = vpack.c.bf16 %v2166_v29, %v2166_v29 }
 0x460   : > { %3790 = vmatprep.subr.bf16.mxu0 %v2898_v23  ;;  %4118 = vmatprep.subr.bf16.mxu1 %v2900_v28  ;;  %v2163_v23 = vsel %vm2131_vm10, %v8374_v27, %v2147_v44  ;;  %v2307_v28 = vld [vmem:[%s8274_s4 + $0x410] sm:$0xff]  ;;  %v2956_v27 = vunpack.c.h.s8.bf16 %v2308_v46  ;;  %v2953_v18 = vunpack.c.h.s8.bf16 %v2305_v22  ;;  %v2988_v44 = vunpack.c.h.s8.bf16 %v2324_v53 }
 0x461   : > { %v2985_v46 = vunpack.c.h.s8.bf16 %v2321_v55 }
 0x463   : > { %3791 = vmatpush1.bf16.msra.mxu0 %v2897_v34  ;;  %4119 = vmatpush1.bf16.msra.mxu1 %v2899_v35  ;;  %v2945_v34 = vunpack.c.l.s8.bf16 %v2305_v22  ;;  %v8507_v35 = vpack.c.bf16 %v2163_v23, %v2163_v23  ;;  %v2331_v22 = vld [vmem:[%s8274_s4 + $0x4d0] sm:$0xff] }
 0x464   : > { %3792 = vmatprep.subr.bf16.mxu0 %v2906_v37  ;;  %4120 = vmatprep.subr.bf16.mxu1 %v2908_v38  ;;  %v2947_v37 = vunpack.c.l.s8.bf16 %v2307_v28  ;;  %v2954_v38 = vunpack.c.h.s8.bf16 %v2306_v16  ;;  %v2332_v16 = vld [vmem:[%s8274_s4 + $0x4d8] sm:$0xff] }
 0x465   : > { %v3004_v29 = vunpack.c.h.s8.bf16 %v2332_v16 }
 0x467   : > { %3793 = vmatpush1.bf16.msra.mxu0 %v2905_v40  ;;  %4121 = vmatpush1.bf16.msra.mxu1 %v2907_v41  ;;  %v2316_v40 = vld [vmem:[%s8274_s4 + $0x458] sm:$0xff]  ;;  %v2955_v41 = vunpack.c.h.s8.bf16 %v2307_v28 }
 0x468   : > { %3794 = vmatprep.subr.bf16.mxu0 %v2914_v42  ;;  %4122 = vmatprep.subr.bf16.mxu1 %v2916_v48  ;;  %v2962_v42 = vunpack.c.l.s8.bf16 %v2314_v20  ;;  %v2964_v48 = vunpack.c.l.s8.bf16 %v2316_v40 }
 0x46b   : > { %3795 = vmatpush1.bf16.msra.mxu0 %v2913_v50  ;;  %4123 = vmatpush1.bf16.msra.mxu1 %v2915_v51  ;;  %v2961_v50 = vunpack.c.l.s8.bf16 %v2313_v1  ;;  %v2963_v51 = vunpack.c.l.s8.bf16 %v2315_v49 }
 0x46c   : > { %3796 = vmatprep.subr.bf16.mxu0 %v2922_v56  ;;  %4124 = vmatprep.subr.bf16.mxu1 %v2924_v57  ;;  %v2970_v56 = vunpack.c.h.s8.bf16 %v2314_v20  ;;  %v2972_v57 = vunpack.c.h.s8.bf16 %v2316_v40  ;;  %v3003_v20 = vunpack.c.h.s8.bf16 %v2331_v22  ;;  %v2337_v40 = vld [vmem:[%s8274_s4 + $0x500] sm:$0xff] }
 0x46f   : > { %3797 = vmatpush1.bf16.msra.mxu0 %v2921_v61  ;;  %4125 = vmatpush1.bf16.msra.mxu1 %v2923_v2  ;;  %v2969_v61 = vunpack.c.h.s8.bf16 %v2313_v1  ;;  %v2971_v2 = vunpack.c.h.s8.bf16 %v2315_v49 }
 0x470   : > { %3798 = vmatprep.subr.bf16.mxu0 %v2930_v3  ;;  %4126 = vmatprep.subr.bf16.mxu1 %v2932_v5  ;;  %v2978_v3 = vunpack.c.l.s8.bf16 %v2322_v58  ;;  %v2980_v5 = vunpack.c.l.s8.bf16 %v2324_v53  ;;  %v2345_v53 = vld [vmem:[%s8274_s4 + $0x540] sm:$0xff] }
 0x473   : > { %3799 = vmatpush1.bf16.msra.mxu0 %v2929_v8  ;;  %4127 = vmatpush1.bf16.msra.mxu1 %v2931_v12  ;;  %v2977_v8 = vunpack.c.l.s8.bf16 %v2321_v55  ;;  %v2979_v12 = vunpack.c.l.s8.bf16 %v2323_v26 }
 0x474   : > { %3800 = vmatprep.subr.bf16.mxu0 %v2938_v13  ;;  %4128 = vmatprep.subr.bf16.mxu1 %v2940_v45  ;;  %v2986_v13 = vunpack.c.h.s8.bf16 %v2322_v58  ;;  %v2330_v45 = vld [vmem:[%s8274_s4 + $0x4c8] sm:$0xff] }
 0x475   : > { %v3002_v28 = vunpack.c.h.s8.bf16 %v2330_v45 }
 0x477   : > { %3801 = vmatpush1.bf16.msra.mxu0 %v2937_v21  ;;  %4129 = vmatpush1.bf16.msra.mxu1 %v2939_v32  ;;  %v2994_v21 = vunpack.c.l.s8.bf16 %v2330_v45  ;;  %v2329_v32 = vld [vmem:[%s8274_s4 + $0x4c0] sm:$0xff] }
 0x478   : > { %3811 = vmatprep.subr.bf16.mxu0 %v2946_v33  ;;  %4139 = vmatprep.subr.bf16.mxu1 %v2948_v25  ;;  %v2996_v33 = vunpack.c.l.s8.bf16 %v2332_v16  ;;  %v2993_v23 = vunpack.c.l.s8.bf16 %v2329_v32  ;;  %v2995_v25 = vunpack.c.l.s8.bf16 %v2331_v22  ;;  %v2353_v16 = vld [vmem:[%s8274_s4 + $0x580] sm:$0xff] }
 0x47a   : > { %3803 = vmatmul.mubr.bf16.vlgmr.msra.gmra.mrb[36].mxu0 %v8507_v35  ;;  %4131 = vmatmul.mubr.bf16.vlgmr.msra.gmra.mrb[36].mxu1 %v8507_v35 }
 0x47b   : > { %3812 = vmatpush1.bf16.msra.mxu0 %v2945_v34  ;;  %3843 = vmatprep.mubr.bf16.mxu0 %v8510_v63  ;;  %v2338_v34 = vld [vmem:[%s8274_s4 + $0x508] sm:$0xff] }
 0x47c   : > { %4140 = vmatpush1.bf16.msra.mxu1 %v2947_v37  ;;  %4171 = vmatprep.mubr.bf16.mxu1 %v8510_v63  ;;  %v2340_v37 = vld [vmem:[%s8274_s4 + $0x518] sm:$0xff] }
 0x47d   : > { %3813 = vmatprep.subr.bf16.mxu0 %v2954_v38  ;;  %4141 = vmatprep.subr.bf16.mxu1 %v2956_v27  ;;  %v3001_v38 = vunpack.c.h.s8.bf16 %v2329_v32  ;;  %v3010_v27 = vunpack.c.l.s8.bf16 %v2338_v34  ;;  %v3020_v49 = vunpack.c.h.s8.bf16 %v2340_v37 }
 0x47f   : > { %3814 = vmatpush1.bf16.msra.mxu0 %v2953_v18  ;;  %v3012_v18 = vunpack.c.l.s8.bf16 %v2340_v37  ;;  %v2361_v37 = vld [vmem:[%s8274_s4 + $0x5c0] sm:$0xff] }
 0x480   : > { %4142 = vmatpush1.bf16.msra.mxu1 %v2955_v41  ;;  %3815 = vmatprep.subr.bf16.mxu0 %v2962_v42  ;;  %v2339_v41 = vld [vmem:[%s8274_s4 + $0x510] sm:$0xff]  ;;  %v3009_v42 = vunpack.c.l.s8.bf16 %v2337_v40 }
 0x481   : > { %4143 = vmatprep.subr.bf16.mxu1 %v2964_v48  ;;  %v3011_v1 = vunpack.c.l.s8.bf16 %v2339_v41  ;;  %v3018_v48 = vunpack.c.h.s8.bf16 %v2338_v34 }
 0x483   : > { %3816 = vmatpush1.bf16.msra.mxu0 %v2961_v50  ;;  %v2346_v50 = vld [vmem:[%s8274_s4 + $0x548] sm:$0xff] }
 0x484   : > { %4144 = vmatpush1.bf16.msra.mxu1 %v2963_v51  ;;  %3817 = vmatprep.subr.bf16.mxu0 %v2970_v56  ;;  %v2348_v51 = vld [vmem:[%s8274_s4 + $0x558] sm:$0xff]  ;;  %v3017_v56 = vunpack.c.h.s8.bf16 %v2337_v40  ;;  %v3026_v58 = vunpack.c.l.s8.bf16 %v2346_v50 }
 0x485   : > { %4145 = vmatprep.subr.bf16.mxu1 %v2972_v57  ;;  %v3019_v57 = vunpack.c.h.s8.bf16 %v2339_v41  ;;  %v3036_v26 = vunpack.c.h.s8.bf16 %v2348_v51  ;;  %v2149_v41 = vmul.f32 0.2, %v8406_v14 }
 0x487   : > { %3818 = vmatpush1.bf16.msra.mxu0 %v2969_v61  ;;  %v3028_v61 = vunpack.c.l.s8.bf16 %v2348_v51 }
 0x488   : > { %4146 = vmatpush1.bf16.msra.mxu1 %v2971_v2  ;;  %3819 = vmatprep.subr.bf16.mxu0 %v2978_v3  ;;  %v2347_v2 = vld [vmem:[%s8274_s4 + $0x550] sm:$0xff]  ;;  %v3025_v3 = vunpack.c.l.s8.bf16 %v2345_v53 }
 0x489   : > { %4147 = vmatprep.subr.bf16.mxu1 %v2980_v5  ;;  %v3027_v55 = vunpack.c.l.s8.bf16 %v2347_v2  ;;  %v3034_v5 = vunpack.c.h.s8.bf16 %v2346_v50  ;;  %v3065_v50 = vunpack.c.h.s8.bf16 %v2361_v37 }
 0x48b   : > { %3820 = vmatpush1.bf16.msra.mxu0 %v2977_v8  ;;  %v2354_v8 = vld [vmem:[%s8274_s4 + $0x588] sm:$0xff] }
 0x48c   : > { %4148 = vmatpush1.bf16.msra.mxu1 %v2979_v12  ;;  %3821 = vmatprep.subr.bf16.mxu0 %v2986_v13  ;;  %v2356_v12 = vld [vmem:[%s8274_s4 + $0x598] sm:$0xff]  ;;  %v3033_v13 = vunpack.c.h.s8.bf16 %v2345_v53  ;;  %v3042_v45 = vunpack.c.l.s8.bf16 %v2354_v8 }
 0x48d   : > { %4149 = vmatprep.subr.bf16.mxu1 %v2988_v44  ;;  %v3035_v44 = vunpack.c.h.s8.bf16 %v2347_v2  ;;  %v3052_v22 = vunpack.c.h.s8.bf16 %v2356_v12 }
 0x48f   : > { %3822 = vmatpush1.bf16.msra.mxu0 %v2985_v46  ;;  %v3044_v46 = vunpack.c.l.s8.bf16 %v2356_v12 }
 0x490   : > { %4150 = vmatpush1.bf16.msra.mxu1 %v2987_v47  ;;  %3823 = vmatprep.subr.bf16.mxu0 %v2994_v21  ;;  %v2355_v47 = vld [vmem:[%s8274_s4 + $0x590] sm:$0xff]  ;;  %v3041_v21 = vunpack.c.l.s8.bf16 %v2353_v16 }
 0x491   : > { %4151 = vmatprep.subr.bf16.mxu1 %v2996_v33  ;;  %v3043_v32 = vunpack.c.l.s8.bf16 %v2355_v47  ;;  %v3050_v33 = vunpack.c.h.s8.bf16 %v2354_v8  ;;  %v2378_v8 = vld [vmem:[%s8274_s4 + $0x648] sm:$0xff] }
 0x493   : > { %3824 = vmatpush1.bf16.msra.mxu0 %v2993_v23  ;;  %v2362_v23 = vld [vmem:[%s8274_s4 + $0x5c8] sm:$0xff] }
 0x494   : > { %4152 = vmatpush1.bf16.msra.mxu1 %v2995_v25  ;;  %3825 = vmatprep.subr.bf16.mxu0 %v3002_v28  ;;  %v2364_v25 = vld [vmem:[%s8274_s4 + $0x5d8] sm:$0xff]  ;;  %v3049_v28 = vunpack.c.h.s8.bf16 %v2353_v16  ;;  %v3058_v34 = vunpack.c.l.s8.bf16 %v2362_v23  ;;  %v2377_v16 = vld [vmem:[%s8274_s4 + $0x640] sm:$0xff] }
 0x495   : > { %4153 = vmatprep.subr.bf16.mxu1 %v3004_v29  ;;  %v3051_v29 = vunpack.c.h.s8.bf16 %v2355_v47  ;;  %v2379_v47 = vld [vmem:[%s8274_s4 + $0x650] sm:$0xff] }
 0x497   : > { %3826 = vmatpush1.bf16.msra.mxu0 %v3001_v38  ;;  %v3060_v38 = vunpack.c.l.s8.bf16 %v2364_v25 }
 0x498   : > { %4154 = vmatpush1.bf16.msra.mxu1 %v3003_v20  ;;  %3827 = vmatprep.subr.bf16.mxu0 %v3010_v27  ;;  %v2363_v20 = vld [vmem:[%s8274_s4 + $0x5d0] sm:$0xff]  ;;  %v3057_v27 = vunpack.c.l.s8.bf16 %v2361_v37  ;;  %v2385_v37 = vld [vmem:[%s8274_s4 + $0x680] sm:$0xff] }
 0x499   : > { %4155 = vmatprep.subr.bf16.mxu1 %v3012_v18  ;;  %v3059_v40 = vunpack.c.l.s8.bf16 %v2363_v20  ;;  %v3066_v18 = vunpack.c.h.s8.bf16 %v2362_v23  ;;  %v3067_v51 = vunpack.c.h.s8.bf16 %v2363_v20  ;;  %v2386_v23 = vld [vmem:[%s8274_s4 + $0x688] sm:$0xff]  ;;  %v2387_v20 = vld [vmem:[%s8274_s4 + $0x690] sm:$0xff] }
 0x49b   : > { %3828 = vmatpush1.bf16.msra.mxu0 %v3009_v42  ;;  %v3068_v42 = vunpack.c.h.s8.bf16 %v2364_v25  ;;  %v2388_v25 = vld [vmem:[%s8274_s4 + $0x698] sm:$0xff] }
 0x49c   : > { %4156 = vmatpush1.bf16.msra.mxu1 %v3011_v1  ;;  %3829 = vmatprep.subr.bf16.mxu0 %v3018_v48  ;;  %v2370_v1 = vld [vmem:[%s8274_s4 + $0x608] sm:$0xff]  ;;  %v2372_v48 = vld [vmem:[%s8274_s4 + $0x618] sm:$0xff] }
 0x49d   : > { %4157 = vmatprep.subr.bf16.mxu1 %v3020_v49  ;;  %v2152_v49 = vmul.f32 0.2, %v8419_v19  ;;  %v3076_v53 = vunpack.c.l.s8.bf16 %v2372_v48 }
 0x49f   : > { %3830 = vmatpush1.bf16.msra.mxu0 %v3017_v56  ;;  %v3074_v56 = vunpack.c.l.s8.bf16 %v2370_v1  ;;  %v2168_v2 = vsel %vm2136_vm13, %v8419_v19, %v2152_v49  ;;  %v3115_v49 = vunpack.c.h.s8.bf16 %v2387_v20 }
 0x4a0   : > { %4158 = vmatpush1.bf16.msra.mxu1 %v3019_v57  ;;  %3831 = vmatprep.subr.bf16.mxu0 %v3026_v58  ;;  %v2369_v57 = vld [vmem:[%s8274_s4 + $0x600] sm:$0xff]  ;;  %v2165_v58 = vsel %vm2133_vm12, %v8406_v14, %v2149_v41  ;;  %v8556_v12 = vpack.c.bf16 %v2168_v2, %v2168_v2  ;;  %v3084_v14 = vunpack.c.h.s8.bf16 %v2372_v48  ;;  %v3116_v41 = vunpack.c.h.s8.bf16 %v2388_v25 }
 0x4a1   : > { %4159 = vmatprep.subr.bf16.mxu1 %v3028_v61  ;;  %v2371_v61 = vld [vmem:[%s8274_s4 + $0x610] sm:$0xff]  ;;  %v3081_v19 = vunpack.c.h.s8.bf16 %v2369_v57  ;;  %v3113_v48 = vunpack.c.h.s8.bf16 %v2385_v37 }
 0x4a3   : > { %3832 = vmatpush1.bf16.msra.mxu0 %v3025_v3  ;;  %v3073_v3 = vunpack.c.l.s8.bf16 %v2369_v57  ;;  %v2395_v57 = vld [vmem:[%s8274_s4 + $0x6d0] sm:$0xff] }
 0x4a4   : > { %4160 = vmatpush1.bf16.msra.mxu1 %v3027_v55  ;;  %3833 = vmatprep.subr.bf16.mxu0 %v3034_v5  ;;  %v8553_v55 = vpack.c.bf16 %v2165_v58, %v2165_v58  ;;  %v3075_v5 = vunpack.c.l.s8.bf16 %v2371_v61 }
 0x4a5   : > { %4161 = vmatprep.subr.bf16.mxu1 %v3036_v26  ;;  %v3082_v26 = vunpack.c.h.s8.bf16 %v2370_v1  ;;  %v2396_v1 = vld [vmem:[%s8274_s4 + $0x6d8] sm:$0xff] }
 0x4a6   : > { %v3132_v2 = vunpack.c.h.s8.bf16 %v2396_v1 }
 0x4a7   : > { %3834 = vmatpush1.bf16.msra.mxu0 %v3033_v13  ;;  %v2380_v13 = vld [vmem:[%s8274_s4 + $0x658] sm:$0xff] }
 0x4a8   : > { %4162 = vmatpush1.bf16.msra.mxu1 %v3035_v44  ;;  %3835 = vmatprep.subr.bf16.mxu0 %v3042_v45  ;;  %v3083_v44 = vunpack.c.h.s8.bf16 %v2371_v61  ;;  %v3090_v45 = vunpack.c.l.s8.bf16 %v2378_v8 }
 0x4a9   : > { %4163 = vmatprep.subr.bf16.mxu1 %v3044_v46  ;;  %v3092_v46 = vunpack.c.l.s8.bf16 %v2380_v13 }
 0x4ab   : > { %3836 = vmatpush1.bf16.msra.mxu0 %v3041_v21  ;;  %v3089_v21 = vunpack.c.l.s8.bf16 %v2377_v16 }
 0x4ac   : > { %4164 = vmatpush1.bf16.msra.mxu1 %v3043_v32  ;;  %3837 = vmatprep.subr.bf16.mxu0 %v3050_v33  ;;  %v3091_v32 = vunpack.c.l.s8.bf16 %v2379_v47  ;;  %v3098_v33 = vunpack.c.h.s8.bf16 %v2378_v8  ;;  %v3131_v8 = vunpack.c.h.s8.bf16 %v2395_v57 }
 0x4ad   : > { %4165 = vmatprep.subr.bf16.mxu1 %v3052_v22  ;;  %v3100_v22 = vunpack.c.h.s8.bf16 %v2380_v13  ;;  %v2401_v13 = vld [vmem:[%s8274_s4 + $0x700] sm:$0xff] }
 0x4af   : > { %3838 = vmatpush1.bf16.msra.mxu0 %v3049_v28  ;;  %v3097_v28 = vunpack.c.h.s8.bf16 %v2377_v16 }
 0x4b0   : > { %4166 = vmatpush1.bf16.msra.mxu1 %v3051_v29  ;;  %3839 = vmatprep.subr.bf16.mxu0 %v3058_v34  ;;  %v3099_v29 = vunpack.c.h.s8.bf16 %v2379_v47  ;;  %v3106_v34 = vunpack.c.l.s8.bf16 %v2386_v23 }
 0x4b1   : > { %4167 = vmatprep.subr.bf16.mxu1 %v3060_v38  ;;  %v3108_v38 = vunpack.c.l.s8.bf16 %v2388_v25  ;;  %v2409_v25 = vld [vmem:[%s8274_s4 + $0x740] sm:$0xff] }
 0x4b3   : > { %3840 = vmatpush1.bf16.msra.mxu0 %v3057_v27  ;;  %v3105_v27 = vunpack.c.l.s8.bf16 %v2385_v37 }
 0x4b4   : > { %4168 = vmatpush1.bf16.msra.mxu1 %v3059_v40  ;;  %3841 = vmatprep.subr.bf16.mxu0 %v3066_v18  ;;  %v3107_v40 = vunpack.c.l.s8.bf16 %v2387_v20  ;;  %v3114_v18 = vunpack.c.h.s8.bf16 %v2386_v23 }
 0x4b5   : > { %4169 = vmatprep.subr.bf16.mxu1 %v3068_v42  ;;  %v2394_v42 = vld [vmem:[%s8274_s4 + $0x6c8] sm:$0xff] }
 0x4b6   : > { %v3130_v61 = vunpack.c.h.s8.bf16 %v2394_v42 }
 0x4b7   : > { %3842 = vmatpush1.bf16.msra.mxu0 %v3065_v50  ;;  %v3122_v50 = vunpack.c.l.s8.bf16 %v2394_v42 }
 0x4b8   : > { %4170 = vmatpush1.bf16.msra.mxu1 %v3067_v51  ;;  %3852 = vmatprep.subr.bf16.mxu0 %v3074_v56  ;;  %v2393_v51 = vld [vmem:[%s8274_s4 + $0x6c0] sm:$0xff]  ;;  %v3124_v56 = vunpack.c.l.s8.bf16 %v2396_v1 }
 0x4b9   : > { %4180 = vmatprep.subr.bf16.mxu1 %v3076_v53  ;;  %v3121_v58 = vunpack.c.l.s8.bf16 %v2393_v51  ;;  %v3123_v53 = vunpack.c.l.s8.bf16 %v2395_v57  ;;  %v2417_v1 = vld [vmem:[%s8274_s4 + $0x780] sm:$0xff] }
 0x4ba   : > { %3844 = vmatmul.mubr.bf16.vlgmr.msra.gmra.mrb[36].mxu0 %v8553_v55 }
 0x4bb   : > { %4172 = vmatmul.mubr.bf16.vlgmr.msra.gmra.mrb[36].mxu1 %v8553_v55  ;;  %3853 = vmatpush1.bf16.msra.mxu0 %v3073_v3  ;;  %v2402_v3 = vld [vmem:[%s8274_s4 + $0x708] sm:$0xff] }
 0x4bc   : > { %3884 = vmatprep.mubr.bf16.mxu0 %v8556_v12  ;;  %4181 = vmatpush1.bf16.msra.mxu1 %v3075_v5  ;;  %v2404_v5 = vld [vmem:[%s8274_s4 + $0x718] sm:$0xff] }
 0x4bd   : > { %4212 = vmatprep.mubr.bf16.mxu1 %v8556_v12  ;;  %3854 = vmatprep.subr.bf16.mxu0 %v3082_v26  ;;  %v3129_v26 = vunpack.c.h.s8.bf16 %v2393_v51  ;;  %v3148_v47 = vunpack.c.h.s8.bf16 %v2404_v5 }
 0x4be   : > { %4182 = vmatprep.subr.bf16.mxu1 %v3084_v14  ;;  %v3138_v14 = vunpack.c.l.s8.bf16 %v2402_v3 }
 0x4bf   : > { %3855 = vmatpush1.bf16.msra.mxu0 %v3081_v19  ;;  %v3140_v19 = vunpack.c.l.s8.bf16 %v2404_v5  ;;  %v2425_v5 = vld [vmem:[%s8274_s4 + $0x7c0] sm:$0xff] }
 0x4c0   : > { %4183 = vmatpush1.bf16.msra.mxu1 %v3083_v44  ;;  %3856 = vmatprep.subr.bf16.mxu0 %v3090_v45  ;;  %v2403_v44 = vld [vmem:[%s8274_s4 + $0x710] sm:$0xff]  ;;  %v3137_v45 = vunpack.c.l.s8.bf16 %v2401_v13 }
 0x4c1   : > { %4184 = vmatprep.subr.bf16.mxu1 %v3092_v46  ;;  %v3139_v16 = vunpack.c.l.s8.bf16 %v2403_v44  ;;  %v3146_v46 = vunpack.c.h.s8.bf16 %v2402_v3 }
 0x4c3   : > { %3857 = vmatpush1.bf16.msra.mxu0 %v3089_v21  ;;  %v2410_v21 = vld [vmem:[%s8274_s4 + $0x748] sm:$0xff] }
 0x4c4   : > { %4185 = vmatpush1.bf16.msra.mxu1 %v3091_v32  ;;  %3858 = vmatprep.subr.bf16.mxu0 %v3098_v33  ;;  %v2412_v32 = vld [vmem:[%s8274_s4 + $0x758] sm:$0xff]  ;;  %v3145_v33 = vunpack.c.h.s8.bf16 %v2401_v13  ;;  %v3154_v23 = vunpack.c.l.s8.bf16 %v2410_v21 }
 0x4c5   : > { %4186 = vmatprep.subr.bf16.mxu1 %v3100_v22  ;;  %v3147_v22 = vunpack.c.h.s8.bf16 %v2403_v44  ;;  %v3164_v20 = vunpack.c.h.s8.bf16 %v2412_v32  ;;  %v2151_v44 = vmul.f32 0.2, %v8408_v15 }
 0x4c7   : > { %3859 = vmatpush1.bf16.msra.mxu0 %v3097_v28  ;;  %v3156_v28 = vunpack.c.l.s8.bf16 %v2412_v32 }
 0x4c8   : > { %4187 = vmatpush1.bf16.msra.mxu1 %v3099_v29  ;;  %3860 = vmatprep.subr.bf16.mxu0 %v3106_v34  ;;  %v2411_v29 = vld [vmem:[%s8274_s4 + $0x750] sm:$0xff]  ;;  %v3153_v34 = vunpack.c.l.s8.bf16 %v2409_v25 }
 0x4c9   : > { %4188 = vmatprep.subr.bf16.mxu1 %v3108_v38  ;;  %v3155_v37 = vunpack.c.l.s8.bf16 %v2411_v29  ;;  %v3162_v38 = vunpack.c.h.s8.bf16 %v2410_v21  ;;  %v3193_v21 = vunpack.c.h.s8.bf16 %v2425_v5 }
 0x4cb   : > { %3861 = vmatpush1.bf16.msra.mxu0 %v3105_v27  ;;  %v2418_v27 = vld [vmem:[%s8274_s4 + $0x788] sm:$0xff] }
 0x4cc   : > { %4189 = vmatpush1.bf16.msra.mxu1 %v3107_v40  ;;  %3862 = vmatprep.subr.bf16.mxu0 %v3114_v18  ;;  %v2420_v40 = vld [vmem:[%s8274_s4 + $0x798] sm:$0xff]  ;;  %v3161_v18 = vunpack.c.h.s8.bf16 %v2409_v25  ;;  %v3170_v42 = vunpack.c.l.s8.bf16 %v2418_v27 }
 0x4cd   : > { %4190 = vmatprep.subr.bf16.mxu1 %v3116_v41  ;;  %v3163_v41 = vunpack.c.h.s8.bf16 %v2411_v29  ;;  %v3180_v57 = vunpack.c.h.s8.bf16 %v2420_v40 }
 0x4cf   : > { %3863 = vmatpush1.bf16.msra.mxu0 %v3113_v48  ;;  %v3172_v48 = vunpack.c.l.s8.bf16 %v2420_v40 }
 0x4d0   : > { %4191 = vmatpush1.bf16.msra.mxu1 %v3115_v49  ;;  %3864 = vmatprep.subr.bf16.mxu0 %v3122_v50  ;;  %v2419_v49 = vld [vmem:[%s8274_s4 + $0x790] sm:$0xff]  ;;  %v3169_v50 = vunpack.c.l.s8.bf16 %v2417_v1 }
 0x4d1   : > { %4192 = vmatprep.subr.bf16.mxu1 %v3124_v56  ;;  %v3171_v51 = vunpack.c.l.s8.bf16 %v2419_v49  ;;  %v3178_v56 = vunpack.c.h.s8.bf16 %v2418_v27  ;;  %v2442_v27 = vld [vmem:[%s8274_s4 + $0x848] sm:$0xff] }
 0x4d3   : > { %3865 = vmatpush1.bf16.msra.mxu0 %v3121_v58  ;;  %v2426_v58 = vld [vmem:[%s8274_s4 + $0x7c8] sm:$0xff] }
 0x4d4   : > { %4193 = vmatpush1.bf16.msra.mxu1 %v3123_v53  ;;  %3866 = vmatprep.subr.bf16.mxu0 %v3130_v61  ;;  %v2428_v53 = vld [vmem:[%s8274_s4 + $0x7d8] sm:$0xff]  ;;  %v3177_v61 = vunpack.c.h.s8.bf16 %v2417_v1  ;;  %v3186_v3 = vunpack.c.l.s8.bf16 %v2426_v58  ;;  %v2441_v1 = vld [vmem:[%s8274_s4 + $0x840] sm:$0xff] }
 0x4d5   : > { %4194 = vmatprep.subr.bf16.mxu1 %v3132_v2  ;;  %v3179_v2 = vunpack.c.h.s8.bf16 %v2419_v49  ;;  %v2443_v49 = vld [vmem:[%s8274_s4 + $0x850] sm:$0xff] }
 0x4d7   : > { %3867 = vmatpush1.bf16.msra.mxu0 %v3129_v26  ;;  %v3188_v26 = vunpack.c.l.s8.bf16 %v2428_v53 }
 0x4d8   : > { %4195 = vmatpush1.bf16.msra.mxu1 %v3131_v8  ;;  %3868 = vmatprep.subr.bf16.mxu0 %v3138_v14  ;;  %v2427_v8 = vld [vmem:[%s8274_s4 + $0x7d0] sm:$0xff]  ;;  %v3185_v14 = vunpack.c.l.s8.bf16 %v2425_v5  ;;  %v2449_v5 = vld [vmem:[%s8274_s4 + $0x880] sm:$0xff] }
 0x4d9   : > { %4196 = vmatprep.subr.bf16.mxu1 %v3140_v19  ;;  %v3187_v13 = vunpack.c.l.s8.bf16 %v2427_v8  ;;  %v3194_v19 = vunpack.c.h.s8.bf16 %v2426_v58  ;;  %v3195_v32 = vunpack.c.h.s8.bf16 %v2427_v8  ;;  %v2450_v58 = vld [vmem:[%s8274_s4 + $0x888] sm:$0xff]  ;;  %v2451_v8 = vld [vmem:[%s8274_s4 + $0x890] sm:$0xff] }
 0x4db   : > { %3869 = vmatpush1.bf16.msra.mxu0 %v3137_v45  ;;  %v3196_v45 = vunpack.c.h.s8.bf16 %v2428_v53  ;;  %v2452_v53 = vld [vmem:[%s8274_s4 + $0x898] sm:$0xff] }
 0x4dc   : > { %4197 = vmatpush1.bf16.msra.mxu1 %v3139_v16  ;;  %3870 = vmatprep.subr.bf16.mxu0 %v3146_v46  ;;  %v2434_v16 = vld [vmem:[%s8274_s4 + $0x808] sm:$0xff]  ;;  %v2436_v46 = vld [vmem:[%s8274_s4 + $0x818] sm:$0xff] }
 0x4dd   : > { %4198 = vmatprep.subr.bf16.mxu1 %v3148_v47  ;;  %v2154_v47 = vmul.f32 0.2, %v8450_v54  ;;  %v3204_v25 = vunpack.c.l.s8.bf16 %v2436_v46 }
 0x4df   : > { %3871 = vmatpush1.bf16.msra.mxu0 %v3145_v33  ;;  %v3202_v33 = vunpack.c.l.s8.bf16 %v2434_v16  ;;  %v2170_v29 = vsel %vm2138_vm15, %v8450_v54, %v2154_v47  ;;  %v3243_v47 = vunpack.c.h.s8.bf16 %v2451_v8 }
 0x4e0   : > { %4199 = vmatpush1.bf16.msra.mxu1 %v3147_v22  ;;  %3872 = vmatprep.subr.bf16.mxu0 %v3154_v23  ;;  %v2433_v22 = vld [vmem:[%s8274_s4 + $0x800] sm:$0xff]  ;;  %v2167_v23 = vsel %vm2135_vm14, %v8408_v15, %v2151_v44  ;;  %v8602_v40 = vpack.c.bf16 %v2170_v29, %v2170_v29  ;;  %v3212_v15 = vunpack.c.h.s8.bf16 %v2436_v46  ;;  %v3244_v44 = vunpack.c.h.s8.bf16 %v2452_v53 }
 0x4e1   : > { %4200 = vmatprep.subr.bf16.mxu1 %v3156_v28  ;;  %v2435_v28 = vld [vmem:[%s8274_s4 + $0x810] sm:$0xff]  ;;  %v3209_v54 = vunpack.c.h.s8.bf16 %v2433_v22  ;;  %v3241_v46 = vunpack.c.h.s8.bf16 %v2449_v5 }
 0x4e3   : > { %3873 = vmatpush1.bf16.msra.mxu0 %v3153_v34  ;;  %v3201_v34 = vunpack.c.l.s8.bf16 %v2433_v22  ;;  %v2459_v22 = vld [vmem:[%s8274_s4 + $0x8d0] sm:$0xff] }
 0x4e4   : > { %4201 = vmatpush1.bf16.msra.mxu1 %v3155_v37  ;;  %3874 = vmatprep.subr.bf16.mxu0 %v3162_v38  ;;  %v8599_v37 = vpack.c.bf16 %v2167_v23, %v2167_v23  ;;  %v3203_v38 = vunpack.c.l.s8.bf16 %v2435_v28 }
 0x4e5   : > { %4202 = vmatprep.subr.bf16.mxu1 %v3164_v20  ;;  %v3210_v20 = vunpack.c.h.s8.bf16 %v2434_v16  ;;  %v2460_v16 = vld [vmem:[%s8274_s4 + $0x8d8] sm:$0xff] }
 0x4e6   : > { %v3260_v29 = vunpack.c.h.s8.bf16 %v2460_v16 }
 0x4e7   : > { %3875 = vmatpush1.bf16.msra.mxu0 %v3161_v18  ;;  %v2444_v18 = vld [vmem:[%s8274_s4 + $0x858] sm:$0xff] }
 0x4e8   : > { %4203 = vmatpush1.bf16.msra.mxu1 %v3163_v41  ;;  %3876 = vmatprep.subr.bf16.mxu0 %v3170_v42  ;;  %v3211_v41 = vunpack.c.h.s8.bf16 %v2435_v28  ;;  %v3218_v42 = vunpack.c.l.s8.bf16 %v2442_v27 }
 0x4e9   : > { %4204 = vmatprep.subr.bf16.mxu1 %v3172_v48  ;;  %v3220_v48 = vunpack.c.l.s8.bf16 %v2444_v18 }
 0x4eb   : > { %3877 = vmatpush1.bf16.msra.mxu0 %v3169_v50  ;;  %v3217_v50 = vunpack.c.l.s8.bf16 %v2441_v1 }
 0x4ec   : > { %4205 = vmatpush1.bf16.msra.mxu1 %v3171_v51  ;;  %3878 = vmatprep.subr.bf16.mxu0 %v3178_v56  ;;  %v3219_v51 = vunpack.c.l.s8.bf16 %v2443_v49  ;;  %v3226_v56 = vunpack.c.h.s8.bf16 %v2442_v27  ;;  %v3259_v27 = vunpack.c.h.s8.bf16 %v2459_v22 }
 0x4ed   : > { %4206 = vmatprep.subr.bf16.mxu1 %v3180_v57  ;;  %v3228_v57 = vunpack.c.h.s8.bf16 %v2444_v18  ;;  %v2465_v18 = vld [vmem:[%s8274_s4 + $0x900] sm:$0xff] }
 0x4ef   : > { %3879 = vmatpush1.bf16.msra.mxu0 %v3177_v61  ;;  %v3225_v61 = vunpack.c.h.s8.bf16 %v2441_v1 }
 0x4f0   : > { %4207 = vmatpush1.bf16.msra.mxu1 %v3179_v2  ;;  %3880 = vmatprep.subr.bf16.mxu0 %v3186_v3  ;;  %v3227_v2 = vunpack.c.h.s8.bf16 %v2443_v49  ;;  %v3234_v3 = vunpack.c.l.s8.bf16 %v2450_v58 }
 0x4f1   : > { %4208 = vmatprep.subr.bf16.mxu1 %v3188_v26  ;;  %v3236_v26 = vunpack.c.l.s8.bf16 %v2452_v53  ;;  %v2473_v53 = vld [vmem:[%s8274_s4 + $0x940] sm:$0xff] }
 0x4f3   : > { %3881 = vmatpush1.bf16.msra.mxu0 %v3185_v14  ;;  %v3233_v14 = vunpack.c.l.s8.bf16 %v2449_v5 }
 0x4f4   : > { %4209 = vmatpush1.bf16.msra.mxu1 %v3187_v13  ;;  %3882 = vmatprep.subr.bf16.mxu0 %v3194_v19  ;;  %v3235_v13 = vunpack.c.l.s8.bf16 %v2451_v8  ;;  %v3242_v19 = vunpack.c.h.s8.bf16 %v2450_v58 }
 0x4f5   : > { %4210 = vmatprep.subr.bf16.mxu1 %v3196_v45  ;;  %v2458_v45 = vld [vmem:[%s8274_s4 + $0x8c8] sm:$0xff] }
 0x4f6   : > { %v3258_v28 = vunpack.c.h.s8.bf16 %v2458_v45 }
 0x4f7   : > { %3883 = vmatpush1.bf16.msra.mxu0 %v3193_v21  ;;  %v3250_v21 = vunpack.c.l.s8.bf16 %v2458_v45 }
 0x4f8   : > { %4211 = vmatpush1.bf16.msra.mxu1 %v3195_v32  ;;  %3893 = vmatprep.subr.bf16.mxu0 %v3202_v33  ;;  %v2457_v32 = vld [vmem:[%s8274_s4 + $0x8c0] sm:$0xff]  ;;  %v3252_v33 = vunpack.c.l.s8.bf16 %v2460_v16 }
 0x4f9   : > { %4221 = vmatprep.subr.bf16.mxu1 %v3204_v25  ;;  %v3249_v23 = vunpack.c.l.s8.bf16 %v2457_v32  ;;  %v3251_v25 = vunpack.c.l.s8.bf16 %v2459_v22  ;;  %v2481_v16 = vld [vmem:[%s8274_s4 + $0x980] sm:$0xff] }
 0x4fa   : > { %3885 = vmatmul.mubr.bf16.vlgmr.msra.gmra.mrb[36].mxu0 %v8599_v37 }
 0x4fb   : > { %4213 = vmatmul.mubr.bf16.vlgmr.msra.gmra.mrb[36].mxu1 %v8599_v37  ;;  %3894 = vmatpush1.bf16.msra.mxu0 %v3201_v34  ;;  %v2466_v34 = vld [vmem:[%s8274_s4 + $0x908] sm:$0xff] }
 0x4fc   : > { %3925 = vmatprep.mubr.bf16.mxu0 %v8602_v40  ;;  %4222 = vmatpush1.bf16.msra.mxu1 %v3203_v38  ;;  %v2468_v38 = vld [vmem:[%s8274_s4 + $0x918] sm:$0xff] }
 0x4fd   : > { %4253 = vmatprep.mubr.bf16.mxu1 %v8602_v40  ;;  %3895 = vmatprep.subr.bf16.mxu0 %v3210_v20  ;;  %v3257_v20 = vunpack.c.h.s8.bf16 %v2457_v32  ;;  %v3276_v49 = vunpack.c.h.s8.bf16 %v2468_v38 }
 0x4fe   : > { %4223 = vmatprep.subr.bf16.mxu1 %v3212_v15  ;;  %v3266_v15 = vunpack.c.l.s8.bf16 %v2466_v34 }
 0x4ff   : > { %3896 = vmatpush1.bf16.msra.mxu0 %v3209_v54  ;;  %v3268_v54 = vunpack.c.l.s8.bf16 %v2468_v38  ;;  %v2489_v38 = vld [vmem:[%s8274_s4 + $0x9c0] sm:$0xff] }
 0x500   : > { %4224 = vmatpush1.bf16.msra.mxu1 %v3211_v41  ;;  %3897 = vmatprep.subr.bf16.mxu0 %v3218_v42  ;;  %v2467_v41 = vld [vmem:[%s8274_s4 + $0x910] sm:$0xff]  ;;  %v3265_v42 = vunpack.c.l.s8.bf16 %v2465_v18 }
 0x501   : > { %4225 = vmatprep.subr.bf16.mxu1 %v3220_v48  ;;  %v3267_v1 = vunpack.c.l.s8.bf16 %v2467_v41  ;;  %v3274_v48 = vunpack.c.h.s8.bf16 %v2466_v34 }
 0x503   : > { %3898 = vmatpush1.bf16.msra.mxu0 %v3217_v50  ;;  %v2474_v50 = vld [vmem:[%s8274_s4 + $0x948] sm:$0xff] }
 0x504   : > { %4226 = vmatpush1.bf16.msra.mxu1 %v3219_v51  ;;  %3899 = vmatprep.subr.bf16.mxu0 %v3226_v56  ;;  %v2476_v51 = vld [vmem:[%s8274_s4 + $0x958] sm:$0xff]  ;;  %v3273_v56 = vunpack.c.h.s8.bf16 %v2465_v18  ;;  %v3282_v58 = vunpack.c.l.s8.bf16 %v2474_v50 }
 0x505   : > { %4227 = vmatprep.subr.bf16.mxu1 %v3228_v57  ;;  %v3275_v57 = vunpack.c.h.s8.bf16 %v2467_v41  ;;  %v3292_v8 = vunpack.c.h.s8.bf16 %v2476_v51  ;;  %v2153_v41 = vmul.f32 0.2, %v8445_v59 }
 0x507   : > { %3900 = vmatpush1.bf16.msra.mxu0 %v3225_v61  ;;  %v3284_v61 = vunpack.c.l.s8.bf16 %v2476_v51 }
 0x508   : > { %4228 = vmatpush1.bf16.msra.mxu1 %v3227_v2  ;;  %3901 = vmatprep.subr.bf16.mxu0 %v3234_v3  ;;  %v2475_v2 = vld [vmem:[%s8274_s4 + $0x950] sm:$0xff]  ;;  %v3281_v3 = vunpack.c.l.s8.bf16 %v2473_v53 }
 0x509   : > { %4229 = vmatprep.subr.bf16.mxu1 %v3236_v26  ;;  %v3283_v5 = vunpack.c.l.s8.bf16 %v2475_v2  ;;  %v3290_v26 = vunpack.c.h.s8.bf16 %v2474_v50  ;;  %v3321_v50 = vunpack.c.h.s8.bf16 %v2489_v38 }
 0x50b   : > { %3902 = vmatpush1.bf16.msra.mxu0 %v3233_v14  ;;  %v2482_v14 = vld [vmem:[%s8274_s4 + $0x988] sm:$0xff] }
 0x50c   : > { %4230 = vmatpush1.bf16.msra.mxu1 %v3235_v13  ;;  %3903 = vmatprep.subr.bf16.mxu0 %v3242_v19  ;;  %v2484_v13 = vld [vmem:[%s8274_s4 + $0x998] sm:$0xff]  ;;  %v3289_v19 = vunpack.c.h.s8.bf16 %v2473_v53  ;;  %v3298_v45 = vunpack.c.l.s8.bf16 %v2482_v14 }
 0x50d   : > { %4231 = vmatprep.subr.bf16.mxu1 %v3244_v44  ;;  %v3291_v44 = vunpack.c.h.s8.bf16 %v2475_v2  ;;  %v3308_v22 = vunpack.c.h.s8.bf16 %v2484_v13 }
 0x50f   : > { %3904 = vmatpush1.bf16.msra.mxu0 %v3241_v46  ;;  %v3300_v46 = vunpack.c.l.s8.bf16 %v2484_v13 }
 0x510   : > { %4232 = vmatpush1.bf16.msra.mxu1 %v3243_v47  ;;  %3905 = vmatprep.subr.bf16.mxu0 %v3250_v21  ;;  %v2483_v47 = vld [vmem:[%s8274_s4 + $0x990] sm:$0xff]  ;;  %v3297_v21 = vunpack.c.l.s8.bf16 %v2481_v16 }
 0x511   : > { %4233 = vmatprep.subr.bf16.mxu1 %v3252_v33  ;;  %v3299_v32 = vunpack.c.l.s8.bf16 %v2483_v47  ;;  %v3306_v33 = vunpack.c.h.s8.bf16 %v2482_v14  ;;  %v2506_v14 = vld [vmem:[%s8274_s4 + $0xa48] sm:$0xff] }
 0x513   : > { %3906 = vmatpush1.bf16.msra.mxu0 %v3249_v23  ;;  %v2490_v23 = vld [vmem:[%s8274_s4 + $0x9c8] sm:$0xff] }
 0x514   : > { %4234 = vmatpush1.bf16.msra.mxu1 %v3251_v25  ;;  %3907 = vmatprep.subr.bf16.mxu0 %v3258_v28  ;;  %v2492_v25 = vld [vmem:[%s8274_s4 + $0x9d8] sm:$0xff]  ;;  %v3305_v28 = vunpack.c.h.s8.bf16 %v2481_v16  ;;  %v3314_v34 = vunpack.c.l.s8.bf16 %v2490_v23  ;;  %v2505_v16 = vld [vmem:[%s8274_s4 + $0xa40] sm:$0xff] }
 0x515   : > { %4235 = vmatprep.subr.bf16.mxu1 %v3260_v29  ;;  %v3307_v29 = vunpack.c.h.s8.bf16 %v2483_v47  ;;  %v2507_v47 = vld [vmem:[%s8274_s4 + $0xa50] sm:$0xff] }
 0x517   : > { %3908 = vmatpush1.bf16.msra.mxu0 %v3257_v20  ;;  %v3316_v20 = vunpack.c.l.s8.bf16 %v2492_v25 }
 0x518   : > { %4236 = vmatpush1.bf16.msra.mxu1 %v3259_v27  ;;  %3909 = vmatprep.subr.bf16.mxu0 %v3266_v15  ;;  %v2491_v27 = vld [vmem:[%s8274_s4 + $0x9d0] sm:$0xff]  ;;  %v3313_v15 = vunpack.c.l.s8.bf16 %v2489_v38  ;;  %v2513_v38 = vld [vmem:[%s8274_s4 + $0xa80] sm:$0xff] }
 0x519   : > { %4237 = vmatprep.subr.bf16.mxu1 %v3268_v54  ;;  %v3315_v18 = vunpack.c.l.s8.bf16 %v2491_v27  ;;  %v3322_v54 = vunpack.c.h.s8.bf16 %v2490_v23  ;;  %v3323_v51 = vunpack.c.h.s8.bf16 %v2491_v27  ;;  %v2514_v23 = vld [vmem:[%s8274_s4 + $0xa88] sm:$0xff]  ;;  %v2515_v27 = vld [vmem:[%s8274_s4 + $0xa90] sm:$0xff] }
 0x51b   : > { %3910 = vmatpush1.bf16.msra.mxu0 %v3265_v42  ;;  %v3324_v42 = vunpack.c.h.s8.bf16 %v2492_v25  ;;  %v2516_v25 = vld [vmem:[%s8274_s4 + $0xa98] sm:$0xff] }
 0x51c   : > { %4238 = vmatpush1.bf16.msra.mxu1 %v3267_v1  ;;  %3911 = vmatprep.subr.bf16.mxu0 %v3274_v48  ;;  %v2498_v1 = vld [vmem:[%s8274_s4 + $0xa08] sm:$0xff]  ;;  %v2500_v48 = vld [vmem:[%s8274_s4 + $0xa18] sm:$0xff] }
 0x51d   : > { %4239 = vmatprep.subr.bf16.mxu1 %v3276_v49  ;;  %v2156_v49 = vmul.f32 0.2, %v8452_v4  ;;  %v3332_v53 = vunpack.c.l.s8.bf16 %v2500_v48 }
 0x51f   : > { %3912 = vmatpush1.bf16.msra.mxu0 %v3273_v56  ;;  %v3330_v56 = vunpack.c.l.s8.bf16 %v2498_v1  ;;  %v2172_v2 = vsel %vm2140_vm1, %v8452_v4, %v2156_v49  ;;  %v3371_v49 = vunpack.c.h.s8.bf16 %v2515_v27 }
 0x520   : > { %4240 = vmatpush1.bf16.msra.mxu1 %v3275_v57  ;;  %3913 = vmatprep.subr.bf16.mxu0 %v3282_v58  ;;  %v2497_v57 = vld [vmem:[%s8274_s4 + $0xa00] sm:$0xff]  ;;  %v2169_v58 = vsel %vm2137_vm0, %v8445_v59, %v2153_v41  ;;  %v8648_v13 = vpack.c.bf16 %v2172_v2, %v2172_v2  ;;  %v3340_v59 = vunpack.c.h.s8.bf16 %v2500_v48  ;;  %v3372_v41 = vunpack.c.h.s8.bf16 %v2516_v25 }
 0x521   : > { %4241 = vmatprep.subr.bf16.mxu1 %v3284_v61  ;;  %v2499_v61 = vld [vmem:[%s8274_s4 + $0xa10] sm:$0xff]  ;;  %v3337_v4 = vunpack.c.h.s8.bf16 %v2497_v57  ;;  %v3369_v48 = vunpack.c.h.s8.bf16 %v2513_v38 }
 0x523   : > { %3914 = vmatpush1.bf16.msra.mxu0 %v3281_v3  ;;  %v3329_v3 = vunpack.c.l.s8.bf16 %v2497_v57  ;;  %v2523_v57 = vld [vmem:[%s8274_s4 + $0xad0] sm:$0xff] }
 0x524   : > { %4242 = vmatpush1.bf16.msra.mxu1 %v3283_v5  ;;  %3915 = vmatprep.subr.bf16.mxu0 %v3290_v26  ;;  %v8645_v5 = vpack.c.bf16 %v2169_v58, %v2169_v58  ;;  %v3331_v26 = vunpack.c.l.s8.bf16 %v2499_v61 }
 0x525   : > { %4243 = vmatprep.subr.bf16.mxu1 %v3292_v8  ;;  %v3338_v8 = vunpack.c.h.s8.bf16 %v2498_v1  ;;  %v2524_v1 = vld [vmem:[%s8274_s4 + $0xad8] sm:$0xff] }
 0x526   : > { %v3388_v2 = vunpack.c.h.s8.bf16 %v2524_v1 }
 0x527   : > { %3916 = vmatpush1.bf16.msra.mxu0 %v3289_v19  ;;  %v2508_v19 = vld [vmem:[%s8274_s4 + $0xa58] sm:$0xff] }
 0x528   : > { %4244 = vmatpush1.bf16.msra.mxu1 %v3291_v44  ;;  %3917 = vmatprep.subr.bf16.mxu0 %v3298_v45  ;;  %v3339_v44 = vunpack.c.h.s8.bf16 %v2499_v61  ;;  %v3346_v45 = vunpack.c.l.s8.bf16 %v2506_v14 }
 0x529   : > { %4245 = vmatprep.subr.bf16.mxu1 %v3300_v46  ;;  %v3348_v46 = vunpack.c.l.s8.bf16 %v2508_v19 }
 0x52b   : > { %3918 = vmatpush1.bf16.msra.mxu0 %v3297_v21  ;;  %v3345_v21 = vunpack.c.l.s8.bf16 %v2505_v16 }
 0x52c   : > { %4246 = vmatpush1.bf16.msra.mxu1 %v3299_v32  ;;  %3919 = vmatprep.subr.bf16.mxu0 %v3306_v33  ;;  %v3347_v32 = vunpack.c.l.s8.bf16 %v2507_v47  ;;  %v3354_v33 = vunpack.c.h.s8.bf16 %v2506_v14  ;;  %v3387_v14 = vunpack.c.h.s8.bf16 %v2523_v57 }
 0x52d   : > { %4247 = vmatprep.subr.bf16.mxu1 %v3308_v22  ;;  %v3356_v22 = vunpack.c.h.s8.bf16 %v2508_v19  ;;  %v2529_v19 = vld [vmem:[%s8274_s4 + $0xb00] sm:$0xff] }
 0x52f   : > { %3920 = vmatpush1.bf16.msra.mxu0 %v3305_v28  ;;  %v3353_v28 = vunpack.c.h.s8.bf16 %v2505_v16 }
 0x530   : > { %4248 = vmatpush1.bf16.msra.mxu1 %v3307_v29  ;;  %3921 = vmatprep.subr.bf16.mxu0 %v3314_v34  ;;  %v3355_v29 = vunpack.c.h.s8.bf16 %v2507_v47  ;;  %v3362_v34 = vunpack.c.l.s8.bf16 %v2514_v23 }
 0x531   : > { %4249 = vmatprep.subr.bf16.mxu1 %v3316_v20  ;;  %v3364_v20 = vunpack.c.l.s8.bf16 %v2516_v25  ;;  %v2537_v25 = vld [vmem:[%s8274_s4 + $0xb40] sm:$0xff] }
 0x533   : > { %3922 = vmatpush1.bf16.msra.mxu0 %v3313_v15  ;;  %v3361_v15 = vunpack.c.l.s8.bf16 %v2513_v38 }
 0x534   : > { %4250 = vmatpush1.bf16.msra.mxu1 %v3315_v18  ;;  %3923 = vmatprep.subr.bf16.mxu0 %v3322_v54  ;;  %v3363_v18 = vunpack.c.l.s8.bf16 %v2515_v27  ;;  %v3370_v54 = vunpack.c.h.s8.bf16 %v2514_v23 }
 0x535   : > { %4251 = vmatprep.subr.bf16.mxu1 %v3324_v42  ;;  %v2522_v42 = vld [vmem:[%s8274_s4 + $0xac8] sm:$0xff] }
 0x536   : > { %v3386_v61 = vunpack.c.h.s8.bf16 %v2522_v42 }
 0x537   : > { %3924 = vmatpush1.bf16.msra.mxu0 %v3321_v50  ;;  %v3378_v50 = vunpack.c.l.s8.bf16 %v2522_v42 }
 0x538   : > { %4252 = vmatpush1.bf16.msra.mxu1 %v3323_v51  ;;  %3934 = vmatprep.subr.bf16.mxu0 %v3330_v56  ;;  %v2521_v51 = vld [vmem:[%s8274_s4 + $0xac0] sm:$0xff]  ;;  %v3380_v56 = vunpack.c.l.s8.bf16 %v2524_v1 }
 0x539   : > { %4262 = vmatprep.subr.bf16.mxu1 %v3332_v53  ;;  %v3377_v58 = vunpack.c.l.s8.bf16 %v2521_v51  ;;  %v3379_v53 = vunpack.c.l.s8.bf16 %v2523_v57  ;;  %v2545_v1 = vld [vmem:[%s8274_s4 + $0xb80] sm:$0xff] }
 0x53a   : > { %3926 = vmatmul.mubr.bf16.vlgmr.msra.gmra.mrb[36].mxu0 %v8645_v5 }
 0x53b   : > { %4254 = vmatmul.mubr.bf16.vlgmr.msra.gmra.mrb[36].mxu1 %v8645_v5  ;;  %3935 = vmatpush1.bf16.msra.mxu0 %v3329_v3  ;;  %v2530_v3 = vld [vmem:[%s8274_s4 + $0xb08] sm:$0xff] }
 0x53c   : > { %3966 = vmatprep.mubr.bf16.mxu0 %v8648_v13  ;;  %4263 = vmatpush1.bf16.msra.mxu1 %v3331_v26  ;;  %v2532_v26 = vld [vmem:[%s8274_s4 + $0xb18] sm:$0xff] }
 0x53d   : > { %4294 = vmatprep.mubr.bf16.mxu1 %v8648_v13  ;;  %3936 = vmatprep.subr.bf16.mxu0 %v3338_v8  ;;  %v3385_v8 = vunpack.c.h.s8.bf16 %v2521_v51  ;;  %v3404_v47 = vunpack.c.h.s8.bf16 %v2532_v26 }
 0x53e   : > { %4264 = vmatprep.subr.bf16.mxu1 %v3340_v59  ;;  %v3394_v59 = vunpack.c.l.s8.bf16 %v2530_v3 }
 0x53f   : > { %3937 = vmatpush1.bf16.msra.mxu0 %v3337_v4  ;;  %v3396_v4 = vunpack.c.l.s8.bf16 %v2532_v26  ;;  %v2553_v26 = vld [vmem:[%s8274_s4 + $0xbc0] sm:$0xff] }
 0x540   : > { %4265 = vmatpush1.bf16.msra.mxu1 %v3339_v44  ;;  %3938 = vmatprep.subr.bf16.mxu0 %v3346_v45  ;;  %v2531_v44 = vld [vmem:[%s8274_s4 + $0xb10] sm:$0xff]  ;;  %v3393_v45 = vunpack.c.l.s8.bf16 %v2529_v19 }
 0x541   : > { %4266 = vmatprep.subr.bf16.mxu1 %v3348_v46  ;;  %v3395_v16 = vunpack.c.l.s8.bf16 %v2531_v44  ;;  %v3402_v46 = vunpack.c.h.s8.bf16 %v2530_v3 }
 0x543   : > { %3939 = vmatpush1.bf16.msra.mxu0 %v3345_v21  ;;  %v2538_v21 = vld [vmem:[%s8274_s4 + $0xb48] sm:$0xff] }
 0x544   : > { %4267 = vmatpush1.bf16.msra.mxu1 %v3347_v32  ;;  %3940 = vmatprep.subr.bf16.mxu0 %v3354_v33  ;;  %v2540_v32 = vld [vmem:[%s8274_s4 + $0xb58] sm:$0xff]  ;;  %v3401_v33 = vunpack.c.h.s8.bf16 %v2529_v19  ;;  %v3410_v23 = vunpack.c.l.s8.bf16 %v2538_v21 }
 0x545   : > { %4268 = vmatprep.subr.bf16.mxu1 %v3356_v22  ;;  %v3403_v22 = vunpack.c.h.s8.bf16 %v2531_v44  ;;  %v3420_v27 = vunpack.c.h.s8.bf16 %v2540_v32  ;;  %v2155_v44 = vmul.f32 0.2, %v8447_v52 }
 0x547   : > { %3941 = vmatpush1.bf16.msra.mxu0 %v3353_v28  ;;  %v3412_v28 = vunpack.c.l.s8.bf16 %v2540_v32 }
 0x548   : > { %4269 = vmatpush1.bf16.msra.mxu1 %v3355_v29  ;;  %3942 = vmatprep.subr.bf16.mxu0 %v3362_v34  ;;  %v2539_v29 = vld [vmem:[%s8274_s4 + $0xb50] sm:$0xff]  ;;  %v3409_v34 = vunpack.c.l.s8.bf16 %v2537_v25 }
 0x549   : > { %4270 = vmatprep.subr.bf16.mxu1 %v3364_v20  ;;  %v3411_v38 = vunpack.c.l.s8.bf16 %v2539_v29  ;;  %v3418_v20 = vunpack.c.h.s8.bf16 %v2538_v21  ;;  %v3449_v21 = vunpack.c.h.s8.bf16 %v2553_v26 }
 0x54b   : > { %3943 = vmatpush1.bf16.msra.mxu0 %v3361_v15  ;;  %v2546_v15 = vld [vmem:[%s8274_s4 + $0xb88] sm:$0xff] }
 0x54c   : > { %4271 = vmatpush1.bf16.msra.mxu1 %v3363_v18  ;;  %3944 = vmatprep.subr.bf16.mxu0 %v3370_v54  ;;  %v2548_v18 = vld [vmem:[%s8274_s4 + $0xb98] sm:$0xff]  ;;  %v3417_v54 = vunpack.c.h.s8.bf16 %v2537_v25  ;;  %v3426_v42 = vunpack.c.l.s8.bf16 %v2546_v15 }
 0x54d   : > { %4272 = vmatprep.subr.bf16.mxu1 %v3372_v41  ;;  %v3419_v41 = vunpack.c.h.s8.bf16 %v2539_v29  ;;  %v3436_v57 = vunpack.c.h.s8.bf16 %v2548_v18 }
 0x54f   : > { %3945 = vmatpush1.bf16.msra.mxu0 %v3369_v48  ;;  %v3428_v48 = vunpack.c.l.s8.bf16 %v2548_v18 }
 0x550   : > { %4273 = vmatpush1.bf16.msra.mxu1 %v3371_v49  ;;  %3946 = vmatprep.subr.bf16.mxu0 %v3378_v50  ;;  %v2547_v49 = vld [vmem:[%s8274_s4 + $0xb90] sm:$0xff]  ;;  %v3425_v50 = vunpack.c.l.s8.bf16 %v2545_v1 }
 0x551   : > { %4274 = vmatprep.subr.bf16.mxu1 %v3380_v56  ;;  %v3427_v51 = vunpack.c.l.s8.bf16 %v2547_v49  ;;  %v3434_v56 = vunpack.c.h.s8.bf16 %v2546_v15  ;;  %v2570_v15 = vld [vmem:[%s8274_s4 + $0xc48] sm:$0xff] }
 0x553   : > { %3947 = vmatpush1.bf16.msra.mxu0 %v3377_v58  ;;  %v2554_v58 = vld [vmem:[%s8274_s4 + $0xbc8] sm:$0xff] }
 0x554   : > { %4275 = vmatpush1.bf16.msra.mxu1 %v3379_v53  ;;  %3948 = vmatprep.subr.bf16.mxu0 %v3386_v61  ;;  %v2556_v53 = vld [vmem:[%s8274_s4 + $0xbd8] sm:$0xff]  ;;  %v3433_v61 = vunpack.c.h.s8.bf16 %v2545_v1  ;;  %v3442_v3 = vunpack.c.l.s8.bf16 %v2554_v58  ;;  %v2569_v1 = vld [vmem:[%s8274_s4 + $0xc40] sm:$0xff] }
 0x555   : > { %4276 = vmatprep.subr.bf16.mxu1 %v3388_v2  ;;  %v3435_v2 = vunpack.c.h.s8.bf16 %v2547_v49  ;;  %v2571_v49 = vld [vmem:[%s8274_s4 + $0xc50] sm:$0xff] }
 0x557   : > { %3949 = vmatpush1.bf16.msra.mxu0 %v3385_v8  ;;  %v3444_v8 = vunpack.c.l.s8.bf16 %v2556_v53 }
 0x558   : > { %4277 = vmatpush1.bf16.msra.mxu1 %v3387_v14  ;;  %3950 = vmatprep.subr.bf16.mxu0 %v3394_v59  ;;  %v2555_v14 = vld [vmem:[%s8274_s4 + $0xbd0] sm:$0xff]  ;;  %v3441_v59 = vunpack.c.l.s8.bf16 %v2553_v26  ;;  %v2577_v26 = vld [vmem:[%s8274_s4 + $0xc80] sm:$0xff] }
 0x559   : > { %4278 = vmatprep.subr.bf16.mxu1 %v3396_v4  ;;  %v3443_v19 = vunpack.c.l.s8.bf16 %v2555_v14  ;;  %v3450_v4 = vunpack.c.h.s8.bf16 %v2554_v58  ;;  %v3451_v32 = vunpack.c.h.s8.bf16 %v2555_v14  ;;  %v2578_v58 = vld [vmem:[%s8274_s4 + $0xc88] sm:$0xff]  ;;  %v2579_v14 = vld [vmem:[%s8274_s4 + $0xc90] sm:$0xff] }
 0x55b   : > { %3951 = vmatpush1.bf16.msra.mxu0 %v3393_v45  ;;  %v3452_v45 = vunpack.c.h.s8.bf16 %v2556_v53  ;;  %v2580_v53 = vld [vmem:[%s8274_s4 + $0xc98] sm:$0xff] }
 0x55c   : > { %4279 = vmatpush1.bf16.msra.mxu1 %v3395_v16  ;;  %3952 = vmatprep.subr.bf16.mxu0 %v3402_v46  ;;  %v2562_v16 = vld [vmem:[%s8274_s4 + $0xc08] sm:$0xff]  ;;  %v2564_v46 = vld [vmem:[%s8274_s4 + $0xc18] sm:$0xff] }
 0x55d   : > { %4280 = vmatprep.subr.bf16.mxu1 %v3404_v47  ;;  %v2158_v47 = vmul.f32 0.2, %v8474_v0  ;;  %v3460_v25 = vunpack.c.l.s8.bf16 %v2564_v46 }
 0x55f   : > { %3953 = vmatpush1.bf16.msra.mxu0 %v3401_v33  ;;  %v3458_v33 = vunpack.c.l.s8.bf16 %v2562_v16  ;;  %v2174_v29 = vsel %vm2142_vm3, %v8474_v0, %v2158_v47  ;;  %v3499_v47 = vunpack.c.h.s8.bf16 %v2579_v14  ;;  %vm6296_vm3 = vcmask 254976  }
 0x560   : > { %4281 = vmatpush1.bf16.msra.mxu1 %v3403_v22  ;;  %3954 = vmatprep.subr.bf16.mxu0 %v3410_v23  ;;  %v2561_v22 = vld [vmem:[%s8274_s4 + $0xc00] sm:$0xff]  ;;  %v2171_v23 = vsel %vm2139_vm2, %v8447_v52, %v2155_v44  ;;  %v8694_v18 = vpack.c.bf16 %v2174_v29, %v2174_v29  ;;  %v3468_v52 = vunpack.c.h.s8.bf16 %v2564_v46  ;;  %v3500_v44 = vunpack.c.h.s8.bf16 %v2580_v53 }
 0x561   : > { %4282 = vmatprep.subr.bf16.mxu1 %v3412_v28  ;;  %v2563_v28 = vld [vmem:[%s8274_s4 + $0xc10] sm:$0xff]  ;;  %v3465_v0 = vunpack.c.h.s8.bf16 %v2561_v22  ;;  %v3497_v46 = vunpack.c.h.s8.bf16 %v2577_v26 }
 0x563   : > { %3955 = vmatpush1.bf16.msra.mxu0 %v3409_v34  ;;  %v3457_v34 = vunpack.c.l.s8.bf16 %v2561_v22  ;;  %v2587_v22 = vld [vmem:[%s8274_s4 + $0xcd0] sm:$0xff] }
 0x564   : > { %4283 = vmatpush1.bf16.msra.mxu1 %v3411_v38  ;;  %3956 = vmatprep.subr.bf16.mxu0 %v3418_v20  ;;  %v8691_v38 = vpack.c.bf16 %v2171_v23, %v2171_v23  ;;  %v3459_v20 = vunpack.c.l.s8.bf16 %v2563_v28 }
 0x565   : > { %4284 = vmatprep.subr.bf16.mxu1 %v3420_v27  ;;  %v3466_v27 = vunpack.c.h.s8.bf16 %v2562_v16  ;;  %v2588_v16 = vld [vmem:[%s8274_s4 + $0xcd8] sm:$0xff] }
 0x566   : > { %v3516_v29 = vunpack.c.h.s8.bf16 %v2588_v16 }
 0x567   : > { %3957 = vmatpush1.bf16.msra.mxu0 %v3417_v54  ;;  %v2572_v54 = vld [vmem:[%s8274_s4 + $0xc58] sm:$0xff] }
 0x568   : > { %4285 = vmatpush1.bf16.msra.mxu1 %v3419_v41  ;;  %3958 = vmatprep.subr.bf16.mxu0 %v3426_v42  ;;  %v3467_v41 = vunpack.c.h.s8.bf16 %v2563_v28  ;;  %v3474_v42 = vunpack.c.l.s8.bf16 %v2570_v15 }
 0x569   : > { %4286 = vmatprep.subr.bf16.mxu1 %v3428_v48  ;;  %v3476_v48 = vunpack.c.l.s8.bf16 %v2572_v54 }
 0x56b   : > { %3959 = vmatpush1.bf16.msra.mxu0 %v3425_v50  ;;  %v3473_v50 = vunpack.c.l.s8.bf16 %v2569_v1 }
 0x56c   : > { %4287 = vmatpush1.bf16.msra.mxu1 %v3427_v51  ;;  %3960 = vmatprep.subr.bf16.mxu0 %v3434_v56  ;;  %v3475_v51 = vunpack.c.l.s8.bf16 %v2571_v49  ;;  %v3482_v56 = vunpack.c.h.s8.bf16 %v2570_v15  ;;  %v3515_v15 = vunpack.c.h.s8.bf16 %v2587_v22 }
 0x56d   : > { %4288 = vmatprep.subr.bf16.mxu1 %v3436_v57  ;;  %v3484_v57 = vunpack.c.h.s8.bf16 %v2572_v54  ;;  %v2593_v54 = vld [vmem:[%s8274_s4 + $0xd00] sm:$0xff] }
 0x56f   : > { %3961 = vmatpush1.bf16.msra.mxu0 %v3433_v61  ;;  %v3481_v61 = vunpack.c.h.s8.bf16 %v2569_v1 }
 0x570   : > { %4289 = vmatpush1.bf16.msra.mxu1 %v3435_v2  ;;  %3962 = vmatprep.subr.bf16.mxu0 %v3442_v3  ;;  %v3483_v2 = vunpack.c.h.s8.bf16 %v2571_v49  ;;  %v3490_v3 = vunpack.c.l.s8.bf16 %v2578_v58 }
 0x571   : > { %4290 = vmatprep.subr.bf16.mxu1 %v3444_v8  ;;  %v3492_v8 = vunpack.c.l.s8.bf16 %v2580_v53  ;;  %v2601_v53 = vld [vmem:[%s8274_s4 + $0xd40] sm:$0xff] }
 0x573   : > { %3963 = vmatpush1.bf16.msra.mxu0 %v3441_v59  ;;  %v3489_v59 = vunpack.c.l.s8.bf16 %v2577_v26 }
 0x574   : > { %4291 = vmatpush1.bf16.msra.mxu1 %v3443_v19  ;;  %3964 = vmatprep.subr.bf16.mxu0 %v3450_v4  ;;  %v3491_v19 = vunpack.c.l.s8.bf16 %v2579_v14  ;;  %v3498_v4 = vunpack.c.h.s8.bf16 %v2578_v58 }
 0x575   : > { %4292 = vmatprep.subr.bf16.mxu1 %v3452_v45  ;;  %v2586_v45 = vld [vmem:[%s8274_s4 + $0xcc8] sm:$0xff] }
 0x576   : > { %v3514_v28 = vunpack.c.h.s8.bf16 %v2586_v45 }
 0x577   : > { %3965 = vmatpush1.bf16.msra.mxu0 %v3449_v21  ;;  %v3506_v21 = vunpack.c.l.s8.bf16 %v2586_v45 }
 0x578   : > { %4293 = vmatpush1.bf16.msra.mxu1 %v3451_v32  ;;  %3975 = vmatprep.subr.bf16.mxu0 %v3458_v33  ;;  %v2585_v32 = vld [vmem:[%s8274_s4 + $0xcc0] sm:$0xff]  ;;  %v3508_v33 = vunpack.c.l.s8.bf16 %v2588_v16 }
 0x579   : > { %4303 = vmatprep.subr.bf16.mxu1 %v3460_v25  ;;  %v3505_v23 = vunpack.c.l.s8.bf16 %v2585_v32  ;;  %v3507_v25 = vunpack.c.l.s8.bf16 %v2587_v22  ;;  %v2609_v16 = vld [vmem:[%s8274_s4 + $0xd80] sm:$0xff] }
 0x57a   : > { %3967 = vmatmul.mubr.bf16.vlgmr.msra.gmra.mrb[36].mxu0 %v8691_v38 }
 0x57b   : > { %4295 = vmatmul.mubr.bf16.vlgmr.msra.gmra.mrb[36].mxu1 %v8691_v38  ;;  %3976 = vmatpush1.bf16.msra.mxu0 %v3457_v34  ;;  %v2594_v34 = vld [vmem:[%s8274_s4 + $0xd08] sm:$0xff] }
 0x57c   : > { %4007 = vmatprep.mubr.bf16.mxu0 %v8694_v18  ;;  %4304 = vmatpush1.bf16.msra.mxu1 %v3459_v20  ;;  %v2596_v20 = vld [vmem:[%s8274_s4 + $0xd18] sm:$0xff] }
 0x57d   : > { %4335 = vmatprep.mubr.bf16.mxu1 %v8694_v18  ;;  %3977 = vmatprep.subr.bf16.mxu0 %v3466_v27  ;;  %v3513_v27 = vunpack.c.h.s8.bf16 %v2585_v32  ;;  %v3532_v49 = vunpack.c.h.s8.bf16 %v2596_v20 }
 0x57e   : > { %4305 = vmatprep.subr.bf16.mxu1 %v3468_v52  ;;  %v3522_v52 = vunpack.c.l.s8.bf16 %v2594_v34 }
 0x57f   : > { %3978 = vmatpush1.bf16.msra.mxu0 %v3465_v0  ;;  %v3524_v0 = vunpack.c.l.s8.bf16 %v2596_v20  ;;  %v2617_v20 = vld [vmem:[%s8274_s4 + $0xdc0] sm:$0xff] }
 0x580   : > { %4306 = vmatpush1.bf16.msra.mxu1 %v3467_v41  ;;  %3979 = vmatprep.subr.bf16.mxu0 %v3474_v42  ;;  %v2595_v41 = vld [vmem:[%s8274_s4 + $0xd10] sm:$0xff]  ;;  %v3521_v42 = vunpack.c.l.s8.bf16 %v2593_v54 }
 0x581   : > { %4307 = vmatprep.subr.bf16.mxu1 %v3476_v48  ;;  %v3523_v1 = vunpack.c.l.s8.bf16 %v2595_v41  ;;  %v3530_v48 = vunpack.c.h.s8.bf16 %v2594_v34 }
 0x583   : > { %3980 = vmatpush1.bf16.msra.mxu0 %v3473_v50  ;;  %v2602_v50 = vld [vmem:[%s8274_s4 + $0xd48] sm:$0xff] }
 0x584   : > { %4308 = vmatpush1.bf16.msra.mxu1 %v3475_v51  ;;  %3981 = vmatprep.subr.bf16.mxu0 %v3482_v56  ;;  %v2604_v51 = vld [vmem:[%s8274_s4 + $0xd58] sm:$0xff]  ;;  %v3529_v56 = vunpack.c.h.s8.bf16 %v2593_v54  ;;  %v3538_v58 = vunpack.c.l.s8.bf16 %v2602_v50 }
 0x585   : > { %4309 = vmatprep.subr.bf16.mxu1 %v3484_v57  ;;  %v3531_v57 = vunpack.c.h.s8.bf16 %v2595_v41  ;;  %v3548_v14 = vunpack.c.h.s8.bf16 %v2604_v51  ;;  %v2157_v41 = vmul.f32 0.2, %v8469_v39 }
 0x587   : > { %3982 = vmatpush1.bf16.msra.mxu0 %v3481_v61  ;;  %v3540_v61 = vunpack.c.l.s8.bf16 %v2604_v51 }
 0x588   : > { %4310 = vmatpush1.bf16.msra.mxu1 %v3483_v2  ;;  %3983 = vmatprep.subr.bf16.mxu0 %v3490_v3  ;;  %v2603_v2 = vld [vmem:[%s8274_s4 + $0xd50] sm:$0xff]  ;;  %v3537_v3 = vunpack.c.l.s8.bf16 %v2601_v53 }
 0x589   : > { %4311 = vmatprep.subr.bf16.mxu1 %v3492_v8  ;;  %v3539_v26 = vunpack.c.l.s8.bf16 %v2603_v2  ;;  %v3546_v8 = vunpack.c.h.s8.bf16 %v2602_v50  ;;  %v3577_v50 = vunpack.c.h.s8.bf16 %v2617_v20 }
 0x58b   : > { %3984 = vmatpush1.bf16.msra.mxu0 %v3489_v59  ;;  %v2610_v59 = vld [vmem:[%s8274_s4 + $0xd88] sm:$0xff] }
 0x58c   : > { %4312 = vmatpush1.bf16.msra.mxu1 %v3491_v19  ;;  %3985 = vmatprep.subr.bf16.mxu0 %v3498_v4  ;;  %v2612_v19 = vld [vmem:[%s8274_s4 + $0xd98] sm:$0xff]  ;;  %v3545_v4 = vunpack.c.h.s8.bf16 %v2601_v53  ;;  %v3554_v45 = vunpack.c.l.s8.bf16 %v2610_v59 }
 0x58d   : > { %4313 = vmatprep.subr.bf16.mxu1 %v3500_v44  ;;  %v3547_v44 = vunpack.c.h.s8.bf16 %v2603_v2  ;;  %v3564_v22 = vunpack.c.h.s8.bf16 %v2612_v19 }
 0x58f   : > { %3986 = vmatpush1.bf16.msra.mxu0 %v3497_v46  ;;  %v3556_v46 = vunpack.c.l.s8.bf16 %v2612_v19 }
 0x590   : > { %4314 = vmatpush1.bf16.msra.mxu1 %v3499_v47  ;;  %3987 = vmatprep.subr.bf16.mxu0 %v3506_v21  ;;  %v2611_v47 = vld [vmem:[%s8274_s4 + $0xd90] sm:$0xff]  ;;  %v3553_v21 = vunpack.c.l.s8.bf16 %v2609_v16 }
 0x591   : > { %4315 = vmatprep.subr.bf16.mxu1 %v3508_v33  ;;  %v3555_v32 = vunpack.c.l.s8.bf16 %v2611_v47  ;;  %v3562_v33 = vunpack.c.h.s8.bf16 %v2610_v59  ;;  %v2634_v59 = vld [vmem:[%s8274_s4 + $0xe48] sm:$0xff] }
 0x593   : > { %3988 = vmatpush1.bf16.msra.mxu0 %v3505_v23  ;;  %v2618_v23 = vld [vmem:[%s8274_s4 + $0xdc8] sm:$0xff] }
 0x594   : > { %4316 = vmatpush1.bf16.msra.mxu1 %v3507_v25  ;;  %3989 = vmatprep.subr.bf16.mxu0 %v3514_v28  ;;  %v2620_v25 = vld [vmem:[%s8274_s4 + $0xdd8] sm:$0xff]  ;;  %v3561_v28 = vunpack.c.h.s8.bf16 %v2609_v16  ;;  %v3570_v34 = vunpack.c.l.s8.bf16 %v2618_v23  ;;  %v2633_v16 = vld [vmem:[%s8274_s4 + $0xe40] sm:$0xff] }
 0x595   : > { %4317 = vmatprep.subr.bf16.mxu1 %v3516_v29  ;;  %v3563_v29 = vunpack.c.h.s8.bf16 %v2611_v47  ;;  %v2635_v47 = vld [vmem:[%s8274_s4 + $0xe50] sm:$0xff] }
 0x597   : > { %3990 = vmatpush1.bf16.msra.mxu0 %v3513_v27  ;;  %v3572_v27 = vunpack.c.l.s8.bf16 %v2620_v25 }
 0x598   : > { %4318 = vmatpush1.bf16.msra.mxu1 %v3515_v15  ;;  %3991 = vmatprep.subr.bf16.mxu0 %v3522_v52  ;;  %v2619_v15 = vld [vmem:[%s8274_s4 + $0xdd0] sm:$0xff]  ;;  %v3569_v52 = vunpack.c.l.s8.bf16 %v2617_v20  ;;  %v2641_v20 = vld [vmem:[%s8274_s4 + $0xe80] sm:$0xff] }
 0x599   : > { %4319 = vmatprep.subr.bf16.mxu1 %v3524_v0  ;;  %v3571_v54 = vunpack.c.l.s8.bf16 %v2619_v15  ;;  %v3578_v0 = vunpack.c.h.s8.bf16 %v2618_v23  ;;  %v3579_v51 = vunpack.c.h.s8.bf16 %v2619_v15  ;;  %v2642_v23 = vld [vmem:[%s8274_s4 + $0xe88] sm:$0xff]  ;;  %v2643_v15 = vld [vmem:[%s8274_s4 + $0xe90] sm:$0xff] }
 0x59b   : > { %3992 = vmatpush1.bf16.msra.mxu0 %v3521_v42  ;;  %v3580_v42 = vunpack.c.h.s8.bf16 %v2620_v25  ;;  %v2644_v25 = vld [vmem:[%s8274_s4 + $0xe98] sm:$0xff] }
 0x59c   : > { %4320 = vmatpush1.bf16.msra.mxu1 %v3523_v1  ;;  %3993 = vmatprep.subr.bf16.mxu0 %v3530_v48  ;;  %v2626_v1 = vld [vmem:[%s8274_s4 + $0xe08] sm:$0xff]  ;;  %v2628_v48 = vld [vmem:[%s8274_s4 + $0xe18] sm:$0xff] }
 0x59d   : > { %4321 = vmatprep.subr.bf16.mxu1 %v3532_v49  ;;  %v2160_v49 = vmul.f32 0.2, %v8476_v43  ;;  %v3588_v53 = vunpack.c.l.s8.bf16 %v2628_v48 }
 0x59f   : > { %3994 = vmatpush1.bf16.msra.mxu0 %v3529_v56  ;;  %v3586_v56 = vunpack.c.l.s8.bf16 %v2626_v1  ;;  %v2176_v2 = vsel %vm2144_vm5, %v8476_v43, %v2160_v49  ;;  %v3627_v49 = vunpack.c.h.s8.bf16 %v2643_v15 }
 0x5a0   : > { %4322 = vmatpush1.bf16.msra.mxu1 %v3531_v57  ;;  %3995 = vmatprep.subr.bf16.mxu0 %v3538_v58  ;;  %v2625_v57 = vld [vmem:[%s8274_s4 + $0xe00] sm:$0xff]  ;;  %v2173_v58 = vsel %vm2141_vm4, %v8469_v39, %v2157_v41  ;;  %v8740_v19 = vpack.c.bf16 %v2176_v2, %v2176_v2  ;;  %v3596_v39 = vunpack.c.h.s8.bf16 %v2628_v48  ;;  %v3628_v41 = vunpack.c.h.s8.bf16 %v2644_v25 }
 0x5a1   : > { %4323 = vmatprep.subr.bf16.mxu1 %v3540_v61  ;;  %v2627_v61 = vld [vmem:[%s8274_s4 + $0xe10] sm:$0xff]  ;;  %v3593_v43 = vunpack.c.h.s8.bf16 %v2625_v57  ;;  %v3625_v48 = vunpack.c.h.s8.bf16 %v2641_v20 }
 0x5a3   : > { %3996 = vmatpush1.bf16.msra.mxu0 %v3537_v3  ;;  %v3585_v3 = vunpack.c.l.s8.bf16 %v2625_v57  ;;  %v2651_v57 = vld [vmem:[%s8274_s4 + $0xed0] sm:$0xff] }
 0x5a4   : > { %4324 = vmatpush1.bf16.msra.mxu1 %v3539_v26  ;;  %3997 = vmatprep.subr.bf16.mxu0 %v3546_v8  ;;  %v8737_v26 = vpack.c.bf16 %v2173_v58, %v2173_v58  ;;  %v3587_v8 = vunpack.c.l.s8.bf16 %v2627_v61 }
 0x5a5   : > { %4325 = vmatprep.subr.bf16.mxu1 %v3548_v14  ;;  %v3594_v14 = vunpack.c.h.s8.bf16 %v2626_v1  ;;  %v2652_v1 = vld [vmem:[%s8274_s4 + $0xed8] sm:$0xff] }
 0x5a6   : > { %v3644_v2 = vunpack.c.h.s8.bf16 %v2652_v1 }
 0x5a7   : > { %3998 = vmatpush1.bf16.msra.mxu0 %v3545_v4  ;;  %v2636_v4 = vld [vmem:[%s8274_s4 + $0xe58] sm:$0xff] }
 0x5a8   : > { %4326 = vmatpush1.bf16.msra.mxu1 %v3547_v44  ;;  %3999 = vmatprep.subr.bf16.mxu0 %v3554_v45  ;;  %v3595_v44 = vunpack.c.h.s8.bf16 %v2627_v61  ;;  %v3602_v45 = vunpack.c.l.s8.bf16 %v2634_v59 }
 0x5a9   : > { %4327 = vmatprep.subr.bf16.mxu1 %v3556_v46  ;;  %v3604_v46 = vunpack.c.l.s8.bf16 %v2636_v4 }
 0x5ab   : > { %4000 = vmatpush1.bf16.msra.mxu0 %v3553_v21  ;;  %v3601_v21 = vunpack.c.l.s8.bf16 %v2633_v16 }
 0x5ac   : > { %4328 = vmatpush1.bf16.msra.mxu1 %v3555_v32  ;;  %4001 = vmatprep.subr.bf16.mxu0 %v3562_v33  ;;  %v3603_v32 = vunpack.c.l.s8.bf16 %v2635_v47  ;;  %v3610_v33 = vunpack.c.h.s8.bf16 %v2634_v59  ;;  %v3643_v59 = vunpack.c.h.s8.bf16 %v2651_v57 }
 0x5ad   : > { %4329 = vmatprep.subr.bf16.mxu1 %v3564_v22  ;;  %v3612_v22 = vunpack.c.h.s8.bf16 %v2636_v4  ;;  %v2657_v4 = vld [vmem:[%s8274_s4 + $0xf00] sm:$0xff] }
 0x5af   : > { %4002 = vmatpush1.bf16.msra.mxu0 %v3561_v28  ;;  %v3609_v28 = vunpack.c.h.s8.bf16 %v2633_v16 }
 0x5b0   : > { %4330 = vmatpush1.bf16.msra.mxu1 %v3563_v29  ;;  %4003 = vmatprep.subr.bf16.mxu0 %v3570_v34  ;;  %v3611_v29 = vunpack.c.h.s8.bf16 %v2635_v47  ;;  %v3618_v34 = vunpack.c.l.s8.bf16 %v2642_v23 }
 0x5b1   : > { %4331 = vmatprep.subr.bf16.mxu1 %v3572_v27  ;;  %v3620_v27 = vunpack.c.l.s8.bf16 %v2644_v25  ;;  %v2665_v25 = vld [vmem:[%s8274_s4 + $0xf40] sm:$0xff] }
 0x5b3   : > { %4004 = vmatpush1.bf16.msra.mxu0 %v3569_v52  ;;  %v3617_v52 = vunpack.c.l.s8.bf16 %v2641_v20 }
 0x5b4   : > { %4332 = vmatpush1.bf16.msra.mxu1 %v3571_v54  ;;  %4005 = vmatprep.subr.bf16.mxu0 %v3578_v0  ;;  %v3619_v54 = vunpack.c.l.s8.bf16 %v2643_v15  ;;  %v3626_v0 = vunpack.c.h.s8.bf16 %v2642_v23 }
 0x5b5   : > { %4333 = vmatprep.subr.bf16.mxu1 %v3580_v42  ;;  %v2650_v42 = vld [vmem:[%s8274_s4 + $0xec8] sm:$0xff] }
 0x5b6   : > { %v3642_v61 = vunpack.c.h.s8.bf16 %v2650_v42 }
 0x5b7   : > { %4006 = vmatpush1.bf16.msra.mxu0 %v3577_v50  ;;  %v3634_v50 = vunpack.c.l.s8.bf16 %v2650_v42 }
 0x5b8   : > { %4334 = vmatpush1.bf16.msra.mxu1 %v3579_v51  ;;  %4016 = vmatprep.subr.bf16.mxu0 %v3586_v56  ;;  %v2649_v51 = vld [vmem:[%s8274_s4 + $0xec0] sm:$0xff]  ;;  %v3636_v56 = vunpack.c.l.s8.bf16 %v2652_v1 }
 0x5b9   : > { %4344 = vmatprep.subr.bf16.mxu1 %v3588_v53  ;;  %v3633_v58 = vunpack.c.l.s8.bf16 %v2649_v51  ;;  %v3635_v53 = vunpack.c.l.s8.bf16 %v2651_v57  ;;  %v2673_v1 = vld [vmem:[%s8274_s4 + $0xf80] sm:$0xff] }
 0x5ba   : > { %4008 = vmatmul.mubr.bf16.vlgmr.msra.gmra.mrb[36].mxu0 %v8737_v26 }
 0x5bb   : > { %4336 = vmatmul.mubr.bf16.vlgmr.msra.gmra.mrb[36].mxu1 %v8737_v26  ;;  %4017 = vmatpush1.bf16.msra.mxu0 %v3585_v3  ;;  %v2658_v3 = vld [vmem:[%s8274_s4 + $0xf08] sm:$0xff] }
 0x5bc   : > { %4048 = vmatprep.mubr.bf16.mxu0 %v8740_v19  ;;  %4345 = vmatpush1.bf16.msra.mxu1 %v3587_v8  ;;  %v2660_v8 = vld [vmem:[%s8274_s4 + $0xf18] sm:$0xff] }
 0x5bd   : > { %4376 = vmatprep.mubr.bf16.mxu1 %v8740_v19  ;;  %4018 = vmatprep.subr.bf16.mxu0 %v3594_v14  ;;  %v3641_v14 = vunpack.c.h.s8.bf16 %v2649_v51  ;;  %v3660_v47 = vunpack.c.h.s8.bf16 %v2660_v8 }
 0x5be   : > { %4346 = vmatprep.subr.bf16.mxu1 %v3596_v39  ;;  %v3650_v39 = vunpack.c.l.s8.bf16 %v2658_v3 }
 0x5bf   : > { %4019 = vmatpush1.bf16.msra.mxu0 %v3593_v43  ;;  %v3652_v43 = vunpack.c.l.s8.bf16 %v2660_v8  ;;  %v2681_v8 = vld [vmem:[%s8274_s4 + $0xfc0] sm:$0xff] }
 0x5c0   : > { %4347 = vmatpush1.bf16.msra.mxu1 %v3595_v44  ;;  %4020 = vmatprep.subr.bf16.mxu0 %v3602_v45  ;;  %v2659_v44 = vld [vmem:[%s8274_s4 + $0xf10] sm:$0xff]  ;;  %v3649_v45 = vunpack.c.l.s8.bf16 %v2657_v4 }
 0x5c1   : > { %4348 = vmatprep.subr.bf16.mxu1 %v3604_v46  ;;  %v3651_v16 = vunpack.c.l.s8.bf16 %v2659_v44  ;;  %v3658_v46 = vunpack.c.h.s8.bf16 %v2658_v3 }
 0x5c3   : > { %4021 = vmatpush1.bf16.msra.mxu0 %v3601_v21  ;;  %v2666_v21 = vld [vmem:[%s8274_s4 + $0xf48] sm:$0xff] }
 0x5c4   : > { %4349 = vmatpush1.bf16.msra.mxu1 %v3603_v32  ;;  %4022 = vmatprep.subr.bf16.mxu0 %v3610_v33  ;;  %v2668_v32 = vld [vmem:[%s8274_s4 + $0xf58] sm:$0xff]  ;;  %v3657_v33 = vunpack.c.h.s8.bf16 %v2657_v4  ;;  %v3666_v23 = vunpack.c.l.s8.bf16 %v2666_v21 }
 0x5c5   : > { %4350 = vmatprep.subr.bf16.mxu1 %v3612_v22  ;;  %v3659_v22 = vunpack.c.h.s8.bf16 %v2659_v44  ;;  %v3676_v15 = vunpack.c.h.s8.bf16 %v2668_v32  ;;  %v2159_v44 = vmul.f32 0.2, %v8471_v62 }
 0x5c7   : > { %4023 = vmatpush1.bf16.msra.mxu0 %v3609_v28  ;;  %v3668_v28 = vunpack.c.l.s8.bf16 %v2668_v32 }
 0x5c8   : > { %4351 = vmatpush1.bf16.msra.mxu1 %v3611_v29  ;;  %4024 = vmatprep.subr.bf16.mxu0 %v3618_v34  ;;  %v2667_v29 = vld [vmem:[%s8274_s4 + $0xf50] sm:$0xff]  ;;  %v3665_v34 = vunpack.c.l.s8.bf16 %v2665_v25 }
 0x5c9   : > { %4352 = vmatprep.subr.bf16.mxu1 %v3620_v27  ;;  %v3667_v20 = vunpack.c.l.s8.bf16 %v2667_v29  ;;  %v3674_v27 = vunpack.c.h.s8.bf16 %v2666_v21 }
 0x5cb   : > { %4025 = vmatpush1.bf16.msra.mxu0 %v3617_v52  ;;  %v2674_v52 = vld [vmem:[%s8274_s4 + $0xf88] sm:$0xff] }
 0x5cc   : > { %4353 = vmatpush1.bf16.msra.mxu1 %v3619_v54  ;;  %4026 = vmatprep.subr.bf16.mxu0 %v3626_v0  ;;  %v2676_v54 = vld [vmem:[%s8274_s4 + $0xf98] sm:$0xff]  ;;  %v3673_v0 = vunpack.c.h.s8.bf16 %v2665_v25  ;;  %v3682_v42 = vunpack.c.l.s8.bf16 %v2674_v52  ;;  %v2183_v25 = vld [vmem:[%s8274_s4 + $0x30] sm:$0xff] }
 0x5cd   : > { %4354 = vmatprep.subr.bf16.mxu1 %v3628_v41  ;;  %v3675_v41 = vunpack.c.h.s8.bf16 %v2667_v29  ;;  %v3692_v57 = vunpack.c.h.s8.bf16 %v2676_v54 }
 0x5cf   : > { %4027 = vmatpush1.bf16.msra.mxu0 %v3625_v48  ;;  %v3684_v48 = vunpack.c.l.s8.bf16 %v2676_v54  ;;  %v2703_v54 = vunpack.c.h.s8.bf16 %v2183_v25 }
 0x5d0   : > { %4355 = vmatpush1.bf16.msra.mxu1 %v3627_v49  ;;  %4028 = vmatprep.subr.bf16.mxu0 %v3634_v50  ;;  %v2675_v49 = vld [vmem:[%s8274_s4 + $0xf90] sm:$0xff]  ;;  %v3681_v50 = vunpack.c.l.s8.bf16 %v2673_v1 }
 0x5d1   : > { %4356 = vmatprep.subr.bf16.mxu1 %v3636_v56  ;;  %v3683_v51 = vunpack.c.l.s8.bf16 %v2675_v49  ;;  %v3690_v56 = vunpack.c.h.s8.bf16 %v2674_v52  ;;  %v2192_v52 = vld [vmem:[%s8274_s4 + $0x78] sm:$0xff] }
 0x5d3   : > { %4029 = vmatpush1.bf16.msra.mxu0 %v3633_v58  ;;  %v2682_v58 = vld [vmem:[%s8274_s4 + $0xfc8] sm:$0xff] }
 0x5d4   : > { %4357 = vmatpush1.bf16.msra.mxu1 %v3635_v53  ;;  %4030 = vmatprep.subr.bf16.mxu0 %v3642_v61  ;;  %v2684_v53 = vld [vmem:[%s8274_s4 + $0xfd8] sm:$0xff]  ;;  %v3689_v61 = vunpack.c.h.s8.bf16 %v2673_v1  ;;  %v3698_v3 = vunpack.c.l.s8.bf16 %v2682_v58  ;;  %v2191_v1 = vld [vmem:[%s8274_s4 + $0x70] sm:$0xff] }
 0x5d5   : > { %4358 = vmatprep.subr.bf16.mxu1 %v3644_v2  ;;  %v3691_v2 = vunpack.c.h.s8.bf16 %v2675_v49  ;;  %v2711_v49 = vunpack.c.l.s8.bf16 %v2191_v1 }
 0x5d7   : > { %4031 = vmatpush1.bf16.msra.mxu0 %v3641_v14  ;;  %v3700_v14 = vunpack.c.l.s8.bf16 %v2684_v53 }
 0x5d8   : > { %4359 = vmatpush1.bf16.msra.mxu1 %v3643_v59  ;;  %4032 = vmatprep.subr.bf16.mxu0 %v3650_v39  ;;  %v2683_v59 = vld [vmem:[%s8274_s4 + $0xfd0] sm:$0xff]  ;;  %v3697_v39 = vunpack.c.l.s8.bf16 %v2681_v8 }
 0x5d9   : > { %4360 = vmatprep.subr.bf16.mxu1 %v3652_v43  ;;  %v3699_v4 = vunpack.c.l.s8.bf16 %v2683_v59  ;;  %v3706_v43 = vunpack.c.h.s8.bf16 %v2682_v58  ;;  %v3707_v21 = vunpack.c.h.s8.bf16 %v2683_v59 }
 0x5db   : > { %4033 = vmatpush1.bf16.msra.mxu0 %v3649_v45  ;;  %v3708_v45 = vunpack.c.h.s8.bf16 %v2684_v53 }
 0x5dc   : > { %4361 = vmatpush1.bf16.msra.mxu1 %v3651_v16  ;;  %4034 = vmatprep.subr.bf16.mxu0 %v3658_v46  ;;  %v2182_v16 = vld [vmem:[%s8274_s4 + $0x28] sm:$0xff]  ;;  %v2184_v46 = vld [vmem:[%s8274_s4 + $0x38] sm:$0xff] }
 0x5dd   : > { %4362 = vmatprep.subr.bf16.mxu1 %v3660_v47  ;;  %v3705_v47 = vunpack.c.h.s8.bf16 %v2681_v8  ;;  %v2694_v32 = vunpack.c.l.s8.bf16 %v2182_v16 }
 0x5df   : > { %4035 = vmatpush1.bf16.msra.mxu0 %v3657_v33  ;;  %v2181_v33 = vld [vmem:[%s8274_s4 + $0x20] sm:$0xff] }
 0x5e0   : > { %4363 = vmatpush1.bf16.msra.mxu1 %v3659_v22  ;;  %4036 = vmatprep.subr.bf16.mxu0 %v3666_v23  ;;  %v2175_v22 = vsel %vm2143_vm6, %v8471_v62, %v2159_v44  ;;  %v2696_v23 = vunpack.c.l.s8.bf16 %v2184_v46  ;;  %v2701_v62 = vunpack.c.h.s8.bf16 %v2181_v33 }
 0x5e1   : > { %4364 = vmatprep.subr.bf16.mxu1 %v3668_v28  ;;  %v2693_v28 = vunpack.c.l.s8.bf16 %v2181_v33  ;;  %v8780_v29 = vpack.c.bf16 %v2175_v22, %v2175_v22 }
 0x5e3   : > { %4037 = vmatpush1.bf16.msra.mxu0 %v3665_v34  ;;  %v2695_v34 = vunpack.c.l.s8.bf16 %v2183_v25  ;;  %v2214_v25 = vld [vmem:[%s8274_s4 + $0x128] sm:$0xff] }
 0x5e4   : > { %4365 = vmatpush1.bf16.msra.mxu1 %v3667_v20  ;;  %4038 = vmatprep.subr.bf16.mxu0 %v3674_v27  ;;  %v2702_v20 = vunpack.c.h.s8.bf16 %v2182_v16  ;;  %v2190_v27 = vld [vmem:[%s8274_s4 + $0x68] sm:$0xff] }
 0x5e5   : > { %4366 = vmatprep.subr.bf16.mxu1 %v3676_v15  ;;  %v2704_v15 = vunpack.c.h.s8.bf16 %v2184_v46  ;;  %v2205_v46 = vld [vmem:[%s8274_s4 + $0xe0] sm:$0xff] }
 0x5e7   : > { %4039 = vmatpush1.bf16.msra.mxu0 %v3673_v0  ;;  %v2710_v0 = vunpack.c.l.s8.bf16 %v2190_v27 }
 0x5e8   : > { %4367 = vmatpush1.bf16.msra.mxu1 %v3675_v41  ;;  %4040 = vmatprep.subr.bf16.mxu0 %v3682_v42  ;;  %v2189_v41 = vld [vmem:[%s8274_s4 + $0x60] sm:$0xff]  ;;  %v2712_v42 = vunpack.c.l.s8.bf16 %v2192_v52 }
 0x5e9   : > { %4368 = vmatprep.subr.bf16.mxu1 %v3684_v48  ;;  %v2709_v48 = vunpack.c.l.s8.bf16 %v2189_v41  ;;  %v2717_v58 = vunpack.c.h.s8.bf16 %v2189_v41  ;;  %v2766_v41 = vunpack.c.h.s8.bf16 %v2214_v25 }
 0x5eb   : > { %4041 = vmatpush1.bf16.msra.mxu0 %v3681_v50  ;;  %v2718_v50 = vunpack.c.h.s8.bf16 %v2190_v27  ;;  %v2758_v27 = vunpack.c.l.s8.bf16 %v2214_v25  ;;  %v2237_v25 = vld [vmem:[%s8274_s4 + $0x1e0] sm:$0xff] }
 0x5ec   : > { %4369 = vmatpush1.bf16.msra.mxu1 %v3683_v51  ;;  %4042 = vmatprep.subr.bf16.mxu0 %v3690_v56  ;;  %v2720_v51 = vunpack.c.h.s8.bf16 %v2192_v52  ;;  %v2198_v56 = vld [vmem:[%s8274_s4 + $0xa8] sm:$0xff] }
 0x5ed   : > { %4370 = vmatprep.subr.bf16.mxu1 %v3692_v57  ;;  %v2200_v57 = vld [vmem:[%s8274_s4 + $0xb8] sm:$0xff]  ;;  %v2726_v53 = vunpack.c.l.s8.bf16 %v2198_v56  ;;  %v2734_v59 = vunpack.c.h.s8.bf16 %v2198_v56  ;;  %v2221_v56 = vld [vmem:[%s8274_s4 + $0x160] sm:$0xff] }
 0x5ef   : > { %4043 = vmatpush1.bf16.msra.mxu0 %v3689_v61  ;;  %v2197_v61 = vld [vmem:[%s8274_s4 + $0xa0] sm:$0xff] }
 0x5f0   : > { %4371 = vmatpush1.bf16.msra.mxu1 %v3691_v2  ;;  %4044 = vmatprep.subr.bf16.mxu0 %v3698_v3  ;;  %v2728_v2 = vunpack.c.l.s8.bf16 %v2200_v57  ;;  %v2199_v3 = vld [vmem:[%s8274_s4 + $0xb0] sm:$0xff]  ;;  %v2725_v8 = vunpack.c.l.s8.bf16 %v2197_v61  ;;  %v2733_v44 = vunpack.c.h.s8.bf16 %v2197_v61 }
 0x5f1   : > { %4372 = vmatprep.subr.bf16.mxu1 %v3700_v14  ;;  %v2727_v14 = vunpack.c.l.s8.bf16 %v2199_v3 }
 0x5f3   : > { %4045 = vmatpush1.bf16.msra.mxu0 %v3697_v39  ;;  %v2736_v39 = vunpack.c.h.s8.bf16 %v2200_v57 }
 0x5f4   : > { %4373 = vmatpush1.bf16.msra.mxu1 %v3699_v4  ;;  %4046 = vmatprep.subr.bf16.mxu0 %v3706_v43  ;;  %v2206_v4 = vld [vmem:[%s8274_s4 + $0xe8] sm:$0xff]  ;;  %v2208_v43 = vld [vmem:[%s8274_s4 + $0xf8] sm:$0xff] }
 0x5f5   : > { %4374 = vmatprep.subr.bf16.mxu1 %v3708_v45  ;;  %v2735_v45 = vunpack.c.h.s8.bf16 %v2199_v3  ;;  %v2742_v16 = vunpack.c.l.s8.bf16 %v2206_v4  ;;  %v2750_v22 = vunpack.c.h.s8.bf16 %v2206_v4  ;;  %v2230_v3 = vld [vmem:[%s8274_s4 + $0x1a8] sm:$0xff]  ;;  %v2229_v4 = vld [vmem:[%s8274_s4 + $0x1a0] sm:$0xff] }
 0x5f7   : > { %4047 = vmatpush1.bf16.msra.mxu0 %v3705_v47  ;;  %v2744_v47 = vunpack.c.l.s8.bf16 %v2208_v43 }
 0x5f8   : > { %4375 = vmatpush1.bf16.msra.mxu1 %v3707_v21  ;;  %4385 = vmatprep.subr.bf16.mxu0 %v2694_v32  ;;  %v2207_v21 = vld [vmem:[%s8274_s4 + $0xf0] sm:$0xff]  ;;  %v2741_v32 = vunpack.c.l.s8.bf16 %v2205_v46 }
 0x5f9   : > { %4713 = vmatprep.subr.bf16.mxu1 %v2696_v23  ;;  %v2743_v33 = vunpack.c.l.s8.bf16 %v2207_v21  ;;  %v2752_v23 = vunpack.c.h.s8.bf16 %v2208_v43 }
 0x5fa   : > { %4049 = vmatmul.mubr.bf16.vlgmr.msra.gmra.mrb[36].mxu0 %v8780_v29 }
 0x5fb   : > { %4377 = vmatmul.mubr.bf16.vlgmr.msra.gmra.mrb[36].mxu1 %v8780_v29  ;;  %4386 = vmatpush1.bf16.msra.mxu0 %v2693_v28  ;;  %v2216_v28 = vld [vmem:[%s8274_s4 + $0x138] sm:$0xff] }
 0x5fc   : > { %4417 = vmatprep.mubr.bf16.mxu0 %v8398_v60  ;;  %4714 = vmatpush1.bf16.msra.mxu1 %v2695_v34  ;;  %v2749_v34 = vunpack.c.h.s8.bf16 %v2205_v46  ;;  %v2760_v52 = vunpack.c.l.s8.bf16 %v2216_v28  ;;  %v2798_v46 = vunpack.c.h.s8.bf16 %v2230_v3 }
 0x5fd   : > { %4745 = vmatprep.mubr.bf16.mxu1 %v8398_v60  ;;  %4387 = vmatprep.subr.bf16.mxu0 %v2702_v20  ;;  %v2719_v60 = vunpack.c.h.s8.bf16 %v2191_v1  ;;  %v2751_v20 = vunpack.c.h.s8.bf16 %v2207_v21  ;;  %v2222_v1 = vld [vmem:[%s8274_s4 + $0x168] sm:$0xff] }
 0x5fe   : > { %4715 = vmatprep.subr.bf16.mxu1 %v2704_v15  ;;  %v2213_v15 = vld [vmem:[%s8274_s4 + $0x120] sm:$0xff]  ;;  %v2782_v61 = vunpack.c.h.s8.bf16 %v2222_v1  ;;  %v2238_v21 = vld [vmem:[%s8274_s4 + $0x1e8] sm:$0xff] }
 0x5ff   : > { %4388 = vmatpush1.bf16.msra.mxu0 %v2701_v62  ;;  %v2215_v62 = vld [vmem:[%s8274_s4 + $0x130] sm:$0xff] }
 0x600   : > { %4716 = vmatpush1.bf16.msra.mxu1 %v2703_v54  ;;  %4389 = vmatprep.subr.bf16.mxu0 %v2710_v0  ;;  %v2757_v54 = vunpack.c.l.s8.bf16 %v2213_v15  ;;  %v2759_v0 = vunpack.c.l.s8.bf16 %v2215_v62 }
 0x601   : > { %4717 = vmatprep.subr.bf16.mxu1 %v2712_v42  ;;  %v2768_v42 = vunpack.c.h.s8.bf16 %v2216_v28 }
 0x603   : > { %4390 = vmatpush1.bf16.msra.mxu0 %v2709_v48  ;;  %v2224_v48 = vld [vmem:[%s8274_s4 + $0x178] sm:$0xff] }
 0x604   : > { %4718 = vmatpush1.bf16.msra.mxu1 %v2711_v49  ;;  %4391 = vmatprep.subr.bf16.mxu0 %v2718_v50  ;;  %v2765_v49 = vunpack.c.h.s8.bf16 %v2213_v15  ;;  %v2767_v50 = vunpack.c.h.s8.bf16 %v2215_v62  ;;  %v2776_v57 = vunpack.c.l.s8.bf16 %v2224_v48  ;;  %v2814_v15 = vunpack.c.h.s8.bf16 %v2238_v21  ;;  %v2246_v62 = vld [vmem:[%s8274_s4 + $0x228] sm:$0xff] }
 0x605   : > { %4719 = vmatprep.subr.bf16.mxu1 %v2720_v51  ;;  %v2774_v51 = vunpack.c.l.s8.bf16 %v2222_v1  ;;  %v2245_v1 = vld [vmem:[%s8274_s4 + $0x220] sm:$0xff] }
 0x607   : > { %4392 = vmatpush1.bf16.msra.mxu0 %v2717_v58  ;;  %v2223_v58 = vld [vmem:[%s8274_s4 + $0x170] sm:$0xff] }
 0x608   : > { %4720 = vmatpush1.bf16.msra.mxu1 %v2719_v60  ;;  %4393 = vmatprep.subr.bf16.mxu0 %v2726_v53  ;;  %v2773_v60 = vunpack.c.l.s8.bf16 %v2221_v56  ;;  %v2775_v53 = vunpack.c.l.s8.bf16 %v2223_v58 }
 0x609   : > { %4721 = vmatprep.subr.bf16.mxu1 %v2728_v2  ;;  %v2784_v2 = vunpack.c.h.s8.bf16 %v2224_v48 }
 0x60b   : > { %4394 = vmatpush1.bf16.msra.mxu0 %v2725_v8  ;;  %v2232_v8 = vld [vmem:[%s8274_s4 + $0x1b8] sm:$0xff] }
 0x60c   : > { %4722 = vmatpush1.bf16.msra.mxu1 %v2727_v14  ;;  %4395 = vmatprep.subr.bf16.mxu0 %v2734_v59  ;;  %v2781_v14 = vunpack.c.h.s8.bf16 %v2221_v56  ;;  %v2783_v59 = vunpack.c.h.s8.bf16 %v2223_v58  ;;  %v2792_v43 = vunpack.c.l.s8.bf16 %v2232_v8  ;;  %v2830_v56 = vunpack.c.h.s8.bf16 %v2246_v62 }
 0x60d   : > { %4723 = vmatprep.subr.bf16.mxu1 %v2736_v39  ;;  %v2790_v39 = vunpack.c.l.s8.bf16 %v2230_v3  ;;  %v2253_v3 = vld [vmem:[%s8274_s4 + $0x260] sm:$0xff] }
 0x60f   : > { %4396 = vmatpush1.bf16.msra.mxu0 %v2733_v44  ;;  %v2231_v44 = vld [vmem:[%s8274_s4 + $0x1b0] sm:$0xff] }
 0x610   : > { %4724 = vmatpush1.bf16.msra.mxu1 %v2735_v45  ;;  %4397 = vmatprep.subr.bf16.mxu0 %v2742_v16  ;;  %v2789_v45 = vunpack.c.l.s8.bf16 %v2229_v4  ;;  %v2791_v16 = vunpack.c.l.s8.bf16 %v2231_v44 }
 0x611   : > { %4725 = vmatprep.subr.bf16.mxu1 %v2744_v47  ;;  %v2800_v47 = vunpack.c.h.s8.bf16 %v2232_v8 }
 0x613   : > { %4398 = vmatpush1.bf16.msra.mxu0 %v2741_v32  ;;  %v2240_v32 = vld [vmem:[%s8274_s4 + $0x1f8] sm:$0xff] }
 0x614   : > { %4726 = vmatpush1.bf16.msra.mxu1 %v2743_v33  ;;  %4399 = vmatprep.subr.bf16.mxu0 %v2750_v22  ;;  %v2797_v33 = vunpack.c.h.s8.bf16 %v2229_v4  ;;  %v2799_v22 = vunpack.c.h.s8.bf16 %v2231_v44  ;;  %v2808_v28 = vunpack.c.l.s8.bf16 %v2240_v32  ;;  %v2264_v44 = vld [vmem:[%s8274_s4 + $0x2b8] sm:$0xff] }
 0x615   : > { %4727 = vmatprep.subr.bf16.mxu1 %v2752_v23  ;;  %v2806_v23 = vunpack.c.l.s8.bf16 %v2238_v21  ;;  %v2263_v21 = vld [vmem:[%s8274_s4 + $0x2b0] sm:$0xff] }
 0x617   : > { %4400 = vmatpush1.bf16.msra.mxu0 %v2749_v34  ;;  %v2239_v34 = vld [vmem:[%s8274_s4 + $0x1f0] sm:$0xff] }
 0x618   : > { %4728 = vmatpush1.bf16.msra.mxu1 %v2751_v20  ;;  %4401 = vmatprep.subr.bf16.mxu0 %v2758_v27  ;;  %v2805_v20 = vunpack.c.l.s8.bf16 %v2237_v25  ;;  %v2807_v27 = vunpack.c.l.s8.bf16 %v2239_v34 }
 0x619   : > { %4729 = vmatprep.subr.bf16.mxu1 %v2760_v52  ;;  %v2816_v52 = vunpack.c.h.s8.bf16 %v2240_v32 }
 0x61b   : > { %4402 = vmatpush1.bf16.msra.mxu0 %v2757_v54  ;;  %v2248_v54 = vld [vmem:[%s8274_s4 + $0x238] sm:$0xff] }
 0x61c   : > { %4730 = vmatpush1.bf16.msra.mxu1 %v2759_v0  ;;  %4403 = vmatprep.subr.bf16.mxu0 %v2766_v41  ;;  %v2813_v0 = vunpack.c.h.s8.bf16 %v2237_v25  ;;  %v2815_v41 = vunpack.c.h.s8.bf16 %v2239_v34  ;;  %v2824_v48 = vunpack.c.l.s8.bf16 %v2248_v54  ;;  %v2832_v58 = vunpack.c.h.s8.bf16 %v2248_v54  ;;  %v2270_v25 = vld [vmem:[%s8274_s4 + $0x2e8] sm:$0xff] }
 0x61d   : > { %4731 = vmatprep.subr.bf16.mxu1 %v2768_v42  ;;  %v2822_v42 = vunpack.c.l.s8.bf16 %v2246_v62  ;;  %v2271_v62 = vld [vmem:[%s8274_s4 + $0x2f0] sm:$0xff] }
 0x61f   : > { %4404 = vmatpush1.bf16.msra.mxu0 %v2765_v49  ;;  %v2247_v49 = vld [vmem:[%s8274_s4 + $0x230] sm:$0xff] }
 0x620   : > { %4732 = vmatpush1.bf16.msra.mxu1 %v2767_v50  ;;  %4405 = vmatprep.subr.bf16.mxu0 %v2774_v51  ;;  %v2821_v50 = vunpack.c.l.s8.bf16 %v2245_v1  ;;  %v2823_v51 = vunpack.c.l.s8.bf16 %v2247_v49 }
 0x621   : > { %4733 = vmatprep.subr.bf16.mxu1 %v2776_v57  ;;  %v2254_v57 = vld [vmem:[%s8274_s4 + $0x268] sm:$0xff] }
 0x623   : > { %4406 = vmatpush1.bf16.msra.mxu0 %v2773_v60  ;;  %v2256_v60 = vld [vmem:[%s8274_s4 + $0x278] sm:$0xff] }
 0x624   : > { %4734 = vmatpush1.bf16.msra.mxu1 %v2775_v53  ;;  %4407 = vmatprep.subr.bf16.mxu0 %v2782_v61  ;;  %v2829_v53 = vunpack.c.h.s8.bf16 %v2245_v1  ;;  %v2831_v61 = vunpack.c.h.s8.bf16 %v2247_v49  ;;  %v2840_v8 = vunpack.c.l.s8.bf16 %v2256_v60  ;;  %v2848_v4 = vunpack.c.h.s8.bf16 %v2256_v60  ;;  %v2278_v1 = vld [vmem:[%s8274_s4 + $0x328] sm:$0xff] }
 0x625   : > { %4735 = vmatprep.subr.bf16.mxu1 %v2784_v2  ;;  %v2838_v2 = vunpack.c.l.s8.bf16 %v2254_v57 }
 0x627   : > { %4408 = vmatpush1.bf16.msra.mxu0 %v2781_v14  ;;  %v2255_v14 = vld [vmem:[%s8274_s4 + $0x270] sm:$0xff] }
 0x628   : > { %4736 = vmatpush1.bf16.msra.mxu1 %v2783_v59  ;;  %4409 = vmatprep.subr.bf16.mxu0 %v2790_v39  ;;  %v2837_v59 = vunpack.c.l.s8.bf16 %v2253_v3  ;;  %v2846_v39 = vunpack.c.h.s8.bf16 %v2254_v57 }
 0x629   : > { %4737 = vmatprep.subr.bf16.mxu1 %v2792_v43  ;;  %v2262_v43 = vld [vmem:[%s8274_s4 + $0x2a8] sm:$0xff] }
 0x62b   : > { %4410 = vmatpush1.bf16.msra.mxu0 %v2789_v45  ;;  %v2845_v45 = vunpack.c.h.s8.bf16 %v2253_v3  ;;  %v2286_v3 = vld [vmem:[%s8274_s4 + $0x368] sm:$0xff] }
 0x62c   : > { %4738 = vmatpush1.bf16.msra.mxu1 %v2791_v16  ;;  %4411 = vmatprep.subr.bf16.mxu0 %v2798_v46  ;;  %v2854_v16 = vunpack.c.l.s8.bf16 %v2262_v43  ;;  %v2261_v46 = vld [vmem:[%s8274_s4 + $0x2a0] sm:$0xff] }
 0x62d   : > { %4739 = vmatprep.subr.bf16.mxu1 %v2800_v47  ;;  %v2856_v47 = vunpack.c.l.s8.bf16 %v2264_v44  ;;  %v2853_v32 = vunpack.c.l.s8.bf16 %v2261_v46  ;;  %v2861_v34 = vunpack.c.h.s8.bf16 %v2261_v46  ;;  %v2294_v46 = vld [vmem:[%s8274_s4 + $0x3a8] sm:$0xff] }
 0x62f   : > { %4412 = vmatpush1.bf16.msra.mxu0 %v2797_v33  ;;  %v2855_v33 = vunpack.c.l.s8.bf16 %v2263_v21 }
 0x630   : > { %4740 = vmatpush1.bf16.msra.mxu1 %v2799_v22  ;;  %4413 = vmatprep.subr.bf16.mxu0 %v2806_v23  ;;  %v2862_v22 = vunpack.c.h.s8.bf16 %v2262_v43  ;;  %v2864_v23 = vunpack.c.h.s8.bf16 %v2264_v44  ;;  %v2287_v43 = vld [vmem:[%s8274_s4 + $0x370] sm:$0xff] }
 0x631   : > { %4741 = vmatprep.subr.bf16.mxu1 %v2808_v28  ;;  %v2272_v28 = vld [vmem:[%s8274_s4 + $0x2f8] sm:$0xff] }
 0x633   : > { %4414 = vmatpush1.bf16.msra.mxu0 %v2805_v20  ;;  %v2863_v20 = vunpack.c.h.s8.bf16 %v2263_v21 }
 0x634   : > { %4742 = vmatpush1.bf16.msra.mxu1 %v2807_v27  ;;  %4415 = vmatprep.subr.bf16.mxu0 %v2814_v15  ;;  %v2870_v27 = vunpack.c.l.s8.bf16 %v2270_v25  ;;  %v2269_v15 = vld [vmem:[%s8274_s4 + $0x2e0] sm:$0xff] }
 0x635   : > { %4743 = vmatprep.subr.bf16.mxu1 %v2816_v52  ;;  %v2872_v52 = vunpack.c.l.s8.bf16 %v2272_v28  ;;  %v2869_v54 = vunpack.c.l.s8.bf16 %v2269_v15  ;;  %v2877_v49 = vunpack.c.h.s8.bf16 %v2269_v15  ;;  %v2302_v15 = vld [vmem:[%s8274_s4 + $0x3e8] sm:$0xff] }
 0x637   : > { %4416 = vmatpush1.bf16.msra.mxu0 %v2813_v0  ;;  %v2871_v0 = vunpack.c.l.s8.bf16 %v2271_v62 }
 0x638   : > { %4744 = vmatpush1.bf16.msra.mxu1 %v2815_v41  ;;  %4426 = vmatprep.subr.bf16.mxu0 %v2822_v42  ;;  %v2878_v41 = vunpack.c.h.s8.bf16 %v2270_v25  ;;  %v2880_v42 = vunpack.c.h.s8.bf16 %v2272_v28  ;;  %v2295_v25 = vld [vmem:[%s8274_s4 + $0x3b0] sm:$0xff] }
 0x639   : > { %4754 = vmatprep.subr.bf16.mxu1 %v2824_v48  ;;  %v2280_v48 = vld [vmem:[%s8274_s4 + $0x338] sm:$0xff] }
 0x63a   : > { %4418 = vmatmul.mubr.bf16.vlgmr.msra.gmra.mrb[40].mxu0 %v8402_v11  ;;  %v2888_v57 = vunpack.c.l.s8.bf16 %v2280_v48 }
 0x63b   : > { %4746 = vmatmul.mubr.bf16.vlgmr.msra.gmra.mrb[40].mxu1 %v8402_v11  ;;  %4427 = vmatpush1.bf16.msra.mxu0 %v2821_v50  ;;  %v2839_v11 = vunpack.c.l.s8.bf16 %v2255_v14  ;;  %v2879_v50 = vunpack.c.h.s8.bf16 %v2271_v62 }
 0x63c   : > { %4458 = vmatprep.mubr.bf16.mxu0 %v8415_v17  ;;  %4755 = vmatpush1.bf16.msra.mxu1 %v2823_v51  ;;  %v2886_v51 = vunpack.c.l.s8.bf16 %v2278_v1 }
 0x63d   : > { %4786 = vmatprep.mubr.bf16.mxu1 %v8415_v17  ;;  %4428 = vmatprep.subr.bf16.mxu0 %v2830_v56  ;;  %v2847_v17 = vunpack.c.h.s8.bf16 %v2255_v14  ;;  %v2277_v56 = vld [vmem:[%s8274_s4 + $0x320] sm:$0xff] }
 0x63e   : > { %4756 = vmatprep.subr.bf16.mxu1 %v2832_v58  ;;  %v2279_v58 = vld [vmem:[%s8274_s4 + $0x330] sm:$0xff]  ;;  %v2885_v60 = vunpack.c.l.s8.bf16 %v2277_v56  ;;  %v2893_v14 = vunpack.c.h.s8.bf16 %v2277_v56  ;;  %v2310_v56 = vld [vmem:[%s8274_s4 + $0x428] sm:$0xff] }
 0x63f   : > { %4429 = vmatpush1.bf16.msra.mxu0 %v2829_v53  ;;  %v2887_v53 = vunpack.c.l.s8.bf16 %v2279_v58 }
 0x640   : > { %4757 = vmatpush1.bf16.msra.mxu1 %v2831_v61  ;;  %4430 = vmatprep.subr.bf16.mxu0 %v2838_v2  ;;  %v2894_v61 = vunpack.c.h.s8.bf16 %v2278_v1  ;;  %v2896_v2 = vunpack.c.h.s8.bf16 %v2280_v48  ;;  %v2303_v1 = vld [vmem:[%s8274_s4 + $0x3f0] sm:$0xff] }
 0x641   : > { %4758 = vmatprep.subr.bf16.mxu1 %v2840_v8  ;;  %v2288_v8 = vld [vmem:[%s8274_s4 + $0x378] sm:$0xff] }
 0x643   : > { %4431 = vmatpush1.bf16.msra.mxu0 %v2837_v59  ;;  %v2895_v59 = vunpack.c.h.s8.bf16 %v2279_v58 }
 0x644   : > { %4759 = vmatpush1.bf16.msra.mxu1 %v2839_v11  ;;  %4432 = vmatprep.subr.bf16.mxu0 %v2846_v39  ;;  %v2902_v11 = vunpack.c.l.s8.bf16 %v2286_v3  ;;  %v2285_v39 = vld [vmem:[%s8274_s4 + $0x360] sm:$0xff] }
 0x645   : > { %4760 = vmatprep.subr.bf16.mxu1 %v2848_v4  ;;  %v2904_v4 = vunpack.c.l.s8.bf16 %v2288_v8  ;;  %v2901_v44 = vunpack.c.l.s8.bf16 %v2285_v39  ;;  %v2909_v21 = vunpack.c.h.s8.bf16 %v2285_v39 }
 0x647   : > { %4433 = vmatpush1.bf16.msra.mxu0 %v2845_v45  ;;  %v2903_v45 = vunpack.c.l.s8.bf16 %v2287_v43 }
 0x648   : > { %4761 = vmatpush1.bf16.msra.mxu1 %v2847_v17  ;;  %4434 = vmatprep.subr.bf16.mxu0 %v2854_v16  ;;  %v2910_v17 = vunpack.c.h.s8.bf16 %v2286_v3  ;;  %v2912_v16 = vunpack.c.h.s8.bf16 %v2288_v8  ;;  %v2311_v3 = vld [vmem:[%s8274_s4 + $0x430] sm:$0xff] }
 0x649   : > { %4762 = vmatprep.subr.bf16.mxu1 %v2856_v47  ;;  %v2296_v47 = vld [vmem:[%s8274_s4 + $0x3b8] sm:$0xff] }
 0x64b   : > { %4435 = vmatpush1.bf16.msra.mxu0 %v2853_v32  ;;  %v2911_v32 = vunpack.c.h.s8.bf16 %v2287_v43 }
 0x64c   : > { %4763 = vmatpush1.bf16.msra.mxu1 %v2855_v33  ;;  %4436 = vmatprep.subr.bf16.mxu0 %v2862_v22  ;;  %v2918_v33 = vunpack.c.l.s8.bf16 %v2294_v46  ;;  %v2293_v22 = vld [vmem:[%s8274_s4 + $0x3a0] sm:$0xff] }
 0x64d   : > { %4764 = vmatprep.subr.bf16.mxu1 %v2864_v23  ;;  %v2920_v23 = vunpack.c.l.s8.bf16 %v2296_v47  ;;  %v2917_v28 = vunpack.c.l.s8.bf16 %v2293_v22  ;;  %v2925_v62 = vunpack.c.h.s8.bf16 %v2293_v22  ;;  %v2328_v22 = vld [vmem:[%s8274_s4 + $0x4b8] sm:$0xff] }
 0x64f   : > { %4437 = vmatpush1.bf16.msra.mxu0 %v2861_v34  ;;  %v2919_v34 = vunpack.c.l.s8.bf16 %v2295_v25 }
 0x650   : > { %4765 = vmatpush1.bf16.msra.mxu1 %v2863_v20  ;;  %4438 = vmatprep.subr.bf16.mxu0 %v2870_v27  ;;  %v2926_v20 = vunpack.c.h.s8.bf16 %v2294_v46  ;;  %v2928_v27 = vunpack.c.h.s8.bf16 %v2296_v47  ;;  %v2319_v46 = vld [vmem:[%s8274_s4 + $0x470] sm:$0xff] }
 0x651   : > { %4766 = vmatprep.subr.bf16.mxu1 %v2872_v52  ;;  %v2304_v52 = vld [vmem:[%s8274_s4 + $0x3f8] sm:$0xff] }
 0x653   : > { %4439 = vmatpush1.bf16.msra.mxu0 %v2869_v54  ;;  %v2927_v54 = vunpack.c.h.s8.bf16 %v2295_v25 }
 0x654   : > { %4767 = vmatpush1.bf16.msra.mxu1 %v2871_v0  ;;  %4440 = vmatprep.subr.bf16.mxu0 %v2878_v41  ;;  %v2934_v0 = vunpack.c.l.s8.bf16 %v2302_v15  ;;  %v2301_v41 = vld [vmem:[%s8274_s4 + $0x3e0] sm:$0xff] }
 0x655   : > { %4768 = vmatprep.subr.bf16.mxu1 %v2880_v42  ;;  %v2936_v42 = vunpack.c.l.s8.bf16 %v2304_v52  ;;  %v2933_v48 = vunpack.c.l.s8.bf16 %v2301_v41  ;;  %v2941_v58 = vunpack.c.h.s8.bf16 %v2301_v41 }
 0x657   : > { %4441 = vmatpush1.bf16.msra.mxu0 %v2877_v49  ;;  %v2935_v49 = vunpack.c.l.s8.bf16 %v2303_v1 }
 0x658   : > { %4769 = vmatpush1.bf16.msra.mxu1 %v2879_v50  ;;  %4442 = vmatprep.subr.bf16.mxu0 %v2886_v51  ;;  %v2942_v50 = vunpack.c.h.s8.bf16 %v2302_v15  ;;  %v2944_v51 = vunpack.c.h.s8.bf16 %v2304_v52 }
 0x659   : > { %4770 = vmatprep.subr.bf16.mxu1 %v2888_v57  ;;  %v2312_v57 = vld [vmem:[%s8274_s4 + $0x438] sm:$0xff] }
 0x65a   : > { %v2960_v39 = vunpack.c.h.s8.bf16 %v2312_v57 }
 0x65b   : > { %4443 = vmatpush1.bf16.msra.mxu0 %v2885_v60  ;;  %v2943_v60 = vunpack.c.h.s8.bf16 %v2303_v1 }
 0x65c   : > { %4771 = vmatpush1.bf16.msra.mxu1 %v2887_v53  ;;  %4444 = vmatprep.subr.bf16.mxu0 %v2894_v61  ;;  %v2950_v53 = vunpack.c.l.s8.bf16 %v2310_v56  ;;  %v2309_v61 = vld [vmem:[%s8274_s4 + $0x420] sm:$0xff] }
 0x65d   : > { %4772 = vmatprep.subr.bf16.mxu1 %v2896_v2  ;;  %v2952_v2 = vunpack.c.l.s8.bf16 %v2312_v57  ;;  %v2949_v8 = vunpack.c.l.s8.bf16 %v2309_v61  ;;  %v2957_v43 = vunpack.c.h.s8.bf16 %v2309_v61 }
 0x65f   : > { %4445 = vmatpush1.bf16.msra.mxu0 %v2893_v14  ;;  %v2951_v14 = vunpack.c.l.s8.bf16 %v2311_v3 }
 0x660   : > { %4773 = vmatpush1.bf16.msra.mxu1 %v2895_v59  ;;  %4446 = vmatprep.subr.bf16.mxu0 %v2902_v11  ;;  %v2958_v59 = vunpack.c.h.s8.bf16 %v2310_v56  ;;  %v2318_v11 = vld [vmem:[%s8274_s4 + $0x468] sm:$0xff] }
 0x661   : > { %4774 = vmatprep.subr.bf16.mxu1 %v2904_v4  ;;  %v2320_v4 = vld [vmem:[%s8274_s4 + $0x478] sm:$0xff] }
 0x663   : > { %4447 = vmatpush1.bf16.msra.mxu0 %v2901_v44  ;;  %v2959_v44 = vunpack.c.h.s8.bf16 %v2311_v3 }
 0x664   : > { %4775 = vmatpush1.bf16.msra.mxu1 %v2903_v45  ;;  %4448 = vmatprep.subr.bf16.mxu0 %v2910_v17  ;;  %v2966_v45 = vunpack.c.l.s8.bf16 %v2318_v11  ;;  %v2317_v17 = vld [vmem:[%s8274_s4 + $0x460] sm:$0xff] }
 0x665   : > { %4776 = vmatprep.subr.bf16.mxu1 %v2912_v16  ;;  %v2968_v16 = vunpack.c.l.s8.bf16 %v2320_v4  ;;  %v2965_v47 = vunpack.c.l.s8.bf16 %v2317_v17 }
 0x667   : > { %4449 = vmatpush1.bf16.msra.mxu0 %v2909_v21  ;;  %v2974_v21 = vunpack.c.h.s8.bf16 %v2318_v11 }
 0x668   : > { %4777 = vmatpush1.bf16.msra.mxu1 %v2911_v32  ;;  %4450 = vmatprep.subr.bf16.mxu0 %v2918_v33  ;;  %v2976_v32 = vunpack.c.h.s8.bf16 %v2320_v4  ;;  %v2326_v33 = vld [vmem:[%s8274_s4 + $0x4a8] sm:$0xff] }
 0x669   : > { %4778 = vmatprep.subr.bf16.mxu1 %v2920_v23  ;;  %v2973_v23 = vunpack.c.h.s8.bf16 %v2317_v17  ;;  %v2982_v25 = vunpack.c.l.s8.bf16 %v2326_v33  ;;  %v2990_v52 = vunpack.c.h.s8.bf16 %v2326_v33 }
 0x66b   : > { %4451 = vmatpush1.bf16.msra.mxu0 %v2917_v28  ;;  %v2325_v28 = vld [vmem:[%s8274_s4 + $0x4a0] sm:$0xff] }
 0x66c   : > { %4779 = vmatpush1.bf16.msra.mxu1 %v2919_v34  ;;  %4452 = vmatprep.subr.bf16.mxu0 %v2926_v20  ;;  %v2984_v34 = vunpack.c.l.s8.bf16 %v2328_v22  ;;  %v2327_v20 = vld [vmem:[%s8274_s4 + $0x4b0] sm:$0xff]  ;;  %v2989_v41 = vunpack.c.h.s8.bf16 %v2325_v28 }
 0x66d   : > { %4780 = vmatprep.subr.bf16.mxu1 %v2928_v27  ;;  %v2981_v27 = vunpack.c.l.s8.bf16 %v2325_v28  ;;  %v2983_v15 = vunpack.c.l.s8.bf16 %v2327_v20 }
 0x66f   : > { %4453 = vmatpush1.bf16.msra.mxu0 %v2925_v62  ;;  %v2992_v62 = vunpack.c.h.s8.bf16 %v2328_v22 }
 0x670   : > { %4781 = vmatpush1.bf16.msra.mxu1 %v2927_v54  ;;  %4454 = vmatprep.subr.bf16.mxu0 %v2934_v0  ;;  %v2334_v54 = vld [vmem:[%s8274_s4 + $0x4e8] sm:$0xff]  ;;  %v2336_v0 = vld [vmem:[%s8274_s4 + $0x4f8] sm:$0xff] }
 0x671   : > { %4782 = vmatprep.subr.bf16.mxu1 %v2936_v42  ;;  %v2991_v42 = vunpack.c.h.s8.bf16 %v2327_v20  ;;  %v2998_v1 = vunpack.c.l.s8.bf16 %v2334_v54  ;;  %v3006_v57 = vunpack.c.h.s8.bf16 %v2334_v54 }
 0x673   : > { %4455 = vmatpush1.bf16.msra.mxu0 %v2933_v48  ;;  %v2333_v48 = vld [vmem:[%s8274_s4 + $0x4e0] sm:$0xff] }
 0x674   : > { %4783 = vmatpush1.bf16.msra.mxu1 %v2935_v49  ;;  %4456 = vmatprep.subr.bf16.mxu0 %v2942_v50  ;;  %v3000_v49 = vunpack.c.l.s8.bf16 %v2336_v0  ;;  %v2335_v50 = vld [vmem:[%s8274_s4 + $0x4f0] sm:$0xff]  ;;  %v3005_v61 = vunpack.c.h.s8.bf16 %v2333_v48 }
 0x675   : > { %4784 = vmatprep.subr.bf16.mxu1 %v2944_v51  ;;  %v2997_v51 = vunpack.c.l.s8.bf16 %v2333_v48  ;;  %v2999_v56 = vunpack.c.l.s8.bf16 %v2335_v50 }
 0x677   : > { %4457 = vmatpush1.bf16.msra.mxu0 %v2941_v58  ;;  %v3008_v58 = vunpack.c.h.s8.bf16 %v2336_v0 }
 0x678   : > { %4785 = vmatpush1.bf16.msra.mxu1 %v2943_v60  ;;  %4467 = vmatprep.subr.bf16.mxu0 %v2950_v53  ;;  %v2342_v60 = vld [vmem:[%s8274_s4 + $0x528] sm:$0xff]  ;;  %v2344_v53 = vld [vmem:[%s8274_s4 + $0x538] sm:$0xff] }
 0x679   : > { %4795 = vmatprep.subr.bf16.mxu1 %v2952_v2  ;;  %v3007_v2 = vunpack.c.h.s8.bf16 %v2335_v50  ;;  %v3014_v3 = vunpack.c.l.s8.bf16 %v2342_v60  ;;  %v3022_v4 = vunpack.c.h.s8.bf16 %v2342_v60 }
 0x67a   : > { %4459 = vmatmul.mubr.bf16.vlgmr.msra.gmra.mrb[40].mxu0 %v8507_v35 }
 0x67b   : > { %4787 = vmatmul.mubr.bf16.vlgmr.msra.gmra.mrb[40].mxu1 %v8507_v35  ;;  %4468 = vmatpush1.bf16.msra.mxu0 %v2949_v8  ;;  %v2967_v35 = vunpack.c.l.s8.bf16 %v2319_v46  ;;  %v2341_v8 = vld [vmem:[%s8274_s4 + $0x520] sm:$0xff] }
 0x67c   : > { %4499 = vmatprep.mubr.bf16.mxu0 %v8510_v63  ;;  %4796 = vmatpush1.bf16.msra.mxu1 %v2951_v14  ;;  %v3016_v14 = vunpack.c.l.s8.bf16 %v2344_v53  ;;  %v3013_v11 = vunpack.c.l.s8.bf16 %v2341_v8  ;;  %v3021_v17 = vunpack.c.h.s8.bf16 %v2341_v8 }
 0x67d   : > { %4827 = vmatprep.mubr.bf16.mxu1 %v8510_v63  ;;  %4469 = vmatprep.subr.bf16.mxu0 %v2958_v59  ;;  %v2975_v63 = vunpack.c.h.s8.bf16 %v2319_v46  ;;  %v2343_v59 = vld [vmem:[%s8274_s4 + $0x530] sm:$0xff] }
 0x67e   : > { %4797 = vmatprep.subr.bf16.mxu1 %v2960_v39  ;;  %v3015_v39 = vunpack.c.l.s8.bf16 %v2343_v59 }
 0x67f   : > { %4470 = vmatpush1.bf16.msra.mxu0 %v2957_v43  ;;  %v3024_v43 = vunpack.c.h.s8.bf16 %v2344_v53 }
 0x680   : > { %4798 = vmatpush1.bf16.msra.mxu1 %v2959_v44  ;;  %4471 = vmatprep.subr.bf16.mxu0 %v2966_v45  ;;  %v2350_v44 = vld [vmem:[%s8274_s4 + $0x568] sm:$0xff]  ;;  %v2352_v45 = vld [vmem:[%s8274_s4 + $0x578] sm:$0xff] }
 0x681   : > { %4799 = vmatprep.subr.bf16.mxu1 %v2968_v16  ;;  %v3023_v16 = vunpack.c.h.s8.bf16 %v2343_v59  ;;  %v3030_v46 = vunpack.c.l.s8.bf16 %v2350_v44  ;;  %v3038_v22 = vunpack.c.h.s8.bf16 %v2350_v44 }
 0x683   : > { %4472 = vmatpush1.bf16.msra.mxu0 %v2965_v47  ;;  %v2349_v47 = vld [vmem:[%s8274_s4 + $0x560] sm:$0xff] }
 0x684   : > { %4800 = vmatpush1.bf16.msra.mxu1 %v2967_v35  ;;  %4473 = vmatprep.subr.bf16.mxu0 %v2974_v21  ;;  %v3032_v35 = vunpack.c.l.s8.bf16 %v2352_v45  ;;  %v2351_v21 = vld [vmem:[%s8274_s4 + $0x570] sm:$0xff]  ;;  %v3037_v28 = vunpack.c.h.s8.bf16 %v2349_v47 }
 0x685   : > { %4801 = vmatprep.subr.bf16.mxu1 %v2976_v32  ;;  %v3029_v32 = vunpack.c.l.s8.bf16 %v2349_v47  ;;  %v3031_v33 = vunpack.c.l.s8.bf16 %v2351_v21 }
 0x687   : > { %4474 = vmatpush1.bf16.msra.mxu0 %v2973_v23  ;;  %v3040_v23 = vunpack.c.h.s8.bf16 %v2352_v45 }
 0x688   : > { %4802 = vmatpush1.bf16.msra.mxu1 %v2975_v63  ;;  %4475 = vmatprep.subr.bf16.mxu0 %v2982_v25  ;;  %v2358_v63 = vld [vmem:[%s8274_s4 + $0x5a8] sm:$0xff]  ;;  %v2360_v25 = vld [vmem:[%s8274_s4 + $0x5b8] sm:$0xff] }
 0x689   : > { %4803 = vmatprep.subr.bf16.mxu1 %v2984_v34  ;;  %v3039_v34 = vunpack.c.h.s8.bf16 %v2351_v21  ;;  %v3046_v20 = vunpack.c.l.s8.bf16 %v2358_v63  ;;  %v3054_v0 = vunpack.c.h.s8.bf16 %v2358_v63 }
 0x68b   : > { %4476 = vmatpush1.bf16.msra.mxu0 %v2981_v27  ;;  %v2357_v27 = vld [vmem:[%s8274_s4 + $0x5a0] sm:$0xff] }
 0x68c   : > { %4804 = vmatpush1.bf16.msra.mxu1 %v2983_v15  ;;  %4477 = vmatprep.subr.bf16.mxu0 %v2990_v52  ;;  %v3048_v15 = vunpack.c.l.s8.bf16 %v2360_v25  ;;  %v2359_v52 = vld [vmem:[%s8274_s4 + $0x5b0] sm:$0xff]  ;;  %v3053_v48 = vunpack.c.h.s8.bf16 %v2357_v27 }
 0x68d   : > { %4805 = vmatprep.subr.bf16.mxu1 %v2992_v62  ;;  %v3045_v62 = vunpack.c.l.s8.bf16 %v2357_v27  ;;  %v3047_v54 = vunpack.c.l.s8.bf16 %v2359_v52 }
 0x68f   : > { %4478 = vmatpush1.bf16.msra.mxu0 %v2989_v41  ;;  %v3056_v41 = vunpack.c.h.s8.bf16 %v2360_v25 }
 0x690   : > { %4806 = vmatpush1.bf16.msra.mxu1 %v2991_v42  ;;  %4479 = vmatprep.subr.bf16.mxu0 %v2998_v1  ;;  %v2366_v42 = vld [vmem:[%s8274_s4 + $0x5e8] sm:$0xff]  ;;  %v2368_v1 = vld [vmem:[%s8274_s4 + $0x5f8] sm:$0xff] }
 0x691   : > { %4807 = vmatprep.subr.bf16.mxu1 %v3000_v49  ;;  %v3055_v49 = vunpack.c.h.s8.bf16 %v2359_v52  ;;  %v3062_v50 = vunpack.c.l.s8.bf16 %v2366_v42  ;;  %v3070_v53 = vunpack.c.h.s8.bf16 %v2366_v42 }
 0x693   : > { %4480 = vmatpush1.bf16.msra.mxu0 %v2997_v51  ;;  %v2365_v51 = vld [vmem:[%s8274_s4 + $0x5e0] sm:$0xff] }
 0x694   : > { %4808 = vmatpush1.bf16.msra.mxu1 %v2999_v56  ;;  %4481 = vmatprep.subr.bf16.mxu0 %v3006_v57  ;;  %v3064_v56 = vunpack.c.l.s8.bf16 %v2368_v1  ;;  %v2367_v57 = vld [vmem:[%s8274_s4 + $0x5f0] sm:$0xff]  ;;  %v3069_v8 = vunpack.c.h.s8.bf16 %v2365_v51 }
 0x695   : > { %4809 = vmatprep.subr.bf16.mxu1 %v3008_v58  ;;  %v3061_v58 = vunpack.c.l.s8.bf16 %v2365_v51  ;;  %v3063_v60 = vunpack.c.l.s8.bf16 %v2367_v57 }
 0x697   : > { %4482 = vmatpush1.bf16.msra.mxu0 %v3005_v61  ;;  %v3072_v61 = vunpack.c.h.s8.bf16 %v2368_v1  ;;  %v2398_v1 = vld [vmem:[%s8274_s4 + $0x6e8] sm:$0xff] }
 0x698   : > { %4810 = vmatpush1.bf16.msra.mxu1 %v3007_v2  ;;  %4483 = vmatprep.subr.bf16.mxu0 %v3014_v3  ;;  %v2374_v2 = vld [vmem:[%s8274_s4 + $0x628] sm:$0xff]  ;;  %v2376_v3 = vld [vmem:[%s8274_s4 + $0x638] sm:$0xff]  ;;  %v3126_v51 = vunpack.c.l.s8.bf16 %v2398_v1 }
 0x699   : > { %4811 = vmatprep.subr.bf16.mxu1 %v3016_v14  ;;  %v3071_v14 = vunpack.c.h.s8.bf16 %v2367_v57  ;;  %v3078_v59 = vunpack.c.l.s8.bf16 %v2374_v2  ;;  %v3086_v45 = vunpack.c.h.s8.bf16 %v2374_v2 }
 0x69b   : > { %4484 = vmatpush1.bf16.msra.mxu0 %v3013_v11  ;;  %v2373_v11 = vld [vmem:[%s8274_s4 + $0x620] sm:$0xff] }
 0x69c   : > { %4812 = vmatpush1.bf16.msra.mxu1 %v3015_v39  ;;  %4485 = vmatprep.subr.bf16.mxu0 %v3022_v4  ;;  %v3080_v39 = vunpack.c.l.s8.bf16 %v2376_v3  ;;  %v2375_v4 = vld [vmem:[%s8274_s4 + $0x630] sm:$0xff]  ;;  %v3085_v47 = vunpack.c.h.s8.bf16 %v2373_v11 }
 0x69d   : > { %4813 = vmatprep.subr.bf16.mxu1 %v3024_v43  ;;  %v3077_v43 = vunpack.c.l.s8.bf16 %v2373_v11  ;;  %v3079_v44 = vunpack.c.l.s8.bf16 %v2375_v4 }
 0x69f   : > { %4486 = vmatpush1.bf16.msra.mxu0 %v3021_v17  ;;  %v2382_v17 = vld [vmem:[%s8274_s4 + $0x668] sm:$0xff] }
 0x6a0   : > { %4814 = vmatpush1.bf16.msra.mxu1 %v3023_v16  ;;  %4487 = vmatprep.subr.bf16.mxu0 %v3030_v46  ;;  %v3088_v16 = vunpack.c.h.s8.bf16 %v2376_v3  ;;  %v2384_v46 = vld [vmem:[%s8274_s4 + $0x678] sm:$0xff]  ;;  %v3094_v21 = vunpack.c.l.s8.bf16 %v2382_v17  ;;  %v3102_v63 = vunpack.c.h.s8.bf16 %v2382_v17 }
 0x6a1   : > { %4815 = vmatprep.subr.bf16.mxu1 %v3032_v35  ;;  %v3087_v35 = vunpack.c.h.s8.bf16 %v2375_v4  ;;  %v3104_v25 = vunpack.c.h.s8.bf16 %v2384_v46 }
 0x6a3   : > { %4488 = vmatpush1.bf16.msra.mxu0 %v3029_v32  ;;  %v2381_v32 = vld [vmem:[%s8274_s4 + $0x660] sm:$0xff] }
 0x6a4   : > { %4816 = vmatpush1.bf16.msra.mxu1 %v3031_v33  ;;  %4489 = vmatprep.subr.bf16.mxu0 %v3038_v22  ;;  %v3096_v33 = vunpack.c.l.s8.bf16 %v2384_v46  ;;  %v2383_v22 = vld [vmem:[%s8274_s4 + $0x670] sm:$0xff] }
 0x6a5   : > { %4817 = vmatprep.subr.bf16.mxu1 %v3040_v23  ;;  %v3093_v23 = vunpack.c.l.s8.bf16 %v2381_v32 }
 0x6a7   : > { %4490 = vmatpush1.bf16.msra.mxu0 %v3037_v28  ;;  %v2390_v28 = vld [vmem:[%s8274_s4 + $0x6a8] sm:$0xff] }
 0x6a8   : > { %4818 = vmatpush1.bf16.msra.mxu1 %v3039_v34  ;;  %4491 = vmatprep.subr.bf16.mxu0 %v3046_v20  ;;  %v2392_v34 = vld [vmem:[%s8274_s4 + $0x6b8] sm:$0xff]  ;;  %v3101_v20 = vunpack.c.h.s8.bf16 %v2381_v32  ;;  %v3110_v27 = vunpack.c.l.s8.bf16 %v2390_v28 }
 0x6a9   : > { %4819 = vmatprep.subr.bf16.mxu1 %v3048_v15  ;;  %v2389_v15 = vld [vmem:[%s8274_s4 + $0x6a0] sm:$0xff]  ;;  %v3112_v52 = vunpack.c.l.s8.bf16 %v2392_v34  ;;  %v3120_v42 = vunpack.c.h.s8.bf16 %v2392_v34 }
 0x6ab   : > { %4492 = vmatpush1.bf16.msra.mxu0 %v3045_v62  ;;  %v2391_v62 = vld [vmem:[%s8274_s4 + $0x6b0] sm:$0xff] }
 0x6ac   : > { %4820 = vmatpush1.bf16.msra.mxu1 %v3047_v54  ;;  %4493 = vmatprep.subr.bf16.mxu0 %v3054_v0  ;;  %v3109_v54 = vunpack.c.l.s8.bf16 %v2389_v15  ;;  %v3111_v0 = vunpack.c.l.s8.bf16 %v2391_v62 }
 0x6ad   : > { %4821 = vmatprep.subr.bf16.mxu1 %v3056_v41  ;;  %v3118_v41 = vunpack.c.h.s8.bf16 %v2390_v28 }
 0x6af   : > { %4494 = vmatpush1.bf16.msra.mxu0 %v3053_v48  ;;  %v2400_v48 = vld [vmem:[%s8274_s4 + $0x6f8] sm:$0xff] }
 0x6b0   : > { %4822 = vmatpush1.bf16.msra.mxu1 %v3055_v49  ;;  %4495 = vmatprep.subr.bf16.mxu0 %v3062_v50  ;;  %v3117_v49 = vunpack.c.h.s8.bf16 %v2389_v15  ;;  %v3119_v50 = vunpack.c.h.s8.bf16 %v2391_v62 }
 0x6b1   : > { %4823 = vmatprep.subr.bf16.mxu1 %v3064_v56  ;;  %v2397_v56 = vld [vmem:[%s8274_s4 + $0x6e0] sm:$0xff] }
 0x6b2   : > { %v3133_v17 = vunpack.c.h.s8.bf16 %v2397_v56 }
 0x6b3   : > { %4496 = vmatpush1.bf16.msra.mxu0 %v3061_v58  ;;  %v3128_v58 = vunpack.c.l.s8.bf16 %v2400_v48 }
 0x6b4   : > { %4824 = vmatpush1.bf16.msra.mxu1 %v3063_v60  ;;  %4497 = vmatprep.subr.bf16.mxu0 %v3070_v53  ;;  %v2399_v60 = vld [vmem:[%s8274_s4 + $0x6f0] sm:$0xff] }
 0x6b5   : > { %4825 = vmatprep.subr.bf16.mxu1 %v3072_v61  ;;  %v3127_v11 = vunpack.c.l.s8.bf16 %v2399_v60 }
 0x6b7   : > { %4498 = vmatpush1.bf16.msra.mxu0 %v3069_v8  ;;  %v3125_v8 = vunpack.c.l.s8.bf16 %v2397_v56 }
 0x6b8   : > { %4826 = vmatpush1.bf16.msra.mxu1 %v3071_v14  ;;  %4508 = vmatprep.subr.bf16.mxu0 %v3078_v59 }
 0x6b9   : > { %4836 = vmatprep.subr.bf16.mxu1 %v3080_v39  ;;  %v3134_v39 = vunpack.c.h.s8.bf16 %v2398_v1 }
 0x6ba   : > { %4500 = vmatmul.mubr.bf16.vlgmr.msra.gmra.mrb[40].mxu0 %v8553_v55 }
 0x6bb   : > { %4828 = vmatmul.mubr.bf16.vlgmr.msra.gmra.mrb[40].mxu1 %v8553_v55  ;;  %4509 = vmatpush1.bf16.msra.mxu0 %v3077_v43  ;;  %v3095_v55 = vunpack.c.l.s8.bf16 %v2383_v22  ;;  %v3136_v43 = vunpack.c.h.s8.bf16 %v2400_v48 }
 0x6bc   : > { %4540 = vmatprep.mubr.bf16.mxu0 %v8556_v12  ;;  %4837 = vmatpush1.bf16.msra.mxu1 %v3079_v44  ;;  %v2406_v44 = vld [vmem:[%s8274_s4 + $0x728] sm:$0xff] }
 0x6bd   : > { %4868 = vmatprep.mubr.bf16.mxu1 %v8556_v12  ;;  %4510 = vmatprep.subr.bf16.mxu0 %v3086_v45  ;;  %v3103_v12 = vunpack.c.h.s8.bf16 %v2383_v22  ;;  %v2408_v45 = vld [vmem:[%s8274_s4 + $0x738] sm:$0xff]  ;;  %v3142_v46 = vunpack.c.l.s8.bf16 %v2406_v44  ;;  %v3150_v22 = vunpack.c.h.s8.bf16 %v2406_v44  ;;  %v2431_v44 = vld [vmem:[%s8274_s4 + $0x7f0] sm:$0xff] }
 0x6be   : > { %4838 = vmatprep.subr.bf16.mxu1 %v3088_v16  ;;  %v3135_v16 = vunpack.c.h.s8.bf16 %v2399_v60 }
 0x6bf   : > { %4511 = vmatpush1.bf16.msra.mxu0 %v3085_v47  ;;  %v2405_v47 = vld [vmem:[%s8274_s4 + $0x720] sm:$0xff] }
 0x6c0   : > { %4839 = vmatpush1.bf16.msra.mxu1 %v3087_v35  ;;  %4512 = vmatprep.subr.bf16.mxu0 %v3094_v21  ;;  %v3144_v35 = vunpack.c.l.s8.bf16 %v2408_v45  ;;  %v2407_v21 = vld [vmem:[%s8274_s4 + $0x730] sm:$0xff]  ;;  %v3141_v32 = vunpack.c.l.s8.bf16 %v2405_v47 }
 0x6c1   : > { %4840 = vmatprep.subr.bf16.mxu1 %v3096_v33  ;;  %v3143_v33 = vunpack.c.l.s8.bf16 %v2407_v21  ;;  %v3151_v28 = vunpack.c.h.s8.bf16 %v2407_v21 }
 0x6c3   : > { %4513 = vmatpush1.bf16.msra.mxu0 %v3093_v23  ;;  %v3152_v23 = vunpack.c.h.s8.bf16 %v2408_v45 }
 0x6c4   : > { %4841 = vmatpush1.bf16.msra.mxu1 %v3095_v55  ;;  %4514 = vmatprep.subr.bf16.mxu0 %v3102_v63  ;;  %v2414_v55 = vld [vmem:[%s8274_s4 + $0x768] sm:$0xff]  ;;  %v2416_v63 = vld [vmem:[%s8274_s4 + $0x778] sm:$0xff] }
 0x6c5   : > { %4842 = vmatprep.subr.bf16.mxu1 %v3104_v25  ;;  %v3149_v25 = vunpack.c.h.s8.bf16 %v2405_v47  ;;  %v3158_v34 = vunpack.c.l.s8.bf16 %v2414_v55  ;;  %v3166_v62 = vunpack.c.h.s8.bf16 %v2414_v55  ;;  %v2438_v47 = vld [vmem:[%s8274_s4 + $0x828] sm:$0xff]  ;;  %v2439_v55 = vld [vmem:[%s8274_s4 + $0x830] sm:$0xff] }
 0x6c7   : > { %4515 = vmatpush1.bf16.msra.mxu0 %v3101_v20  ;;  %v2413_v20 = vld [vmem:[%s8274_s4 + $0x760] sm:$0xff] }
 0x6c8   : > { %4843 = vmatpush1.bf16.msra.mxu1 %v3103_v12  ;;  %4516 = vmatprep.subr.bf16.mxu0 %v3110_v27  ;;  %v3160_v12 = vunpack.c.l.s8.bf16 %v2416_v63  ;;  %v2415_v27 = vld [vmem:[%s8274_s4 + $0x770] sm:$0xff]  ;;  %v3157_v15 = vunpack.c.l.s8.bf16 %v2413_v20 }
 0x6c9   : > { %4844 = vmatprep.subr.bf16.mxu1 %v3112_v52  ;;  %v3159_v52 = vunpack.c.l.s8.bf16 %v2415_v27  ;;  %v3167_v1 = vunpack.c.h.s8.bf16 %v2415_v27 }
 0x6cb   : > { %4517 = vmatpush1.bf16.msra.mxu0 %v3109_v54  ;;  %v3168_v54 = vunpack.c.h.s8.bf16 %v2416_v63 }
 0x6cc   : > { %4845 = vmatpush1.bf16.msra.mxu1 %v3111_v0  ;;  %4518 = vmatprep.subr.bf16.mxu0 %v3118_v41  ;;  %v2422_v0 = vld [vmem:[%s8274_s4 + $0x7a8] sm:$0xff]  ;;  %v2424_v41 = vld [vmem:[%s8274_s4 + $0x7b8] sm:$0xff] }
 0x6cd   : > { %v8905_v57 = vpop.f32.mrb[36].mxu0  ;;  %4846 = vmatprep.subr.bf16.mxu1 %v3120_v42  ;;  %v3165_v42 = vunpack.c.h.s8.bf16 %v2413_v20  ;;  %v3174_v48 = vunpack.c.l.s8.bf16 %v2422_v0  ;;  %v3182_v60 = vunpack.c.h.s8.bf16 %v2422_v0  ;;  %v2447_v0 = vld [vmem:[%s8274_s4 + $0x870] sm:$0xff] }
 0x6ce   : > { %v8908_v53 = vpop.f32.mrb[36].mxu1  ;;  %v8910_v61 = vpop.f32.mrb[37].mxu0 }
 0x6cf   : > { %v8912_v2 = vpop.f32.mrb[37].mxu1  ;;  %v4054_v3 = vpop.f32.mrb[38].mxu0  ;;  %4519 = vmatpush1.bf16.msra.mxu0 %v3117_v49  ;;  %v2421_v49 = vld [vmem:[%s8274_s4 + $0x7a0] sm:$0xff] }
 0x6d0   : > { %v4382_v14 = vpop.f32.mrb[38].mxu1  ;;  %4847 = vmatpush1.bf16.msra.mxu1 %v3119_v50  ;;  %v4055_v59 = vpop.f32.mrb[39].mxu0  ;;  %4520 = vmatprep.subr.bf16.mxu0 %v3126_v51  ;;  %v3176_v50 = vunpack.c.l.s8.bf16 %v2424_v41  ;;  %v2423_v51 = vld [vmem:[%s8274_s4 + $0x7b0] sm:$0xff]  ;;  %v3173_v56 = vunpack.c.l.s8.bf16 %v2421_v49  ;;  %v3184_v3 = vunpack.c.h.s8.bf16 %v2424_v41 }
 0x6d1   : > { %v4383_v4 = vpop.f32.mrb[39].mxu1  ;;  %4848 = vmatprep.subr.bf16.mxu1 %v3128_v58  ;;  %v3175_v58 = vunpack.c.l.s8.bf16 %v2423_v51  ;;  %v2432_v14 = vld [vmem:[%s8274_s4 + $0x7f8] sm:$0xff]  ;;  %v3181_v59 = vunpack.c.h.s8.bf16 %v2421_v49 }
 0x6d2   : > { %v2429_v4 = vld [vmem:[%s8274_s4 + $0x7e0] sm:$0xff]  ;;  %v2456_v49 = vld [vmem:[%s8274_s4 + $0x8b8] sm:$0xff] }
 0x6d3   : > { %4521 = vmatpush1.bf16.msra.mxu0 %v3125_v8  ;;  %v2430_v8 = vld [vmem:[%s8274_s4 + $0x7e8] sm:$0xff]  ;;  %v3189_v45 = vunpack.c.l.s8.bf16 %v2429_v4  ;;  %v3197_v21 = vunpack.c.h.s8.bf16 %v2429_v4 }
 0x6d4   : > { %4849 = vmatpush1.bf16.msra.mxu1 %v3127_v11  ;;  %4522 = vmatprep.subr.bf16.mxu0 %v3134_v39  ;;  %v3183_v11 = vunpack.c.h.s8.bf16 %v2423_v51  ;;  %v3190_v39 = vunpack.c.l.s8.bf16 %v2430_v8 }
 0x6d5   : > { %4850 = vmatprep.subr.bf16.mxu1 %v3136_v43  ;;  %v3192_v43 = vunpack.c.l.s8.bf16 %v2432_v14 }
 0x6d7   : > { %4523 = vmatpush1.bf16.msra.mxu0 %v3133_v17  ;;  %v3191_v17 = vunpack.c.l.s8.bf16 %v2431_v44 }
 0x6d8   : > { %4851 = vmatpush1.bf16.msra.mxu1 %v3135_v16  ;;  %4524 = vmatprep.subr.bf16.mxu0 %v3142_v46  ;;  %v3198_v16 = vunpack.c.h.s8.bf16 %v2430_v8  ;;  %v3200_v46 = vunpack.c.h.s8.bf16 %v2432_v14 }
 0x6d9   : > { %4852 = vmatprep.subr.bf16.mxu1 %v3144_v35  ;;  %v2440_v35 = vld [vmem:[%s8274_s4 + $0x838] sm:$0xff] }
 0x6da   : > { %v3216_v20 = vunpack.c.h.s8.bf16 %v2440_v35 }
 0x6db   : > { %4525 = vmatpush1.bf16.msra.mxu0 %v3141_v32  ;;  %v3199_v32 = vunpack.c.h.s8.bf16 %v2431_v44 }
 0x6dc   : > { %4853 = vmatpush1.bf16.msra.mxu1 %v3143_v33  ;;  %4526 = vmatprep.subr.bf16.mxu0 %v3150_v22  ;;  %v3206_v33 = vunpack.c.l.s8.bf16 %v2438_v47  ;;  %v2437_v22 = vld [vmem:[%s8274_s4 + $0x820] sm:$0xff] }
 0x6dd   : > { %4854 = vmatprep.subr.bf16.mxu1 %v3152_v23  ;;  %v3208_v23 = vunpack.c.l.s8.bf16 %v2440_v35  ;;  %v3205_v63 = vunpack.c.l.s8.bf16 %v2437_v22  ;;  %v3213_v27 = vunpack.c.h.s8.bf16 %v2437_v22 }
 0x6df   : > { %4527 = vmatpush1.bf16.msra.mxu0 %v3149_v25  ;;  %v3207_v25 = vunpack.c.l.s8.bf16 %v2439_v55 }
 0x6e0   : > { %4855 = vmatpush1.bf16.msra.mxu1 %v3151_v28  ;;  %4528 = vmatprep.subr.bf16.mxu0 %v3158_v34  ;;  %v3214_v28 = vunpack.c.h.s8.bf16 %v2438_v47  ;;  %v2446_v34 = vld [vmem:[%s8274_s4 + $0x868] sm:$0xff] }
 0x6e1   : > { %4856 = vmatprep.subr.bf16.mxu1 %v3160_v12  ;;  %v2448_v12 = vld [vmem:[%s8274_s4 + $0x878] sm:$0xff] }
 0x6e3   : > { %4529 = vmatpush1.bf16.msra.mxu0 %v3157_v15  ;;  %v3215_v15 = vunpack.c.h.s8.bf16 %v2439_v55 }
 0x6e4   : > { %4857 = vmatpush1.bf16.msra.mxu1 %v3159_v52  ;;  %4530 = vmatprep.subr.bf16.mxu0 %v3166_v62  ;;  %v3222_v52 = vunpack.c.l.s8.bf16 %v2446_v34  ;;  %v2445_v62 = vld [vmem:[%s8274_s4 + $0x860] sm:$0xff] }
 0x6e5   : > { %4858 = vmatprep.subr.bf16.mxu1 %v3168_v54  ;;  %v3224_v54 = vunpack.c.l.s8.bf16 %v2448_v12  ;;  %v3221_v41 = vunpack.c.l.s8.bf16 %v2445_v62 }
 0x6e7   : > { %4531 = vmatpush1.bf16.msra.mxu0 %v3165_v42  ;;  %v3230_v42 = vunpack.c.h.s8.bf16 %v2446_v34 }
 0x6e8   : > { %4859 = vmatpush1.bf16.msra.mxu1 %v3167_v1  ;;  %4532 = vmatprep.subr.bf16.mxu0 %v3174_v48  ;;  %v3232_v1 = vunpack.c.h.s8.bf16 %v2448_v12  ;;  %v2454_v48 = vld [vmem:[%s8274_s4 + $0x8a8] sm:$0xff] }
 0x6e9   : > { %4860 = vmatprep.subr.bf16.mxu1 %v3176_v50  ;;  %v3229_v50 = vunpack.c.h.s8.bf16 %v2445_v62  ;;  %v3238_v51 = vunpack.c.l.s8.bf16 %v2454_v48  ;;  %v3246_v14 = vunpack.c.h.s8.bf16 %v2454_v48 }
 0x6eb   : > { %4533 = vmatpush1.bf16.msra.mxu0 %v3173_v56  ;;  %v2453_v56 = vld [vmem:[%s8274_s4 + $0x8a0] sm:$0xff] }
 0x6ec   : > { %4861 = vmatpush1.bf16.msra.mxu1 %v3175_v58  ;;  %4534 = vmatprep.subr.bf16.mxu0 %v3182_v60  ;;  %v3240_v58 = vunpack.c.l.s8.bf16 %v2456_v49  ;;  %v2455_v60 = vld [vmem:[%s8274_s4 + $0x8b0] sm:$0xff]  ;;  %v3245_v4 = vunpack.c.h.s8.bf16 %v2453_v56 }
 0x6ed   : > { %4862 = vmatprep.subr.bf16.mxu1 %v3184_v3  ;;  %v3237_v3 = vunpack.c.l.s8.bf16 %v2453_v56  ;;  %v3239_v8 = vunpack.c.l.s8.bf16 %v2455_v60 }
 0x6ef   : > { %4535 = vmatpush1.bf16.msra.mxu0 %v3181_v59  ;;  %v3248_v59 = vunpack.c.h.s8.bf16 %v2456_v49 }
 0x6f0   : > { %4863 = vmatpush1.bf16.msra.mxu1 %v3183_v11  ;;  %4536 = vmatprep.subr.bf16.mxu0 %v3190_v39  ;;  %v2462_v11 = vld [vmem:[%s8274_s4 + $0x8e8] sm:$0xff]  ;;  %v2464_v39 = vld [vmem:[%s8274_s4 + $0x8f8] sm:$0xff] }
 0x6f1   : > { %4864 = vmatprep.subr.bf16.mxu1 %v3192_v43  ;;  %v3247_v43 = vunpack.c.h.s8.bf16 %v2455_v60  ;;  %v3254_v44 = vunpack.c.l.s8.bf16 %v2462_v11  ;;  %v3262_v35 = vunpack.c.h.s8.bf16 %v2462_v11 }
 0x6f3   : > { %4537 = vmatpush1.bf16.msra.mxu0 %v3189_v45  ;;  %v2461_v45 = vld [vmem:[%s8274_s4 + $0x8e0] sm:$0xff] }
 0x6f4   : > { %4865 = vmatpush1.bf16.msra.mxu1 %v3191_v17  ;;  %4538 = vmatprep.subr.bf16.mxu0 %v3198_v16  ;;  %v3256_v17 = vunpack.c.l.s8.bf16 %v2464_v39  ;;  %v2463_v16 = vld [vmem:[%s8274_s4 + $0x8f0] sm:$0xff]  ;;  %v3261_v22 = vunpack.c.h.s8.bf16 %v2461_v45 }
 0x6f5   : > { %4866 = vmatprep.subr.bf16.mxu1 %v3200_v46  ;;  %v3253_v46 = vunpack.c.l.s8.bf16 %v2461_v45  ;;  %v3255_v47 = vunpack.c.l.s8.bf16 %v2463_v16 }
 0x6f7   : > { %4539 = vmatpush1.bf16.msra.mxu0 %v3197_v21  ;;  %v3264_v21 = vunpack.c.h.s8.bf16 %v2464_v39 }
 0x6f8   : > { %4867 = vmatpush1.bf16.msra.mxu1 %v3199_v32  ;;  %4549 = vmatprep.subr.bf16.mxu0 %v3206_v33  ;;  %v2470_v32 = vld [vmem:[%s8274_s4 + $0x928] sm:$0xff]  ;;  %v2472_v33 = vld [vmem:[%s8274_s4 + $0x938] sm:$0xff] }
 0x6f9   : > { %4877 = vmatprep.subr.bf16.mxu1 %v3208_v23  ;;  %v3263_v23 = vunpack.c.h.s8.bf16 %v2463_v16  ;;  %v3270_v55 = vunpack.c.l.s8.bf16 %v2470_v32  ;;  %v3278_v12 = vunpack.c.h.s8.bf16 %v2470_v32 }
 0x6fa   : > { %4541 = vmatmul.mubr.bf16.vlgmr.msra.gmra.mrb[40].mxu0 %v8599_v37 }
 0x6fb   : > { %4869 = vmatmul.mubr.bf16.vlgmr.msra.gmra.mrb[40].mxu1 %v8599_v37  ;;  %4550 = vmatpush1.bf16.msra.mxu0 %v3205_v63  ;;  %v3223_v37 = vunpack.c.l.s8.bf16 %v2447_v0  ;;  %v2469_v63 = vld [vmem:[%s8274_s4 + $0x920] sm:$0xff] }
 0x6fc   : > { %4581 = vmatprep.mubr.bf16.mxu0 %v8602_v40  ;;  %4878 = vmatpush1.bf16.msra.mxu1 %v3207_v25  ;;  %v3272_v25 = vunpack.c.l.s8.bf16 %v2472_v33  ;;  %v3269_v34 = vunpack.c.l.s8.bf16 %v2469_v63  ;;  %v3277_v62 = vunpack.c.h.s8.bf16 %v2469_v63 }
 0x6fd   : > { %4909 = vmatprep.mubr.bf16.mxu1 %v8602_v40  ;;  %4551 = vmatprep.subr.bf16.mxu0 %v3214_v28  ;;  %v3231_v40 = vunpack.c.h.s8.bf16 %v2447_v0  ;;  %v2471_v28 = vld [vmem:[%s8274_s4 + $0x930] sm:$0xff] }
 0x6fe   : > { %4879 = vmatprep.subr.bf16.mxu1 %v3216_v20  ;;  %v3271_v20 = vunpack.c.l.s8.bf16 %v2471_v28 }
 0x6ff   : > { %4552 = vmatpush1.bf16.msra.mxu0 %v3213_v27  ;;  %v3280_v27 = vunpack.c.h.s8.bf16 %v2472_v33 }
 0x700   : > { %4880 = vmatpush1.bf16.msra.mxu1 %v3215_v15  ;;  %4553 = vmatprep.subr.bf16.mxu0 %v3222_v52  ;;  %v2478_v15 = vld [vmem:[%s8274_s4 + $0x968] sm:$0xff]  ;;  %v2480_v52 = vld [vmem:[%s8274_s4 + $0x978] sm:$0xff] }
 0x701   : > { %4881 = vmatprep.subr.bf16.mxu1 %v3224_v54  ;;  %v3279_v54 = vunpack.c.h.s8.bf16 %v2471_v28  ;;  %v3286_v0 = vunpack.c.l.s8.bf16 %v2478_v15  ;;  %v3294_v49 = vunpack.c.h.s8.bf16 %v2478_v15 }
 0x703   : > { %4554 = vmatpush1.bf16.msra.mxu0 %v3221_v41  ;;  %v2477_v41 = vld [vmem:[%s8274_s4 + $0x960] sm:$0xff] }
 0x704   : > { %4882 = vmatpush1.bf16.msra.mxu1 %v3223_v37  ;;  %4555 = vmatprep.subr.bf16.mxu0 %v3230_v42  ;;  %v3288_v37 = vunpack.c.l.s8.bf16 %v2480_v52  ;;  %v2479_v42 = vld [vmem:[%s8274_s4 + $0x970] sm:$0xff]  ;;  %v3293_v56 = vunpack.c.h.s8.bf16 %v2477_v41 }
 0x705   : > { %4883 = vmatprep.subr.bf16.mxu1 %v3232_v1  ;;  %v3285_v1 = vunpack.c.l.s8.bf16 %v2477_v41  ;;  %v3287_v48 = vunpack.c.l.s8.bf16 %v2479_v42 }
 0x707   : > { %4556 = vmatpush1.bf16.msra.mxu0 %v3229_v50  ;;  %v3296_v50 = vunpack.c.h.s8.bf16 %v2480_v52 }
 0x708   : > { %4884 = vmatpush1.bf16.msra.mxu1 %v3231_v40  ;;  %4557 = vmatprep.subr.bf16.mxu0 %v3238_v51  ;;  %v2486_v40 = vld [vmem:[%s8274_s4 + $0x9a8] sm:$0xff]  ;;  %v2488_v51 = vld [vmem:[%s8274_s4 + $0x9b8] sm:$0xff] }
 0x709   : > { %4885 = vmatprep.subr.bf16.mxu1 %v3240_v58  ;;  %v3295_v58 = vunpack.c.h.s8.bf16 %v2479_v42  ;;  %v3302_v60 = vunpack.c.l.s8.bf16 %v2486_v40  ;;  %v3310_v39 = vunpack.c.h.s8.bf16 %v2486_v40 }
 0x70b   : > { %4558 = vmatpush1.bf16.msra.mxu0 %v3237_v3  ;;  %v2485_v3 = vld [vmem:[%s8274_s4 + $0x9a0] sm:$0xff] }
 0x70c   : > { %4886 = vmatpush1.bf16.msra.mxu1 %v3239_v8  ;;  %4559 = vmatprep.subr.bf16.mxu0 %v3246_v14  ;;  %v3304_v8 = vunpack.c.l.s8.bf16 %v2488_v51  ;;  %v2487_v14 = vld [vmem:[%s8274_s4 + $0x9b0] sm:$0xff]  ;;  %v3309_v45 = vunpack.c.h.s8.bf16 %v2485_v3 }
 0x70d   : > { %4887 = vmatprep.subr.bf16.mxu1 %v3248_v59  ;;  %v3301_v59 = vunpack.c.l.s8.bf16 %v2485_v3  ;;  %v3303_v11 = vunpack.c.l.s8.bf16 %v2487_v14 }
 0x70f   : > { %4560 = vmatpush1.bf16.msra.mxu0 %v3245_v4  ;;  %v3312_v4 = vunpack.c.h.s8.bf16 %v2488_v51 }
 0x710   : > { %4888 = vmatpush1.bf16.msra.mxu1 %v3247_v43  ;;  %4561 = vmatprep.subr.bf16.mxu0 %v3254_v44  ;;  %v2494_v43 = vld [vmem:[%s8274_s4 + $0x9e8] sm:$0xff]  ;;  %v2496_v44 = vld [vmem:[%s8274_s4 + $0x9f8] sm:$0xff] }
 0x711   : > { %4889 = vmatprep.subr.bf16.mxu1 %v3256_v17  ;;  %v3311_v17 = vunpack.c.h.s8.bf16 %v2487_v14  ;;  %v3318_v16 = vunpack.c.l.s8.bf16 %v2494_v43  ;;  %v3326_v33 = vunpack.c.h.s8.bf16 %v2494_v43 }
 0x713   : > { %4562 = vmatpush1.bf16.msra.mxu0 %v3253_v46  ;;  %v2493_v46 = vld [vmem:[%s8274_s4 + $0x9e0] sm:$0xff] }
 0x714   : > { %4890 = vmatpush1.bf16.msra.mxu1 %v3255_v47  ;;  %4563 = vmatprep.subr.bf16.mxu0 %v3262_v35  ;;  %v3320_v47 = vunpack.c.l.s8.bf16 %v2496_v44  ;;  %v2495_v35 = vld [vmem:[%s8274_s4 + $0x9f0] sm:$0xff]  ;;  %v3325_v63 = vunpack.c.h.s8.bf16 %v2493_v46 }
 0x715   : > { %4891 = vmatprep.subr.bf16.mxu1 %v3264_v21  ;;  %v3317_v21 = vunpack.c.l.s8.bf16 %v2493_v46  ;;  %v3319_v32 = vunpack.c.l.s8.bf16 %v2495_v35 }
 0x717   : > { %4564 = vmatpush1.bf16.msra.mxu0 %v3261_v22  ;;  %v3328_v22 = vunpack.c.h.s8.bf16 %v2496_v44  ;;  %v2526_v44 = vld [vmem:[%s8274_s4 + $0xae8] sm:$0xff] }
 0x718   : > { %4892 = vmatpush1.bf16.msra.mxu1 %v3263_v23  ;;  %4565 = vmatprep.subr.bf16.mxu0 %v3270_v55  ;;  %v2502_v23 = vld [vmem:[%s8274_s4 + $0xa28] sm:$0xff]  ;;  %v2504_v55 = vld [vmem:[%s8274_s4 + $0xa38] sm:$0xff]  ;;  %v3382_v46 = vunpack.c.l.s8.bf16 %v2526_v44 }
 0x719   : > { %4893 = vmatprep.subr.bf16.mxu1 %v3272_v25  ;;  %v3327_v25 = vunpack.c.h.s8.bf16 %v2495_v35  ;;  %v3334_v28 = vunpack.c.l.s8.bf16 %v2502_v23  ;;  %v3342_v52 = vunpack.c.h.s8.bf16 %v2502_v23 }
 0x71b   : > { %4566 = vmatpush1.bf16.msra.mxu0 %v3269_v34  ;;  %v2501_v34 = vld [vmem:[%s8274_s4 + $0xa20] sm:$0xff] }
 0x71c   : > { %4894 = vmatpush1.bf16.msra.mxu1 %v3271_v20  ;;  %4567 = vmatprep.subr.bf16.mxu0 %v3278_v12  ;;  %v3336_v20 = vunpack.c.l.s8.bf16 %v2504_v55  ;;  %v2503_v12 = vld [vmem:[%s8274_s4 + $0xa30] sm:$0xff]  ;;  %v3341_v41 = vunpack.c.h.s8.bf16 %v2501_v34 }
 0x71d   : > { %4895 = vmatprep.subr.bf16.mxu1 %v3280_v27  ;;  %v3333_v27 = vunpack.c.l.s8.bf16 %v2501_v34  ;;  %v3335_v15 = vunpack.c.l.s8.bf16 %v2503_v12 }
 0x71f   : > { %4568 = vmatpush1.bf16.msra.mxu0 %v3277_v62  ;;  %v2510_v62 = vld [vmem:[%s8274_s4 + $0xa68] sm:$0xff] }
 0x720   : > { %4896 = vmatpush1.bf16.msra.mxu1 %v3279_v54  ;;  %4569 = vmatprep.subr.bf16.mxu0 %v3286_v0  ;;  %v3344_v54 = vunpack.c.h.s8.bf16 %v2504_v55  ;;  %v2512_v0 = vld [vmem:[%s8274_s4 + $0xa78] sm:$0xff]  ;;  %v3350_v42 = vunpack.c.l.s8.bf16 %v2510_v62  ;;  %v3358_v40 = vunpack.c.h.s8.bf16 %v2510_v62  ;;  %v2534_v55 = vld [vmem:[%s8274_s4 + $0xb28] sm:$0xff] }
 0x721   : > { %4897 = vmatprep.subr.bf16.mxu1 %v3288_v37  ;;  %v3343_v37 = vunpack.c.h.s8.bf16 %v2503_v12  ;;  %v3360_v51 = vunpack.c.h.s8.bf16 %v2512_v0  ;;  %v3398_v34 = vunpack.c.l.s8.bf16 %v2534_v55  ;;  %v3406_v62 = vunpack.c.h.s8.bf16 %v2534_v55 }
 0x723   : > { %4570 = vmatpush1.bf16.msra.mxu0 %v3285_v1  ;;  %v2509_v1 = vld [vmem:[%s8274_s4 + $0xa60] sm:$0xff] }
 0x724   : > { %4898 = vmatpush1.bf16.msra.mxu1 %v3287_v48  ;;  %4571 = vmatprep.subr.bf16.mxu0 %v3294_v49  ;;  %v3352_v48 = vunpack.c.l.s8.bf16 %v2512_v0  ;;  %v2511_v49 = vld [vmem:[%s8274_s4 + $0xa70] sm:$0xff]  ;;  %v2542_v0 = vld [vmem:[%s8274_s4 + $0xb68] sm:$0xff] }
 0x725   : > { %4899 = vmatprep.subr.bf16.mxu1 %v3296_v50  ;;  %v3349_v50 = vunpack.c.l.s8.bf16 %v2509_v1 }
 0x727   : > { %4572 = vmatpush1.bf16.msra.mxu0 %v3293_v56  ;;  %v2518_v56 = vld [vmem:[%s8274_s4 + $0xaa8] sm:$0xff] }
 0x728   : > { %4900 = vmatpush1.bf16.msra.mxu1 %v3295_v58  ;;  %4573 = vmatprep.subr.bf16.mxu0 %v3302_v60  ;;  %v2520_v58 = vld [vmem:[%s8274_s4 + $0xab8] sm:$0xff]  ;;  %v3357_v60 = vunpack.c.h.s8.bf16 %v2509_v1  ;;  %v3366_v3 = vunpack.c.l.s8.bf16 %v2518_v56  ;;  %v3414_v1 = vunpack.c.l.s8.bf16 %v2542_v0 }
 0x729   : > { %4901 = vmatprep.subr.bf16.mxu1 %v3304_v8  ;;  %v2517_v8 = vld [vmem:[%s8274_s4 + $0xaa0] sm:$0xff]  ;;  %v3368_v14 = vunpack.c.l.s8.bf16 %v2520_v58  ;;  %v3376_v43 = vunpack.c.h.s8.bf16 %v2520_v58  ;;  %v2550_v58 = vld [vmem:[%s8274_s4 + $0xba8] sm:$0xff] }
 0x72b   : > { %4574 = vmatpush1.bf16.msra.mxu0 %v3301_v59  ;;  %v2519_v59 = vld [vmem:[%s8274_s4 + $0xab0] sm:$0xff] }
 0x72c   : > { %4902 = vmatpush1.bf16.msra.mxu1 %v3303_v11  ;;  %4575 = vmatprep.subr.bf16.mxu0 %v3310_v39  ;;  %v3365_v11 = vunpack.c.l.s8.bf16 %v2517_v8  ;;  %v3367_v39 = vunpack.c.l.s8.bf16 %v2519_v59 }
 0x72d   : > { %4903 = vmatprep.subr.bf16.mxu1 %v3312_v4  ;;  %v3374_v4 = vunpack.c.h.s8.bf16 %v2518_v56 }
 0x72f   : > { %4576 = vmatpush1.bf16.msra.mxu0 %v3309_v45  ;;  %v2528_v45 = vld [vmem:[%s8274_s4 + $0xaf8] sm:$0xff] }
 0x730   : > { %4904 = vmatpush1.bf16.msra.mxu1 %v3311_v17  ;;  %4577 = vmatprep.subr.bf16.mxu0 %v3318_v16  ;;  %v3373_v17 = vunpack.c.h.s8.bf16 %v2517_v8  ;;  %v3375_v16 = vunpack.c.h.s8.bf16 %v2519_v59  ;;  %v3384_v35 = vunpack.c.l.s8.bf16 %v2528_v45  ;;  %v3392_v23 = vunpack.c.h.s8.bf16 %v2528_v45  ;;  %v2558_v45 = vld [vmem:[%s8274_s4 + $0xbe8] sm:$0xff] }
 0x731   : > { %4905 = vmatprep.subr.bf16.mxu1 %v3320_v47  ;;  %v2525_v47 = vld [vmem:[%s8274_s4 + $0xae0] sm:$0xff]  ;;  %v3430_v8 = vunpack.c.l.s8.bf16 %v2550_v58 }
 0x733   : > { %4578 = vmatpush1.bf16.msra.mxu0 %v3317_v21  ;;  %v2527_v21 = vld [vmem:[%s8274_s4 + $0xaf0] sm:$0xff] }
 0x734   : > { %4906 = vmatpush1.bf16.msra.mxu1 %v3319_v32  ;;  %4579 = vmatprep.subr.bf16.mxu0 %v3326_v33  ;;  %v3381_v32 = vunpack.c.l.s8.bf16 %v2525_v47  ;;  %v3383_v33 = vunpack.c.l.s8.bf16 %v2527_v21 }
 0x735   : > { %4907 = vmatprep.subr.bf16.mxu1 %v3328_v22  ;;  %v3390_v22 = vunpack.c.h.s8.bf16 %v2526_v44 }
 0x737   : > { %4580 = vmatpush1.bf16.msra.mxu0 %v3325_v63  ;;  %v2536_v63 = vld [vmem:[%s8274_s4 + $0xb38] sm:$0xff] }
 0x738   : > { %4908 = vmatpush1.bf16.msra.mxu1 %v3327_v25  ;;  %4590 = vmatprep.subr.bf16.mxu0 %v3334_v28  ;;  %v3389_v25 = vunpack.c.h.s8.bf16 %v2525_v47  ;;  %v3391_v28 = vunpack.c.h.s8.bf16 %v2527_v21  ;;  %v3400_v12 = vunpack.c.l.s8.bf16 %v2536_v63  ;;  %v3446_v47 = vunpack.c.l.s8.bf16 %v2558_v45 }
 0x739   : > { %4918 = vmatprep.subr.bf16.mxu1 %v3336_v20  ;;  %v2533_v20 = vld [vmem:[%s8274_s4 + $0xb20] sm:$0xff] }
 0x73a   : > { %4582 = vmatmul.mubr.bf16.vlgmr.msra.gmra.mrb[40].mxu0 %v8645_v5 }
 0x73b   : > { %4910 = vmatmul.mubr.bf16.vlgmr.msra.gmra.mrb[40].mxu1 %v8645_v5  ;;  %4591 = vmatpush1.bf16.msra.mxu0 %v3333_v27  ;;  %v3351_v5 = vunpack.c.l.s8.bf16 %v2511_v49  ;;  %v2535_v27 = vld [vmem:[%s8274_s4 + $0xb30] sm:$0xff] }
 0x73c   : > { %4622 = vmatprep.mubr.bf16.mxu0 %v8648_v13  ;;  %4919 = vmatpush1.bf16.msra.mxu1 %v3335_v15  ;;  %v3397_v15 = vunpack.c.l.s8.bf16 %v2533_v20 }
 0x73d   : > { %4950 = vmatprep.mubr.bf16.mxu1 %v8648_v13  ;;  %4592 = vmatprep.subr.bf16.mxu0 %v3342_v52  ;;  %v3359_v13 = vunpack.c.h.s8.bf16 %v2511_v49  ;;  %v3399_v52 = vunpack.c.l.s8.bf16 %v2535_v27 }
 0x73e   : > { %4920 = vmatprep.subr.bf16.mxu1 %v3344_v54  ;;  %v3408_v54 = vunpack.c.h.s8.bf16 %v2536_v63  ;;  %v2566_v63 = vld [vmem:[%s8274_s4 + $0xc28] sm:$0xff] }
 0x73f   : > { %4593 = vmatpush1.bf16.msra.mxu0 %v3341_v41  ;;  %v2544_v41 = vld [vmem:[%s8274_s4 + $0xb78] sm:$0xff] }
 0x740   : > { %4921 = vmatpush1.bf16.msra.mxu1 %v3343_v37  ;;  %4594 = vmatprep.subr.bf16.mxu0 %v3350_v42  ;;  %v3405_v37 = vunpack.c.h.s8.bf16 %v2533_v20  ;;  %v3407_v42 = vunpack.c.h.s8.bf16 %v2535_v27  ;;  %v3416_v49 = vunpack.c.l.s8.bf16 %v2544_v41  ;;  %v3424_v56 = vunpack.c.h.s8.bf16 %v2544_v41 }
 0x741   : > { %4922 = vmatprep.subr.bf16.mxu1 %v3352_v48  ;;  %v2541_v48 = vld [vmem:[%s8274_s4 + $0xb60] sm:$0xff]  ;;  %v3462_v20 = vunpack.c.l.s8.bf16 %v2566_v63 }
 0x743   : > { %4595 = vmatpush1.bf16.msra.mxu0 %v3349_v50  ;;  %v2543_v50 = vld [vmem:[%s8274_s4 + $0xb70] sm:$0xff] }
 0x744   : > { %4923 = vmatpush1.bf16.msra.mxu1 %v3351_v5  ;;  %4596 = vmatprep.subr.bf16.mxu0 %v3358_v40  ;;  %v3413_v5 = vunpack.c.l.s8.bf16 %v2541_v48  ;;  %v3415_v40 = vunpack.c.l.s8.bf16 %v2543_v50 }
 0x745   : > { %4924 = vmatprep.subr.bf16.mxu1 %v3360_v51  ;;  %v3422_v51 = vunpack.c.h.s8.bf16 %v2542_v0  ;;  %v2574_v0 = vld [vmem:[%s8274_s4 + $0xc68] sm:$0xff] }
 0x747   : > { %4597 = vmatpush1.bf16.msra.mxu0 %v3357_v60  ;;  %v2552_v60 = vld [vmem:[%s8274_s4 + $0xbb8] sm:$0xff] }
 0x748   : > { %4925 = vmatpush1.bf16.msra.mxu1 %v3359_v13  ;;  %4598 = vmatprep.subr.bf16.mxu0 %v3366_v3  ;;  %v3421_v13 = vunpack.c.h.s8.bf16 %v2541_v48  ;;  %v3423_v3 = vunpack.c.h.s8.bf16 %v2543_v50  ;;  %v3432_v59 = vunpack.c.l.s8.bf16 %v2552_v60  ;;  %v3440_v44 = vunpack.c.h.s8.bf16 %v2552_v60  ;;  %v2584_v60 = vld [vmem:[%s8274_s4 + $0xcb8] sm:$0xff] }
 0x749   : > { %4926 = vmatprep.subr.bf16.mxu1 %v3368_v14  ;;  %v2549_v14 = vld [vmem:[%s8274_s4 + $0xba0] sm:$0xff]  ;;  %v3478_v48 = vunpack.c.l.s8.bf16 %v2574_v0 }
 0x74b   : > { %4599 = vmatpush1.bf16.msra.mxu0 %v3365_v11  ;;  %v2551_v11 = vld [vmem:[%s8274_s4 + $0xbb0] sm:$0xff] }
 0x74c   : > { %4927 = vmatpush1.bf16.msra.mxu1 %v3367_v39  ;;  %4600 = vmatprep.subr.bf16.mxu0 %v3374_v4  ;;  %v3429_v39 = vunpack.c.l.s8.bf16 %v2549_v14  ;;  %v3431_v4 = vunpack.c.l.s8.bf16 %v2551_v11 }
 0x74d   : > { %4928 = vmatprep.subr.bf16.mxu1 %v3376_v43  ;;  %v3438_v43 = vunpack.c.h.s8.bf16 %v2550_v58  ;;  %v2582_v58 = vld [vmem:[%s8274_s4 + $0xca8] sm:$0xff] }
 0x74f   : > { %4601 = vmatpush1.bf16.msra.mxu0 %v3373_v17  ;;  %v2560_v17 = vld [vmem:[%s8274_s4 + $0xbf8] sm:$0xff] }
 0x750   : > { %4929 = vmatpush1.bf16.msra.mxu1 %v3375_v16  ;;  %4602 = vmatprep.subr.bf16.mxu0 %v3382_v46  ;;  %v3437_v16 = vunpack.c.h.s8.bf16 %v2549_v14  ;;  %v3439_v46 = vunpack.c.h.s8.bf16 %v2551_v11  ;;  %v3448_v21 = vunpack.c.l.s8.bf16 %v2560_v17  ;;  %v3456_v55 = vunpack.c.h.s8.bf16 %v2560_v17 }
 0x751   : > { %4930 = vmatprep.subr.bf16.mxu1 %v3384_v35  ;;  %v2557_v35 = vld [vmem:[%s8274_s4 + $0xbe0] sm:$0xff]  ;;  %v3496_v14 = vunpack.c.l.s8.bf16 %v2584_v60 }
 0x753   : > { %4603 = vmatpush1.bf16.msra.mxu0 %v3381_v32  ;;  %v2559_v32 = vld [vmem:[%s8274_s4 + $0xbf0] sm:$0xff] }
 0x754   : > { %4931 = vmatpush1.bf16.msra.mxu1 %v3383_v33  ;;  %4604 = vmatprep.subr.bf16.mxu0 %v3390_v22  ;;  %v3445_v33 = vunpack.c.l.s8.bf16 %v2557_v35  ;;  %v3447_v22 = vunpack.c.l.s8.bf16 %v2559_v32 }
 0x755   : > { %4932 = vmatprep.subr.bf16.mxu1 %v3392_v23  ;;  %v3454_v23 = vunpack.c.h.s8.bf16 %v2558_v45  ;;  %v2592_v45 = vld [vmem:[%s8274_s4 + $0xcf8] sm:$0xff] }
 0x757   : > { %4605 = vmatpush1.bf16.msra.mxu0 %v3389_v25  ;;  %v2568_v25 = vld [vmem:[%s8274_s4 + $0xc38] sm:$0xff] }
 0x758   : > { %4933 = vmatpush1.bf16.msra.mxu1 %v3391_v28  ;;  %4606 = vmatprep.subr.bf16.mxu0 %v3398_v34  ;;  %v3453_v28 = vunpack.c.h.s8.bf16 %v2557_v35  ;;  %v3455_v34 = vunpack.c.h.s8.bf16 %v2559_v32  ;;  %v3464_v27 = vunpack.c.l.s8.bf16 %v2568_v25  ;;  %v3472_v41 = vunpack.c.h.s8.bf16 %v2568_v25 }
 0x759   : > { %4934 = vmatprep.subr.bf16.mxu1 %v3400_v12  ;;  %v2565_v12 = vld [vmem:[%s8274_s4 + $0xc20] sm:$0xff]  ;;  %v3512_v35 = vunpack.c.l.s8.bf16 %v2592_v45 }
 0x75b   : > { %4607 = vmatpush1.bf16.msra.mxu0 %v3397_v15  ;;  %v2567_v15 = vld [vmem:[%s8274_s4 + $0xc30] sm:$0xff] }
 0x75c   : > { %4935 = vmatpush1.bf16.msra.mxu1 %v3399_v52  ;;  %4608 = vmatprep.subr.bf16.mxu0 %v3406_v62  ;;  %v3461_v52 = vunpack.c.l.s8.bf16 %v2565_v12  ;;  %v3463_v62 = vunpack.c.l.s8.bf16 %v2567_v15 }
 0x75d   : > { %4936 = vmatprep.subr.bf16.mxu1 %v3408_v54  ;;  %v3470_v54 = vunpack.c.h.s8.bf16 %v2566_v63  ;;  %v2600_v63 = vld [vmem:[%s8274_s4 + $0xd38] sm:$0xff] }
 0x75f   : > { %4609 = vmatpush1.bf16.msra.mxu0 %v3405_v37  ;;  %v2576_v37 = vld [vmem:[%s8274_s4 + $0xc78] sm:$0xff] }
 0x760   : > { %4937 = vmatpush1.bf16.msra.mxu1 %v3407_v42  ;;  %4610 = vmatprep.subr.bf16.mxu0 %v3414_v1  ;;  %v3469_v42 = vunpack.c.h.s8.bf16 %v2565_v12  ;;  %v3471_v1 = vunpack.c.h.s8.bf16 %v2567_v15  ;;  %v3480_v50 = vunpack.c.l.s8.bf16 %v2576_v37  ;;  %v3528_v12 = vunpack.c.l.s8.bf16 %v2600_v63 }
 0x761   : > { %4938 = vmatprep.subr.bf16.mxu1 %v3416_v49  ;;  %v2573_v49 = vld [vmem:[%s8274_s4 + $0xc60] sm:$0xff] }
 0x763   : > { %4611 = vmatpush1.bf16.msra.mxu0 %v3413_v5  ;;  %v2575_v5 = vld [vmem:[%s8274_s4 + $0xc70] sm:$0xff] }
 0x764   : > { %4939 = vmatpush1.bf16.msra.mxu1 %v3415_v40  ;;  %4612 = vmatprep.subr.bf16.mxu0 %v3422_v51  ;;  %v3477_v40 = vunpack.c.l.s8.bf16 %v2573_v49  ;;  %v3486_v51 = vunpack.c.h.s8.bf16 %v2574_v0  ;;  %v2606_v0 = vld [vmem:[%s8274_s4 + $0xd68] sm:$0xff] }
 0x765   : > { %4940 = vmatprep.subr.bf16.mxu1 %v3424_v56  ;;  %v3488_v56 = vunpack.c.h.s8.bf16 %v2576_v37 }
 0x767   : > { %4613 = vmatpush1.bf16.msra.mxu0 %v3421_v13  ;;  %v3485_v13 = vunpack.c.h.s8.bf16 %v2573_v49 }
 0x768   : > { %4941 = vmatpush1.bf16.msra.mxu1 %v3423_v3  ;;  %4614 = vmatprep.subr.bf16.mxu0 %v3430_v8  ;;  %v3494_v3 = vunpack.c.l.s8.bf16 %v2582_v58  ;;  %v2581_v8 = vld [vmem:[%s8274_s4 + $0xca0] sm:$0xff] }
 0x769   : > { %4942 = vmatprep.subr.bf16.mxu1 %v3432_v59  ;;  %v2583_v59 = vld [vmem:[%s8274_s4 + $0xcb0] sm:$0xff]  ;;  %v3493_v11 = vunpack.c.l.s8.bf16 %v2581_v8  ;;  %v3501_v17 = vunpack.c.h.s8.bf16 %v2581_v8 }
 0x76b   : > { %4615 = vmatpush1.bf16.msra.mxu0 %v3429_v39  ;;  %v3495_v39 = vunpack.c.l.s8.bf16 %v2583_v59 }
 0x76c   : > { %4943 = vmatpush1.bf16.msra.mxu1 %v3431_v4  ;;  %4616 = vmatprep.subr.bf16.mxu0 %v3438_v43  ;;  %v3502_v4 = vunpack.c.h.s8.bf16 %v2582_v58  ;;  %v3504_v43 = vunpack.c.h.s8.bf16 %v2584_v60  ;;  %v2616_v58 = vld [vmem:[%s8274_s4 + $0xdb8] sm:$0xff] }
 0x76d   : > { %4944 = vmatprep.subr.bf16.mxu1 %v3440_v44  ;;  %v2590_v44 = vld [vmem:[%s8274_s4 + $0xce8] sm:$0xff]  ;;  %v3560_v8 = vunpack.c.l.s8.bf16 %v2616_v58 }
 0x76f   : > { %4617 = vmatpush1.bf16.msra.mxu0 %v3437_v16  ;;  %v3503_v16 = vunpack.c.h.s8.bf16 %v2583_v59 }
 0x770   : > { %4945 = vmatpush1.bf16.msra.mxu1 %v3439_v46  ;;  %4618 = vmatprep.subr.bf16.mxu0 %v3446_v47  ;;  %v3510_v46 = vunpack.c.l.s8.bf16 %v2590_v44  ;;  %v2589_v47 = vld [vmem:[%s8274_s4 + $0xce0] sm:$0xff] }
 0x771   : > { %4946 = vmatprep.subr.bf16.mxu1 %v3448_v21  ;;  %v2591_v21 = vld [vmem:[%s8274_s4 + $0xcf0] sm:$0xff]  ;;  %v3509_v32 = vunpack.c.l.s8.bf16 %v2589_v47  ;;  %v3517_v25 = vunpack.c.h.s8.bf16 %v2589_v47 }
 0x773   : > { %4619 = vmatpush1.bf16.msra.mxu0 %v3445_v33  ;;  %v3511_v33 = vunpack.c.l.s8.bf16 %v2591_v21 }
 0x774   : > { %4947 = vmatpush1.bf16.msra.mxu1 %v3447_v22  ;;  %4620 = vmatprep.subr.bf16.mxu0 %v3454_v23  ;;  %v3518_v22 = vunpack.c.h.s8.bf16 %v2590_v44  ;;  %v3520_v23 = vunpack.c.h.s8.bf16 %v2592_v45  ;;  %v2624_v44 = vld [vmem:[%s8274_s4 + $0xdf8] sm:$0xff] }
 0x775   : > { %4948 = vmatprep.subr.bf16.mxu1 %v3456_v55  ;;  %v2598_v55 = vld [vmem:[%s8274_s4 + $0xd28] sm:$0xff]  ;;  %v3576_v47 = vunpack.c.l.s8.bf16 %v2624_v44 }
 0x777   : > { %4621 = vmatpush1.bf16.msra.mxu0 %v3453_v28  ;;  %v3519_v28 = vunpack.c.h.s8.bf16 %v2591_v21 }
 0x778   : > { %4949 = vmatpush1.bf16.msra.mxu1 %v3455_v34  ;;  %4631 = vmatprep.subr.bf16.mxu0 %v3462_v20  ;;  %v3526_v34 = vunpack.c.l.s8.bf16 %v2598_v55  ;;  %v2597_v20 = vld [vmem:[%s8274_s4 + $0xd20] sm:$0xff] }
 0x779   : > { %4959 = vmatprep.subr.bf16.mxu1 %v3464_v27  ;;  %v2599_v27 = vld [vmem:[%s8274_s4 + $0xd30] sm:$0xff]  ;;  %v3525_v15 = vunpack.c.l.s8.bf16 %v2597_v20  ;;  %v3533_v37 = vunpack.c.h.s8.bf16 %v2597_v20 }
 0x77a   : > { %4623 = vmatmul.mubr.bf16.vlgmr.msra.gmra.mrb[40].mxu0 %v8691_v38 }
 0x77b   : > { %4951 = vmatmul.mubr.bf16.vlgmr.msra.gmra.mrb[40].mxu1 %v8691_v38  ;;  %4632 = vmatpush1.bf16.msra.mxu0 %v3461_v52  ;;  %v3479_v38 = vunpack.c.l.s8.bf16 %v2575_v5  ;;  %v3527_v52 = vunpack.c.l.s8.bf16 %v2599_v27 }
 0x77c   : > { %4663 = vmatprep.mubr.bf16.mxu0 %v8694_v18  ;;  %4960 = vmatpush1.bf16.msra.mxu1 %v3463_v62  ;;  %v3534_v62 = vunpack.c.h.s8.bf16 %v2598_v55  ;;  %v2632_v55 = vld [vmem:[%s8274_s4 + $0xe38] sm:$0xff] }
 0x77d   : > { %4991 = vmatprep.mubr.bf16.mxu1 %v8694_v18  ;;  %4633 = vmatprep.subr.bf16.mxu0 %v3470_v54  ;;  %v3487_v18 = vunpack.c.h.s8.bf16 %v2575_v5  ;;  %v3536_v54 = vunpack.c.h.s8.bf16 %v2600_v63  ;;  %v3592_v20 = vunpack.c.l.s8.bf16 %v2632_v55 }
 0x77e   : > { %4961 = vmatprep.subr.bf16.mxu1 %v3472_v41  ;;  %v2608_v41 = vld [vmem:[%s8274_s4 + $0xd78] sm:$0xff] }
 0x77f   : > { %4634 = vmatpush1.bf16.msra.mxu0 %v3469_v42  ;;  %v3535_v42 = vunpack.c.h.s8.bf16 %v2599_v27  ;;  %v3544_v49 = vunpack.c.l.s8.bf16 %v2608_v41 }
 0x780   : > { %4962 = vmatpush1.bf16.msra.mxu1 %v3471_v1  ;;  %4635 = vmatprep.subr.bf16.mxu0 %v3478_v48  ;;  %v3542_v1 = vunpack.c.l.s8.bf16 %v2606_v0  ;;  %v2605_v48 = vld [vmem:[%s8274_s4 + $0xd60] sm:$0xff] }
 0x781   : > { %4963 = vmatprep.subr.bf16.mxu1 %v3480_v50  ;;  %v2607_v50 = vld [vmem:[%s8274_s4 + $0xd70] sm:$0xff]  ;;  %v3541_v5 = vunpack.c.l.s8.bf16 %v2605_v48  ;;  %v3549_v60 = vunpack.c.h.s8.bf16 %v2605_v48 }
 0x783   : > { %4636 = vmatpush1.bf16.msra.mxu0 %v3477_v40  ;;  %v3543_v40 = vunpack.c.l.s8.bf16 %v2607_v50 }
 0x784   : > { %4964 = vmatpush1.bf16.msra.mxu1 %v3479_v38  ;;  %4637 = vmatprep.subr.bf16.mxu0 %v3486_v51  ;;  %v3550_v38 = vunpack.c.h.s8.bf16 %v2606_v0  ;;  %v3552_v51 = vunpack.c.h.s8.bf16 %v2608_v41  ;;  %v2640_v0 = vld [vmem:[%s8274_s4 + $0xe78] sm:$0xff] }
 0x785   : > { %4965 = vmatprep.subr.bf16.mxu1 %v3488_v56  ;;  %v2614_v56 = vld [vmem:[%s8274_s4 + $0xda8] sm:$0xff]  ;;  %v3608_v48 = vunpack.c.l.s8.bf16 %v2640_v0 }
 0x787   : > { %4638 = vmatpush1.bf16.msra.mxu0 %v3485_v13  ;;  %v3551_v13 = vunpack.c.h.s8.bf16 %v2607_v50 }
 0x788   : > { %4966 = vmatpush1.bf16.msra.mxu1 %v3487_v18  ;;  %4639 = vmatprep.subr.bf16.mxu0 %v3494_v3  ;;  %v3558_v18 = vunpack.c.l.s8.bf16 %v2614_v56  ;;  %v2613_v3 = vld [vmem:[%s8274_s4 + $0xda0] sm:$0xff] }
 0x789   : > { %4967 = vmatprep.subr.bf16.mxu1 %v3496_v14  ;;  %v2615_v14 = vld [vmem:[%s8274_s4 + $0xdb0] sm:$0xff]  ;;  %v3557_v59 = vunpack.c.l.s8.bf16 %v2613_v3  ;;  %v3565_v45 = vunpack.c.h.s8.bf16 %v2613_v3 }
 0x78b   : > { %4640 = vmatpush1.bf16.msra.mxu0 %v3493_v11  ;;  %v3559_v11 = vunpack.c.l.s8.bf16 %v2615_v14 }
 0x78c   : > { %4968 = vmatpush1.bf16.msra.mxu1 %v3495_v39  ;;  %4641 = vmatprep.subr.bf16.mxu0 %v3502_v4  ;;  %v3566_v39 = vunpack.c.h.s8.bf16 %v2614_v56  ;;  %v3568_v4 = vunpack.c.h.s8.bf16 %v2616_v58 }
 0x78d   : > { %4969 = vmatprep.subr.bf16.mxu1 %v3504_v43  ;;  %v2622_v43 = vld [vmem:[%s8274_s4 + $0xde8] sm:$0xff] }
 0x78f   : > { %4642 = vmatpush1.bf16.msra.mxu0 %v3501_v17  ;;  %v3567_v17 = vunpack.c.h.s8.bf16 %v2615_v14 }
 0x790   : > { %4970 = vmatpush1.bf16.msra.mxu1 %v3503_v16  ;;  %4643 = vmatprep.subr.bf16.mxu0 %v3510_v46  ;;  %v3574_v16 = vunpack.c.l.s8.bf16 %v2622_v43  ;;  %v2621_v46 = vld [vmem:[%s8274_s4 + $0xde0] sm:$0xff] }
 0x791   : > { %4971 = vmatprep.subr.bf16.mxu1 %v3512_v35  ;;  %v2623_v35 = vld [vmem:[%s8274_s4 + $0xdf0] sm:$0xff]  ;;  %v3573_v21 = vunpack.c.l.s8.bf16 %v2621_v46  ;;  %v3581_v63 = vunpack.c.h.s8.bf16 %v2621_v46 }
 0x793   : > { %4644 = vmatpush1.bf16.msra.mxu0 %v3509_v32  ;;  %v3575_v32 = vunpack.c.l.s8.bf16 %v2623_v35 }
 0x794   : > { %4972 = vmatpush1.bf16.msra.mxu1 %v3511_v33  ;;  %4645 = vmatprep.subr.bf16.mxu0 %v3518_v22  ;;  %v3582_v33 = vunpack.c.h.s8.bf16 %v2622_v43  ;;  %v3584_v22 = vunpack.c.h.s8.bf16 %v2624_v44 }
 0x795   : > { %4973 = vmatprep.subr.bf16.mxu1 %v3520_v23  ;;  %v2630_v23 = vld [vmem:[%s8274_s4 + $0xe28] sm:$0xff] }
 0x797   : > { %4646 = vmatpush1.bf16.msra.mxu0 %v3517_v25  ;;  %v3583_v25 = vunpack.c.h.s8.bf16 %v2623_v35 }
 0x798   : > { %4974 = vmatpush1.bf16.msra.mxu1 %v3519_v28  ;;  %4647 = vmatprep.subr.bf16.mxu0 %v3526_v34  ;;  %v3590_v28 = vunpack.c.l.s8.bf16 %v2630_v23  ;;  %v2629_v34 = vld [vmem:[%s8274_s4 + $0xe20] sm:$0xff] }
 0x799   : > { %4975 = vmatprep.subr.bf16.mxu1 %v3528_v12  ;;  %v2631_v12 = vld [vmem:[%s8274_s4 + $0xe30] sm:$0xff]  ;;  %v3589_v27 = vunpack.c.l.s8.bf16 %v2629_v34  ;;  %v3597_v41 = vunpack.c.h.s8.bf16 %v2629_v34 }
 0x79b   : > { %4648 = vmatpush1.bf16.msra.mxu0 %v3525_v15  ;;  %v3591_v15 = vunpack.c.l.s8.bf16 %v2631_v12 }
 0x79c   : > { %4976 = vmatpush1.bf16.msra.mxu1 %v3527_v52  ;;  %4649 = vmatprep.subr.bf16.mxu0 %v3534_v62  ;;  %v3598_v52 = vunpack.c.h.s8.bf16 %v2630_v23  ;;  %v2638_v62 = vld [vmem:[%s8274_s4 + $0xe68] sm:$0xff] }
 0x79d   : > { %4977 = vmatprep.subr.bf16.mxu1 %v3536_v54  ;;  %v3600_v54 = vunpack.c.h.s8.bf16 %v2632_v55 }
 0x79f   : > { %4650 = vmatpush1.bf16.msra.mxu0 %v3533_v37  ;;  %v3599_v37 = vunpack.c.h.s8.bf16 %v2631_v12 }
 0x7a0   : > { %4978 = vmatpush1.bf16.msra.mxu1 %v3535_v42  ;;  %4651 = vmatprep.subr.bf16.mxu0 %v3542_v1  ;;  %v3606_v42 = vunpack.c.l.s8.bf16 %v2638_v62  ;;  %v2637_v1 = vld [vmem:[%s8274_s4 + $0xe60] sm:$0xff] }
 0x7a1   : > { %4979 = vmatprep.subr.bf16.mxu1 %v3544_v49  ;;  %v2639_v49 = vld [vmem:[%s8274_s4 + $0xe70] sm:$0xff]  ;;  %v3605_v50 = vunpack.c.l.s8.bf16 %v2637_v1  ;;  %v3613_v56 = vunpack.c.h.s8.bf16 %v2637_v1 }
 0x7a3   : > { %4652 = vmatpush1.bf16.msra.mxu0 %v3541_v5  ;;  %v3614_v5 = vunpack.c.h.s8.bf16 %v2638_v62 }
 0x7a4   : > { %4980 = vmatpush1.bf16.msra.mxu1 %v3543_v40  ;;  %4653 = vmatprep.subr.bf16.mxu0 %v3550_v38  ;;  %v3616_v40 = vunpack.c.h.s8.bf16 %v2640_v0  ;;  %v2646_v38 = vld [vmem:[%s8274_s4 + $0xea8] sm:$0xff] }
 0x7a5   : > { %4981 = vmatprep.subr.bf16.mxu1 %v3552_v51  ;;  %v2648_v51 = vld [vmem:[%s8274_s4 + $0xeb8] sm:$0xff]  ;;  %v3622_v58 = vunpack.c.l.s8.bf16 %v2646_v38  ;;  %v3630_v14 = vunpack.c.h.s8.bf16 %v2646_v38  ;;  %v9072_v38 = vld [vmem:[%s9069_s26] sm:$0xff] }
 0x7a7   : > { %4654 = vmatpush1.bf16.msra.mxu0 %v3549_v60  ;;  %v2645_v60 = vld [vmem:[%s8274_s4 + $0xea0] sm:$0xff] }
 0x7a8   : > { %4982 = vmatpush1.bf16.msra.mxu1 %v3551_v13  ;;  %4655 = vmatprep.subr.bf16.mxu0 %v3558_v18  ;;  %v3624_v13 = vunpack.c.l.s8.bf16 %v2648_v51  ;;  %v2647_v18 = vld [vmem:[%s8274_s4 + $0xeb0] sm:$0xff]  ;;  %v3621_v3 = vunpack.c.l.s8.bf16 %v2645_v60 }
 0x7a9   : > { %4983 = vmatprep.subr.bf16.mxu1 %v3560_v8  ;;  %v3623_v8 = vunpack.c.l.s8.bf16 %v2647_v18  ;;  %v3631_v43 = vunpack.c.h.s8.bf16 %v2647_v18 }
 0x7ab   : > { %4656 = vmatpush1.bf16.msra.mxu0 %v3557_v59  ;;  %v3632_v59 = vunpack.c.h.s8.bf16 %v2648_v51 }
 0x7ac   : > { %4984 = vmatpush1.bf16.msra.mxu1 %v3559_v11  ;;  %4657 = vmatprep.subr.bf16.mxu0 %v3566_v39  ;;  %v2654_v11 = vld [vmem:[%s8274_s4 + $0xee8] sm:$0xff]  ;;  %v2656_v39 = vld [vmem:[%s8274_s4 + $0xef8] sm:$0xff] }
 0x7ad   : > { %4985 = vmatprep.subr.bf16.mxu1 %v3568_v4  ;;  %v3629_v4 = vunpack.c.h.s8.bf16 %v2645_v60  ;;  %v3638_v44 = vunpack.c.l.s8.bf16 %v2654_v11  ;;  %v3646_v35 = vunpack.c.h.s8.bf16 %v2654_v11  ;;  %v2679_v60 = vld [vmem:[%s8274_s4 + $0xfb0] sm:$0xff]  ;;  %v2686_v11 = vld [vmem:[%s8274_s4 + $0xfe8] sm:$0xff] }
 0x7af   : > { %4658 = vmatpush1.bf16.msra.mxu0 %v3565_v45  ;;  %v2653_v45 = vld [vmem:[%s8274_s4 + $0xee0] sm:$0xff] }
 0x7b0   : > { %4986 = vmatpush1.bf16.msra.mxu1 %v3567_v17  ;;  %4659 = vmatprep.subr.bf16.mxu0 %v3574_v16  ;;  %v3640_v17 = vunpack.c.l.s8.bf16 %v2656_v39  ;;  %v2655_v16 = vld [vmem:[%s8274_s4 + $0xef0] sm:$0xff]  ;;  %v3637_v46 = vunpack.c.l.s8.bf16 %v2653_v45 }
 0x7b1   : > { %4987 = vmatprep.subr.bf16.mxu1 %v3576_v47  ;;  %v3639_v47 = vunpack.c.l.s8.bf16 %v2655_v16  ;;  %v3647_v23 = vunpack.c.h.s8.bf16 %v2655_v16  ;;  %v2685_v16 = vld [vmem:[%s8274_s4 + $0xfe0] sm:$0xff] }
 0x7b3   : > { %4660 = vmatpush1.bf16.msra.mxu0 %v3573_v21  ;;  %v3648_v21 = vunpack.c.h.s8.bf16 %v2656_v39  ;;  %v2688_v39 = vld [vmem:[%s8274_s4 + $0xff8] sm:$0xff] }
 0x7b4   : > { %4988 = vmatpush1.bf16.msra.mxu1 %v3575_v32  ;;  %4661 = vmatprep.subr.bf16.mxu0 %v3582_v33  ;;  %v2662_v32 = vld [vmem:[%s8274_s4 + $0xf28] sm:$0xff]  ;;  %v2664_v33 = vld [vmem:[%s8274_s4 + $0xf38] sm:$0xff] }
 0x7b5   : > { %4989 = vmatprep.subr.bf16.mxu1 %v3584_v22  ;;  %v3645_v22 = vunpack.c.h.s8.bf16 %v2653_v45  ;;  %v3654_v55 = vunpack.c.l.s8.bf16 %v2662_v32  ;;  %v3662_v12 = vunpack.c.h.s8.bf16 %v2662_v32  ;;  %v3695_v45 = vunpack.c.h.s8.bf16 %v2679_v60 }
 0x7b6   : > { %v3710_v32 = vunpack.c.h.s8.bf16 %v2686_v11 }
 0x7b7   : > { %4662 = vmatpush1.bf16.msra.mxu0 %v3581_v63  ;;  %v2661_v63 = vld [vmem:[%s8274_s4 + $0xf20] sm:$0xff] }
 0x7b8   : > { %4990 = vmatpush1.bf16.msra.mxu1 %v3583_v25  ;;  %4672 = vmatprep.subr.bf16.mxu0 %v3590_v28  ;;  %v3656_v25 = vunpack.c.l.s8.bf16 %v2664_v33  ;;  %v2663_v28 = vld [vmem:[%s8274_s4 + $0xf30] sm:$0xff]  ;;  %v3653_v34 = vunpack.c.l.s8.bf16 %v2661_v63  ;;  %v3661_v62 = vunpack.c.h.s8.bf16 %v2661_v63  ;;  %v3709_v63 = vunpack.c.h.s8.bf16 %v2685_v16 }
 0x7b9   : > { %5000 = vmatprep.subr.bf16.mxu1 %v3592_v20  ;;  %v3655_v20 = vunpack.c.l.s8.bf16 %v2663_v28 }
 0x7ba   : > { %4664 = vmatmul.mubr.bf16.vlgmr.msra.gmra.mrb[40].mxu0 %v8737_v26 }
 0x7bb   : > { %4992 = vmatmul.mubr.bf16.vlgmr.msra.gmra.mrb[40].mxu1 %v8737_v26  ;;  %4673 = vmatpush1.bf16.msra.mxu0 %v3589_v27  ;;  %v3607_v26 = vunpack.c.l.s8.bf16 %v2639_v49  ;;  %v3664_v27 = vunpack.c.h.s8.bf16 %v2664_v33  ;;  %v3712_v33 = vunpack.c.h.s8.bf16 %v2688_v39 }
 0x7bc   : > { %4704 = vmatprep.mubr.bf16.mxu0 %v8740_v19  ;;  %5001 = vmatpush1.bf16.msra.mxu1 %v3591_v15  ;;  %v2670_v15 = vld [vmem:[%s8274_s4 + $0xf68] sm:$0xff] }
 0x7bd   : > { %5032 = vmatprep.mubr.bf16.mxu1 %v8740_v19  ;;  %4674 = vmatprep.subr.bf16.mxu0 %v3598_v52  ;;  %v3615_v19 = vunpack.c.h.s8.bf16 %v2639_v49  ;;  %v2672_v52 = vld [vmem:[%s8274_s4 + $0xf78] sm:$0xff]  ;;  %v3670_v0 = vunpack.c.l.s8.bf16 %v2670_v15  ;;  %v3678_v49 = vunpack.c.h.s8.bf16 %v2670_v15 }
 0x7be   : > { %5002 = vmatprep.subr.bf16.mxu1 %v3600_v54  ;;  %v3663_v54 = vunpack.c.h.s8.bf16 %v2663_v28 }
 0x7bf   : > { %4675 = vmatpush1.bf16.msra.mxu0 %v3597_v41  ;;  %v2669_v41 = vld [vmem:[%s8274_s4 + $0xf60] sm:$0xff] }
 0x7c0   : > { %5003 = vmatpush1.bf16.msra.mxu1 %v3599_v37  ;;  %4676 = vmatprep.subr.bf16.mxu0 %v3606_v42  ;;  %v3672_v37 = vunpack.c.l.s8.bf16 %v2672_v52  ;;  %v2671_v42 = vld [vmem:[%s8274_s4 + $0xf70] sm:$0xff]  ;;  %v3669_v1 = vunpack.c.l.s8.bf16 %v2669_v41 }
 0x7c1   : > { %5004 = vmatprep.subr.bf16.mxu1 %v3608_v48  ;;  %v3671_v48 = vunpack.c.l.s8.bf16 %v2671_v42  ;;  %v3679_v51 = vunpack.c.h.s8.bf16 %v2671_v42 }
 0x7c3   : > { %4677 = vmatpush1.bf16.msra.mxu0 %v3605_v50  ;;  %v3680_v50 = vunpack.c.h.s8.bf16 %v2672_v52 }
 0x7c4   : > { %5005 = vmatpush1.bf16.msra.mxu1 %v3607_v26  ;;  %4678 = vmatprep.subr.bf16.mxu0 %v3614_v5  ;;  %v2678_v26 = vld [vmem:[%s8274_s4 + $0xfa8] sm:$0xff]  ;;  %v2680_v5 = vld [vmem:[%s8274_s4 + $0xfb8] sm:$0xff] }
 0x7c5   : > { %5006 = vmatprep.subr.bf16.mxu1 %v3616_v40  ;;  %v3677_v40 = vunpack.c.h.s8.bf16 %v2669_v41 }
 0x7c7   : > { %4679 = vmatpush1.bf16.msra.mxu0 %v3613_v56  ;;  %v3686_v56 = vunpack.c.l.s8.bf16 %v2678_v26 }
 0x7c8   : > { %5007 = vmatpush1.bf16.msra.mxu1 %v3615_v19  ;;  %4680 = vmatprep.subr.bf16.mxu0 %v3622_v58  ;;  %v2677_v19 = vld [vmem:[%s8274_s4 + $0xfa0] sm:$0xff]  ;;  %v3688_v58 = vunpack.c.l.s8.bf16 %v2680_v5 }
 0x7c9   : > { %5008 = vmatprep.subr.bf16.mxu1 %v3624_v13  ;;  %v5050_v13 = vrot.slane %v9072_v38, %v8360_v9  ;;  %v3685_v18 = vunpack.c.l.s8.bf16 %v2677_v19 }
 0x7cb   : > { %4681 = vmatpush1.bf16.msra.mxu0 %v3621_v3  ;;  %v9081_v3 = vld [vmem:[%s9078_s6] sm:$0xff] }
 0x7cc   : > { %5009 = vmatpush1.bf16.msra.mxu1 %v3623_v8  ;;  %4682 = vmatprep.subr.bf16.mxu0 %v3630_v14  ;;  %v3687_v8 = vunpack.c.l.s8.bf16 %v2679_v60  ;;  %v3694_v14 = vunpack.c.h.s8.bf16 %v2678_v26  ;;  %v5171_v26 = vld [vmem:[%s9091_s22 + $0x30] sm:$0xff] }
 0x7cd   : > { %5010 = vmatprep.subr.bf16.mxu1 %v3632_v59  ;;  %v3696_v59 = vunpack.c.h.s8.bf16 %v2680_v5  ;;  %v5307_v60 = vunpack.c.h.s8.bf16 %v5171_v26 }
 0x7cf   : > { %4683 = vmatpush1.bf16.msra.mxu0 %v3629_v4  ;;  %v5084_v4 = vmul.f32 %v5050_v13, %v8910_v61 }
 0x7d0   : > { %5011 = vmatpush1.bf16.msra.mxu1 %v3631_v43  ;;  %4684 = vmatprep.subr.bf16.mxu0 %v3638_v44  ;;  %v5100_v43 = vrot.slane %v9081_v3, %v8360_v9  ;;  %v3693_v44 = vunpack.c.h.s8.bf16 %v2677_v19  ;;  %v5176_v19 = vld [vmem:[%s9091_s22 + $0x58] sm:$0xff] }
 0x7d1   : > { %5012 = vmatprep.subr.bf16.mxu1 %v3640_v17  ;;  %v3702_v17 = vunpack.c.l.s8.bf16 %v2686_v11 }
 0x7d3   : > { %4685 = vmatpush1.bf16.msra.mxu0 %v3637_v46  ;;  %v3704_v46 = vunpack.c.l.s8.bf16 %v2688_v39 }
 0x7d4   : > { %5013 = vmatpush1.bf16.msra.mxu1 %v3639_v47  ;;  %4686 = vmatprep.subr.bf16.mxu0 %v3646_v35  ;;  %v2687_v47 = vld [vmem:[%s8274_s4 + $0xff0] sm:$0xff]  ;;  %v5134_v35 = vadd.f32 %v5100_v43, %v5084_v4  ;;  %v5316_v4 = vunpack.c.h.s8.bf16 %v5176_v19  ;;  %v5178_v43 = vld [vmem:[%s9091_s22 + $0x68] sm:$0xff]  ;;  %s782_s4 = scalar_lea.vmem [#allocation17], %s6630_s21 }
 0x7d5   : > { %5014 = vmatprep.subr.bf16.mxu1 %v3648_v21  ;;  %v3701_v21 = vunpack.c.l.s8.bf16 %v2685_v16  ;;  %v3703_v61 = vunpack.c.l.s8.bf16 %v2687_v47  ;;  %v5318_v16 = vunpack.c.l.s8.bf16 %v5178_v43 }
 0x7d6   : > { %vm5142_vm7 = vcmp.ge.f32.partialorder %v5134_v35, 0.0 }
 0x7d7   : > { %4687 = vmatpush1.bf16.msra.mxu0 %v3645_v22  ;;  %v5166_v22 = vld [vmem:[%s9091_s22 + $0x8] sm:$0xff] }
 0x7d8   : > { %5015 = vmatpush1.bf16.msra.mxu1 %v3647_v23  ;;  %4688 = vmatprep.subr.bf16.mxu0 %v3654_v55  ;;  %v5168_v23 = vld [vmem:[%s9091_s22 + $0x18] sm:$0xff]  ;;  %v5150_v55 = vmul.f32 0.2, %v5134_v35  ;;  %v5294_v28 = vunpack.c.l.s8.bf16 %v5166_v22 }
 0x7d9   : > { %5016 = vmatprep.subr.bf16.mxu1 %v3656_v25  ;;  %v3711_v25 = vunpack.c.h.s8.bf16 %v2687_v47  ;;  %v5300_v41 = vunpack.c.h.s8.bf16 %v5168_v23 }
 0x7da   : > { %v5158_v15 = vsel %vm5142_vm7, %v5134_v35, %v5150_v55  ;;  %v5179_v35 = vld [vmem:[%s9091_s22 + $0x70] sm:$0xff] }
 0x7db   : > { %4689 = vmatpush1.bf16.msra.mxu0 %v3653_v34  ;;  %v5165_v34 = vld [vmem:[%s9091_s22] sm:$0xff] }
 0x7dc   : > { %5017 = vmatpush1.bf16.msra.mxu1 %v3655_v20  ;;  %4690 = vmatprep.subr.bf16.mxu0 %v3662_v12  ;;  %v5296_v20 = vunpack.c.l.s8.bf16 %v5168_v23  ;;  %v5167_v12 = vld [vmem:[%s9091_s22 + $0x10] sm:$0xff]  ;;  %v5297_v42 = vunpack.c.h.s8.bf16 %v5165_v34  ;;  %v5184_v23 = vld [vmem:[%s9091_s22 + $0x98] sm:$0xff] }
 0x7dd   : > { %5018 = vmatprep.subr.bf16.mxu1 %v3664_v27  ;;  %v5293_v27 = vunpack.c.l.s8.bf16 %v5165_v34  ;;  %v5295_v52 = vunpack.c.l.s8.bf16 %v5167_v12  ;;  %v5328_v34 = vunpack.c.l.s8.bf16 %v5184_v23 }
 0x7df   : > { %4691 = vmatpush1.bf16.msra.mxu0 %v3661_v62  ;;  %v5298_v62 = vunpack.c.h.s8.bf16 %v5166_v22  ;;  %v5182_v22 = vld [vmem:[%s9091_s22 + $0x88] sm:$0xff] }
 0x7e0   : > { %5019 = vmatpush1.bf16.msra.mxu1 %v3663_v54  ;;  %4692 = vmatprep.subr.bf16.mxu0 %v3670_v0  ;;  %v5170_v54 = vld [vmem:[%s9091_s22 + $0x28] sm:$0xff]  ;;  %v5550_v0 = vpack.c.bf16 %v5158_v15, %v5158_v15  ;;  %v5330_v15 = vunpack.c.h.s8.bf16 %v5182_v22 }
 0x7e1   : > { %5020 = vmatprep.subr.bf16.mxu1 %v3672_v37  ;;  %v5172_v37 = vld [vmem:[%s9091_s22 + $0x38] sm:$0xff] }
 0x7e3   : > { %4693 = vmatpush1.bf16.msra.mxu0 %v3669_v1  ;;  %v5299_v1 = vunpack.c.h.s8.bf16 %v5167_v12 }
 0x7e4   : > { %5021 = vmatpush1.bf16.msra.mxu1 %v3671_v48  ;;  %4694 = vmatprep.subr.bf16.mxu0 %v3678_v49  ;;  %v5302_v48 = vunpack.c.l.s8.bf16 %v5170_v54  ;;  %v5169_v49 = vld [vmem:[%s9091_s22 + $0x20] sm:$0xff] }
 0x7e5   : > { %5022 = vmatprep.subr.bf16.mxu1 %v3680_v50  ;;  %v5304_v50 = vunpack.c.l.s8.bf16 %v5172_v37  ;;  %v5301_v5 = vunpack.c.l.s8.bf16 %v5169_v49 }
 0x7e7   : > { %4695 = vmatpush1.bf16.msra.mxu0 %v3677_v40  ;;  %v5306_v40 = vunpack.c.h.s8.bf16 %v5170_v54  ;;  %v5188_v54 = vld [vmem:[%s9091_s22 + $0xb8] sm:$0xff] }
 0x7e8   : > { %5023 = vmatpush1.bf16.msra.mxu1 %v3679_v51  ;;  %4696 = vmatprep.subr.bf16.mxu0 %v3686_v56  ;;  %v5308_v51 = vunpack.c.h.s8.bf16 %v5172_v37  ;;  %v5174_v56 = vld [vmem:[%s9091_s22 + $0x48] sm:$0xff] }
 0x7e9   : > { %5024 = vmatprep.subr.bf16.mxu1 %v3688_v58  ;;  %v5305_v58 = vunpack.c.h.s8.bf16 %v5169_v49  ;;  %v5310_v13 = vunpack.c.l.s8.bf16 %v5174_v56  ;;  %v5314_v39 = vunpack.c.h.s8.bf16 %v5174_v56 }
 0x7eb   : > { %4697 = vmatpush1.bf16.msra.mxu0 %v3685_v18  ;;  %v5173_v18 = vld [vmem:[%s9091_s22 + $0x40] sm:$0xff] }
 0x7ec   : > { %5025 = vmatpush1.bf16.msra.mxu1 %v3687_v8  ;;  %4698 = vmatprep.subr.bf16.mxu0 %v3694_v14  ;;  %v5312_v8 = vunpack.c.l.s8.bf16 %v5176_v19  ;;  %v5175_v14 = vld [vmem:[%s9091_s22 + $0x50] sm:$0xff] }
 0x7ed   : > { %5026 = vmatprep.subr.bf16.mxu1 %v3696_v59  ;;  %v5309_v59 = vunpack.c.l.s8.bf16 %v5173_v18  ;;  %v5311_v11 = vunpack.c.l.s8.bf16 %v5175_v14 }
 0x7ef   : > { %4699 = vmatpush1.bf16.msra.mxu0 %v3693_v44  ;;  %v5180_v44 = vld [vmem:[%s9091_s22 + $0x78] sm:$0xff] }
 0x7f0   : > { %5027 = vmatpush1.bf16.msra.mxu1 %v3695_v45  ;;  %4700 = vmatprep.subr.bf16.mxu0 %v3702_v17  ;;  %v5313_v45 = vunpack.c.h.s8.bf16 %v5173_v18  ;;  %v5315_v17 = vunpack.c.h.s8.bf16 %v5175_v14  ;;  %v5320_v47 = vunpack.c.l.s8.bf16 %v5180_v44  ;;  %v5191_v18 = vld [vmem:[%s9091_s22 + $0xd0] sm:$0xff] }
 0x7f1   : > { %5028 = vmatprep.subr.bf16.mxu1 %v3704_v46  ;;  %v5177_v46 = vld [vmem:[%s9091_s22 + $0x60] sm:$0xff] }
 0x7f2   : > { %v5321_v55 = vunpack.c.h.s8.bf16 %v5177_v46 }
 0x7f3   : > { %4701 = vmatpush1.bf16.msra.mxu0 %v3701_v21  ;;  %v5317_v21 = vunpack.c.l.s8.bf16 %v5177_v46 }
 0x7f4   : > { %5029 = vmatpush1.bf16.msra.mxu1 %v3703_v61  ;;  %4702 = vmatprep.subr.bf16.mxu0 %v3710_v32  ;;  %v5319_v61 = vunpack.c.l.s8.bf16 %v5179_v35  ;;  %v5322_v32 = vunpack.c.h.s8.bf16 %v5178_v43 }
 0x7f5   : > { %5030 = vmatprep.subr.bf16.mxu1 %v3712_v33  ;;  %v5324_v33 = vunpack.c.h.s8.bf16 %v5180_v44  ;;  %v5194_v44 = vld [vmem:[%s9091_s22 + $0xe8] sm:$0xff] }
 0x7f7   : > { %4703 = vmatpush1.bf16.msra.mxu0 %v3709_v63  ;;  %v5323_v63 = vunpack.c.h.s8.bf16 %v5179_v35  ;;  %v5350_v35 = vunpack.c.l.s8.bf16 %v5194_v44 }
 0x7f8   : > { %5031 = vmatpush1.bf16.msra.mxu1 %v3711_v25  ;;  %5557 = vmatprep.subr.bf16.mxu0 %v5294_v28  ;;  %v5326_v25 = vunpack.c.l.s8.bf16 %v5182_v22  ;;  %v5181_v28 = vld [vmem:[%s9091_s22 + $0x80] sm:$0xff] }
 0x7f9   : > { %5721 = vmatprep.subr.bf16.mxu1 %v5296_v20  ;;  %v5183_v20 = vld [vmem:[%s9091_s22 + $0x90] sm:$0xff]  ;;  %v5325_v12 = vunpack.c.l.s8.bf16 %v5181_v28 }
 0x7fa   : > { %4705 = vmatmul.mubr.bf16.vlgmr.msra.gmra.mrb[40].mxu0 %v8780_v29 }
 0x7fb   : > { %5033 = vmatmul.mubr.bf16.vlgmr.msra.gmra.mrb[40].mxu1 %v8780_v29  ;;  %5558 = vmatpush1.bf16.msra.mxu0 %v5293_v27  ;;  %v5303_v29 = vunpack.c.l.s8.bf16 %v5171_v26  ;;  %v5327_v27 = vunpack.c.l.s8.bf16 %v5183_v20 }
 0x7fc   : > { %5589 = vmatprep.mubr.bf16.mxu0 %v5550_v0  ;;  %5722 = vmatpush1.bf16.msra.mxu1 %v5295_v52  ;;  %v5332_v52 = vunpack.c.h.s8.bf16 %v5184_v23  ;;  %v5354_v23 = vunpack.c.h.s8.bf16 %v5194_v44  ;;  %v5207_v44 = vld [vmem:[%s9091_s22 + $0x150] sm:$0xff] }
 0x7fd   : > { %5753 = vmatprep.mubr.bf16.mxu1 %v5550_v0  ;;  %5559 = vmatprep.subr.bf16.mxu0 %v5298_v62  ;;  %v5186_v62 = vld [vmem:[%s9091_s22 + $0xa8] sm:$0xff]  ;;  %v5329_v0 = vunpack.c.h.s8.bf16 %v5181_v28  ;;  %v5200_v28 = vld [vmem:[%s9091_s22 + $0x118] sm:$0xff] }
 0x7fe   : > { %5723 = vmatprep.subr.bf16.mxu1 %v5300_v41  ;;  %v5331_v41 = vunpack.c.h.s8.bf16 %v5183_v20  ;;  %v5334_v37 = vunpack.c.l.s8.bf16 %v5186_v62  ;;  %v5338_v26 = vunpack.c.h.s8.bf16 %v5186_v62  ;;  %v5360_v62 = vunpack.c.l.s8.bf16 %v5200_v28 }
 0x7ff   : > { %5560 = vmatpush1.bf16.msra.mxu0 %v5297_v42  ;;  %v5185_v42 = vld [vmem:[%s9091_s22 + $0xa0] sm:$0xff] }
 0x800   : > { %5724 = vmatpush1.bf16.msra.mxu1 %v5299_v1  ;;  %5561 = vmatprep.subr.bf16.mxu0 %v5302_v48  ;;  %v5336_v1 = vunpack.c.l.s8.bf16 %v5188_v54  ;;  %v5187_v48 = vld [vmem:[%s9091_s22 + $0xb0] sm:$0xff]  ;;  %v5333_v49 = vunpack.c.l.s8.bf16 %v5185_v42 }
 0x801   : > { %5725 = vmatprep.subr.bf16.mxu1 %v5304_v50  ;;  %v5335_v50 = vunpack.c.l.s8.bf16 %v5187_v48  ;;  %v5339_v56 = vunpack.c.h.s8.bf16 %v5187_v48  ;;  %v5202_v48 = vld [vmem:[%s9091_s22 + $0x128] sm:$0xff] }
 0x803   : > { %5562 = vmatpush1.bf16.msra.mxu0 %v5301_v5  ;;  %v5340_v5 = vunpack.c.h.s8.bf16 %v5188_v54  ;;  %v5199_v54 = vld [vmem:[%s9091_s22 + $0x110] sm:$0xff] }
 0x804   : > { %5726 = vmatpush1.bf16.msra.mxu1 %v5303_v29  ;;  %5563 = vmatprep.subr.bf16.mxu0 %v5306_v40  ;;  %v5190_v29 = vld [vmem:[%s9091_s22 + $0xc8] sm:$0xff]  ;;  %v5192_v40 = vld [vmem:[%s9091_s22 + $0xd8] sm:$0xff] }
 0x805   : > { %5727 = vmatprep.subr.bf16.mxu1 %v5308_v51  ;;  %v5337_v51 = vunpack.c.h.s8.bf16 %v5185_v42  ;;  %v5342_v19 = vunpack.c.l.s8.bf16 %v5190_v29  ;;  %v5348_v43 = vunpack.c.h.s8.bf16 %v5192_v40  ;;  %v5359_v42 = vunpack.c.l.s8.bf16 %v5199_v54 }
 0x807   : > { %5564 = vmatpush1.bf16.msra.mxu0 %v5305_v58  ;;  %v5189_v58 = vld [vmem:[%s9091_s22 + $0xc0] sm:$0xff] }
 0x808   : > { %5728 = vmatpush1.bf16.msra.mxu1 %v5307_v60  ;;  %5565 = vmatprep.subr.bf16.mxu0 %v5310_v13  ;;  %v5046_v60 = vrot.slane %v9072_v38, %v8351_v6  ;;  %v5344_v13 = vunpack.c.l.s8.bf16 %v5192_v40  ;;  %v5341_v14 = vunpack.c.l.s8.bf16 %v5189_v58  ;;  %v5345_v46 = vunpack.c.h.s8.bf16 %v5189_v58 }
 0x809   : > { %5729 = vmatprep.subr.bf16.mxu1 %v5312_v8  ;;  %v5058_v8 = vrot.slane %v9072_v38, %v8362_v10  ;;  %v5366_v40 = vunpack.c.l.s8.bf16 %v5202_v48 }
 0x80b   : > { %5566 = vmatpush1.bf16.msra.mxu0 %v5309_v59  ;;  %v5343_v59 = vunpack.c.l.s8.bf16 %v5191_v18 }
 0x80c   : > { %5730 = vmatpush1.bf16.msra.mxu1 %v5311_v11  ;;  %5567 = vmatprep.subr.bf16.mxu0 %v5314_v39  ;;  %v5346_v11 = vunpack.c.h.s8.bf16 %v5190_v29  ;;  %v5083_v39 = vmul.f32 %v5046_v60, %v8905_v57  ;;  %v5193_v57 = vld [vmem:[%s9091_s22 + $0xe0] sm:$0xff]  ;;  %v5363_v29 = vunpack.c.h.s8.bf16 %v5199_v54 }
 0x80d   : > { %5731 = vmatprep.subr.bf16.mxu1 %v5316_v4  ;;  %v5096_v4 = vrot.slane %v9081_v3, %v8351_v6  ;;  %v5349_v22 = vunpack.c.l.s8.bf16 %v5193_v57  ;;  %v5353_v20 = vunpack.c.h.s8.bf16 %v5193_v57 }
 0x80f   : > { %5568 = vmatpush1.bf16.msra.mxu0 %v5313_v45  ;;  %v5196_v45 = vld [vmem:[%s9091_s22 + $0xf8] sm:$0xff] }
 0x810   : > { %5732 = vmatpush1.bf16.msra.mxu1 %v5315_v17  ;;  %5569 = vmatprep.subr.bf16.mxu0 %v5318_v16  ;;  %v5086_v17 = vmul.f32 %v5058_v8, %v8912_v2  ;;  %v5108_v16 = vrot.slane %v9081_v3, %v8362_v10  ;;  %v5206_v8 = vld [vmem:[%s9091_s22 + $0x148] sm:$0xff] }
 0x811   : > { %5733 = vmatprep.subr.bf16.mxu1 %v5320_v47  ;;  %v5347_v47 = vunpack.c.h.s8.bf16 %v5191_v18 }
 0x813   : > { %5570 = vmatpush1.bf16.msra.mxu0 %v5317_v21  ;;  %v5133_v21 = vadd.f32 %v5096_v4, %v5083_v39  ;;  %v5374_v39 = vunpack.c.l.s8.bf16 %v5206_v8  ;;  %v5205_v4 = vld [vmem:[%s9091_s22 + $0x140] sm:$0xff] }
 0x814   : > { %5734 = vmatpush1.bf16.msra.mxu1 %v5319_v61  ;;  %5571 = vmatprep.subr.bf16.mxu0 %v5322_v32  ;;  %v5352_v61 = vunpack.c.l.s8.bf16 %v5196_v45  ;;  %v5195_v32 = vld [vmem:[%s9091_s22 + $0xf0] sm:$0xff]  ;;  %v5377_v57 = vunpack.c.h.s8.bf16 %v5205_v4 }
 0x815   : > { %5735 = vmatprep.subr.bf16.mxu1 %v5324_v33  ;;  %v5136_v33 = vadd.f32 %v5108_v16, %v5086_v17  ;;  %v5351_v2 = vunpack.c.l.s8.bf16 %v5195_v32  ;;  %vm5141_vm8 = vcmp.ge.f32.partialorder %v5133_v21, 0.0  ;;  %v5375_v17 = vunpack.c.l.s8.bf16 %v5207_v44 }
 0x816   : > { %v5378_v16 = vunpack.c.h.s8.bf16 %v5206_v8  ;;  %v5221_v8 = vld [vmem:[%s9091_s22 + $0x1c0] sm:$0xff] }
 0x817   : > { %5572 = vmatpush1.bf16.msra.mxu0 %v5321_v55  ;;  %v5149_v55 = vmul.f32 0.2, %v5133_v21  ;;  %vm5144_vm9 = vcmp.ge.f32.partialorder %v5136_v33, 0.0 }
 0x818   : > { %5736 = vmatpush1.bf16.msra.mxu1 %v5323_v63  ;;  %5573 = vmatprep.subr.bf16.mxu0 %v5326_v25  ;;  %v5356_v63 = vunpack.c.h.s8.bf16 %v5196_v45  ;;  %v5198_v25 = vld [vmem:[%s9091_s22 + $0x108] sm:$0xff]  ;;  %v5373_v45 = vunpack.c.l.s8.bf16 %v5205_v4 }
 0x819   : > { %5737 = vmatprep.subr.bf16.mxu1 %v5328_v34  ;;  %v5152_v34 = vmul.f32 0.2, %v5136_v33 }
 0x81b   : > { %5574 = vmatpush1.bf16.msra.mxu0 %v5325_v12  ;;  %v5355_v12 = vunpack.c.h.s8.bf16 %v5195_v32  ;;  %v5209_v32 = vld [vmem:[%s9091_s22 + $0x160] sm:$0xff] }
 0x81c   : > { %5738 = vmatpush1.bf16.msra.mxu1 %v5327_v27  ;;  %5575 = vmatprep.subr.bf16.mxu0 %v5330_v15  ;;  %v5358_v27 = vunpack.c.l.s8.bf16 %v5198_v25  ;;  %v5197_v15 = vld [vmem:[%s9091_s22 + $0x100] sm:$0xff] }
 0x81d   : > { %5739 = vmatprep.subr.bf16.mxu1 %v5332_v52  ;;  %v5157_v52 = vsel %vm5141_vm8, %v5133_v21, %v5149_v55  ;;  %v5379_v21 = vunpack.c.h.s8.bf16 %v5207_v44 }
 0x81f   : > { %5576 = vmatpush1.bf16.msra.mxu0 %v5329_v0  ;;  %v5357_v0 = vunpack.c.l.s8.bf16 %v5197_v15 }
 0x820   : > { %5740 = vmatpush1.bf16.msra.mxu1 %v5331_v41  ;;  %5577 = vmatprep.subr.bf16.mxu0 %v5334_v37  ;;  %v5160_v41 = vsel %vm5144_vm9, %v5136_v33, %v5152_v34  ;;  %v5549_v37 = vpack.c.bf16 %v5157_v52, %v5157_v52  ;;  %v5385_v34 = vunpack.c.h.s8.bf16 %v5209_v32  ;;  %v5215_v52 = vld [vmem:[%s9091_s22 + $0x190] sm:$0xff] }
 0x821   : > { %5741 = vmatprep.subr.bf16.mxu1 %v5336_v1  ;;  %v5362_v1 = vunpack.c.h.s8.bf16 %v5198_v25  ;;  %v5214_v25 = vld [vmem:[%s9091_s22 + $0x188] sm:$0xff]  ;;  %v5391_v54 = vunpack.c.l.s8.bf16 %v5215_v52 }
 0x823   : > { %5578 = vmatpush1.bf16.msra.mxu0 %v5333_v49  ;;  %v5552_v49 = vpack.c.bf16 %v5160_v41, %v5160_v41 }
 0x824   : > { %5742 = vmatpush1.bf16.msra.mxu1 %v5335_v50  ;;  %5579 = vmatprep.subr.bf16.mxu0 %v5338_v26  ;;  %v5364_v50 = vunpack.c.h.s8.bf16 %v5200_v28  ;;  %v5204_v26 = vld [vmem:[%s9091_s22 + $0x138] sm:$0xff] }
 0x825   : > { %5743 = vmatprep.subr.bf16.mxu1 %v5340_v5  ;;  %v5361_v5 = vunpack.c.h.s8.bf16 %v5197_v15  ;;  %v5372_v18 = vunpack.c.h.s8.bf16 %v5204_v26  ;;  %v5216_v28 = vld [vmem:[%s9091_s22 + $0x198] sm:$0xff] }
 0x826   : > { %v5392_v15 = vunpack.c.l.s8.bf16 %v5216_v28  ;;  %v5396_v41 = vunpack.c.h.s8.bf16 %v5216_v28 }
 0x827   : > { %5580 = vmatpush1.bf16.msra.mxu0 %v5337_v51  ;;  %v5201_v51 = vld [vmem:[%s9091_s22 + $0x120] sm:$0xff] }
 0x828   : > { %5744 = vmatpush1.bf16.msra.mxu1 %v5339_v56  ;;  %5581 = vmatprep.subr.bf16.mxu0 %v5342_v19  ;;  %v5368_v56 = vunpack.c.l.s8.bf16 %v5204_v26  ;;  %v5203_v19 = vld [vmem:[%s9091_s22 + $0x130] sm:$0xff]  ;;  %v5365_v58 = vunpack.c.l.s8.bf16 %v5201_v51 }
 0x829   : > { %5745 = vmatprep.subr.bf16.mxu1 %v5344_v13  ;;  %v5367_v60 = vunpack.c.l.s8.bf16 %v5203_v19  ;;  %v5370_v13 = vunpack.c.h.s8.bf16 %v5202_v48  ;;  %v5395_v48 = vunpack.c.h.s8.bf16 %v5215_v52 }
 0x82b   : > { %5582 = vmatpush1.bf16.msra.mxu0 %v5341_v14  ;;  %v5208_v14 = vld [vmem:[%s9091_s22 + $0x158] sm:$0xff] }
 0x82c   : > { %5746 = vmatpush1.bf16.msra.mxu1 %v5343_v59  ;;  %5583 = vmatprep.subr.bf16.mxu0 %v5346_v11  ;;  %v5369_v59 = vunpack.c.h.s8.bf16 %v5201_v51  ;;  %v5371_v11 = vunpack.c.h.s8.bf16 %v5203_v19  ;;  %v5222_v19 = vld [vmem:[%s9091_s22 + $0x1c8] sm:$0xff] }
 0x82d   : > { %5747 = vmatprep.subr.bf16.mxu1 %v5348_v43  ;;  %v5376_v43 = vunpack.c.l.s8.bf16 %v5208_v14 }
 0x82f   : > { %5584 = vmatpush1.bf16.msra.mxu0 %v5345_v46  ;;  %v5380_v46 = vunpack.c.h.s8.bf16 %v5208_v14  ;;  %v5054_v14 = vrot.slane %v9072_v38, %v8353_v7  ;;  %v5228_v38 = vld [vmem:[%s9091_s22 + $0x1f8] sm:$0xff] }
 0x830   : > { %5748 = vmatpush1.bf16.msra.mxu1 %v5347_v47  ;;  %5585 = vmatprep.subr.bf16.mxu0 %v5350_v35  ;;  %v5210_v47 = vld [vmem:[%s9091_s22 + $0x168] sm:$0xff]  ;;  %v5212_v35 = vld [vmem:[%s9091_s22 + $0x178] sm:$0xff] }
 0x831   : > { %5749 = vmatprep.subr.bf16.mxu1 %v5352_v61  ;;  %v5382_v61 = vunpack.c.l.s8.bf16 %v5210_v47  ;;  %v5384_v33 = vunpack.c.l.s8.bf16 %v5212_v35  ;;  %v5386_v55 = vunpack.c.h.s8.bf16 %v5210_v47  ;;  %v5085_v44 = vmul.f32 %v5054_v14, %v8908_v53  ;;  %v5239_v14 = vld [vmem:[%s9091_s22 + $0x250] sm:$0xff] }
 0x832   : > { %v5416_v53 = vunpack.c.l.s8.bf16 %v5228_v38 }
 0x833   : > { %5586 = vmatpush1.bf16.msra.mxu0 %v5349_v22  ;;  %v5211_v22 = vld [vmem:[%s9091_s22 + $0x170] sm:$0xff] }
 0x834   : > { %5750 = vmatpush1.bf16.msra.mxu1 %v5351_v2  ;;  %5587 = vmatprep.subr.bf16.mxu0 %v5354_v23  ;;  %v5381_v2 = vunpack.c.l.s8.bf16 %v5209_v32  ;;  %v5383_v23 = vunpack.c.l.s8.bf16 %v5211_v22 }
 0x835   : > { %5751 = vmatprep.subr.bf16.mxu1 %v5356_v63  ;;  %v5388_v63 = vunpack.c.h.s8.bf16 %v5212_v35 }
 0x837   : > { %5588 = vmatpush1.bf16.msra.mxu0 %v5353_v20  ;;  %v5387_v20 = vunpack.c.h.s8.bf16 %v5211_v22 }
 0x838   : > { %5752 = vmatpush1.bf16.msra.mxu1 %v5355_v12  ;;  %5598 = vmatprep.subr.bf16.mxu0 %v5358_v27  ;;  %v5390_v12 = vunpack.c.l.s8.bf16 %v5214_v25  ;;  %v5213_v27 = vld [vmem:[%s9091_s22 + $0x180] sm:$0xff] }
 0x839   : > { %5762 = vmatprep.subr.bf16.mxu1 %v5360_v62  ;;  %v5389_v62 = vunpack.c.l.s8.bf16 %v5213_v27 }
 0x83a   : > { %5590 = vmatmul.mubr.bf16.vlgmr.msra.gmra.mrb[44].mxu0 %v5549_v37 }
 0x83b   : > { %5754 = vmatmul.mubr.bf16.vlgmr.msra.gmra.mrb[44].mxu1 %v5549_v37  ;;  %5599 = vmatpush1.bf16.msra.mxu0 %v5357_v0  ;;  %v5394_v0 = vunpack.c.h.s8.bf16 %v5214_v25  ;;  %v5218_v37 = vld [vmem:[%s9091_s22 + $0x1a8] sm:$0xff] }
 0x83c   : > { %5630 = vmatprep.mubr.bf16.mxu0 %v5552_v49  ;;  %5763 = vmatpush1.bf16.msra.mxu1 %v5359_v42  ;;  %v5220_v42 = vld [vmem:[%s9091_s22 + $0x1b8] sm:$0xff]  ;;  %v5402_v51 = vunpack.c.h.s8.bf16 %v5218_v37 }
 0x83d   : > { %5794 = vmatprep.mubr.bf16.mxu1 %v5552_v49  ;;  %5600 = vmatprep.subr.bf16.mxu0 %v5362_v1  ;;  %v5393_v1 = vunpack.c.h.s8.bf16 %v5213_v27  ;;  %v5398_v49 = vunpack.c.l.s8.bf16 %v5218_v37  ;;  %v5400_v26 = vunpack.c.l.s8.bf16 %v5220_v42  ;;  %v5231_v27 = vld [vmem:[%s9091_s22 + $0x210] sm:$0xff]  ;;  %v5236_v37 = vld [vmem:[%s9091_s22 + $0x238] sm:$0xff] }
 0x83e   : > { %5764 = vmatprep.subr.bf16.mxu1 %v5364_v50  ;;  %v5217_v50 = vld [vmem:[%s9091_s22 + $0x1a0] sm:$0xff] }
 0x83f   : > { %5601 = vmatpush1.bf16.msra.mxu0 %v5361_v5  ;;  %v5219_v5 = vld [vmem:[%s9091_s22 + $0x1b0] sm:$0xff] }
 0x840   : > { %5765 = vmatpush1.bf16.msra.mxu1 %v5363_v29  ;;  %5602 = vmatprep.subr.bf16.mxu0 %v5366_v40  ;;  %v5397_v29 = vunpack.c.l.s8.bf16 %v5217_v50  ;;  %v5399_v40 = vunpack.c.l.s8.bf16 %v5219_v5 }
 0x841   : > { %5766 = vmatprep.subr.bf16.mxu1 %v5368_v56  ;;  %v5404_v56 = vunpack.c.h.s8.bf16 %v5220_v42 }
 0x843   : > { %5603 = vmatpush1.bf16.msra.mxu0 %v5365_v58  ;;  %v5224_v58 = vld [vmem:[%s9091_s22 + $0x1d8] sm:$0xff] }
 0x844   : > { %5767 = vmatpush1.bf16.msra.mxu1 %v5367_v60  ;;  %5604 = vmatprep.subr.bf16.mxu0 %v5370_v13  ;;  %v5401_v60 = vunpack.c.h.s8.bf16 %v5217_v50  ;;  %v5403_v13 = vunpack.c.h.s8.bf16 %v5219_v5  ;;  %v5432_v50 = vunpack.c.l.s8.bf16 %v5236_v37 }
 0x845   : > { %5768 = vmatprep.subr.bf16.mxu1 %v5372_v18  ;;  %v5406_v18 = vunpack.c.l.s8.bf16 %v5222_v19 }
 0x847   : > { %5605 = vmatpush1.bf16.msra.mxu0 %v5369_v59  ;;  %v5408_v59 = vunpack.c.l.s8.bf16 %v5224_v58 }
 0x848   : > { %5769 = vmatpush1.bf16.msra.mxu1 %v5371_v11  ;;  %5606 = vmatprep.subr.bf16.mxu0 %v5374_v39  ;;  %v5223_v11 = vld [vmem:[%s9091_s22 + $0x1d0] sm:$0xff]  ;;  %v5405_v39 = vunpack.c.l.s8.bf16 %v5221_v8 }
 0x849   : > { %5770 = vmatprep.subr.bf16.mxu1 %v5376_v43  ;;  %v5407_v4 = vunpack.c.l.s8.bf16 %v5223_v11  ;;  %v5410_v43 = vunpack.c.h.s8.bf16 %v5222_v19  ;;  %v5411_v47 = vunpack.c.h.s8.bf16 %v5223_v11  ;;  %v5240_v19 = vld [vmem:[%s9091_s22 + $0x258] sm:$0xff]  ;;  %v5439_v11 = vunpack.c.l.s8.bf16 %v5239_v14 }
 0x84b   : > { %5607 = vmatpush1.bf16.msra.mxu0 %v5373_v45  ;;  %v5104_v45 = vrot.slane %v9081_v3, %v8353_v7 }
 0x84c   : > { %5771 = vmatpush1.bf16.msra.mxu1 %v5375_v17  ;;  %5608 = vmatprep.subr.bf16.mxu0 %v5378_v16  ;;  %v5412_v17 = vunpack.c.h.s8.bf16 %v5224_v58  ;;  %v5226_v16 = vld [vmem:[%s9091_s22 + $0x1e8] sm:$0xff] }
 0x84d   : > { %5772 = vmatprep.subr.bf16.mxu1 %v5380_v46  ;;  %v5409_v46 = vunpack.c.h.s8.bf16 %v5221_v8  ;;  %v5414_v35 = vunpack.c.l.s8.bf16 %v5226_v16  ;;  %v5440_v8 = vunpack.c.l.s8.bf16 %v5240_v19 }
 0x84f   : > { %5609 = vmatpush1.bf16.msra.mxu0 %v5377_v57  ;;  %v5225_v57 = vld [vmem:[%s9091_s22 + $0x1e0] sm:$0xff] }
 0x850   : > { %5773 = vmatpush1.bf16.msra.mxu1 %v5379_v21  ;;  %5610 = vmatprep.subr.bf16.mxu0 %v5382_v61  ;;  %v5135_v21 = vadd.f32 %v5104_v45, %v5085_v44  ;;  %v5227_v61 = vld [vmem:[%s9091_s22 + $0x1f0] sm:$0xff]  ;;  %v5413_v32 = vunpack.c.l.s8.bf16 %v5225_v57  ;;  %v5244_v44 = vld [vmem:[%s9091_s22 + $0x278] sm:$0xff] }
 0x851   : > { %5774 = vmatprep.subr.bf16.mxu1 %v5384_v33  ;;  %v5415_v3 = vunpack.c.l.s8.bf16 %v5227_v61  ;;  %v5418_v33 = vunpack.c.h.s8.bf16 %v5226_v16  ;;  %v5419_v25 = vunpack.c.h.s8.bf16 %v5227_v61  ;;  %v5246_v61 = vld [vmem:[%s9091_s22 + $0x288] sm:$0xff] }
 0x852   : > { %v5151_v22 = vmul.f32 0.2, %v5135_v21  ;;  %vm5143_vm10 = vcmp.ge.f32.partialorder %v5135_v21, 0.0 }
 0x853   : > { %5611 = vmatpush1.bf16.msra.mxu0 %v5381_v2  ;;  %v5420_v2 = vunpack.c.h.s8.bf16 %v5228_v38  ;;  %v5241_v38 = vld [vmem:[%s9091_s22 + $0x260] sm:$0xff] }
 0x854   : > { %5775 = vmatpush1.bf16.msra.mxu1 %v5383_v23  ;;  %5612 = vmatprep.subr.bf16.mxu0 %v5386_v55  ;;  %v5230_v23 = vld [vmem:[%s9091_s22 + $0x208] sm:$0xff]  ;;  %v5232_v55 = vld [vmem:[%s9091_s22 + $0x218] sm:$0xff] }
 0x855   : > { %5776 = vmatprep.subr.bf16.mxu1 %v5388_v63  ;;  %v5417_v63 = vunpack.c.h.s8.bf16 %v5225_v57  ;;  %v5422_v28 = vunpack.c.l.s8.bf16 %v5230_v23 }
 0x857   : > { %5613 = vmatpush1.bf16.msra.mxu0 %v5385_v34  ;;  %v5229_v34 = vld [vmem:[%s9091_s22 + $0x200] sm:$0xff] }
 0x858   : > { %5777 = vmatpush1.bf16.msra.mxu1 %v5387_v20  ;;  %5614 = vmatprep.subr.bf16.mxu0 %v5390_v12  ;;  %v5159_v20 = vsel %vm5143_vm10, %v5135_v21, %v5151_v22  ;;  %v5424_v12 = vunpack.c.l.s8.bf16 %v5232_v55  ;;  %v5425_v42 = vunpack.c.h.s8.bf16 %v5229_v34  ;;  %v5454_v22 = vunpack.c.l.s8.bf16 %v5246_v61 }
 0x859   : > { %5778 = vmatprep.subr.bf16.mxu1 %v5392_v15  ;;  %v5421_v15 = vunpack.c.l.s8.bf16 %v5229_v34  ;;  %v5551_v52 = vpack.c.bf16 %v5159_v20, %v5159_v20  ;;  %v5250_v20 = vld [vmem:[%s9091_s22 + $0x2a8] sm:$0xff] }
 0x85b   : > { %5615 = vmatpush1.bf16.msra.mxu0 %v5389_v62  ;;  %v5423_v62 = vunpack.c.l.s8.bf16 %v5231_v27 }
 0x85c   : > { %5779 = vmatpush1.bf16.msra.mxu1 %v5391_v54  ;;  %5616 = vmatprep.subr.bf16.mxu0 %v5394_v0  ;;  %v5426_v54 = vunpack.c.h.s8.bf16 %v5230_v23  ;;  %v5428_v0 = vunpack.c.h.s8.bf16 %v5232_v55  ;;  %v5247_v55 = vld [vmem:[%s9091_s22 + $0x290] sm:$0xff] }
 0x85d   : > { %5780 = vmatprep.subr.bf16.mxu1 %v5396_v41  ;;  %v5234_v41 = vld [vmem:[%s9091_s22 + $0x228] sm:$0xff] }
 0x85f   : > { %5617 = vmatpush1.bf16.msra.mxu0 %v5393_v1  ;;  %v5427_v1 = vunpack.c.h.s8.bf16 %v5231_v27 }
 0x860   : > { %5781 = vmatpush1.bf16.msra.mxu1 %v5395_v48  ;;  %5618 = vmatprep.subr.bf16.mxu0 %v5398_v49  ;;  %v5430_v48 = vunpack.c.l.s8.bf16 %v5234_v41  ;;  %v5233_v49 = vld [vmem:[%s9091_s22 + $0x220] sm:$0xff] }
 0x861   : > { %5782 = vmatprep.subr.bf16.mxu1 %v5400_v26  ;;  %v5235_v26 = vld [vmem:[%s9091_s22 + $0x230] sm:$0xff]  ;;  %v5429_v5 = vunpack.c.l.s8.bf16 %v5233_v49  ;;  %v5433_v58 = vunpack.c.h.s8.bf16 %v5233_v49  ;;  %v5256_v49 = vld [vmem:[%s9091_s22 + $0x2d8] sm:$0xff] }
 0x863   : > { %5619 = vmatpush1.bf16.msra.mxu0 %v5397_v29  ;;  %v5431_v29 = vunpack.c.l.s8.bf16 %v5235_v26 }
 0x864   : > { %5783 = vmatpush1.bf16.msra.mxu1 %v5399_v40  ;;  %5620 = vmatprep.subr.bf16.mxu0 %v5402_v51  ;;  %v5434_v40 = vunpack.c.h.s8.bf16 %v5234_v41  ;;  %v5436_v51 = vunpack.c.h.s8.bf16 %v5236_v37 }
 0x865   : > { %5784 = vmatprep.subr.bf16.mxu1 %v5404_v56  ;;  %v5238_v56 = vld [vmem:[%s9091_s22 + $0x248] sm:$0xff] }
 0x867   : > { %5621 = vmatpush1.bf16.msra.mxu0 %v5401_v60  ;;  %v5435_v60 = vunpack.c.h.s8.bf16 %v5235_v26 }
 0x868   : > { %5785 = vmatpush1.bf16.msra.mxu1 %v5403_v13  ;;  %5622 = vmatprep.subr.bf16.mxu0 %v5406_v18  ;;  %v5438_v13 = vunpack.c.l.s8.bf16 %v5238_v56  ;;  %v5237_v18 = vld [vmem:[%s9091_s22 + $0x240] sm:$0xff] }
 0x869   : > { %5786 = vmatprep.subr.bf16.mxu1 %v5408_v59  ;;  %v5437_v59 = vunpack.c.l.s8.bf16 %v5237_v18  ;;  %v5441_v45 = vunpack.c.h.s8.bf16 %v5237_v18  ;;  %v5260_v18 = vld [vmem:[%s9091_s22 + $0x2f8] sm:$0xff] }
 0x86b   : > { %5623 = vmatpush1.bf16.msra.mxu0 %v5405_v39  ;;  %v5442_v39 = vunpack.c.h.s8.bf16 %v5238_v56 }
 0x86c   : > { %5787 = vmatpush1.bf16.msra.mxu1 %v5407_v4  ;;  %5624 = vmatprep.subr.bf16.mxu0 %v5410_v43  ;;  %v5444_v4 = vunpack.c.h.s8.bf16 %v5240_v19  ;;  %v5242_v43 = vld [vmem:[%s9091_s22 + $0x268] sm:$0xff] }
 0x86d   : > { %5788 = vmatprep.subr.bf16.mxu1 %v5412_v17  ;;  %v5443_v17 = vunpack.c.h.s8.bf16 %v5239_v14  ;;  %v5446_v16 = vunpack.c.l.s8.bf16 %v5242_v43  ;;  %v5450_v21 = vunpack.c.h.s8.bf16 %v5242_v43 }
 0x86f   : > { %5625 = vmatpush1.bf16.msra.mxu0 %v5409_v46  ;;  %v5448_v46 = vunpack.c.l.s8.bf16 %v5244_v44 }
 0x870   : > { %5789 = vmatpush1.bf16.msra.mxu1 %v5411_v47  ;;  %5626 = vmatprep.subr.bf16.mxu0 %v5414_v35  ;;  %v5243_v47 = vld [vmem:[%s9091_s22 + $0x270] sm:$0xff]  ;;  %v5445_v35 = vunpack.c.l.s8.bf16 %v5241_v38 }
 0x871   : > { %5790 = vmatprep.subr.bf16.mxu1 %v5416_v53  ;;  %v5447_v57 = vunpack.c.l.s8.bf16 %v5243_v47  ;;  %v5452_v53 = vunpack.c.h.s8.bf16 %v5244_v44 }
 0x873   : > { %5627 = vmatpush1.bf16.msra.mxu0 %v5413_v32  ;;  %v5248_v32 = vld [vmem:[%s9091_s22 + $0x298] sm:$0xff] }
 0x874   : > { %5791 = vmatpush1.bf16.msra.mxu1 %v5415_v3  ;;  %5628 = vmatprep.subr.bf16.mxu0 %v5418_v33  ;;  %v5449_v3 = vunpack.c.h.s8.bf16 %v5241_v38  ;;  %v5451_v33 = vunpack.c.h.s8.bf16 %v5243_v47  ;;  %v5456_v23 = vunpack.c.l.s8.bf16 %v5248_v32  ;;  %v5460_v34 = vunpack.c.h.s8.bf16 %v5248_v32  ;;  %v9217_v38 = vld [vmem:[%s9091_s22 + $0x318] sm:$0xff] }
 0x875   : > { %5792 = vmatprep.subr.bf16.mxu1 %v5420_v2  ;;  %v5245_v2 = vld [vmem:[%s9091_s22 + $0x280] sm:$0xff]  ;;  %v9229_v32 = vld [vmem:[%s9078_s6] sm:$0xff]  ;;  %s882_s6 = scalar_lea.vmem [#allocation19], %s6632_s14 }
 0x876   : > { %v5457_v27 = vunpack.c.h.s8.bf16 %v5245_v2  ;;  %s6312_s18 = sshll.u32 %s882_s6, 4  ;;  %s9327_s18 = int_to_ptr.vmem [resolvable:$true] %s6312_s18 }
 0x877   : > { %5629 = vmatpush1.bf16.msra.mxu0 %v5417_v63  ;;  %v5453_v63 = vunpack.c.l.s8.bf16 %v5245_v2  ;;  %v5116_v2 = vrot.slane %v9229_v32, %v8378_v31  ;;  %s7512_s1 = scalar_lea.vmem %s9327_s18, 32 }
 0x878   : > { %5793 = vmatpush1.bf16.msra.mxu1 %v5419_v25  ;;  %5639 = vmatprep.subr.bf16.mxu0 %v5422_v28  ;;  %v5455_v25 = vunpack.c.l.s8.bf16 %v5247_v55  ;;  %v5458_v28 = vunpack.c.h.s8.bf16 %v5246_v61  ;;  %p7513_p7 = scmp.ne.s32.totalorder %s9327_s18, %s7512_s1 }
 0x879   : > { %5803 = vmatprep.subr.bf16.mxu1 %v5424_v12  ;;  %v5252_v12 = vld [vmem:[%s9091_s22 + $0x2b8] sm:$0xff] }
 0x87a   : > { %5631 = vmatmul.mubr.bf16.vlgmr.msra.gmra.mrb[44].mxu0 %v5551_v52  ;;  %p7514_p12 = pnand %p7513_p7, %p9473_p11 }
 0x87b   : > { %5795 = vmatmul.mubr.bf16.vlgmr.msra.gmra.mrb[44].mxu1 %v5551_v52  ;;  %5640 = vmatpush1.bf16.msra.mxu0 %v5421_v15  ;;  %v5459_v15 = vunpack.c.h.s8.bf16 %v5247_v55  ;;  %v5462_v52 = vunpack.c.l.s8.bf16 %v5250_v20 }
 0x87c   : > { %5804 = vmatpush1.bf16.msra.mxu1 %v5423_v62  ;;  %5641 = vmatprep.subr.bf16.mxu0 %v5426_v54  ;;  %v5249_v62 = vld [vmem:[%s9091_s22 + $0x2a0] sm:$0xff]  ;;  %v5464_v54 = vunpack.c.l.s8.bf16 %v5252_v12  ;;  %p7515_p0 = pneg %p7514_p12 }
 0x87d   : > { %5805 = vmatprep.subr.bf16.mxu1 %v5428_v0  ;;  %v5251_v0 = vld [vmem:[%s9091_s22 + $0x2b0] sm:$0xff]  ;;  %v5461_v41 = vunpack.c.l.s8.bf16 %v5249_v62 }
 0x87e   : > { %v5463_v37 = vunpack.c.l.s8.bf16 %v5251_v0  ;;  %v5467_v26 = vunpack.c.h.s8.bf16 %v5251_v0 }
 0x87f   : > { %5642 = vmatpush1.bf16.msra.mxu0 %v5425_v42  ;;  %v5466_v42 = vunpack.c.h.s8.bf16 %v5250_v20 }
 0x880   : > { %5806 = vmatpush1.bf16.msra.mxu1 %v5427_v1  ;;  %5643 = vmatprep.subr.bf16.mxu0 %v5430_v48  ;;  %v5468_v1 = vunpack.c.h.s8.bf16 %v5252_v12  ;;  %v5254_v48 = vld [vmem:[%s9091_s22 + $0x2c8] sm:$0xff] }
 0x881   : > { %5807 = vmatprep.subr.bf16.mxu1 %v5432_v50  ;;  %v5465_v50 = vunpack.c.h.s8.bf16 %v5249_v62 }
 0x883   : > { %5644 = vmatpush1.bf16.msra.mxu0 %v5429_v5  ;;  %v5470_v5 = vunpack.c.l.s8.bf16 %v5254_v48 }
 0x884   : > { %5808 = vmatpush1.bf16.msra.mxu1 %v5431_v29  ;;  %5645 = vmatprep.subr.bf16.mxu0 %v5434_v40  ;;  %v5253_v29 = vld [vmem:[%s9091_s22 + $0x2c0] sm:$0xff]  ;;  %v5472_v40 = vunpack.c.l.s8.bf16 %v5256_v49 }
 0x885   : > { %5809 = vmatprep.subr.bf16.mxu1 %v5436_v51  ;;  %v5255_v51 = vld [vmem:[%s9091_s22 + $0x2d0] sm:$0xff]  ;;  %v5469_v56 = vunpack.c.l.s8.bf16 %v5253_v29 }
 0x886   : > { %v5471_v19 = vunpack.c.l.s8.bf16 %v5255_v51  ;;  %v5475_v14 = vunpack.c.h.s8.bf16 %v5255_v51  ;;  %v5266_v51 = vld [vmem:[%s9091_s22 + $0x328] sm:$0xff] }
 0x887   : > { %5646 = vmatpush1.bf16.msra.mxu0 %v5433_v58  ;;  %v5474_v58 = vunpack.c.h.s8.bf16 %v5254_v48 }
 0x888   : > { %5810 = vmatpush1.bf16.msra.mxu1 %v5435_v60  ;;  %5647 = vmatprep.subr.bf16.mxu0 %v5438_v13  ;;  %v5476_v60 = vunpack.c.h.s8.bf16 %v5256_v49  ;;  %v5258_v13 = vld [vmem:[%s9091_s22 + $0x2e8] sm:$0xff] }
 0x889   : > { %5811 = vmatprep.subr.bf16.mxu1 %v5440_v8  ;;  %v5473_v8 = vunpack.c.h.s8.bf16 %v5253_v29 }
 0x88b   : > { %5648 = vmatpush1.bf16.msra.mxu0 %v5437_v59  ;;  %v5478_v59 = vunpack.c.l.s8.bf16 %v5258_v13 }
 0x88c   : > { %5812 = vmatpush1.bf16.msra.mxu1 %v5439_v11  ;;  %5649 = vmatprep.subr.bf16.mxu0 %v5442_v39  ;;  %v5257_v11 = vld [vmem:[%s9091_s22 + $0x2e0] sm:$0xff]  ;;  %v5480_v39 = vunpack.c.l.s8.bf16 %v5260_v18 }
 0x88d   : > { %5813 = vmatprep.subr.bf16.mxu1 %v5444_v4  ;;  %v5259_v4 = vld [vmem:[%s9091_s22 + $0x2f0] sm:$0xff]  ;;  %v5477_v43 = vunpack.c.l.s8.bf16 %v5257_v11 }
 0x88e   : > { %v5479_v44 = vunpack.c.l.s8.bf16 %v5259_v4  ;;  %v5483_v47 = vunpack.c.h.s8.bf16 %v5259_v4 }
 0x88f   : > { %5650 = vmatpush1.bf16.msra.mxu0 %v5441_v45  ;;  %v5482_v45 = vunpack.c.h.s8.bf16 %v5258_v13  ;;  %v5494_v13 = vunpack.c.l.s8.bf16 %v5266_v51 }
 0x890   : > { %5814 = vmatpush1.bf16.msra.mxu1 %v5443_v17  ;;  %5651 = vmatprep.subr.bf16.mxu0 %v5446_v16  ;;  %v5484_v17 = vunpack.c.h.s8.bf16 %v5260_v18  ;;  %v9214_v16 = vld [vmem:[%s9091_s22 + $0x308] sm:$0xff] }
 0x891   : > { %5815 = vmatprep.subr.bf16.mxu1 %v5448_v46  ;;  %v5481_v46 = vunpack.c.h.s8.bf16 %v5257_v11  ;;  %v5490_v29 = vunpack.c.h.s8.bf16 %v9214_v16 }
 0x893   : > { %5652 = vmatpush1.bf16.msra.mxu0 %v5445_v35  ;;  %v5486_v35 = vunpack.c.l.s8.bf16 %v9214_v16 }
 0x894   : > { %5816 = vmatpush1.bf16.msra.mxu1 %v5447_v57  ;;  %5653 = vmatprep.subr.bf16.mxu0 %v5450_v21  ;;  %v5488_v57 = vunpack.c.l.s8.bf16 %v9217_v38  ;;  %v9222_v21 = vld [vmem:[%s9069_s26] sm:$0xff]  ;;  %s6738_s26 = sshll.u32 %s9458_s29, 5  ;;  %s7613_s29 = smov [#allocation19]  }
 0x895   : > { %5817 = vmatprep.subr.bf16.mxu1 %v5452_v53  ;;  %v5062_v53 = vrot.slane %v9222_v21, %v8372_v24  ;;  %v5066_v61 = vrot.slane %v9222_v21, %v8378_v31  ;;  %s9325_s16 = scalar_lea.hbm %s9472_s20, %s6738_s26 }
 0x897   : > { %5654 = vmatpush1.bf16.msra.mxu0 %v5449_v3  ;;  %v5112_v3 = vrot.slane %v9229_v32, %v8372_v24 }
 0x898   : > { %5818 = vmatpush1.bf16.msra.mxu1 %v5451_v33  ;;  %5655 = vmatprep.subr.bf16.mxu0 %v5454_v22  ;;  %v5074_v33 = vrot.slane %v9222_v21, %v8380_v36 }
 0x899   : > { %5819 = vmatprep.subr.bf16.mxu1 %v5456_v23 }
 0x89b   : > { %5656 = vmatpush1.bf16.msra.mxu0 %v5453_v63 }
 0x89c   : > { %5820 = vmatpush1.bf16.msra.mxu1 %v5455_v25  ;;  %5657 = vmatprep.subr.bf16.mxu0 %v5458_v28  ;;  %v5124_v25 = vrot.slane %v9229_v32, %v8380_v36 }
 0x89d   : > { %5821 = vmatprep.subr.bf16.mxu1 %v5460_v34 }
 0x89f   : > { %5658 = vmatpush1.bf16.msra.mxu0 %v5457_v27 }
 0x8a0   : > { %5822 = vmatpush1.bf16.msra.mxu1 %v5459_v15  ;;  %5659 = vmatprep.subr.bf16.mxu0 %v5462_v52 }
 0x8a1   : > { %5823 = vmatprep.subr.bf16.mxu1 %v5464_v54 }
 0x8a3   : > { %5660 = vmatpush1.bf16.msra.mxu0 %v5461_v41  ;;  %v5261_v41 = vld [vmem:[%s9091_s22 + $0x300] sm:$0xff] }
 0x8a4   : > { %5824 = vmatpush1.bf16.msra.mxu1 %v5463_v37  ;;  %5661 = vmatprep.subr.bf16.mxu0 %v5466_v42  ;;  %v5263_v37 = vld [vmem:[%s9091_s22 + $0x310] sm:$0xff]  ;;  %v5485_v49 = vunpack.c.l.s8.bf16 %v5261_v41 }
 0x8a5   : > { %5825 = vmatprep.subr.bf16.mxu1 %v5468_v1 }
 0x8a7   : > { %5662 = vmatpush1.bf16.msra.mxu0 %v5465_v50  ;;  %v5487_v50 = vunpack.c.l.s8.bf16 %v5263_v37 }
 0x8a8   : > { %5826 = vmatpush1.bf16.msra.mxu1 %v5467_v26  ;;  %5663 = vmatprep.subr.bf16.mxu0 %v5470_v5 }
 0x8a9   : > { %5827 = vmatprep.subr.bf16.mxu1 %v5472_v40  ;;  %v5492_v40 = vunpack.c.h.s8.bf16 %v9217_v38 }
 0x8ab   : > { %5664 = vmatpush1.bf16.msra.mxu0 %v5469_v56  ;;  %v5268_v56 = vld [vmem:[%s9091_s22 + $0x338] sm:$0xff] }
 0x8ac   : > { %5828 = vmatpush1.bf16.msra.mxu1 %v5471_v19  ;;  %5665 = vmatprep.subr.bf16.mxu0 %v5474_v58  ;;  %v5489_v58 = vunpack.c.h.s8.bf16 %v5261_v41  ;;  %v5496_v18 = vunpack.c.l.s8.bf16 %v5268_v56  ;;  %v5500_v4 = vunpack.c.h.s8.bf16 %v5268_v56  ;;  %v5279_v41 = vld [vmem:[%s9091_s22 + $0x390] sm:$0xff] }
 0x8ad   : > { %5829 = vmatprep.subr.bf16.mxu1 %v5476_v60  ;;  %v5491_v60 = vunpack.c.h.s8.bf16 %v5263_v37 }
 0x8af   : > { %5666 = vmatpush1.bf16.msra.mxu0 %v5473_v8  ;;  %v5265_v8 = vld [vmem:[%s9091_s22 + $0x320] sm:$0xff] }
 0x8b0   : > { %5830 = vmatpush1.bf16.msra.mxu1 %v5475_v14  ;;  %5667 = vmatprep.subr.bf16.mxu0 %v5478_v59  ;;  %v5267_v14 = vld [vmem:[%s9091_s22 + $0x330] sm:$0xff]  ;;  %v5493_v59 = vunpack.c.l.s8.bf16 %v5265_v8 }
 0x8b1   : > { %5831 = vmatprep.subr.bf16.mxu1 %v5480_v39  ;;  %v5495_v11 = vunpack.c.l.s8.bf16 %v5267_v14  ;;  %v5498_v39 = vunpack.c.h.s8.bf16 %v5266_v51  ;;  %v5283_v51 = vld [vmem:[%s9091_s22 + $0x3b0] sm:$0xff] }
 0x8b3   : > { %5668 = vmatpush1.bf16.msra.mxu0 %v5477_v43  ;;  %v5270_v43 = vld [vmem:[%s9091_s22 + $0x348] sm:$0xff] }
 0x8b4   : > { %5832 = vmatpush1.bf16.msra.mxu1 %v5479_v44  ;;  %5669 = vmatprep.subr.bf16.mxu0 %v5482_v45  ;;  %v5272_v44 = vld [vmem:[%s9091_s22 + $0x358] sm:$0xff]  ;;  %v5497_v45 = vunpack.c.h.s8.bf16 %v5265_v8  ;;  %v5502_v16 = vunpack.c.l.s8.bf16 %v5270_v43 }
 0x8b5   : > { %5833 = vmatprep.subr.bf16.mxu1 %v5484_v17  ;;  %v5499_v17 = vunpack.c.h.s8.bf16 %v5267_v14  ;;  %v5504_v38 = vunpack.c.l.s8.bf16 %v5272_v44  ;;  %v5531_v14 = vunpack.c.h.s8.bf16 %v5283_v51 }
 0x8b7   : > { %5670 = vmatpush1.bf16.msra.mxu0 %v5481_v46  ;;  %v5269_v46 = vld [vmem:[%s9091_s22 + $0x340] sm:$0xff] }
 0x8b8   : > { %5834 = vmatpush1.bf16.msra.mxu1 %v5483_v47  ;;  %5680 = vmatprep.subr.bf16.mxu0 %v5486_v35  ;;  %v5271_v47 = vld [vmem:[%s9091_s22 + $0x350] sm:$0xff]  ;;  %v5501_v35 = vunpack.c.l.s8.bf16 %v5269_v46 }
 0x8b9   : > { %5844 = vmatprep.subr.bf16.mxu1 %v5488_v57  ;;  %v5503_v57 = vunpack.c.l.s8.bf16 %v5271_v47 }
 0x8cd   : > { %v4706_v22 = vpop.f32.mrb[40].mxu0 }
 0x8ce   : > { %v5087_v23 = vmul.f32 %v5062_v53, %v4706_v22  ;;  %v9237_v55 = vpop.f32.mrb[40].mxu1  ;;  %v4708_v63 = vpop.f32.mrb[41].mxu0  ;;  %v5506_v53 = vunpack.c.h.s8.bf16 %v5270_v43  ;;  %v5505_v22 = vunpack.c.h.s8.bf16 %v5269_v46  ;;  %v5070_v43 = vrot.slane %v9222_v21, %v8376_v30 }
 0x8cf   : > { %v5088_v28 = vmul.f32 %v5066_v61, %v4708_v63  ;;  %v5036_v34 = vpop.f32.mrb[41].mxu1  ;;  %v4710_v20 = vpop.f32.mrb[42].mxu0  ;;  %v5508_v61 = vunpack.c.h.s8.bf16 %v5272_v44  ;;  %v5120_v46 = vrot.slane %v9229_v32, %v8376_v30 }
 0x8d0   : > { %v5137_v24 = vadd.f32 %v5112_v3, %v5087_v23  ;;  %v5090_v12 = vmul.f32 %v5074_v33, %v5036_v34  ;;  %v5038_v27 = vpop.f32.mrb[42].mxu1  ;;  %v4711_v15 = vpop.f32.mrb[43].mxu0  ;;  %v5274_v3 = vld [vmem:[%s9091_s22 + $0x368] sm:$0xff]  ;;  %v5276_v33 = vld [vmem:[%s9091_s22 + $0x378] sm:$0xff] }
 0x8d1   : > { %v5138_v52 = vadd.f32 %v5116_v2, %v5088_v28  ;;  %v5039_v62 = vpop.f32.mrb[43].mxu1  ;;  %v5507_v2 = vunpack.c.h.s8.bf16 %v5271_v47  ;;  %v5510_v23 = vunpack.c.l.s8.bf16 %v5274_v3  ;;  %v5512_v63 = vunpack.c.l.s8.bf16 %v5276_v33  ;;  %v5275_v28 = vld [vmem:[%s9091_s22 + $0x370] sm:$0xff]  ;;  %v5278_v27 = vld [vmem:[%s9091_s22 + $0x388] sm:$0xff]  ;;  %v5280_v15 = vld [vmem:[%s9091_s22 + $0x398] sm:$0xff] }
 0x8d2   : > { %vm5145_vm11 = vcmp.ge.f32.partialorder %v5137_v24, 0.0  ;;  %v5153_v31 = vmul.f32 0.2, %v5137_v24  ;;  %v5140_v54 = vadd.f32 %v5124_v25, %v5090_v12  ;;  %v5273_v25 = vld [vmem:[%s9091_s22 + $0x360] sm:$0xff]  ;;  %v5511_v20 = vunpack.c.l.s8.bf16 %v5275_v28  ;;  %v5290_v47 = vld [vmem:[%s9091_s22 + $0x3e8] sm:$0xff] }
 0x8d3   : > { %v5154_v0 = vmul.f32 0.2, %v5138_v52  ;;  %vm5146_vm12 = vcmp.ge.f32.partialorder %v5138_v52, 0.0  ;;  %v5509_v34 = vunpack.c.l.s8.bf16 %v5273_v25  ;;  %v5516_v12 = vunpack.c.h.s8.bf16 %v5276_v33  ;;  %v5291_v33 = vld [vmem:[%s9091_s22 + $0x3f0] sm:$0xff] }
 0x8d4   : > { %v5161_v36 = vsel %vm5145_vm11, %v5137_v24, %v5153_v31  ;;  %v5156_v42 = vmul.f32 0.2, %v5140_v54  ;;  %vm5148_vm13 = vcmp.ge.f32.partialorder %v5140_v54, 0.0  ;;  %v5514_v24 = vunpack.c.h.s8.bf16 %v5274_v3  ;;  %v5289_v3 = vld [vmem:[%s9091_s22 + $0x3e0] sm:$0xff] }
 0x8d5   : > { %v5162_v1 = vsel %vm5146_vm12, %v5138_v52, %v5154_v0  ;;  %v5553_v5 = vpack.c.bf16 %v5161_v36, %v5161_v36  ;;  %v5513_v52 = vunpack.c.h.s8.bf16 %v5273_v25  ;;  %v5515_v62 = vunpack.c.h.s8.bf16 %v5275_v28  ;;  %v5277_v0 = vld [vmem:[%s9091_s22 + $0x380] sm:$0xff]  ;;  %v7096_v28 = vld [vmem:[%s9203_s27 + $0x40] sm:$0xff]  }
 0x8d6   : > { %v5554_v48 = vpack.c.bf16 %v5162_v1, %v5162_v1  ;;  %v5164_v26 = vsel %vm5148_vm13, %v5140_v54, %v5156_v42  ;;  %v5518_v31 = vunpack.c.l.s8.bf16 %v5278_v27  ;;  %v5520_v54 = vunpack.c.l.s8.bf16 %v5280_v15 }
 0x8d7   : > { %v5556_v19 = vpack.c.bf16 %v5164_v26, %v5164_v26  ;;  %v5517_v37 = vunpack.c.l.s8.bf16 %v5277_v0  ;;  %v5519_v36 = vunpack.c.l.s8.bf16 %v5279_v41  ;;  %v5522_v42 = vunpack.c.h.s8.bf16 %v5278_v27 }
 0x8d8   : > { %5671 = vmatprep.mubr.bf16.mxu0 %v5554_v48  ;;  %5835 = vmatprep.mubr.bf16.mxu1 %v5554_v48  ;;  %v5524_v1 = vunpack.c.h.s8.bf16 %v5280_v15  ;;  %v5282_v48 = vld [vmem:[%s9091_s22 + $0x3a8] sm:$0xff]  ;;  %v5523_v26 = vunpack.c.h.s8.bf16 %v5279_v41  ;;  %v5546_v30 = vunpack.c.h.s8.bf16 %v5290_v47  ;;  %v5547_v25 = vunpack.c.h.s8.bf16 %v5291_v33  ;;  %v7100_v15 = vld [vmem:[%s9203_s27 + $0x48] sm:$0xff]   ;;  %v7106_v41 = vld [vmem:[%s9203_s27 + $0x10] sm:$0xff]  }
 0x8d9   : > { %5672 = vmatmul.mubr.bf16.vlgmr.msra.gmra.mrb[44].mxu0 %v5553_v5  ;;  %5836 = vmatmul.mubr.bf16.vlgmr.msra.gmra.mrb[44].mxu1 %v5553_v5  ;;  %v5526_v5 = vunpack.c.l.s8.bf16 %v5282_v48 }
 0x8da   : > { %5681 = vmatpush1.bf16.msra.mxu0 %v5485_v49  ;;  %5845 = vmatpush1.bf16.msra.mxu1 %v5487_v50  ;;  %v5284_v49 = vld [vmem:[%s9091_s22 + $0x3b8] sm:$0xff]  ;;  %v5521_v50 = vunpack.c.h.s8.bf16 %v5277_v0 }
 0x8db   : > { %5712 = vmatprep.mubr.bf16.mxu0 %v5556_v19  ;;  %5876 = vmatprep.mubr.bf16.mxu1 %v5556_v19  ;;  %v5527_v19 = vunpack.c.l.s8.bf16 %v5283_v51  ;;  %v7105_v0 = vld [vmem:[%s9203_s27 + $0xd0] sm:$0xff]   ;;  %v7118_v51 = vld [vmem:[%s9203_s27 + $0x28] sm:$0xff]  }
 0x8dc   : > { %5682 = vmatprep.subr.bf16.mxu0 %v5490_v29  ;;  %5846 = vmatprep.subr.bf16.mxu1 %v5492_v40  ;;  %v5528_v29 = vunpack.c.l.s8.bf16 %v5284_v49  ;;  %v5281_v40 = vld [vmem:[%s9091_s22 + $0x3a0] sm:$0xff] }
 0x8dd   : > { %v5525_v56 = vunpack.c.l.s8.bf16 %v5281_v40  ;;  %v5529_v8 = vunpack.c.h.s8.bf16 %v5281_v40  ;;  %v7117_v40 = vld [vmem:[%s9203_s27 + $0xe8] sm:$0xff]  }
 0x8de   : > { %5683 = vmatpush1.bf16.msra.mxu0 %v5489_v58  ;;  %5847 = vmatpush1.bf16.msra.mxu1 %v5491_v60  ;;  %v5530_v58 = vunpack.c.h.s8.bf16 %v5282_v48  ;;  %v5532_v60 = vunpack.c.h.s8.bf16 %v5284_v49  ;;  %v7111_v48 = vld [vmem:[%s9203_s27 + $0x98] sm:$0xff]   ;;  %v7112_v49 = vld [vmem:[%s9203_s27 + $0x60] sm:$0xff]  }
 0x8df   : > { %5684 = vmatprep.subr.bf16.mxu0 %v5494_v13  ;;  %5848 = vmatprep.subr.bf16.mxu1 %v5496_v18  ;;  %v5286_v13 = vld [vmem:[%s9091_s22 + $0x3c8] sm:$0xff]  ;;  %v5288_v18 = vld [vmem:[%s9091_s22 + $0x3d8] sm:$0xff] }
 0x8e2   : > { %5685 = vmatpush1.bf16.msra.mxu0 %v5493_v59  ;;  %5849 = vmatpush1.bf16.msra.mxu1 %v5495_v11  ;;  %v5534_v59 = vunpack.c.l.s8.bf16 %v5286_v13  ;;  %v5536_v11 = vunpack.c.l.s8.bf16 %v5288_v18 }
 0x8e3   : > { %5686 = vmatprep.subr.bf16.mxu0 %v5498_v39  ;;  %5850 = vmatprep.subr.bf16.mxu1 %v5500_v4  ;;  %v5285_v39 = vld [vmem:[%s9091_s22 + $0x3c0] sm:$0xff]  ;;  %v5287_v4 = vld [vmem:[%s9091_s22 + $0x3d0] sm:$0xff] }
 0x8e4   : > { %v5533_v44 = vunpack.c.l.s8.bf16 %v5285_v39  ;;  %v5537_v21 = vunpack.c.h.s8.bf16 %v5285_v39  ;;  %v5911_v39 = vld [vmem:[%s782_s4] sm:$0xf] }
 0x8e6   : > { %5687 = vmatpush1.bf16.msra.mxu0 %v5497_v45  ;;  %5851 = vmatpush1.bf16.msra.mxu1 %v5499_v17  ;;  %v5535_v45 = vunpack.c.l.s8.bf16 %v5287_v4  ;;  %v5538_v17 = vunpack.c.h.s8.bf16 %v5286_v13  ;;  %v7123_v13 = vld [vmem:[%s9203_s27 + $0xb0] sm:$0xff]  }
 0x8e7   : > { %5688 = vmatprep.subr.bf16.mxu0 %v5502_v16  ;;  %5852 = vmatprep.subr.bf16.mxu1 %v5504_v38  ;;  %v5540_v16 = vunpack.c.h.s8.bf16 %v5288_v18  ;;  %v5089_v38 = vmul.f32 %v5070_v43, %v9237_v55  ;;  %v5541_v55 = vunpack.c.l.s8.bf16 %v5289_v3  ;;  %v7124_v18 = vld [vmem:[%s9203_s27 + $0x78] sm:$0xff]  }
 0x8ea   : > { %5689 = vmatpush1.bf16.msra.mxu0 %v5501_v35  ;;  %5853 = vmatpush1.bf16.msra.mxu1 %v5503_v57  ;;  %v5292_v35 = vld [vmem:[%s9091_s22 + $0x3f8] sm:$0xff]  ;;  %v5539_v57 = vunpack.c.h.s8.bf16 %v5287_v4 }
 0x8eb   : > { %5690 = vmatprep.subr.bf16.mxu0 %v5506_v53  ;;  %5854 = vmatprep.subr.bf16.mxu1 %v5508_v61  ;;  %v5542_v53 = vunpack.c.l.s8.bf16 %v5290_v47  ;;  %v5544_v61 = vunpack.c.l.s8.bf16 %v5292_v35  ;;  %v5548_v32 = vunpack.c.h.s8.bf16 %v5292_v35  ;;  %v5920_v47 = vrot.slane %v5911_v39, %v8360_v9 }
 0x8ec   : > { %v5928_v35 = vrot.slane %v5911_v39, %v8362_v10 }
 0x8ee   : > { %5691 = vmatpush1.bf16.msra.mxu0 %v5505_v22  ;;  %5855 = vmatpush1.bf16.msra.mxu1 %v5507_v2  ;;  %v5139_v22 = vadd.f32 %v5120_v46, %v5089_v38  ;;  %v5543_v2 = vunpack.c.l.s8.bf16 %v5291_v33 }
 0x8ef   : > { %5692 = vmatprep.subr.bf16.mxu0 %v5510_v23  ;;  %5856 = vmatprep.subr.bf16.mxu1 %v5512_v63  ;;  %v5545_v63 = vunpack.c.h.s8.bf16 %v5289_v3 }
 0x8f0   : > { %v5155_v23 = vmul.f32 0.2, %v5139_v22  ;;  %vm5147_vm14 = vcmp.ge.f32.partialorder %v5139_v22, 0.0 }
 0x8f2   : > { %5693 = vmatpush1.bf16.msra.mxu0 %v5509_v34  ;;  %5857 = vmatpush1.bf16.msra.mxu1 %v5511_v20  ;;  %v7097_v34 = vld [vmem:[%s9203_s27 + $0xc0] sm:$0xff]   ;;  %v5163_v20 = vsel %vm5147_vm14, %v5139_v22, %v5155_v23 }
 0x8f3   : > { %5694 = vmatprep.subr.bf16.mxu0 %v5514_v24  ;;  %5858 = vmatprep.subr.bf16.mxu1 %v5516_v12  ;;  %v7098_v24 = vld [vmem:[%s9203_s27] sm:$0xff]   ;;  %v5555_v27 = vpack.c.bf16 %v5163_v20, %v5163_v20 }
 0x8f4   : > { %v7099_v12 = vld [vmem:[%s9203_s27 + $0x80] sm:$0xff]  }
 0x8f6   : > { %5695 = vmatpush1.bf16.msra.mxu0 %v5513_v52  ;;  %5859 = vmatpush1.bf16.msra.mxu1 %v5515_v62  ;;  %v7101_v52 = vld [vmem:[%s9203_s27 + $0xc8] sm:$0xff]  }
 0x8f7   : > { %5696 = vmatprep.subr.bf16.mxu0 %v5518_v31  ;;  %5860 = vmatprep.subr.bf16.mxu1 %v5520_v54  ;;  %v7102_v62 = vld [vmem:[%s9203_s27 + $0x8] sm:$0xff]   ;;  %v7104_v54 = vld [vmem:[%s9203_s27 + $0x50] sm:$0xff]  }
 0x8f8   : > { %v7103_v31 = vld [vmem:[%s9203_s27 + $0x88] sm:$0xff]  }
 0x8fa   : > { %5697 = vmatpush1.bf16.msra.mxu0 %v5517_v37  ;;  %5861 = vmatpush1.bf16.msra.mxu1 %v5519_v36  ;;  %v7107_v37 = vld [vmem:[%s9203_s27 + $0x90] sm:$0xff]   ;;  %v7108_v36 = vld [vmem:[%s9203_s27 + $0x58] sm:$0xff]  }
 0x8fb   : > { %5698 = vmatprep.subr.bf16.mxu0 %v5522_v42  ;;  %5862 = vmatprep.subr.bf16.mxu1 %v5524_v1  ;;  %v7109_v42 = vld [vmem:[%s9203_s27 + $0xd8] sm:$0xff]  }
 0x8fc   : > { %v7110_v1 = vld [vmem:[%s9203_s27 + $0x18] sm:$0xff]  }
 0x8fe   : > { %5699 = vmatpush1.bf16.msra.mxu0 %v5521_v50  ;;  %5863 = vmatpush1.bf16.msra.mxu1 %v5523_v26  ;;  %v7113_v50 = vld [vmem:[%s9203_s27 + $0xe0] sm:$0xff]  }
 0x8ff   : > { %5700 = vmatprep.subr.bf16.mxu0 %v5526_v5  ;;  %5864 = vmatprep.subr.bf16.mxu1 %v5528_v29  ;;  %v7114_v26 = vld [vmem:[%s9203_s27 + $0x20] sm:$0xff]   ;;  %v7116_v29 = vld [vmem:[%s9203_s27 + $0x68] sm:$0xff]  }
 0x900   : > { %v7115_v5 = vld [vmem:[%s9203_s27 + $0xa0] sm:$0xff]  }
 0x902   : > { %5701 = vmatpush1.bf16.msra.mxu0 %v5525_v56  ;;  %5865 = vmatpush1.bf16.msra.mxu1 %v5527_v19  ;;  %v7119_v56 = vld [vmem:[%s9203_s27 + $0xa8] sm:$0xff]   ;;  %v7120_v19 = vld [vmem:[%s9203_s27 + $0x70] sm:$0xff]  }
 0x903   : > { %5702 = vmatprep.subr.bf16.mxu0 %v5530_v58  ;;  %5866 = vmatprep.subr.bf16.mxu1 %v5532_v60  ;;  %v7121_v58 = vld [vmem:[%s9203_s27 + $0xf0] sm:$0xff]  }
 0x904   : > { %v7122_v60 = vld [vmem:[%s9203_s27 + $0x30] sm:$0xff]  }
 0x906   : > { %5703 = vmatpush1.bf16.msra.mxu0 %v5529_v8  ;;  %5867 = vmatpush1.bf16.msra.mxu1 %v5531_v14  ;;  %v7125_v8 = vld [vmem:[%s9203_s27 + $0xf8] sm:$0xff]  }
 0x907   : > { %5704 = vmatprep.subr.bf16.mxu0 %v5534_v59  ;;  %5868 = vmatprep.subr.bf16.mxu1 %v5536_v11  ;;  %v7126_v14 = vld [vmem:[%s9203_s27 + $0x38] sm:$0xff]  }
 0x908   : > { %v7127_v59 = vld [vmem:[%s9203_s27 + $0xb8] sm:$0xff]   ;;  %s7516_s27 = sshll.u32 %s7613_s29, 4  ;;  %s7517_s27 = int_to_ptr.vmem [resolvable:$false] %s7516_s27 }
 0x909   : > { %v5885_v11 = vld [vmem:[%s773_s17] sm:$0xf]  ;;  %s7518_s21 = scalar_lea.vmem %s7517_s27, 64  ;;  %p7519_p13 = scmp.lt.s32.totalorder %s9327_s18, %s7517_s27 }
 0x90a   : > { %5705 = vmatpush1.bf16.msra.mxu0 %v5533_v44  ;;  %5869 = vmatpush1.bf16.msra.mxu1 %v5535_v45  ;;  %v5890_v4 = vrot.slane %v5885_v11, %v8351_v6  ;;  %v5898_v43 = vrot.slane %v5885_v11, %v8353_v7  ;;  %v5894_v44 = vrot.slane %v5885_v11, %v8360_v9  ;;  %p7520_p8 = scmp.lt.s32.totalorder %s7518_s21, %s7512_s1 }
 0x90b   : > { %5706 = vmatprep.subr.bf16.mxu0 %v5538_v17  ;;  %5870 = vmatprep.subr.bf16.mxu1 %v5540_v16  ;;  %v5902_v45 = vrot.slane %v5885_v11, %v8362_v10  ;;  %v5916_v17 = vrot.slane %v5911_v39, %v8351_v6  ;;  %v5924_v16 = vrot.slane %v5911_v39, %v8353_v7 }
 0x90c   : > { %p7521_p10 = por %p7520_p8, %p7519_p13 }
 0x90e   : > { %5707 = vmatpush1.bf16.msra.mxu0 %v5537_v21  ;;  %5871 = vmatpush1.bf16.msra.mxu1 %v5539_v57  ;;  %p7522_p1 = pnand %p7521_p10, %p7515_p0 }
 0x90f   : > { %5708 = vmatprep.subr.bf16.mxu0 %v5542_v53  ;;  %5872 = vmatprep.subr.bf16.mxu1 %v5544_v61 }
 0x912   : > { %5709 = vmatpush1.bf16.msra.mxu0 %v5541_v55  ;;  %5873 = vmatpush1.bf16.msra.mxu1 %v5543_v2 }
 0x913   : > { %5710 = vmatprep.subr.bf16.mxu0 %v5546_v30  ;;  %5874 = vmatprep.subr.bf16.mxu1 %v5548_v32 }
 0x916   : > { %5711 = vmatpush1.bf16.msra.mxu0 %v5545_v63  ;;  %5875 = vmatpush1.bf16.msra.mxu1 %v5547_v25 }
 0x917   : > { %6756 = vmatprep.subr.bf16.mxu0 %v7096_v28  ;;  %6778 = vmatprep.subr.bf16.mxu1 %v7097_v34 }
 0x919   : > { %5713 = vmatmul.mubr.bf16.vlgmr.msra.gmra.mrb[44].mxu0 %v5555_v27  ;;  %5877 = vmatmul.mubr.bf16.vlgmr.msra.gmra.mrb[44].mxu1 %v5555_v27 }
 0x91a   : > { %6757 = vmatpush3.bf16.msra.mxu0 %v7098_v24  ;;  %6779 = vmatpush3.bf16.msra.mxu1 %v7099_v12 }
 0x91b   : > { %6758 = vmatprep.subr.bf16.mxu0 %v7100_v15  ;;  %6780 = vmatprep.subr.bf16.mxu1 %v7101_v52 }
 0x91e   : > { %6759 = vmatpush3.bf16.msra.mxu0 %v7102_v62  ;;  %6781 = vmatpush3.bf16.msra.mxu1 %v7103_v31 }
 0x91f   : > { %6760 = vmatprep.subr.bf16.mxu0 %v7104_v54  ;;  %6782 = vmatprep.subr.bf16.mxu1 %v7105_v0  ;;  %v6704_v54 = vld [vmem:[%s790_s0] ss:$0 sm:$0xff] }
 0x922   : > { %6761 = vmatpush3.bf16.msra.mxu0 %v7106_v41  ;;  %6783 = vmatpush3.bf16.msra.mxu1 %v7107_v37 }
 0x923   : > { %6762 = vmatprep.subr.bf16.mxu0 %v7108_v36  ;;  %6784 = vmatprep.subr.bf16.mxu1 %v7109_v42 }
 0x926   : > { %6763 = vmatpush3.bf16.msra.mxu0 %v7110_v1  ;;  %6785 = vmatpush3.bf16.msra.mxu1 %v7111_v48 }
 0x927   : > { %6764 = vmatprep.subr.bf16.mxu0 %v7112_v49  ;;  %6786 = vmatprep.subr.bf16.mxu1 %v7113_v50 }
 0x92a   : > { %6765 = vmatpush3.bf16.msra.mxu0 %v7114_v26  ;;  %6787 = vmatpush3.bf16.msra.mxu1 %v7115_v5 }
 0x92b   : > { %6766 = vmatprep.subr.bf16.mxu0 %v7116_v29  ;;  %6788 = vmatprep.subr.bf16.mxu1 %v7117_v40 }
 0x92e   : > { %6767 = vmatpush3.bf16.msra.mxu0 %v7118_v51  ;;  %6789 = vmatpush3.bf16.msra.mxu1 %v7119_v56 }
 0x92f   : > { %6768 = vmatprep.subr.bf16.mxu0 %v7120_v19  ;;  %6790 = vmatprep.subr.bf16.mxu1 %v7121_v58 }
 0x932   : > { %6769 = vmatpush3.bf16.msra.mxu0 %v7122_v60  ;;  %6791 = vmatpush3.bf16.msra.mxu1 %v7123_v13 }
 0x933   : > { %6770 = vmatprep.subr.bf16.mxu0 %v7124_v18  ;;  %6792 = vmatprep.subr.bf16.mxu1 %v7125_v8 }
 0x936   : > { %6771 = vmatpush3.bf16.msra.mxu0 %v7126_v14  ;;  %6793 = vmatpush3.bf16.msra.mxu1 %v7127_v59 }
 0x9ec   : > { %v5714_v38 = vpop.f32.mrb[44].mxu0  ;;  %v5878_v46 = vpop.f32.mrb[44].mxu1 }
 0x9ed   : > { %v5907_v21 = vmul.f32 %v5890_v4, %v5714_v38  ;;  %v5909_v57 = vmul.f32 %v5898_v43, %v5878_v46  ;;  %v5716_v53 = vpop.f32.mrb[45].mxu0  ;;  %v5880_v61 = vpop.f32.mrb[45].mxu1 }
 0x9ee   : > { %v5908_v3 = vmul.f32 %v5894_v44, %v5716_v53  ;;  %v5910_v33 = vmul.f32 %v5902_v45, %v5880_v61  ;;  %v5718_v22 = vpop.f32.mrb[46].mxu0  ;;  %v5882_v55 = vpop.f32.mrb[46].mxu1 }
 0x9ef   : > { %v5933_v2 = vadd.f32 %v5916_v17, %v5907_v21  ;;  %v5935_v30 = vadd.f32 %v5924_v16, %v5909_v57  ;;  %v5719_v32 = vpop.f32.mrb[47].mxu0  ;;  %v5883_v6 = vpop.f32.mrb[47].mxu1 }
 0x9f0   : > { %v5934_v23 = vadd.f32 %v5920_v47, %v5908_v3  ;;  %v5936_v7 = vadd.f32 %v5928_v35, %v5910_v33 }
 0x9f1   : > { %vm5937_vm15 = vcmp.ge.f32.partialorder %v5933_v2, 0.0  ;;  %v5941_v63 = vmul.f32 0.2, %v5933_v2  ;;  %vm5939_vm0 = vcmp.ge.f32.partialorder %v5935_v30, 0.0  ;;  %v5943_v9 = vmul.f32 0.2, %v5935_v30 }
 0x9f2   : > { %v5942_v25 = vmul.f32 0.2, %v5934_v23  ;;  %v5944_v10 = vmul.f32 0.2, %v5936_v7  ;;  %vm5938_vm1 = vcmp.ge.f32.partialorder %v5934_v23, 0.0  ;;  %vm5940_vm2 = vcmp.ge.f32.partialorder %v5936_v7, 0.0 }
 0x9f3   : > { %v5945_v28 = vsel %vm5937_vm15, %v5933_v2, %v5941_v63  ;;  %v5947_v34 = vsel %vm5939_vm0, %v5935_v30, %v5943_v9 }
 0x9f4   : > { %v5946_v20 = vsel %vm5938_vm1, %v5934_v23, %v5942_v25  ;;  %v5948_v24 = vsel %vm5940_vm2, %v5936_v7, %v5944_v10  ;;  %v5949_v15 = vpack.c.bf16 %v5945_v28, %v5945_v28  ;;  %v5951_v52 = vpack.c.bf16 %v5947_v34, %v5947_v34 }
 0x9f5   : > { %v5950_v12 = vpack.c.bf16 %v5946_v20, %v5946_v20  ;;  %v5952_v27 = vpack.c.bf16 %v5948_v24, %v5948_v24 }
 0x9f7   : > { %6248 = vmatprep.mubr.bf16.mxu0 %v5950_v12  ;;  %6288 = vmatprep.mubr.bf16.mxu1 %v5952_v27 }
 0x9f8   : > { %6249 = vmatmul.mubr.bf16.vlgmr.msra.gmra.mrb[48].mxu0 %v5949_v15  ;;  %6289 = vmatmul.mubr.bf16.vlgmr.msra.gmra.mrb[48].mxu1 %v5951_v52 }
 0xacb   : > { %v6772_v62 = vpop.f32.mrb[48].mxu0  ;;  %v6794_v31 = vpop.f32.mrb[48].mxu1 }
 0xacc   : > { %v6773_v0 = vpop.f32.mrb[49].mxu0  ;;  %v6795_v41 = vpop.f32.mrb[49].mxu1 }
 0xacd   : > { %v6774_v37 = vadd.f32 %v6773_v0, %v6772_v62  ;;  %v6796_v36 = vadd.f32 %v6795_v41, %v6794_v31  ;;  %v6775_v42 = vpop.f32.mrb[50].mxu0  ;;  %v6797_v1 = vpop.f32.mrb[50].mxu1 }
 0xace   : > { %v6776_v48 = vpop.f32.mrb[51].mxu0  ;;  %v6798_v49 = vpop.f32.mrb[51].mxu1 }
 0xacf   : > { %v6251_v50 = vadd.f32 %v6774_v37, %v6704_v54 }
 0xad1   : > { %v6291_v26 = vadd.f32 %v6796_v36, %v6251_v50 }
 0xad3   : > { %6297 = vst.msk [vmem:[%s882_s6] sm:$0x3] %vm6296_vm3, %v6291_v26 }
 0xad4   : > { %7525 = shalt.err (!%p7522_p1)
}
 0xad5   : > { %s7526_s30 = scalar_lea.hbm %s9325_s16, 32  ;;  %s7530_s14 = scalar_lea.hbm %s9472_s20, 192 }
 0xad6   : > { %p7527_p6 = scmp.ne.s32.totalorder %s9325_s16, %s7526_s30  ;;  %p7531_p4 = scmp.lt.u32.totalorder %s9325_s16, %s9472_s20 }
 0xad7   : > { %p7532_p9 = scmp.lt.u32.totalorder %s7530_s14, %s7526_s30  ;;  %p7534_p7 = scmp.lt.u32.totalorder %s7526_s30, %s9325_s16 }
 0xad8   : > { %p7528_p2 = pnand %p7527_p6, %p9473_p11 }
 0xad9   : > { %p7533_p5 = por %p7532_p9, %p7531_p4 }
 0xada   : > { %p7529_p3 = pneg %p7528_p2 }
 0xadb   : > { %p7535_p12 = por %p7534_p7, %p7533_p5 }
 0xadd   : > { %p7536_p0 = pnand %p7535_p12, %p7529_p3 }
 0xadf   : > { %7539 = shalt.err (!%p7536_p0)
}
 0xae0   : > { %6995 = dma.vmem_to_hbm [thread:$0]  (%p9473_p11), %s9327_s18, 32, %s9325_s16, %s6299_s25  }
 0xae1 PF: > { %s9474_s6 = sld [smem:[#allocation25_spill]]  ;;  %s9475_s22 = sld [smem:[#allocation33_spill]] }
 0xae2   : > { %p7051_p13 = scmp.ge.s32.totalorder %s7590_s24, 2 }
 0xae7   : > { %s6324_s19 = sand.u32 1, %s9474_s6   ;;  %p9476_p8 = scmp.ne.s32.totalorder %s9475_s22, 0 }
 0xae8   : > { %s6325_s1 = scalar_lea.sflag [#allocation4], %s6324_s19 }
 0xae9   : > { %p7039_p10 = pnand %p7051_p13, %p9476_p8 }
 0xaeb   : > { %7573 = dma.done.wait (!%p7039_p10), %s6325_s1, 32  }
 0xaec   : > { %7575 = vsyncadd (!%p7039_p10), %s6325_s1, 4294967264  ;;  %s9477_s24 = sld [smem:[#allocation29_spill]]  ;;  %s9478_s21 = sld [smem:[#allocation26_spill]] }
 0xaed   : > { %s9479_s22 = sld [smem:[#allocation27_spill]]  ;;  %s9480_s23 = sld [smem:[#allocation30_spill]] }
 0xaf2   : > { %p29_p1 = scmp.ge.s32.totalorder %s9477_s24, 8  }
 0xaf4   :  { %31 = sbr.rel (!%p29_p1) target bundleno = 13 (0xd), region = 236 }
 0xafb   :  { %6330 = vsyncpa [#allocation3], 1 }
 0xafc   :  { %6332 = vsyncpa [#allocation3 + $0x1], 1 }
 0xafd   :  { %6333 = vsyncpa [#allocation6], 1 }
 0xafe   :  { %6334 = vsyncpa [#allocation9], 1 }
 0xaff   :  { %6335 = vsyncpa [#allocation4], 1 }
 0xb00   :  { %6337 = vsyncpa [#allocation4 + $0x1], 1 }

</bundles_post_ra>
